<compile_context>
chip_gen: v7x
topology: tpu7x:2x2x1
jax: 0.10.0
libtpu: 0.0.40
codegen_flags: <defaults>
</compile_context>

<pallas_src>
import functools
import math

import jax
import jax.numpy as jnp
from jax.experimental import pallas as pl
from jax.experimental.pallas import tpu as pltpu


def dvae_kernel(*refs, training: bool):
    if training:
        (x_ref, eps_ref,
         w1s_ref, b11_ref, w12_ref, b12_ref, w2f_ref, b2f_ref,
         wg1_ref, bg1_ref, wg2_ref, bg2_ref, wg3_ref, bg3_ref, wg4_ref, bg4_ref,
         wd_ref, bd_ref,
         z_ref, g_ref, d_ref, mu_ref, lv_ref) = refs
    else:
        (x_ref,
         w1s_ref, b11_ref, w12_ref, b12_ref, w2f_ref, b2f_ref,
         wg1_ref, bg1_ref, wg2_ref, bg2_ref, wg3_ref, bg3_ref, wg4_ref, bg4_ref,
         wd_ref, bd_ref,
         z_ref, g_ref, d_ref, mu_ref, lv_ref) = refs
        eps_ref = None

    H = w12_ref.shape[0]
    K = wd_ref.shape[0]
    bf = jnp.bfloat16

    def mm(act, w_ref):
        # bf16 operands into the MXU, fp32 accumulation.  If `act` is already
        # bf16 the astype is a no-op at trace time.
        return jnp.dot(act.astype(bf), w_ref[...],
                       preferred_element_type=jnp.float32)

    x = x_ref[...]                                          # bf16 (TB, V)

    # ---------------- encode (fc11 and fcs fused into one (V, 2H) dot) -------
    xw = mm(x, w1s_ref)                                     # (TB, 2H) fp32
    a1 = jnp.maximum(xw[:, :H] + b11_ref[...], 0.0).astype(bf)   # relu(fc11(x))
    e1 = jnp.maximum(mm(a1, w12_ref) + b12_ref[...], 0.0)        # relu(fc12(.))
    e1 = e1 + xw[:, H:]                                          # + fcs(x) (fp32)

    # ---------------- mu / logvar (fc21 and fc22 fused into one (H, 2K) dot) -
    ml = mm(e1, w2f_ref) + b2f_ref[...]                     # (TB, 2K) fp32
    mu = ml[:, :K]
    logvar = ml[:, K:]

    # ---------------- reparameterize ----------------
    if training:
        z = mu + eps_ref[...] * jnp.exp(0.5 * logvar)
    else:
        z = mu

    # ---------------- generate ----------------
    # F.normalize(z, p=2, dim=1, eps=1e-12) == z * rsqrt(max(sum(z^2), 1e-24))
    sumsq = jnp.sum(z * z, axis=-1, keepdims=True)
    h = z * jax.lax.rsqrt(jnp.maximum(sumsq, 1e-24))        # fp32

    g1 = jnp.maximum(mm(h, wg1_ref) + bg1_ref[...], 0.0).astype(bf)
    g1 = jnp.maximum(mm(g1, wg2_ref) + bg2_ref[...], 0.0).astype(bf)
    g1 = jnp.maximum(mm(g1, wg3_ref) + bg3_ref[...], 0.0).astype(bf)
    g4 = jnp.maximum(mm(g1, wg4_ref) + bg4_ref[...], 0.0)   # fp32 for residual
    g = g4 + h

    # ---------------- decode: softmax(fcd1(g), dim=1) ----------------
    logits = mm(g, wd_ref) + bd_ref[...]
    logits = logits - jnp.max(logits, axis=-1, keepdims=True)
    ex = jnp.exp(logits)
    d = ex * pl.reciprocal(jnp.sum(ex, axis=-1, keepdims=True), approx=True)

    # ---------------- write outputs ----------------
    z_ref[...] = z.astype(z_ref.dtype)
    g_ref[...] = g.astype(g_ref.dtype)
    d_ref[...] = d.astype(d_ref.dtype)
    mu_ref[...] = mu.astype(mu_ref.dtype)
    lv_ref[...] = logvar.astype(lv_ref.dtype)


def _pick_batch_tile(B):
    """Device-aware batch tile so the MXU M-dimension is filled.

    v5e (128x128 MXU): 128.  v6e (1 TC, 256-wide MXU): 256.  v7x (2 TCs,
    256-wide MXU): 256 only when B >= 512 so the "parallel" batch grid still
    has >= 2 steps to shard across the two TensorCores; otherwise 128."""
    try:
        kind = jax.devices()[0].device_kind.lower()
    except Exception:
        kind = ""
    two_cores = ("v7" in kind) or ("7x" in kind)
    wide_mxu = two_cores or ("v6" in kind) or ("6e" in kind)
    preferred = 256 if wide_mxu else 128
    if two_cores and B < 512:
        preferred = 128
    for t in (256, 128, 64, 32, 16, 8):
        if t <= preferred and t <= B and B % t == 0:
            return t
    return B


def dvae_forward(x, params, eps=None, *, training=False, batch_tile=None,
                 weight_buffer_count=1, out_dtype=jnp.float32,
                 dist_dtype=jnp.bfloat16):
    """Full DVAE forward.  Batch is tiled over a 1-D grid (marked "parallel"
    so v7x megacore splits it); all weights stay VMEM-resident via constant
    index_maps (single-buffered when supported) and are DMA'd once."""
    B, V = x.shape
    H = params["w12"].shape[0]
    K = params["wd"].shape[0]
    # The fused xw[:, :H]/xw[:, H:] and ml[:, :K]/ml[:, K:] column slices are
    # only free when they fall on lane-tile (128) boundaries.
    assert H % 128 == 0 and K % 128 == 0, (H, K)
    if training:
        assert eps is not None and eps.shape == (B, K)

    if batch_tile is None:
        batch_tile = _pick_batch_tile(B)
    TB = min(batch_tile, B)
    assert B % TB == 0 and TB % 8 == 0, "batch must tile into multiples of 8"
    grid = (B // TB,)

    # Feed x to the kernel in bf16: halves the dominant per-step input DMA and
    # removes an in-kernel VPU pack.  (Same values the fp32 reference sees at
    # its matmul inputs, since it casts to bf16 there anyway.)
    if x.dtype != jnp.bfloat16:
        x = x.astype(jnp.bfloat16)
    if training and eps.dtype != jnp.float32:
        eps = eps.astype(jnp.float32)

    weight_args = (
        params["w1s"], params["b11"], params["w12"], params["b12"],
        params["w2f"], params["b2f"],
        params["wg1"], params["bg1"], params["wg2"], params["bg2"],
        params["wg3"], params["bg3"], params["wg4"], params["bg4"],
        params["wd"], params["bd"],
    )

    def batch_spec(n):
        return pl.BlockSpec((TB, n), lambda i: (i, 0))

    if weight_buffer_count is None:
        def resident_spec(a):
            nd = a.ndim
            return pl.BlockSpec(a.shape, lambda i, _nd=nd: (0,) * _nd)
    else:
        pipeline_mode = pl.Buffered(weight_buffer_count)

        def resident_spec(a):
            nd = a.ndim
            return pl.BlockSpec(a.shape, lambda i, _nd=nd: (0,) * _nd,
                                pipeline_mode=pipeline_mode)

    in_arrays = (x,) + ((eps,) if training else ()) + weight_args
    in_specs = [batch_spec(V)]
    if training:
        in_specs.append(batch_spec(K))
    in_specs += [resident_spec(a) for a in weight_args]

    out_shape = (
        jax.ShapeDtypeStruct((B, K), out_dtype),   # z
        jax.ShapeDtypeStruct((B, K), out_dtype),   # g
        jax.ShapeDtypeStruct((B, V), dist_dtype),  # d = softmax(fcd1(g))
        jax.ShapeDtypeStruct((B, K), out_dtype),   # mu
        jax.ShapeDtypeStruct((B, K), out_dtype),   # logvar
    )
    out_specs = (batch_spec(K), batch_spec(K), batch_spec(V),
                 batch_spec(K), batch_spec(K))

    # VMEM limit derived from the actual footprint (weights * buffer count +
    # double-buffered per-step I/O + fp32 intermediates), with headroom.
    wbuf = weight_buffer_count if weight_buffer_count is not None else 2
    weight_bytes = sum(int(a.size) * a.dtype.itemsize for a in weight_args)
    step_bytes = (TB * V * x.dtype.itemsize
                  + (TB * K * 4 if training else 0)
                  + 4 * TB * K * jnp.dtype(out_dtype).itemsize
                  + TB * V * jnp.dtype(dist_dtype).itemsize)
    act_bytes = TB * (2 * H + 2 * K + 2 * V) * 4
    need = wbuf * weight_bytes + 2 * step_bytes + act_bytes
    vmem_limit = int(min(max(32 << 20, int(1.5 * need) + (8 << 20)), 96 << 20))

    # Advisory cost hint for XLA's scheduler around the custom call.
    flops = 2 * B * (V * 2 * H + H * H + H * 2 * K + 4 * K * K + K * V)
    transcendentals = B * V + 2 * B + (B * K if training else 0)
    bytes_accessed = (x.size * x.dtype.itemsize
                      + (eps.size * eps.dtype.itemsize if training else 0)
                      + weight_bytes
                      + sum(math.prod(s.shape) * jnp.dtype(s.dtype).itemsize
                            for s in out_shape))

    # TODO(synk): at realistic BOW vocab sizes (20k+) on v7x (64 MiB VMEM),
    # tile w1s over V rows (reduction grid axis + fp32 accumulator) and wd / d
    # over V output columns with a two-pass or online softmax; the
    # weights-resident design below assumes the small synthetic V used here
    # (on v5e/v6e a raised vmem_limit_bytes is enough at 20k vocab).
    return pl.pallas_call(
        functools.partial(dvae_kernel, training=training),
        grid=grid,
        in_specs=in_specs,
        out_specs=out_specs,
        out_shape=out_shape,
        compiler_params=pltpu.CompilerParams(
            dimension_semantics=("parallel",),
            vmem_limit_bytes=vmem_limit,
        ),
        cost_estimate=pl.CostEstimate(
            flops=flops,
            transcendentals=transcendentals,
            bytes_accessed=bytes_accessed,
        ),
    )(*in_arrays)


def init_params(key, bow_vocab_size, topic_num, hidden_dim):
    """Deterministic synthetic init in fp32.  Weights stored as (in, out) —
    transposed relative to PyTorch nn.Linear's (out, in)."""
    V, K, H = bow_vocab_size, topic_num, hidden_dim
    ks = jax.random.split(key, 20)

    def w(k, fan_in, fan_out):
        bound = 1.0 / jnp.sqrt(fan_in)
        return jax.random.uniform(k, (fan_in, fan_out), jnp.float32, -bound, bound)

    def b(k, fan_in, fan_out):
        bound = 1.0 / jnp.sqrt(fan_in)
        return jax.random.uniform(k, (1, fan_out), jnp.float32, -bound, bound)

    return {
        "w11": w(ks[0], V, H), "b11": b(ks[1], V, H),
        "w12": w(ks[2], H, H), "b12": b(ks[3], H, H),
        "w21": w(ks[4], H, K), "b21": b(ks[5], H, K),
        "w22": w(ks[6], H, K), "b22": b(ks[7], H, K),
        "ws":  w(ks[8], V, H),                              # fcs: no bias
        "wg1": w(ks[9], K, K), "bg1": b(ks[10], K, K),
        "wg2": w(ks[11], K, K), "bg2": b(ks[12], K, K),
        "wg3": w(ks[13], K, K), "bg3": b(ks[14], K, K),
        "wg4": w(ks[15], K, K), "bg4": b(ks[16], K, K),
        "wd":  w(ks[17], K, V), "bd":  b(ks[18], K, V),
    }


def pack_params(p):
    """Fuse paired matmuls and cast weights to bf16 (biases stay fp32)."""
    bf = jnp.bfloat16
    return {
        "w1s": jnp.concatenate([p["w11"], p["ws"]], axis=1).astype(bf),  # (V, 2H)
        "b11": p["b11"],
        "w12": p["w12"].astype(bf), "b12": p["b12"],
        "w2f": jnp.concatenate([p["w21"], p["w22"]], axis=1).astype(bf),  # (H, 2K)
        "b2f": jnp.concatenate([p["b21"], p["b22"]], axis=1),
        "wg1": p["wg1"].astype(bf), "bg1": p["bg1"],
        "wg2": p["wg2"].astype(bf), "bg2": p["bg2"],
        "wg3": p["wg3"].astype(bf), "bg3": p["bg3"],
        "wg4": p["wg4"].astype(bf), "bg4": p["bg4"],
        "wd":  p["wd"].astype(bf),  "bd":  p["bd"],
    }


def _reference(x, eps, p, training=False):
    """Plain-JAX reference mirroring the PyTorch forward with the same bf16
    weight quantization / fp32 accumulation as the kernel."""
    bf = jnp.bfloat16

    def mm(a, w):
        return jnp.dot(a.astype(bf), w.astype(bf),
                       preferred_element_type=jnp.float32)

    e1 = jax.nn.relu(mm(x, p["w11"]) + p["b11"])
    e1 = jax.nn.relu(mm(e1, p["w12"]) + p["b12"])
    e1 = e1 + mm(x, p["ws"])
    mu = mm(e1, p["w21"]) + p["b21"]
    lv = mm(e1, p["w22"]) + p["b22"]
    z = mu + eps * jnp.exp(0.5 * lv) if training else mu
    h = z / jnp.maximum(jnp.linalg.norm(z, axis=-1, keepdims=True), 1e-12)
    g1 = jax.nn.relu(mm(h, p["wg1"]) + p["bg1"])
    g1 = jax.nn.relu(mm(g1, p["wg2"]) + p["bg2"])
    g1 = jax.nn.relu(mm(g1, p["wg3"]) + p["bg3"])
    g1 = jax.nn.relu(mm(g1, p["wg4"]) + p["bg4"])
    g = g1 + h
    d = jax.nn.softmax(mm(g, p["wd"]) + p["bd"], axis=1)
    return z, g, d, mu, lv


if __name__ == "__main__":
    # Small synthetic shapes consistent with the module's forward
    # (x.view(-1, bow_vocab_size) -> 2-D bag-of-words input).  Batch is 256 so
    # the batch grid / MXU occupancy changes are actually exercised.
    B = 256          # batch
    V = 512          # bow_vocab_size
    K = 128          # topic_num
    H = 256          # hidden_dim

    key = jax.random.PRNGKey(0)
    kx, keps, kp = jax.random.split(key, 3)

    x = jax.random.uniform(kx, (B, V), jnp.float32)       # bag-of-words counts
    eps = jax.random.normal(keps, (B, K), jnp.float32)    # reparam noise (train)

    raw_params = init_params(kp, V, K, H)
    packed = pack_params(raw_params)

    names = ("z", "g", "d", "mu", "logvar")

    def run(training, eps_arg):
        try:
            outs = dvae_forward(x, packed, eps=eps_arg, training=training,
                                weight_buffer_count=1)
            jax.block_until_ready(outs)
            return outs
        except Exception:
            # TODO(synk): some JAX versions reject pl.Buffered(1) on pallas_call
            # BlockSpecs; fall back to default double-buffered resident weights.
            outs = dvae_forward(x, packed, eps=eps_arg, training=training,
                                weight_buffer_count=None)
            jax.block_until_ready(outs)
            return outs

    # ---- eval mode (self.training False -> z = mu); eps not passed at all ----
    outs = run(False, None)
    refs = _reference(x, eps, raw_params, training=False)
    for name, got, want in zip(names, outs, refs):
        assert got.shape == want.shape, (name, got.shape, want.shape)
        err = float(jnp.max(jnp.abs(got.astype(jnp.float32) - want)))
        tol = 2e-3 if name == "d" else 1e-3
        assert err < tol, (name, err)
    # softmax rows sum to ~1 (approx reciprocal denominator + bf16 d output)
    row_sum = jnp.sum(outs[2].astype(jnp.float32), axis=1)
    assert float(jnp.max(jnp.abs(row_sum - 1.0))) < 1e-2

    # ---- training mode reparameterization (torch.randn_like noise is
    #      supplied externally as `eps` so semantics match given same noise) ----
    outs_tr = run(True, eps)
    refs_tr = _reference(x, eps, raw_params, training=True)
    for name, got, want in zip(names, outs_tr, refs_tr):
        assert got.shape == want.shape, (name, got.shape, want.shape)
        err = float(jnp.max(jnp.abs(got.astype(jnp.float32) - want)))
        tol = 2e-3 if name == "d" else 1e-3
        assert err < tol, (name, err)

    print("KERNEL_OK")
</pallas_src>

<mosaic_0001>
module attributes {stable_mosaic.version = 11 : i64} {
  func.func @dvae_kernel(%arg0: i32, %arg1: memref<128x512xbf16, #tpu.memory_space<vmem>>, %arg2: memref<512x512xbf16, #tpu.memory_space<vmem>>, %arg3: memref<1x256xf32, #tpu.memory_space<vmem>>, %arg4: memref<256x256xbf16, #tpu.memory_space<vmem>>, %arg5: memref<1x256xf32, #tpu.memory_space<vmem>>, %arg6: memref<256x256xbf16, #tpu.memory_space<vmem>>, %arg7: memref<1x256xf32, #tpu.memory_space<vmem>>, %arg8: memref<128x128xbf16, #tpu.memory_space<vmem>>, %arg9: memref<1x128xf32, #tpu.memory_space<vmem>>, %arg10: memref<128x128xbf16, #tpu.memory_space<vmem>>, %arg11: memref<1x128xf32, #tpu.memory_space<vmem>>, %arg12: memref<128x128xbf16, #tpu.memory_space<vmem>>, %arg13: memref<1x128xf32, #tpu.memory_space<vmem>>, %arg14: memref<128x128xbf16, #tpu.memory_space<vmem>>, %arg15: memref<1x128xf32, #tpu.memory_space<vmem>>, %arg16: memref<128x512xbf16, #tpu.memory_space<vmem>>, %arg17: memref<1x512xf32, #tpu.memory_space<vmem>>, %arg18: memref<128x128xf32, #tpu.memory_space<vmem>>, %arg19: memref<128x128xf32, #tpu.memory_space<vmem>>, %arg20: memref<128x512xbf16, #tpu.memory_space<vmem>>, %arg21: memref<128x128xf32, #tpu.memory_space<vmem>>, %arg22: memref<128x128xf32, #tpu.memory_space<vmem>>) attributes {dimension_semantics = [#tpu.dimension_semantics<parallel>], iteration_bounds = array<i64: 2>, scalar_prefetch = 0 : i64, scratch_operands = 0 : i64, tpu.core_type = #tpu.core_type<tc>, window_params = [{transform_indices = @transform_0, window_bounds = array<i64: 128, 512>}, {pipeline_mode = #tpu.pipeline_mode<synchronous>, transform_indices = @transform_1, window_bounds = array<i64: 512, 512>}, {pipeline_mode = #tpu.pipeline_mode<synchronous>, transform_indices = @transform_2, window_bounds = array<i64: 1, 256>}, {pipeline_mode = #tpu.pipeline_mode<synchronous>, transform_indices = @transform_3, window_bounds = array<i64: 256, 256>}, {pipeline_mode = #tpu.pipeline_mode<synchronous>, transform_indices = @transform_4, window_bounds = array<i64: 1, 256>}, {pipeline_mode = #tpu.pipeline_mode<synchronous>, transform_indices = @transform_5, window_bounds = array<i64: 256, 256>}, {pipeline_mode = #tpu.pipeline_mode<synchronous>, transform_indices = @transform_6, window_bounds = array<i64: 1, 256>}, {pipeline_mode = #tpu.pipeline_mode<synchronous>, transform_indices = @transform_7, window_bounds = array<i64: 128, 128>}, {pipeline_mode = #tpu.pipeline_mode<synchronous>, transform_indices = @transform_8, window_bounds = array<i64: 1, 128>}, {pipeline_mode = #tpu.pipeline_mode<synchronous>, transform_indices = @transform_9, window_bounds = array<i64: 128, 128>}, {pipeline_mode = #tpu.pipeline_mode<synchronous>, transform_indices = @transform_10, window_bounds = array<i64: 1, 128>}, {pipeline_mode = #tpu.pipeline_mode<synchronous>, transform_indices = @transform_11, window_bounds = array<i64: 128, 128>}, {pipeline_mode = #tpu.pipeline_mode<synchronous>, transform_indices = @transform_12, window_bounds = array<i64: 1, 128>}, {pipeline_mode = #tpu.pipeline_mode<synchronous>, transform_indices = @transform_13, window_bounds = array<i64: 128, 128>}, {pipeline_mode = #tpu.pipeline_mode<synchronous>, transform_indices = @transform_14, window_bounds = array<i64: 1, 128>}, {pipeline_mode = #tpu.pipeline_mode<synchronous>, transform_indices = @transform_15, window_bounds = array<i64: 128, 512>}, {pipeline_mode = #tpu.pipeline_mode<synchronous>, transform_indices = @transform_16, window_bounds = array<i64: 1, 512>}, {transform_indices = @transform_17, window_bounds = array<i64: 128, 128>}, {transform_indices = @transform_18, window_bounds = array<i64: 128, 128>}, {transform_indices = @transform_19, window_bounds = array<i64: 128, 512>}, {transform_indices = @transform_20, window_bounds = array<i64: 128, 128>}, {transform_indices = @transform_21, window_bounds = array<i64: 128, 128>}]} {
    %c0 = arith.constant 0 : index
    %c0_0 = arith.constant 0 : index
    %0 = vector.load %arg1[%c0, %c0_0] : memref<128x512xbf16, #tpu.memory_space<vmem>>, vector<128x512xbf16>
    %c0_1 = arith.constant 0 : index
    %c0_2 = arith.constant 0 : index
    %1 = vector.load %arg2[%c0_1, %c0_2] : memref<512x512xbf16, #tpu.memory_space<vmem>>, vector<512x512xbf16>
    %cst = arith.constant dense<0.000000e+00> : vector<128x512xf32>
    %2 = tpu.matmul %0, %1, %cst {dimension_numbers = #tpu.dot_dimension_numbers<[1], [0], [0], [1], [0, 0, 1, 1], [], []>} : vector<128x512xbf16>, vector<512x512xbf16>, vector<128x512xf32> -> vector<128x512xf32>
    %3 = vector.extract_strided_slice %2 {offsets = [0, 0], sizes = [128, 256], strides = [1, 1]} : vector<128x512xf32> to vector<128x256xf32>
    %c0_3 = arith.constant 0 : index
    %c0_4 = arith.constant 0 : index
    %4 = vector.load %arg3[%c0_3, %c0_4] : memref<1x256xf32, #tpu.memory_space<vmem>>, vector<1x256xf32>
    %5 = vector.broadcast %4 : vector<1x256xf32> to vector<128x256xf32>
    %6 = arith.addf %3, %5 : vector<128x256xf32>
    %cst_5 = arith.constant 0.000000e+00 : f32
    %7 = vector.broadcast %cst_5 : f32 to vector<128x256xf32>
    %8 = arith.maximumf %6, %7 : vector<128x256xf32>
    %9 = arith.truncf %8 : vector<128x256xf32> to vector<128x256xbf16>
    %c0_6 = arith.constant 0 : index
    %c0_7 = arith.constant 0 : index
    %10 = vector.load %arg4[%c0_6, %c0_7] : memref<256x256xbf16, #tpu.memory_space<vmem>>, vector<256x256xbf16>
    %cst_8 = arith.constant dense<0.000000e+00> : vector<128x256xf32>
    %11 = tpu.matmul %9, %10, %cst_8 {dimension_numbers = #tpu.dot_dimension_numbers<[1], [0], [0], [1], [0, 0, 1, 1], [], []>} : vector<128x256xbf16>, vector<256x256xbf16>, vector<128x256xf32> -> vector<128x256xf32>
    %c0_9 = arith.constant 0 : index
    %c0_10 = arith.constant 0 : index
    %12 = vector.load %arg5[%c0_9, %c0_10] : memref<1x256xf32, #tpu.memory_space<vmem>>, vector<1x256xf32>
    %13 = vector.broadcast %12 : vector<1x256xf32> to vector<128x256xf32>
    %14 = arith.addf %11, %13 : vector<128x256xf32>
    %cst_11 = arith.constant 0.000000e+00 : f32
    %15 = vector.broadcast %cst_11 : f32 to vector<128x256xf32>
    %16 = arith.maximumf %14, %15 : vector<128x256xf32>
    %17 = vector.extract_strided_slice %2 {offsets = [0, 256], sizes = [128, 256], strides = [1, 1]} : vector<128x512xf32> to vector<128x256xf32>
    %18 = arith.addf %16, %17 : vector<128x256xf32>
    %19 = arith.truncf %18 : vector<128x256xf32> to vector<128x256xbf16>
    %c0_12 = arith.constant 0 : index
    %c0_13 = arith.constant 0 : index
    %20 = vector.load %arg6[%c0_12, %c0_13] : memref<256x256xbf16, #tpu.memory_space<vmem>>, vector<256x256xbf16>
    %cst_14 = arith.constant dense<0.000000e+00> : vector<128x256xf32>
    %21 = tpu.matmul %19, %20, %cst_14 {dimension_numbers = #tpu.dot_dimension_numbers<[1], [0], [0], [1], [0, 0, 1, 1], [], []>} : vector<128x256xbf16>, vector<256x256xbf16>, vector<128x256xf32> -> vector<128x256xf32>
    %c0_15 = arith.constant 0 : index
    %c0_16 = arith.constant 0 : index
    %22 = vector.load %arg7[%c0_15, %c0_16] : memref<1x256xf32, #tpu.memory_space<vmem>>, vector<1x256xf32>
    %23 = vector.broadcast %22 : vector<1x256xf32> to vector<128x256xf32>
    %24 = arith.addf %21, %23 : vector<128x256xf32>
    %25 = vector.extract_strided_slice %24 {offsets = [0, 0], sizes = [128, 128], strides = [1, 1]} : vector<128x256xf32> to vector<128x128xf32>
    %26 = vector.extract_strided_slice %24 {offsets = [0, 128], sizes = [128, 128], strides = [1, 1]} : vector<128x256xf32> to vector<128x128xf32>
    %27 = arith.mulf %25, %25 : vector<128x128xf32>
    %cst_17 = arith.constant dense<0.000000e+00> : vector<128xf32>
    %28 = vector.multi_reduction <add>, %27, %cst_17 [1] : vector<128x128xf32> to vector<128xf32>
    %29 = vector.shape_cast %28 : vector<128xf32> to vector<128x1xf32>
    %cst_18 = arith.constant 1.000000e-24 : f32
    %30 = vector.broadcast %cst_18 : f32 to vector<128x1xf32>
    %31 = arith.maximumf %29, %30 : vector<128x1xf32>
    %32 = math.rsqrt %31 : vector<128x1xf32>
    %33 = vector.broadcast %32 : vector<128x1xf32> to vector<128x128xf32>
    %34 = arith.mulf %25, %33 : vector<128x128xf32>
    %35 = arith.truncf %34 : vector<128x128xf32> to vector<128x128xbf16>
    %c0_19 = arith.constant 0 : index
    %c0_20 = arith.constant 0 : index
    %36 = vector.load %arg8[%c0_19, %c0_20] : memref<128x128xbf16, #tpu.memory_space<vmem>>, vector<128x128xbf16>
    %cst_21 = arith.constant dense<0.000000e+00> : vector<128x128xf32>
    %37 = tpu.matmul %35, %36, %cst_21 {dimension_numbers = #tpu.dot_dimension_numbers<[1], [0], [0], [1], [0, 0, 1, 1], [], []>} : vector<128x128xbf16>, vector<128x128xbf16>, vector<128x128xf32> -> vector<128x128xf32>
    %c0_22 = arith.constant 0 : index
    %c0_23 = arith.constant 0 : index
    %38 = vector.load %arg9[%c0_22, %c0_23] : memref<1x128xf32, #tpu.memory_space<vmem>>, vector<1x128xf32>
    %39 = vector.broadcast %38 : vector<1x128xf32> to vector<128x128xf32>
    %40 = arith.addf %37, %39 : vector<128x128xf32>
    %cst_24 = arith.constant 0.000000e+00 : f32
    %41 = vector.broadcast %cst_24 : f32 to vector<128x128xf32>
    %42 = arith.maximumf %40, %41 : vector<128x128xf32>
    %43 = arith.truncf %42 : vector<128x128xf32> to vector<128x128xbf16>
    %c0_25 = arith.constant 0 : index
    %c0_26 = arith.constant 0 : index
    %44 = vector.load %arg10[%c0_25, %c0_26] : memref<128x128xbf16, #tpu.memory_space<vmem>>, vector<128x128xbf16>
    %cst_27 = arith.constant dense<0.000000e+00> : vector<128x128xf32>
    %45 = tpu.matmul %43, %44, %cst_27 {dimension_numbers = #tpu.dot_dimension_numbers<[1], [0], [0], [1], [0, 0, 1, 1], [], []>} : vector<128x128xbf16>, vector<128x128xbf16>, vector<128x128xf32> -> vector<128x128xf32>
    %c0_28 = arith.constant 0 : index
    %c0_29 = arith.constant 0 : index
    %46 = vector.load %arg11[%c0_28, %c0_29] : memref<1x128xf32, #tpu.memory_space<vmem>>, vector<1x128xf32>
    %47 = vector.broadcast %46 : vector<1x128xf32> to vector<128x128xf32>
    %48 = arith.addf %45, %47 : vector<128x128xf32>
    %cst_30 = arith.constant 0.000000e+00 : f32
    %49 = vector.broadcast %cst_30 : f32 to vector<128x128xf32>
    %50 = arith.maximumf %48, %49 : vector<128x128xf32>
    %51 = arith.truncf %50 : vector<128x128xf32> to vector<128x128xbf16>
    %c0_31 = arith.constant 0 : index
    %c0_32 = arith.constant 0 : index
    %52 = vector.load %arg12[%c0_31, %c0_32] : memref<128x128xbf16, #tpu.memory_space<vmem>>, vector<128x128xbf16>
    %cst_33 = arith.constant dense<0.000000e+00> : vector<128x128xf32>
    %53 = tpu.matmul %51, %52, %cst_33 {dimension_numbers = #tpu.dot_dimension_numbers<[1], [0], [0], [1], [0, 0, 1, 1], [], []>} : vector<128x128xbf16>, vector<128x128xbf16>, vector<128x128xf32> -> vector<128x128xf32>
    %c0_34 = arith.constant 0 : index
    %c0_35 = arith.constant 0 : index
    %54 = vector.load %arg13[%c0_34, %c0_35] : memref<1x128xf32, #tpu.memory_space<vmem>>, vector<1x128xf32>
    %55 = vector.broadcast %54 : vector<1x128xf32> to vector<128x128xf32>
    %56 = arith.addf %53, %55 : vector<128x128xf32>
    %cst_36 = arith.constant 0.000000e+00 : f32
    %57 = vector.broadcast %cst_36 : f32 to vector<128x128xf32>
    %58 = arith.maximumf %56, %57 : vector<128x128xf32>
    %59 = arith.truncf %58 : vector<128x128xf32> to vector<128x128xbf16>
    %c0_37 = arith.constant 0 : index
    %c0_38 = arith.constant 0 : index
    %60 = vector.load %arg14[%c0_37, %c0_38] : memref<128x128xbf16, #tpu.memory_space<vmem>>, vector<128x128xbf16>
    %cst_39 = arith.constant dense<0.000000e+00> : vector<128x128xf32>
    %61 = tpu.matmul %59, %60, %cst_39 {dimension_numbers = #tpu.dot_dimension_numbers<[1], [0], [0], [1], [0, 0, 1, 1], [], []>} : vector<128x128xbf16>, vector<128x128xbf16>, vector<128x128xf32> -> vector<128x128xf32>
    %c0_40 = arith.constant 0 : index
    %c0_41 = arith.constant 0 : index
    %62 = vector.load %arg15[%c0_40, %c0_41] : memref<1x128xf32, #tpu.memory_space<vmem>>, vector<1x128xf32>
    %63 = vector.broadcast %62 : vector<1x128xf32> to vector<128x128xf32>
    %64 = arith.addf %61, %63 : vector<128x128xf32>
    %cst_42 = arith.constant 0.000000e+00 : f32
    %65 = vector.broadcast %cst_42 : f32 to vector<128x128xf32>
    %66 = arith.maximumf %64, %65 : vector<128x128xf32>
    %67 = arith.addf %66, %34 : vector<128x128xf32>
    %68 = arith.truncf %67 : vector<128x128xf32> to vector<128x128xbf16>
    %c0_43 = arith.constant 0 : index
    %c0_44 = arith.constant 0 : index
    %69 = vector.load %arg16[%c0_43, %c0_44] : memref<128x512xbf16, #tpu.memory_space<vmem>>, vector<128x512xbf16>
    %cst_45 = arith.constant dense<0.000000e+00> : vector<128x512xf32>
    %70 = tpu.matmul %68, %69, %cst_45 {dimension_numbers = #tpu.dot_dimension_numbers<[1], [0], [0], [1], [0, 0, 1, 1], [], []>} : vector<128x128xbf16>, vector<128x512xbf16>, vector<128x512xf32> -> vector<128x512xf32>
    %c0_46 = arith.constant 0 : index
    %c0_47 = arith.constant 0 : index
    %71 = vector.load %arg17[%c0_46, %c0_47] : memref<1x512xf32, #tpu.memory_space<vmem>>, vector<1x512xf32>
    %72 = vector.broadcast %71 : vector<1x512xf32> to vector<128x512xf32>
    %73 = arith.addf %70, %72 : vector<128x512xf32>
    %cst_48 = arith.constant dense<0xFF800000> : vector<128xf32>
    %74 = vector.multi_reduction <maximumf>, %73, %cst_48 [1] : vector<128x512xf32> to vector<128xf32>
    %75 = vector.shape_cast %74 : vector<128xf32> to vector<128x1xf32>
    %76 = vector.broadcast %75 : vector<128x1xf32> to vector<128x512xf32>
    %77 = arith.subf %73, %76 : vector<128x512xf32>
    %78 = math.exp %77 : vector<128x512xf32>
    %cst_49 = arith.constant dense<0.000000e+00> : vector<128xf32>
    %79 = vector.multi_reduction <add>, %78, %cst_49 [1] : vector<128x512xf32> to vector<128xf32>
    %80 = vector.shape_cast %79 : vector<128xf32> to vector<128x1xf32>
    %81 = tpu.reciprocal %80 {approx = true} : vector<128x1xf32> -> vector<128x1xf32>
    %82 = vector.broadcast %81 : vector<128x1xf32> to vector<128x512xf32>
    %83 = arith.mulf %78, %82 : vector<128x512xf32>
    %c0_50 = arith.constant 0 : index
    %c0_51 = arith.constant 0 : index
    %84 = vector.load %arg18[%c0_50, %c0_51] : memref<128x128xf32, #tpu.memory_space<vmem>>, vector<128x128xf32>
    tpu.vector_store %arg18[%c0_50, %c0_51], %25 {strides = array<i32>} : memref<128x128xf32, #tpu.memory_space<vmem>>, vector<128x128xf32>,
    %c0_52 = arith.constant 0 : index
    %c0_53 = arith.constant 0 : index
    %85 = vector.load %arg19[%c0_52, %c0_53] : memref<128x128xf32, #tpu.memory_space<vmem>>, vector<128x128xf32>
    tpu.vector_store %arg19[%c0_52, %c0_53], %67 {strides = array<i32>} : memref<128x128xf32, #tpu.memory_space<vmem>>, vector<128x128xf32>,
    %86 = arith.truncf %83 : vector<128x512xf32> to vector<128x512xbf16>
    %c0_54 = arith.constant 0 : index
    %c0_55 = arith.constant 0 : index
    %87 = vector.load %arg20[%c0_54, %c0_55] : memref<128x512xbf16, #tpu.memory_space<vmem>>, vector<128x512xbf16>
    tpu.vector_store %arg20[%c0_54, %c0_55], %86 {strides = array<i32>} : memref<128x512xbf16, #tpu.memory_space<vmem>>, vector<128x512xbf16>,
    %c0_56 = arith.constant 0 : index
    %c0_57 = arith.constant 0 : index
    %88 = vector.load %arg21[%c0_56, %c0_57] : memref<128x128xf32, #tpu.memory_space<vmem>>, vector<128x128xf32>
    tpu.vector_store %arg21[%c0_56, %c0_57], %25 {strides = array<i32>} : memref<128x128xf32, #tpu.memory_space<vmem>>, vector<128x128xf32>,
    %c0_58 = arith.constant 0 : index
    %c0_59 = arith.constant 0 : index
    %89 = vector.load %arg22[%c0_58, %c0_59] : memref<128x128xf32, #tpu.memory_space<vmem>>, vector<128x128xf32>
    tpu.vector_store %arg22[%c0_58, %c0_59], %26 {strides = array<i32>} : memref<128x128xf32, #tpu.memory_space<vmem>>, vector<128x128xf32>,
    return
  }
  func.func @transform_0(%arg0: i32) -> (i32, i32) {
    %c0_i32 = arith.constant 0 : i32
    %c0_i32_0 = arith.constant 0 : i32
    return %arg0, %c0_i32 : i32, i32
  }
  func.func @transform_1(%arg0: i32) -> (i32, i32) {
    %c0_i32 = arith.constant 0 : i32
    %c0_i32_0 = arith.constant 0 : i32
    %c0_i32_1 = arith.constant 0 : i32
    return %c0_i32, %c0_i32_0 : i32, i32
  }
  func.func @transform_2(%arg0: i32) -> (i32, i32) {
    %c0_i32 = arith.constant 0 : i32
    %c0_i32_0 = arith.constant 0 : i32
    %c0_i32_1 = arith.constant 0 : i32
    return %c0_i32, %c0_i32_0 : i32, i32
  }
  func.func @transform_3(%arg0: i32) -> (i32, i32) {
    %c0_i32 = arith.constant 0 : i32
    %c0_i32_0 = arith.constant 0 : i32
    %c0_i32_1 = arith.constant 0 : i32
    return %c0_i32, %c0_i32_0 : i32, i32
  }
  func.func @transform_4(%arg0: i32) -> (i32, i32) {
    %c0_i32 = arith.constant 0 : i32
    %c0_i32_0 = arith.constant 0 : i32
    %c0_i32_1 = arith.constant 0 : i32
    return %c0_i32, %c0_i32_0 : i32, i32
  }
  func.func @transform_5(%arg0: i32) -> (i32, i32) {
    %c0_i32 = arith.constant 0 : i32
    %c0_i32_0 = arith.constant 0 : i32
    %c0_i32_1 = arith.constant 0 : i32
    return %c0_i32, %c0_i32_0 : i32, i32
  }
  func.func @transform_6(%arg0: i32) -> (i32, i32) {
    %c0_i32 = arith.constant 0 : i32
    %c0_i32_0 = arith.constant 0 : i32
    %c0_i32_1 = arith.constant 0 : i32
    return %c0_i32, %c0_i32_0 : i32, i32
  }
  func.func @transform_7(%arg0: i32) -> (i32, i32) {
    %c0_i32 = arith.constant 0 : i32
    %c0_i32_0 = arith.constant 0 : i32
    %c0_i32_1 = arith.constant 0 : i32
    return %c0_i32, %c0_i32_0 : i32, i32
  }
  func.func @transform_8(%arg0: i32) -> (i32, i32) {
    %c0_i32 = arith.constant 0 : i32
    %c0_i32_0 = arith.constant 0 : i32
    %c0_i32_1 = arith.constant 0 : i32
    return %c0_i32, %c0_i32_0 : i32, i32
  }
  func.func @transform_9(%arg0: i32) -> (i32, i32) {
    %c0_i32 = arith.constant 0 : i32
    %c0_i32_0 = arith.constant 0 : i32
    %c0_i32_1 = arith.constant 0 : i32
    return %c0_i32, %c0_i32_0 : i32, i32
  }
  func.func @transform_10(%arg0: i32) -> (i32, i32) {
    %c0_i32 = arith.constant 0 : i32
    %c0_i32_0 = arith.constant 0 : i32
    %c0_i32_1 = arith.constant 0 : i32
    return %c0_i32, %c0_i32_0 : i32, i32
  }
  func.func @transform_11(%arg0: i32) -> (i32, i32) {
    %c0_i32 = arith.constant 0 : i32
    %c0_i32_0 = arith.constant 0 : i32
    %c0_i32_1 = arith.constant 0 : i32
    return %c0_i32, %c0_i32_0 : i32, i32
  }
  func.func @transform_12(%arg0: i32) -> (i32, i32) {
    %c0_i32 = arith.constant 0 : i32
    %c0_i32_0 = arith.constant 0 : i32
    %c0_i32_1 = arith.constant 0 : i32
    return %c0_i32, %c0_i32_0 : i32, i32
  }
  func.func @transform_13(%arg0: i32) -> (i32, i32) {
    %c0_i32 = arith.constant 0 : i32
    %c0_i32_0 = arith.constant 0 : i32
    %c0_i32_1 = arith.constant 0 : i32
    return %c0_i32, %c0_i32_0 : i32, i32
  }
  func.func @transform_14(%arg0: i32) -> (i32, i32) {
    %c0_i32 = arith.constant 0 : i32
    %c0_i32_0 = arith.constant 0 : i32
    %c0_i32_1 = arith.constant 0 : i32
    return %c0_i32, %c0_i32_0 : i32, i32
  }
  func.func @transform_15(%arg0: i32) -> (i32, i32) {
    %c0_i32 = arith.constant 0 : i32
    %c0_i32_0 = arith.constant 0 : i32
    %c0_i32_1 = arith.constant 0 : i32
    return %c0_i32, %c0_i32_0 : i32, i32
  }
  func.func @transform_16(%arg0: i32) -> (i32, i32) {
    %c0_i32 = arith.constant 0 : i32
    %c0_i32_0 = arith.constant 0 : i32
    %c0_i32_1 = arith.constant 0 : i32
    return %c0_i32, %c0_i32_0 : i32, i32
  }
  func.func @transform_17(%arg0: i32) -> (i32, i32) {
    %c0_i32 = arith.constant 0 : i32
    %c0_i32_0 = arith.constant 0 : i32
    return %arg0, %c0_i32 : i32, i32
  }
  func.func @transform_18(%arg0: i32) -> (i32, i32) {
    %c0_i32 = arith.constant 0 : i32
    %c0_i32_0 = arith.constant 0 : i32
    return %arg0, %c0_i32 : i32, i32
  }
  func.func @transform_19(%arg0: i32) -> (i32, i32) {
    %c0_i32 = arith.constant 0 : i32
    %c0_i32_0 = arith.constant 0 : i32
    return %arg0, %c0_i32 : i32, i32
  }
  func.func @transform_20(%arg0: i32) -> (i32, i32) {
    %c0_i32 = arith.constant 0 : i32
    %c0_i32_0 = arith.constant 0 : i32
    return %arg0, %c0_i32 : i32, i32
  }
  func.func @transform_21(%arg0: i32) -> (i32, i32) {
    %c0_i32 = arith.constant 0 : i32
    %c0_i32_0 = arith.constant 0 : i32
    return %arg0, %c0_i32 : i32, i32
  }
}

module attributes {stable_mosaic.version = 11 : i64} {
  func.func @dvae_kernel(%arg0: i32, %arg1: memref<128x512xbf16, #tpu.memory_space<vmem>>, %arg2: memref<512x512xbf16, #tpu.memory_space<vmem>>, %arg3: memref<1x256xf32, #tpu.memory_space<vmem>>, %arg4: memref<256x256xbf16, #tpu.memory_space<vmem>>, %arg5: memref<1x256xf32, #tpu.memory_space<vmem>>, %arg6: memref<256x256xbf16, #tpu.memory_space<vmem>>, %arg7: memref<1x256xf32, #tpu.memory_space<vmem>>, %arg8: memref<128x128xbf16, #tpu.memory_space<vmem>>, %arg9: memref<1x128xf32, #tpu.memory_space<vmem>>, %arg10: memref<128x128xbf16, #tpu.memory_space<vmem>>, %arg11: memref<1x128xf32, #tpu.memory_space<vmem>>, %arg12: memref<128x128xbf16, #tpu.memory_space<vmem>>, %arg13: memref<1x128xf32, #tpu.memory_space<vmem>>, %arg14: memref<128x128xbf16, #tpu.memory_space<vmem>>, %arg15: memref<1x128xf32, #tpu.memory_space<vmem>>, %arg16: memref<128x512xbf16, #tpu.memory_space<vmem>>, %arg17: memref<1x512xf32, #tpu.memory_space<vmem>>, %arg18: memref<128x128xf32, #tpu.memory_space<vmem>>, %arg19: memref<128x128xf32, #tpu.memory_space<vmem>>, %arg20: memref<128x512xbf16, #tpu.memory_space<vmem>>, %arg21: memref<128x128xf32, #tpu.memory_space<vmem>>, %arg22: memref<128x128xf32, #tpu.memory_space<vmem>>) attributes {dimension_semantics = [#tpu.dimension_semantics<parallel>], iteration_bounds = array<i64: 2>, scalar_prefetch = 0 : i64, scratch_operands = 0 : i64, tpu.core_type = #tpu.core_type<tc>, window_params = [{transform_indices = @transform_0, window_bounds = array<i64: 128, 512>}, {pipeline_mode = #tpu.pipeline_mode<synchronous>, transform_indices = @transform_1, window_bounds = array<i64: 512, 512>}, {pipeline_mode = #tpu.pipeline_mode<synchronous>, transform_indices = @transform_2, window_bounds = array<i64: 1, 256>}, {pipeline_mode = #tpu.pipeline_mode<synchronous>, transform_indices = @transform_3, window_bounds = array<i64: 256, 256>}, {pipeline_mode = #tpu.pipeline_mode<synchronous>, transform_indices = @transform_4, window_bounds = array<i64: 1, 256>}, {pipeline_mode = #tpu.pipeline_mode<synchronous>, transform_indices = @transform_5, window_bounds = array<i64: 256, 256>}, {pipeline_mode = #tpu.pipeline_mode<synchronous>, transform_indices = @transform_6, window_bounds = array<i64: 1, 256>}, {pipeline_mode = #tpu.pipeline_mode<synchronous>, transform_indices = @transform_7, window_bounds = array<i64: 128, 128>}, {pipeline_mode = #tpu.pipeline_mode<synchronous>, transform_indices = @transform_8, window_bounds = array<i64: 1, 128>}, {pipeline_mode = #tpu.pipeline_mode<synchronous>, transform_indices = @transform_9, window_bounds = array<i64: 128, 128>}, {pipeline_mode = #tpu.pipeline_mode<synchronous>, transform_indices = @transform_10, window_bounds = array<i64: 1, 128>}, {pipeline_mode = #tpu.pipeline_mode<synchronous>, transform_indices = @transform_11, window_bounds = array<i64: 128, 128>}, {pipeline_mode = #tpu.pipeline_mode<synchronous>, transform_indices = @transform_12, window_bounds = array<i64: 1, 128>}, {pipeline_mode = #tpu.pipeline_mode<synchronous>, transform_indices = @transform_13, window_bounds = array<i64: 128, 128>}, {pipeline_mode = #tpu.pipeline_mode<synchronous>, transform_indices = @transform_14, window_bounds = array<i64: 1, 128>}, {pipeline_mode = #tpu.pipeline_mode<synchronous>, transform_indices = @transform_15, window_bounds = array<i64: 128, 512>}, {pipeline_mode = #tpu.pipeline_mode<synchronous>, transform_indices = @transform_16, window_bounds = array<i64: 1, 512>}, {transform_indices = @transform_17, window_bounds = array<i64: 128, 128>}, {transform_indices = @transform_18, window_bounds = array<i64: 128, 128>}, {transform_indices = @transform_19, window_bounds = array<i64: 128, 512>}, {transform_indices = @transform_20, window_bounds = array<i64: 128, 128>}, {transform_indices = @transform_21, window_bounds = array<i64: 128, 128>}]} {
    %c0 = arith.constant 0 : index
    %c0_0 = arith.constant 0 : index
    %0 = vector.load %arg1[%c0, %c0_0] : memref<128x512xbf16, #tpu.memory_space<vmem>>, vector<128x512xbf16>
    %c0_1 = arith.constant 0 : index
    %c0_2 = arith.constant 0 : index
    %1 = vector.load %arg2[%c0_1, %c0_2] : memref<512x512xbf16, #tpu.memory_space<vmem>>, vector<512x512xbf16>
    %cst = arith.constant dense<0.000000e+00> : vector<128x512xf32>
    %2 = tpu.matmul %0, %1, %cst {dimension_numbers = #tpu.dot_dimension_numbers<[1], [0], [0], [1], [0, 0, 1, 1], [], []>} : vector<128x512xbf16>, vector<512x512xbf16>, vector<128x512xf32> -> vector<128x512xf32>
    %3 = vector.extract_strided_slice %2 {offsets = [0, 0], sizes = [128, 256], strides = [1, 1]} : vector<128x512xf32> to vector<128x256xf32>
    %c0_3 = arith.constant 0 : index
    %c0_4 = arith.constant 0 : index
    %4 = vector.load %arg3[%c0_3, %c0_4] : memref<1x256xf32, #tpu.memory_space<vmem>>, vector<1x256xf32>
    %5 = vector.broadcast %4 : vector<1x256xf32> to vector<128x256xf32>
    %6 = arith.addf %3, %5 : vector<128x256xf32>
    %cst_5 = arith.constant 0.000000e+00 : f32
    %7 = vector.broadcast %cst_5 : f32 to vector<128x256xf32>
    %8 = arith.maximumf %6, %7 : vector<128x256xf32>
    %9 = arith.truncf %8 : vector<128x256xf32> to vector<128x256xbf16>
    %c0_6 = arith.constant 0 : index
    %c0_7 = arith.constant 0 : index
    %10 = vector.load %arg4[%c0_6, %c0_7] : memref<256x256xbf16, #tpu.memory_space<vmem>>, vector<256x256xbf16>
    %cst_8 = arith.constant dense<0.000000e+00> : vector<128x256xf32>
    %11 = tpu.matmul %9, %10, %cst_8 {dimension_numbers = #tpu.dot_dimension_numbers<[1], [0], [0], [1], [0, 0, 1, 1], [], []>} : vector<128x256xbf16>, vector<256x256xbf16>, vector<128x256xf32> -> vector<128x256xf32>
    %c0_9 = arith.constant 0 : index
    %c0_10 = arith.constant 0 : index
    %12 = vector.load %arg5[%c0_9, %c0_10] : memref<1x256xf32, #tpu.memory_space<vmem>>, vector<1x256xf32>
    %13 = vector.broadcast %12 : vector<1x256xf32> to vector<128x256xf32>
    %14 = arith.addf %11, %13 : vector<128x256xf32>
    %cst_11 = arith.constant 0.000000e+00 : f32
    %15 = vector.broadcast %cst_11 : f32 to vector<128x256xf32>
    %16 = arith.maximumf %14, %15 : vector<128x256xf32>
    %17 = vector.extract_strided_slice %2 {offsets = [0, 256], sizes = [128, 256], strides = [1, 1]} : vector<128x512xf32> to vector<128x256xf32>
    %18 = arith.addf %16, %17 : vector<128x256xf32>
    %19 = arith.truncf %18 : vector<128x256xf32> to vector<128x256xbf16>
    %c0_12 = arith.constant 0 : index
    %c0_13 = arith.constant 0 : index
    %20 = vector.load %arg6[%c0_12, %c0_13] : memref<256x256xbf16, #tpu.memory_space<vmem>>, vector<256x256xbf16>
    %cst_14 = arith.constant dense<0.000000e+00> : vector<128x256xf32>
    %21 = tpu.matmul %19, %20, %cst_14 {dimension_numbers = #tpu.dot_dimension_numbers<[1], [0], [0], [1], [0, 0, 1, 1], [], []>} : vector<128x256xbf16>, vector<256x256xbf16>, vector<128x256xf32> -> vector<128x256xf32>
    %c0_15 = arith.constant 0 : index
    %c0_16 = arith.constant 0 : index
    %22 = vector.load %arg7[%c0_15, %c0_16] : memref<1x256xf32, #tpu.memory_space<vmem>>, vector<1x256xf32>
    %23 = vector.broadcast %22 : vector<1x256xf32> to vector<128x256xf32>
    %24 = arith.addf %21, %23 : vector<128x256xf32>
    %25 = vector.extract_strided_slice %24 {offsets = [0, 0], sizes = [128, 128], strides = [1, 1]} : vector<128x256xf32> to vector<128x128xf32>
    %26 = vector.extract_strided_slice %24 {offsets = [0, 128], sizes = [128, 128], strides = [1, 1]} : vector<128x256xf32> to vector<128x128xf32>
    %27 = arith.mulf %25, %25 : vector<128x128xf32>
    %cst_17 = arith.constant dense<0.000000e+00> : vector<128xf32>
    %28 = vector.multi_reduction <add>, %27, %cst_17 [1] : vector<128x128xf32> to vector<128xf32>
    %29 = vector.shape_cast %28 : vector<128xf32> to vector<128x1xf32>
    %cst_18 = arith.constant 1.000000e-24 : f32
    %30 = vector.broadcast %cst_18 : f32 to vector<128x1xf32>
    %31 = arith.maximumf %29, %30 : vector<128x1xf32>
    %32 = math.rsqrt %31 : vector<128x1xf32>
    %33 = vector.broadcast %32 : vector<128x1xf32> to vector<128x128xf32>
    %34 = arith.mulf %25, %33 : vector<128x128xf32>
    %35 = arith.truncf %34 : vector<128x128xf32> to vector<128x128xbf16>
    %c0_19 = arith.constant 0 : index
    %c0_20 = arith.constant 0 : index
    %36 = vector.load %arg8[%c0_19, %c0_20] : memref<128x128xbf16, #tpu.memory_space<vmem>>, vector<128x128xbf16>
    %cst_21 = arith.constant dense<0.000000e+00> : vector<128x128xf32>
    %37 = tpu.matmul %35, %36, %cst_21 {dimension_numbers = #tpu.dot_dimension_numbers<[1], [0], [0], [1], [0, 0, 1, 1], [], []>} : vector<128x128xbf16>, vector<128x128xbf16>, vector<128x128xf32> -> vector<128x128xf32>
    %c0_22 = arith.constant 0 : index
    %c0_23 = arith.constant 0 : index
    %38 = vector.load %arg9[%c0_22, %c0_23] : memref<1x128xf32, #tpu.memory_space<vmem>>, vector<1x128xf32>
    %39 = vector.broadcast %38 : vector<1x128xf32> to vector<128x128xf32>
    %40 = arith.addf %37, %39 : vector<128x128xf32>
    %cst_24 = arith.constant 0.000000e+00 : f32
    %41 = vector.broadcast %cst_24 : f32 to vector<128x128xf32>
    %42 = arith.maximumf %40, %41 : vector<128x128xf32>
    %43 = arith.truncf %42 : vector<128x128xf32> to vector<128x128xbf16>
    %c0_25 = arith.constant 0 : index
    %c0_26 = arith.constant 0 : index
    %44 = vector.load %arg10[%c0_25, %c0_26] : memref<128x128xbf16, #tpu.memory_space<vmem>>, vector<128x128xbf16>
    %cst_27 = arith.constant dense<0.000000e+00> : vector<128x128xf32>
    %45 = tpu.matmul %43, %44, %cst_27 {dimension_numbers = #tpu.dot_dimension_numbers<[1], [0], [0], [1], [0, 0, 1, 1], [], []>} : vector<128x128xbf16>, vector<128x128xbf16>, vector<128x128xf32> -> vector<128x128xf32>
    %c0_28 = arith.constant 0 : index
    %c0_29 = arith.constant 0 : index
    %46 = vector.load %arg11[%c0_28, %c0_29] : memref<1x128xf32, #tpu.memory_space<vmem>>, vector<1x128xf32>
    %47 = vector.broadcast %46 : vector<1x128xf32> to vector<128x128xf32>
    %48 = arith.addf %45, %47 : vector<128x128xf32>
    %cst_30 = arith.constant 0.000000e+00 : f32
    %49 = vector.broadcast %cst_30 : f32 to vector<128x128xf32>
    %50 = arith.maximumf %48, %49 : vector<128x128xf32>
    %51 = arith.truncf %50 : vector<128x128xf32> to vector<128x128xbf16>
    %c0_31 = arith.constant 0 : index
    %c0_32 = arith.constant 0 : index
    %52 = vector.load %arg12[%c0_31, %c0_32] : memref<128x128xbf16, #tpu.memory_space<vmem>>, vector<128x128xbf16>
    %cst_33 = arith.constant dense<0.000000e+00> : vector<128x128xf32>
    %53 = tpu.matmul %51, %52, %cst_33 {dimension_numbers = #tpu.dot_dimension_numbers<[1], [0], [0], [1], [0, 0, 1, 1], [], []>} : vector<128x128xbf16>, vector<128x128xbf16>, vector<128x128xf32> -> vector<128x128xf32>
    %c0_34 = arith.constant 0 : index
    %c0_35 = arith.constant 0 : index
    %54 = vector.load %arg13[%c0_34, %c0_35] : memref<1x128xf32, #tpu.memory_space<vmem>>, vector<1x128xf32>
    %55 = vector.broadcast %54 : vector<1x128xf32> to vector<128x128xf32>
    %56 = arith.addf %53, %55 : vector<128x128xf32>
    %cst_36 = arith.constant 0.000000e+00 : f32
    %57 = vector.broadcast %cst_36 : f32 to vector<128x128xf32>
    %58 = arith.maximumf %56, %57 : vector<128x128xf32>
    %59 = arith.truncf %58 : vector<128x128xf32> to vector<128x128xbf16>
    %c0_37 = arith.constant 0 : index
    %c0_38 = arith.constant 0 : index
    %60 = vector.load %arg14[%c0_37, %c0_38] : memref<128x128xbf16, #tpu.memory_space<vmem>>, vector<128x128xbf16>
    %cst_39 = arith.constant dense<0.000000e+00> : vector<128x128xf32>
    %61 = tpu.matmul %59, %60, %cst_39 {dimension_numbers = #tpu.dot_dimension_numbers<[1], [0], [0], [1], [0, 0, 1, 1], [], []>} : vector<128x128xbf16>, vector<128x128xbf16>, vector<128x128xf32> -> vector<128x128xf32>
    %c0_40 = arith.constant 0 : index
    %c0_41 = arith.constant 0 : index
    %62 = vector.load %arg15[%c0_40, %c0_41] : memref<1x128xf32, #tpu.memory_space<vmem>>, vector<1x128xf32>
    %63 = vector.broadcast %62 : vector<1x128xf32> to vector<128x128xf32>
    %64 = arith.addf %61, %63 : vector<128x128xf32>
    %cst_42 = arith.constant 0.000000e+00 : f32
    %65 = vector.broadcast %cst_42 : f32 to vector<128x128xf32>
    %66 = arith.maximumf %64, %65 : vector<128x128xf32>
    %67 = arith.addf %66, %34 : vector<128x128xf32>
    %68 = arith.truncf %67 : vector<128x128xf32> to vector<128x128xbf16>
    %c0_43 = arith.constant 0 : index
    %c0_44 = arith.constant 0 : index
    %69 = vector.load %arg16[%c0_43, %c0_44] : memref<128x512xbf16, #tpu.memory_space<vmem>>, vector<128x512xbf16>
    %cst_45 = arith.constant dense<0.000000e+00> : vector<128x512xf32>
    %70 = tpu.matmul %68, %69, %cst_45 {dimension_numbers = #tpu.dot_dimension_numbers<[1], [0], [0], [1], [0, 0, 1, 1], [], []>} : vector<128x128xbf16>, vector<128x512xbf16>, vector<128x512xf32> -> vector<128x512xf32>
    %c0_46 = arith.constant 0 : index
    %c0_47 = arith.constant 0 : index
    %71 = vector.load %arg17[%c0_46, %c0_47] : memref<1x512xf32, #tpu.memory_space<vmem>>, vector<1x512xf32>
    %72 = vector.broadcast %71 : vector<1x512xf32> to vector<128x512xf32>
    %73 = arith.addf %70, %72 : vector<128x512xf32>
    %cst_48 = arith.constant dense<0xFF800000> : vector<128xf32>
    %74 = vector.multi_reduction <maximumf>, %73, %cst_48 [1] : vector<128x512xf32> to vector<128xf32>
    %75 = vector.shape_cast %74 : vector<128xf32> to vector<128x1xf32>
    %76 = vector.broadcast %75 : vector<128x1xf32> to vector<128x512xf32>
    %77 = arith.subf %73, %76 : vector<128x512xf32>
    %78 = math.exp %77 : vector<128x512xf32>
    %cst_49 = arith.constant dense<0.000000e+00> : vector<128xf32>
    %79 = vector.multi_reduction <add>, %78, %cst_49 [1] : vector<128x512xf32> to vector<128xf32>
    %80 = vector.shape_cast %79 : vector<128xf32> to vector<128x1xf32>
    %81 = tpu.reciprocal %80 {approx = true} : vector<128x1xf32> -> vector<128x1xf32>
    %82 = vector.broadcast %81 : vector<128x1xf32> to vector<128x512xf32>
    %83 = arith.mulf %78, %82 : vector<128x512xf32>
    %c0_50 = arith.constant 0 : index
    %c0_51 = arith.constant 0 : index
    %84 = vector.load %arg18[%c0_50, %c0_51] : memref<128x128xf32, #tpu.memory_space<vmem>>, vector<128x128xf32>
    tpu.vector_store %arg18[%c0_50, %c0_51], %25 {strides = array<i32>} : memref<128x128xf32, #tpu.memory_space<vmem>>, vector<128x128xf32>,
    %c0_52 = arith.constant 0 : index
    %c0_53 = arith.constant 0 : index
    %85 = vector.load %arg19[%c0_52, %c0_53] : memref<128x128xf32, #tpu.memory_space<vmem>>, vector<128x128xf32>
    tpu.vector_store %arg19[%c0_52, %c0_53], %67 {strides = array<i32>} : memref<128x128xf32, #tpu.memory_space<vmem>>, vector<128x128xf32>,
    %86 = arith.truncf %83 : vector<128x512xf32> to vector<128x512xbf16>
    %c0_54 = arith.constant 0 : index
    %c0_55 = arith.constant 0 : index
    %87 = vector.load %arg20[%c0_54, %c0_55] : memref<128x512xbf16, #tpu.memory_space<vmem>>, vector<128x512xbf16>
    tpu.vector_store %arg20[%c0_54, %c0_55], %86 {strides = array<i32>} : memref<128x512xbf16, #tpu.memory_space<vmem>>, vector<128x512xbf16>,
    %c0_56 = arith.constant 0 : index
    %c0_57 = arith.constant 0 : index
    %88 = vector.load %arg21[%c0_56, %c0_57] : memref<128x128xf32, #tpu.memory_space<vmem>>, vector<128x128xf32>
    tpu.vector_store %arg21[%c0_56, %c0_57], %25 {strides = array<i32>} : memref<128x128xf32, #tpu.memory_space<vmem>>, vector<128x128xf32>,
    %c0_58 = arith.constant 0 : index
    %c0_59 = arith.constant 0 : index
    %89 = vector.load %arg22[%c0_58, %c0_59] : memref<128x128xf32, #tpu.memory_space<vmem>>, vector<128x128xf32>
    tpu.vector_store %arg22[%c0_58, %c0_59], %26 {strides = array<i32>} : memref<128x128xf32, #tpu.memory_space<vmem>>, vector<128x128xf32>,
    return
  }
  func.func @transform_0(%arg0: i32) -> (i32, i32) {
    %c0_i32 = arith.constant 0 : i32
    %c0_i32_0 = arith.constant 0 : i32
    return %arg0, %c0_i32 : i32, i32
  }
  func.func @transform_1(%arg0: i32) -> (i32, i32) {
    %c0_i32 = arith.constant 0 : i32
    %c0_i32_0 = arith.constant 0 : i32
    %c0_i32_1 = arith.constant 0 : i32
    return %c0_i32, %c0_i32_0 : i32, i32
  }
  func.func @transform_2(%arg0: i32) -> (i32, i32) {
    %c0_i32 = arith.constant 0 : i32
    %c0_i32_0 = arith.constant 0 : i32
    %c0_i32_1 = arith.constant 0 : i32
    return %c0_i32, %c0_i32_0 : i32, i32
  }
  func.func @transform_3(%arg0: i32) -> (i32, i32) {
    %c0_i32 = arith.constant 0 : i32
    %c0_i32_0 = arith.constant 0 : i32
    %c0_i32_1 = arith.constant 0 : i32
    return %c0_i32, %c0_i32_0 : i32, i32
  }
  func.func @transform_4(%arg0: i32) -> (i32, i32) {
    %c0_i32 = arith.constant 0 : i32
    %c0_i32_0 = arith.constant 0 : i32
    %c0_i32_1 = arith.constant 0 : i32
    return %c0_i32, %c0_i32_0 : i32, i32
  }
  func.func @transform_5(%arg0: i32) -> (i32, i32) {
    %c0_i32 = arith.constant 0 : i32
    %c0_i32_0 = arith.constant 0 : i32
    %c0_i32_1 = arith.constant 0 : i32
    return %c0_i32, %c0_i32_0 : i32, i32
  }
  func.func @transform_6(%arg0: i32) -> (i32, i32) {
    %c0_i32 = arith.constant 0 : i32
    %c0_i32_0 = arith.constant 0 : i32
    %c0_i32_1 = arith.constant 0 : i32
    return %c0_i32, %c0_i32_0 : i32, i32
  }
  func.func @transform_7(%arg0: i32) -> (i32, i32) {
    %c0_i32 = arith.constant 0 : i32
    %c0_i32_0 = arith.constant 0 : i32
    %c0_i32_1 = arith.constant 0 : i32
    return %c0_i32, %c0_i32_0 : i32, i32
  }
  func.func @transform_8(%arg0: i32) -> (i32, i32) {
    %c0_i32 = arith.constant 0 : i32
    %c0_i32_0 = arith.constant 0 : i32
    %c0_i32_1 = arith.constant 0 : i32
    return %c0_i32, %c0_i32_0 : i32, i32
  }
  func.func @transform_9(%arg0: i32) -> (i32, i32) {
    %c0_i32 = arith.constant 0 : i32
    %c0_i32_0 = arith.constant 0 : i32
    %c0_i32_1 = arith.constant 0 : i32
    return %c0_i32, %c0_i32_0 : i32, i32
  }
  func.func @transform_10(%arg0: i32) -> (i32, i32) {
    %c0_i32 = arith.constant 0 : i32
    %c0_i32_0 = arith.constant 0 : i32
    %c0_i32_1 = arith.constant 0 : i32
    return %c0_i32, %c0_i32_0 : i32, i32
  }
  func.func @transform_11(%arg0: i32) -> (i32, i32) {
    %c0_i32 = arith.constant 0 : i32
    %c0_i32_0 = arith.constant 0 : i32
    %c0_i32_1 = arith.constant 0 : i32
    return %c0_i32, %c0_i32_0 : i32, i32
  }
  func.func @transform_12(%arg0: i32) -> (i32, i32) {
    %c0_i32 = arith.constant 0 : i32
    %c0_i32_0 = arith.constant 0 : i32
    %c0_i32_1 = arith.constant 0 : i32
    return %c0_i32, %c0_i32_0 : i32, i32
  }
  func.func @transform_13(%arg0: i32) -> (i32, i32) {
    %c0_i32 = arith.constant 0 : i32
    %c0_i32_0 = arith.constant 0 : i32
    %c0_i32_1 = arith.constant 0 : i32
    return %c0_i32, %c0_i32_0 : i32, i32
  }
  func.func @transform_14(%arg0: i32) -> (i32, i32) {
    %c0_i32 = arith.constant 0 : i32
    %c0_i32_0 = arith.constant 0 : i32
    %c0_i32_1 = arith.constant 0 : i32
    return %c0_i32, %c0_i32_0 : i32, i32
  }
  func.func @transform_15(%arg0: i32) -> (i32, i32) {
    %c0_i32 = arith.constant 0 : i32
    %c0_i32_0 = arith.constant 0 : i32
    %c0_i32_1 = arith.constant 0 : i32
    return %c0_i32, %c0_i32_0 : i32, i32
  }
  func.func @transform_16(%arg0: i32) -> (i32, i32) {
    %c0_i32 = arith.constant 0 : i32
    %c0_i32_0 = arith.constant 0 : i32
    %c0_i32_1 = arith.constant 0 : i32
    return %c0_i32, %c0_i32_0 : i32, i32
  }
  func.func @transform_17(%arg0: i32) -> (i32, i32) {
    %c0_i32 = arith.constant 0 : i32
    %c0_i32_0 = arith.constant 0 : i32
    return %arg0, %c0_i32 : i32, i32
  }
  func.func @transform_18(%arg0: i32) -> (i32, i32) {
    %c0_i32 = arith.constant 0 : i32
    %c0_i32_0 = arith.constant 0 : i32
    return %arg0, %c0_i32 : i32, i32
  }
  func.func @transform_19(%arg0: i32) -> (i32, i32) {
    %c0_i32 = arith.constant 0 : i32
    %c0_i32_0 = arith.constant 0 : i32
    return %arg0, %c0_i32 : i32, i32
  }
  func.func @transform_20(%arg0: i32) -> (i32, i32) {
    %c0_i32 = arith.constant 0 : i32
    %c0_i32_0 = arith.constant 0 : i32
    return %arg0, %c0_i32 : i32, i32
  }
  func.func @transform_21(%arg0: i32) -> (i32, i32) {
    %c0_i32 = arith.constant 0 : i32
    %c0_i32_0 = arith.constant 0 : i32
    return %arg0, %c0_i32 : i32, i32
  }
}

</mosaic_0001>

<bundles_post_ra>
// kernel: tpu_custom_call.1
= control target key start
LH: loop header
LB: loop body
LE: loop exit
PB: predicated region body
PF: predicated region fallthrough
CT: control target
= control target key end

     0   :  { %s9368_s0 = inlined_call_operand.hbm [shape: bf16[256,512], index: 0, kind: input, shape index: {}]   ;;  %s9369_s1 = inlined_call_operand.hbm [shape: bf16[512,512], index: 1, kind: input, shape index: {}]   ;;  %s9370_s2 = inlined_call_operand.vmem [shape: f32[1,256], index: 2, kind: input, shape index: {}]   ;;  %s9371_s3 = inlined_call_operand.hbm [shape: bf16[256,256], index: 3, kind: input, shape index: {}]   ;;  %s9372_s4 = inlined_call_operand.vmem [shape: f32[1,256], index: 4, kind: input, shape index: {}]   ;;  %s9373_s5 = inlined_call_operand.hbm [shape: bf16[256,256], index: 5, kind: input, shape index: {}]   ;;  %s9374_s6 = inlined_call_operand.vmem [shape: f32[1,256], index: 6, kind: input, shape index: {}]   ;;  %s9375_s7 = inlined_call_operand.hbm [shape: bf16[128,128], index: 7, kind: input, shape index: {}]   ;;  %s9376_s8 = inlined_call_operand.vmem [shape: f32[1,128], index: 8, kind: input, shape index: {}]   ;;  %s9377_s9 = inlined_call_operand.hbm [shape: bf16[128,128], index: 9, kind: input, shape index: {}]   ;;  %s9378_s10 = inlined_call_operand.vmem [shape: f32[1,128], index: 10, kind: input, shape index: {}]   ;;  %s9379_s11 = inlined_call_operand.hbm [shape: bf16[128,128], index: 11, kind: input, shape index: {}]   ;;  %s9380_s12 = inlined_call_operand.vmem [shape: f32[1,128], index: 12, kind: input, shape index: {}]   ;;  %s9381_s13 = inlined_call_operand.hbm [shape: bf16[128,128], index: 13, kind: input, shape index: {}]   ;;  %s9382_s14 = inlined_call_operand.vmem [shape: f32[1,128], index: 14, kind: input, shape index: {}]   ;;  %s9383_s15 = inlined_call_operand.hbm [shape: bf16[128,512], index: 15, kind: input, shape index: {}]   ;;  %s9384_s16 = inlined_call_operand.vmem [shape: f32[1,512], index: 16, kind: input, shape index: {}]   ;;  %s9385_s17 = inlined_call_operand.hbm [shape: f32[256,128], index: 17, kind: output, shape index: {0}]   ;;  %s9386_s18 = inlined_call_operand.hbm [shape: f32[256,128], index: 18, kind: output, shape index: {1}]   ;;  %s9387_s19 = inlined_call_operand.hbm [shape: bf16[256,512], index: 19, kind: output, shape index: {2}]   ;;  %s9388_s20 = inlined_call_operand.hbm [shape: f32[256,128], index: 20, kind: output, shape index: {3}]   ;;  %s9389_s21 = inlined_call_operand.hbm [shape: f32[256,128], index: 21, kind: output, shape index: {4}]  }
   0x1   :  { %9445 = sst [smem:[#allocation46_spill]] %s9368_s0 }
   0x2   :  { %9446 = sst [smem:[#allocation47_spill]] %s9369_s1 }
   0x3   :  { %9447 = sst [smem:[#allocation48_spill]] %s9370_s2 }
   0x4   :  { %9448 = sst [smem:[#allocation49_spill]] %s9371_s3 }
   0x5   :  { %9449 = sst [smem:[#allocation50_spill]] %s9372_s4 }
   0x6   :  { %9450 = sst [smem:[#allocation51_spill]] %s9373_s5 }
   0x7   :  { %9451 = sst [smem:[#allocation52_spill]] %s9374_s6 }
   0x8   :  { %9452 = sst [smem:[#allocation53_spill]] %s9375_s7 }
   0x9   :  { %9453 = sst [smem:[#allocation54_spill]] %s9376_s8 }
   0xa   :  { %9454 = sst [smem:[#allocation55_spill]] %s9377_s9 }
   0xb   :  { %9455 = sst [smem:[#allocation56_spill]] %s9378_s10 }
   0xc   :  { %9456 = sst [smem:[#allocation57_spill]] %s9379_s11 }
   0xd   :  { %9457 = sst [smem:[#allocation58_spill]] %s9380_s12 }
   0xe   :  { %9458 = sst [smem:[#allocation59_spill]] %s9381_s13 }
   0xf   :  { %9459 = sst [smem:[#allocation60_spill]] %s9382_s14 }
  0x10   :  { %9460 = sst [smem:[#allocation61_spill]] %s9383_s15 }
  0x11   :  { %9461 = sst [smem:[#allocation62_spill]] %s9384_s16 }
  0x12   :  { %9462 = sst [smem:[#allocation63_spill]] %s9385_s17 }
  0x13   :  { %9463 = sst [smem:[#allocation64_spill]] %s9386_s18 }
  0x14   :  { %9464 = sst [smem:[#allocation65_spill]] %s9387_s19 }
  0x15   :  { %9465 = sst [smem:[#allocation66_spill]] %s9388_s20 }
  0x16   :  { %9466 = sst [smem:[#allocation67_spill]] %s9389_s21 }
  0x17   :  { %27 = vsyncpa [#allocation3], 0 }
  0x18   :  { %29 = vsyncpa [#allocation3 + $0x1], 0 }
  0x19   :  { %30 = vsyncpa [#allocation6], 0 }
  0x1a   :  { %31 = vsyncpa [#allocation9], 0 }
  0x1b   :  { %32 = vsyncpa [#allocation12], 0 }
  0x1c   :  { %33 = vsyncpa [#allocation15], 0 }
  0x1d   :  { %34 = vsyncpa [#allocation4], 0 }
  0x1e   :  { %36 = vsyncpa [#allocation4 + $0x1], 0 }
  0x1f   :  { %37 = vsyncpa [#allocation19], 0 }
  0x20   :  { %39 = vsyncpa [#allocation19 + $0x1], 0 }
  0x21   :  { %40 = vsyncpa [#allocation22], 0 }
  0x22   :  { %42 = vsyncpa [#allocation22 + $0x1], 0  ;;  %s7497_s2 = smov 0   ;;  %s7499_s25 = smov 0  }
  0x23   :  { %s7501_s26 = smov 0   ;;  %s7503_s27 = smov 0  }
  0x24 LB: > { %s7362_s3 = smov [#allocation5]   ;;  %s7518_s29 = sadd.s32 4294967295, %s7360_s27   ;;  %s7360_s27 = sphi %s7503_s27, %s9576_s27   ;;  %s7356_s26 = sphi %s7501_s26, %s9575_s26   ;;  %s7352_s25 = sphi %s7499_s25, %s9574_s25   ;;  %s7348_s2 = sphi %s7497_s2, %s9573_s2  }
  0x25   : > { %s557_s28 = sshll.u32 %s7362_s3, 4  ;;  %p5471_p0 = scmp.ge.s32.totalorder %s7360_s27, 1  ;;  %s7523_s28 = int_to_ptr.vmem [resolvable:$true] %s557_s28 }
  0x26   : > { %p9404_p1 = scmp.eq.s32.totalorder %s7518_s29, 0  ;;  %p545_p2 = scmp.lt.s32.totalorder %s7360_s27, 3 }
  0x27   : > { %s7363_s30 = smov [#allocation8]   ;;  %s9469_s1 = sld [smem:[#allocation47_spill]] }
  0x28   : > { %p7525_p3 = pnand %p5471_p0, %p545_p2  ;;  %s589_s5 = sshll.u32 %s7363_s30, 4  ;;  %s7538_s5 = int_to_ptr.vmem [resolvable:$true] %s589_s5 }
  0x2a   : > { %s9467_s0 = scalar_select %p7525_p3, 1, 0 }
  0x2b   : > { %p6182_p5 = pneg %p7525_p3 }
  0x2d   : > { %p7534_p6 = pnand %p6182_p5, %p9404_p1  ;;  %s6904_s24 = scalar_lea.hbm %s9469_s1, 16384 }
  0x2e   : > { %p6905_p7 = scmp.ne.s32.totalorder %s9469_s1, %s6904_s24  ;;  %p6911_p11 = scmp.lt.u32.totalorder %s6904_s24, %s9469_s1 }
  0x2f   : > { %p7548_p8 = pneg %p7534_p6 }
  0x31   : > { %p6907_p9 = pnand %p7548_p8, %p6905_p7 }
  0x33   : > { %p6908_p10 = pneg %p6907_p9 }
  0x35   : > { %p6913_p12 = pnand %p6911_p11, %p6908_p10 }
  0x37   : > { %6916 = shalt.err (!%p6913_p12)
}
  0x38   : > { %s6917_s19 = scalar_lea.vmem %s7523_s28, 16384  ;;  %p6925_p5 = scmp.lt.s32.totalorder %s7523_s28, %s7523_s28 }
  0x39   : > { %p6918_p13 = scmp.ne.s32.totalorder %s7523_s28, %s6917_s19  ;;  %p6926_p4 = scmp.lt.s32.totalorder %s6917_s19, %s6917_s19 }
  0x3b   : > { %p6920_p0 = pnand %p6918_p13, %p7548_p8  ;;  %p6927_p7 = por %p6926_p4, %p6925_p5 }
  0x3d   : > { %p6921_p2 = pneg %p6920_p0 }
  0x3f   : > { %p6928_p9 = pnand %p6927_p7, %p6921_p2 }
  0x41   : > { %6931 = shalt.err (!%p6928_p9)
}
  0x42   : > { %s9399_s22 = smov 256   ;;  %s9401_s17 = smov 16  }
  0x43   : > { %6185 = dma.hbm_to_vmem [thread:$0]  (!%p7534_p6), %s9469_s1, 16384, %s7523_s28, [#allocation6], %s9399_s22, %s9399_s22, %s9401_s17  }
  0x44   : > { %s9471_s20 = sld [smem:[#allocation51_spill]] }
  0x4a   : > { %s6932_s19 = scalar_lea.hbm %s9471_s20, 4096 }
  0x4b   : > { %p6933_p4 = scmp.ne.s32.totalorder %s9471_s20, %s6932_s19  ;;  %p6939_p12 = scmp.lt.u32.totalorder %s6932_s19, %s9471_s20 }
  0x4d   : > { %p6935_p10 = pnand %p6933_p4, %p7548_p8 }
  0x4f   : > { %p6936_p11 = pneg %p6935_p10 }
  0x51   : > { %p6941_p13 = pnand %p6939_p12, %p6936_p11 }
  0x53   : > { %6944 = shalt.err (!%p6941_p13)
}
  0x54   : > { %s6945_s28 = scalar_lea.vmem %s7538_s5, 4096  ;;  %p6953_p7 = scmp.lt.s32.totalorder %s7538_s5, %s7538_s5 }
  0x55   : > { %p6946_p0 = scmp.ne.s32.totalorder %s7538_s5, %s6945_s28  ;;  %p6954_p9 = scmp.lt.s32.totalorder %s6945_s28, %s6945_s28 }
  0x57   : > { %p6948_p2 = pnand %p6946_p0, %p7548_p8  ;;  %p6955_p4 = por %p6954_p9, %p6953_p7 }
  0x59   : > { %p6949_p5 = pneg %p6948_p2 }
  0x5b   : > { %p6956_p10 = pnand %p6955_p4, %p6949_p5 }
  0x5d   : > { %6959 = shalt.err (!%p6956_p10)
}
  0x5e   : > { %s9406_s16 = smov 128   ;;  %s9407_s12 = smov 8  }
  0x5f   : > { %6191 = dma.hbm_to_vmem [thread:$0]  (!%p7534_p6), %s9471_s20, 4096, %s7538_s5, [#allocation9], %s9406_s16, %s9406_s16, %s9407_s12  }
  0x60   : > { %s7368_s23 = smov [#allocation11]   ;;  %s7369_s3 = smov [#allocation14]  }
  0x61   : > { %s621_s24 = sshll.u32 %s7368_s23, 4  ;;  %s653_s30 = sshll.u32 %s7369_s3, 4  ;;  %s622_s24 = int_to_ptr.vmem [resolvable:$true] %s621_s24  ;;  %s7598_s30 = int_to_ptr.vmem [resolvable:$true] %s653_s30 }
  0x62   : > { %s9472_s9 = sld [smem:[#allocation55_spill]] }
  0x68   : > { %s6960_s22 = scalar_lea.hbm %s9472_s9, 1024 }
  0x69   : > { %p6961_p11 = scmp.ne.s32.totalorder %s9472_s9, %s6960_s22  ;;  %p6967_p0 = scmp.lt.u32.totalorder %s6960_s22, %s9472_s9 }
  0x6b   : > { %p6963_p12 = pnand %p6961_p11, %p7548_p8 }
  0x6d   : > { %p6964_p13 = pneg %p6963_p12 }
  0x6f   : > { %p6969_p2 = pnand %p6967_p0, %p6964_p13 }
  0x71   : > { %6972 = shalt.err (!%p6969_p2)
}
  0x72   : > { %s6973_s18 = scalar_lea.vmem %s622_s24, 1024  ;;  %p6981_p4 = scmp.lt.s32.totalorder %s622_s24, %s622_s24 }
  0x73   : > { %p6974_p5 = scmp.ne.s32.totalorder %s622_s24, %s6973_s18  ;;  %p6982_p10 = scmp.lt.s32.totalorder %s6973_s18, %s6973_s18 }
  0x75   : > { %p6976_p7 = pnand %p6974_p5, %p7548_p8  ;;  %p6983_p1 = por %p6982_p10, %p6981_p4 }
  0x77   : > { %p6977_p9 = pneg %p6976_p7 }
  0x79   : > { %p6984_p3 = pnand %p6983_p1, %p6977_p9 }
  0x7b   : > { %6987 = shalt.err (!%p6984_p3)
}
  0x7c   : > { %s9408_s1 = smov 64   ;;  %s7371_s17 = smov 4  }
  0x7d   : > { %6197 = dma.hbm_to_vmem [thread:$0]  (!%p7534_p6), %s9472_s9, 1024, %s622_s24, [#allocation12], %s9408_s1, %s9408_s1, %s7371_s17  }
  0x7e   : > { %s9473_s13 = sld [smem:[#allocation59_spill]] }
  0x84   : > { %s6988_s28 = scalar_lea.hbm %s9473_s13, 1024 }
  0x85   : > { %p6989_p1 = scmp.ne.s32.totalorder %s9473_s13, %s6988_s28  ;;  %p6995_p12 = scmp.lt.u32.totalorder %s6988_s28, %s9473_s13 }
  0x87   : > { %p6991_p3 = pnand %p6989_p1, %p7548_p8 }
  0x89   : > { %p6992_p11 = pneg %p6991_p3 }
  0x8b   : > { %p6997_p13 = pnand %p6995_p12, %p6992_p11 }
  0x8d   : > { %7000 = shalt.err (!%p6997_p13)
}
  0x8e   : > { %s7001_s24 = scalar_lea.vmem %s7598_s30, 1024  ;;  %p7009_p7 = scmp.lt.s32.totalorder %s7598_s30, %s7598_s30 }
  0x8f   : > { %p7002_p0 = scmp.ne.s32.totalorder %s7598_s30, %s7001_s24  ;;  %p7010_p9 = scmp.lt.s32.totalorder %s7001_s24, %s7001_s24 }
  0x91   : > { %p7004_p2 = pnand %p7002_p0, %p7548_p8  ;;  %p7011_p4 = por %p7010_p9, %p7009_p7 }
  0x93   : > { %p7005_p5 = pneg %p7004_p2 }
  0x95   : > { %p7012_p10 = pnand %p7011_p4, %p7005_p5 }
  0x97   : > { %7015 = shalt.err (!%p7012_p10)
}
  0x98   : > { %6203 = dma.hbm_to_vmem [thread:$0]  (!%p7534_p6), %s9473_s13, 1024, %s7598_s30, [#allocation15], %s9408_s1, %s9408_s1, %s7371_s17  }
  0x99   : > { %s7372_s23 = smov [#allocation7]   ;;  %s7373_s19 = smov [#allocation10]  }
  0x9a   : > { %s573_s3 = sshll.u32 %s7372_s23, 4  ;;  %s605_s28 = sshll.u32 %s7373_s19, 4  ;;  %s574_s3 = int_to_ptr.vmem [resolvable:$true] %s573_s3  ;;  %s7647_s28 = int_to_ptr.vmem [resolvable:$true] %s605_s28 }
  0x9b   : > { %s9474_s18 = sld [smem:[#allocation49_spill]] }
  0xa1   : > { %s7016_s24 = scalar_lea.hbm %s9474_s18, 4096 }
  0xa2   : > { %p7017_p1 = scmp.ne.s32.totalorder %s9474_s18, %s7016_s24  ;;  %p7023_p12 = scmp.lt.u32.totalorder %s7016_s24, %s9474_s18 }
  0xa4   : > { %p7019_p3 = pnand %p7017_p1, %p7548_p8 }
  0xa6   : > { %p7020_p11 = pneg %p7019_p3 }
  0xa8   : > { %p7025_p13 = pnand %p7023_p12, %p7020_p11 }
  0xaa   : > { %7028 = shalt.err (!%p7025_p13)
}
  0xab   : > { %s7029_s22 = scalar_lea.vmem %s574_s3, 4096  ;;  %p7037_p7 = scmp.lt.s32.totalorder %s574_s3, %s574_s3 }
  0xac   : > { %p7030_p0 = scmp.ne.s32.totalorder %s574_s3, %s7029_s22  ;;  %p7038_p9 = scmp.lt.s32.totalorder %s7029_s22, %s7029_s22 }
  0xae   : > { %p7032_p2 = pnand %p7030_p0, %p7548_p8  ;;  %p7039_p4 = por %p7038_p9, %p7037_p7 }
  0xb0   : > { %p7033_p5 = pneg %p7032_p2 }
  0xb2   : > { %p7040_p10 = pnand %p7039_p4, %p7033_p5 }
  0xb4   : > { %7043 = shalt.err (!%p7040_p10)
}
  0xb5   : > { %s9475_s9 = smov 8   ;;  %s9476_s12 = smov 128  }
  0xb6   : > { %6188 = dma.hbm_to_vmem [thread:$0]  (!%p7534_p6), %s9474_s18, 4096, %s574_s3, [#allocation6], %s9476_s12, %s9476_s12, %s9475_s9  }
  0xb7   : > { %s9477_s7 = sld [smem:[#allocation53_spill]] }
  0xbd   : > { %s7044_s24 = scalar_lea.hbm %s9477_s7, 1024 }
  0xbe   : > { %p7045_p1 = scmp.ne.s32.totalorder %s9477_s7, %s7044_s24  ;;  %p7051_p12 = scmp.lt.u32.totalorder %s7044_s24, %s9477_s7 }
  0xc0   : > { %p7047_p3 = pnand %p7045_p1, %p7548_p8 }
  0xc2   : > { %p7048_p11 = pneg %p7047_p3 }
  0xc4   : > { %p7053_p13 = pnand %p7051_p12, %p7048_p11 }
  0xc6   : > { %7056 = shalt.err (!%p7053_p13)
}
  0xc7   : > { %s7057_s3 = scalar_lea.vmem %s7647_s28, 1024  ;;  %p7065_p7 = scmp.lt.s32.totalorder %s7647_s28, %s7647_s28 }
  0xc8   : > { %p7058_p0 = scmp.ne.s32.totalorder %s7647_s28, %s7057_s3  ;;  %p7066_p9 = scmp.lt.s32.totalorder %s7057_s3, %s7057_s3 }
  0xca   : > { %p7060_p2 = pnand %p7058_p0, %p7548_p8  ;;  %p7067_p4 = por %p7066_p9, %p7065_p7 }
  0xcc   : > { %p7061_p5 = pneg %p7060_p2 }
  0xce   : > { %p7068_p10 = pnand %p7067_p4, %p7061_p5 }
  0xd0   : > { %7071 = shalt.err (!%p7068_p10)
}
  0xd1   : > { %s9478_s1 = smov 64   ;;  %s7374_s23 = smov [#allocation13]  }
  0xd2   : > { %6194 = dma.hbm_to_vmem [thread:$0]  (!%p7534_p6), %s9477_s7, 1024, %s7647_s28, [#allocation9], %s9478_s1, %s9478_s1, %s7371_s17  }
  0xd3   : > { %s637_s19 = sshll.u32 %s7374_s23, 4  ;;  %s7375_s14 = smov [#allocation16]   ;;  %s638_s19 = int_to_ptr.vmem [resolvable:$true] %s637_s19 }
  0xd4   : > { %s669_s5 = sshll.u32 %s7375_s14, 4  ;;  %s9479_s11 = sld [smem:[#allocation57_spill]]  ;;  %s7696_s5 = int_to_ptr.vmem [resolvable:$true] %s669_s5 }
  0xda   : > { %s7072_s30 = scalar_lea.hbm %s9479_s11, 1024 }
  0xdb   : > { %p7073_p1 = scmp.ne.s32.totalorder %s9479_s11, %s7072_s30  ;;  %p7079_p12 = scmp.lt.u32.totalorder %s7072_s30, %s9479_s11 }
  0xdd   : > { %p7075_p3 = pnand %p7073_p1, %p7548_p8 }
  0xdf   : > { %p7076_p11 = pneg %p7075_p3 }
  0xe1   : > { %p7081_p13 = pnand %p7079_p12, %p7076_p11 }
  0xe3   : > { %7084 = shalt.err (!%p7081_p13)
}
  0xe4   : > { %s7085_s12 = scalar_lea.vmem %s638_s19, 1024  ;;  %p7093_p7 = scmp.lt.s32.totalorder %s638_s19, %s638_s19 }
  0xe5   : > { %p7086_p0 = scmp.ne.s32.totalorder %s638_s19, %s7085_s12  ;;  %p7094_p9 = scmp.lt.s32.totalorder %s7085_s12, %s7085_s12 }
  0xe7   : > { %p7088_p2 = pnand %p7086_p0, %p7548_p8  ;;  %p7095_p4 = por %p7094_p9, %p7093_p7 }
  0xe9   : > { %p7089_p5 = pneg %p7088_p2 }
  0xeb   : > { %p7096_p10 = pnand %p7095_p4, %p7089_p5 }
  0xed   : > { %7099 = shalt.err (!%p7096_p10)
}
  0xee   : > { %6200 = dma.hbm_to_vmem [thread:$0]  (!%p7534_p6), %s9479_s11, 1024, %s638_s19, [#allocation12], %s9478_s1, %s9478_s1, %s7371_s17  }
  0xef   : > { %s9480_s15 = sld [smem:[#allocation61_spill]] }
  0xf5   : > { %s7100_s30 = scalar_lea.hbm %s9480_s15, 4096 }
  0xf6   : > { %p7101_p1 = scmp.ne.s32.totalorder %s9480_s15, %s7100_s30  ;;  %p7107_p12 = scmp.lt.u32.totalorder %s7100_s30, %s9480_s15 }
  0xf8   : > { %p7103_p3 = pnand %p7101_p1, %p7548_p8 }
  0xfa   : > { %p7104_p11 = pneg %p7103_p3 }
  0xfc   : > { %p7109_p13 = pnand %p7107_p12, %p7104_p11 }
  0xfe   : > { %7112 = shalt.err (!%p7109_p13)
}
  0xff   : > { %s7113_s17 = scalar_lea.vmem %s7696_s5, 4096  ;;  %p7121_p7 = scmp.lt.s32.totalorder %s7696_s5, %s7696_s5 }
 0x100   : > { %p7114_p0 = scmp.ne.s32.totalorder %s7696_s5, %s7113_s17  ;;  %p7122_p9 = scmp.lt.s32.totalorder %s7113_s17, %s7113_s17 }
 0x102   : > { %p7116_p2 = pnand %p7114_p0, %p7548_p8  ;;  %p7123_p4 = por %p7122_p9, %p7121_p7 }
 0x104   : > { %p7117_p5 = pneg %p7116_p2 }
 0x106   : > { %p7124_p10 = pnand %p7123_p4, %p7117_p5 }
 0x108   : > { %7127 = shalt.err (!%p7124_p10)
}
 0x109   : > { %s9481_s1 = smov 16   ;;  %s9482_s19 = smov 256  }
 0x10a   : > { %6206 = dma.hbm_to_vmem [thread:$0]  (!%p7534_p6), %s9480_s15, 4096, %s7696_s5, [#allocation15], %s9482_s19, %s9482_s19, %s9481_s1  }
 0x10b   : > { %s9410_s21 = sadd.s32 4294967294, %s7360_s27   ;;  %s7747_s4 = sadd.s32 1, %s7360_s27  }
 0x10c   : > { %s52_s14 = ssub.s32 %s7360_s27, %s7747_s4  ;;  %s55_s24 = sadd.s32 1, %s7356_s26 }
 0x10d   : > { %p53_p8 = scmp.eq.s32.totalorder %s52_s14, 0  ;;  %p62_p1 = scmp.ne.s32.totalorder %s7356_s26, %s7352_s25 }
 0x10e   : > { %p63_p3 = scmp.eq.s32.totalorder %s7360_s27, 0  ;;  %p68_p11 = scmp.ne.s32.totalorder %s7352_s25, %s7348_s2 }
 0x10f   : > { %s7758_s16 = scalar_select %p53_p8, %s7356_s26, %s55_s24  }
 0x110   : > { %p7760_p12 = por %p63_p3, %p62_p1  ;;  %p9484_p13 = scmp.eq.s32.totalorder %s7518_s29, 0 }
 0x111   : > { %p428_p0 = scmp.eq.s32.totalorder %s7518_s29, 1  ;;  %p434_p2 = scmp.eq.s32.totalorder %s9410_s21, 1 }
 0x112   : > { %p7766_p6 = por %p9484_p13, %p68_p11  ;;  %p6235_p5 = scmp.lt.s32.totalorder %s7360_s27, 2 }
 0x113   : > { %s686_s22 = sand.u32 1, %s7356_s26   ;;  %p7775_p7 = por %p428_p0, %p62_p1 }
 0x114   : > { %p7779_p9 = por %p434_p2, %p68_p11  ;;  %s5481_s28 = sshll.u32 %s686_s22, 8 }
 0x115   : > { %s9486_s3 = scalar_select %p7775_p7, 1, 0 }
 0x116   : > { %s9487_s9 = scalar_select %p7779_p9, 1, 0 }
 0x117   : > { %s5843_s17 = sshll.u32 %s7360_s27, 12  ;;  %s9488_s14 = sld [smem:[#allocation46_spill]] }
 0x118   : > { %s690_s21 = scalar_lea.vmem [#allocation2], %s5481_s28  ;;  %p7793_p4 = pnand %p6235_p5, %p7760_p12 }
 0x119   : > { %s698_s7 = sshll.u32 %s690_s21, 4  ;;  %s7797_s13 = scalar_lea.sflag [#allocation3], %s686_s22  ;;  %s7789_s7 = int_to_ptr.vmem [resolvable:$true] %s698_s7 }
 0x11a   : > { %p7130_p8 = pneg %p7793_p4 }
 0x11d   : > { %s7787_s24 = scalar_lea.hbm %s9488_s14, %s5843_s17  ;;  %s7133_s30 = scalar_lea.hbm %s9488_s14, 8192 }
 0x11e   : > { %s7128_s12 = scalar_lea.hbm %s7787_s24, 4096  ;;  %p7134_p11 = scmp.lt.u32.totalorder %s7787_s24, %s9488_s14 }
 0x11f   : > { %p7129_p10 = scmp.ne.s32.totalorder %s7787_s24, %s7128_s12  ;;  %p7135_p12 = scmp.lt.u32.totalorder %s7133_s30, %s7128_s12 }
 0x120   : > { %p7137_p0 = scmp.lt.u32.totalorder %s7128_s12, %s7787_s24 }
 0x121   : > { %p7131_p1 = pnand %p7130_p8, %p7129_p10  ;;  %p7136_p13 = por %p7135_p12, %p7134_p11 }
 0x123   : > { %p7132_p3 = pneg %p7131_p1  ;;  %p7138_p2 = por %p7137_p0, %p7136_p13 }
 0x125   : > { %p7139_p5 = pnand %p7138_p2, %p7132_p3 }
 0x127   : > { %7142 = shalt.err (!%p7139_p5)
}
 0x128   : > { %s7143_s22 = scalar_lea.vmem %s7789_s7, 4096  ;;  %s7376_s21 = smov [#allocation2]  }
 0x129   : > { %p7144_p10 = scmp.ne.s32.totalorder %s7789_s7, %s7143_s22  ;;  %s7148_s28 = sshll.u32 %s7376_s21, 4  ;;  %s7149_s28 = int_to_ptr.vmem [resolvable:$false] %s7148_s28 }
 0x12a   : > { %s7150_s17 = scalar_lea.vmem %s7149_s28, 8192  ;;  %p7151_p7 = scmp.lt.s32.totalorder %s7789_s7, %s7149_s28 }
 0x12b   : > { %p7146_p1 = pnand %p7144_p10, %p7130_p8  ;;  %p7152_p11 = scmp.lt.s32.totalorder %s7150_s17, %s7143_s22 }
 0x12d   : > { %p7147_p9 = pneg %p7146_p1  ;;  %p7153_p12 = por %p7152_p11, %p7151_p7 }
 0x12f   : > { %p7154_p13 = pnand %p7153_p12, %p7147_p9 }
 0x131   : > { %7157 = shalt.err (!%p7154_p13)
}
 0x132   : > { %6210 = dma.hbm_to_vmem [thread:$0]  (!%p7793_p4), %s7787_s24, 4096, %s7789_s7, %s7797_s13, %s9482_s19, %s9482_s19, %s9481_s1  }
 0x133   : > { %p9490_p8 = scmp.ne.s32.totalorder %s9467_s0, 0 }
 0x135   : > { %710 = sbr.rel (%p9490_p8) target bundleno = 2801 (0xaf1), region = 88 }
 0x13c   : > { %s7831_s12 = sand.u32 1, %s7352_s25  }
 0x13d   : > { %s9432_s30 = sshll.u32 %s7831_s12, 8  ;;  %s713_s23 = scalar_lea.sflag [#allocation3], %s7831_s12 }
 0x13e   : > { %s7837_s11 = scalar_lea.vmem [#allocation2], %s9432_s30 }
 0x13f   : > { %7315 = dma.done.wait (%p7766_p6), %s713_s23, 4096  }
 0x140   : > { %7317 = vsyncadd (%p7766_p6), %s713_s23, 4294963200  ;;  %p9491_p7 = scmp.eq.s32.totalorder %s7518_s29, 0 }
 0x142   : > { %7319 = dma.done.wait (%p9491_p7), [#allocation6], 20480   ;;  %p9492_p9 = pmov %p9491_p7 }
 0x143   : > { %p9493_p4 = pmov %p9491_p7 }
 0x144   : > { %7321 = vsyncadd (%p9492_p9), [#allocation6], 4294946816 }
 0x145   : > { %7323 = dma.done.wait (%p9493_p4), [#allocation9], 5120   ;;  %p9494_p3 = pmov %p9493_p4 }
 0x147   : > { %7325 = vsyncadd (%p9494_p3), [#allocation9], 4294962176  ;;  %p9495_p0 = pmov %p9494_p3 }
 0x149   : > { %7327 = dma.done.wait (%p9495_p0), [#allocation12], 2048   ;;  %p9496_p2 = pmov %p9495_p0 }
 0x14a   : > { %p9497_p6 = pmov %p9495_p0 }
 0x14b   : > { %7329 = vsyncadd (%p9496_p2), [#allocation12], 4294965248 }
 0x14c   : > { %7331 = dma.done.wait (%p9497_p6), [#allocation15], 5120   ;;  %p9498_p5 = pmov %p9495_p0 }
 0x14d   : > { %v6296_v0 = vld [vmem:[#allocation5 + $0x4] ss:$16 sps:$4 sm:$0xff]   ;;  %v6298_v1 = vld [vmem:[#allocation5] ss:$16 sps:$4 sm:$0xff]   ;;  %v6431_v35 = vld [vmem:[#allocation5 + $0xc] ss:$16 sps:$4 sm:$0xff]  }
 0x14e   : > { %7333 = vsyncadd (%p9498_p5), [#allocation15], 4294962176  ;;  %1794 = vmatprep.subr.bf16.mxu0 %v6296_v0  ;;  %v6299_v2 = vld [vmem:[#allocation5 + $0x24] ss:$16 sps:$4 sm:$0xff]   ;;  %v6301_v3 = vld [vmem:[#allocation5 + $0x20] ss:$16 sps:$4 sm:$0xff]   ;;  %2020 = vmatprep.subr.bf16.mxu1 %v6431_v35 }
 0x14f   : > { %1795 = vmatpush1.bf16.msra.mxu0 %v6298_v1  ;;  %v6302_v4 = vld [vmem:[#allocation5 + $0x44] ss:$16 sps:$4 sm:$0xff]   ;;  %v6304_v5 = vld [vmem:[#allocation5 + $0x40] ss:$16 sps:$4 sm:$0xff]   ;;  %v6433_v36 = vld [vmem:[#allocation5 + $0x8] ss:$16 sps:$4 sm:$0xff]  }
 0x150   : > { %1796 = vmatprep.subr.bf16.mxu0 %v6299_v2  ;;  %v6305_v6 = vld [vmem:[#allocation5 + $0x64] ss:$16 sps:$4 sm:$0xff]   ;;  %v6307_v7 = vld [vmem:[#allocation5 + $0x60] ss:$16 sps:$4 sm:$0xff]   ;;  %v6434_v38 = vld [vmem:[#allocation5 + $0x2c] ss:$16 sps:$4 sm:$0xff]   ;;  %2021 = vmatpush1.bf16.msra.mxu1 %v6433_v36 }
 0x151   : > { %v6308_v8 = vld [vmem:[#allocation5 + $0x84] ss:$16 sps:$4 sm:$0xff]   ;;  %v6310_v9 = vld [vmem:[#allocation5 + $0x80] ss:$16 sps:$4 sm:$0xff]   ;;  %2022 = vmatprep.subr.bf16.mxu1 %v6434_v38  ;;  %v6436_v41 = vld [vmem:[#allocation5 + $0x28] ss:$16 sps:$4 sm:$0xff]  }
 0x152   : > { %v6311_v10 = vld [vmem:[#allocation5 + $0xa4] ss:$16 sps:$4 sm:$0xff]   ;;  %v6313_v11 = vld [vmem:[#allocation5 + $0xa0] ss:$16 sps:$4 sm:$0xff]   ;;  %v6440_v42 = vld [vmem:[#allocation5 + $0x4c] ss:$16 sps:$4 sm:$0xff]  }
 0x153   : > { %1797 = vmatpush1.bf16.msra.mxu0 %v6301_v3  ;;  %v6314_v12 = vld [vmem:[#allocation5 + $0xc4] ss:$16 sps:$4 sm:$0xff]   ;;  %v6316_v14 = vld [vmem:[#allocation5 + $0xc0] ss:$16 sps:$4 sm:$0xff]   ;;  %v6442_v45 = vld [vmem:[#allocation5 + $0x48] ss:$16 sps:$4 sm:$0xff]  }
 0x154   : > { %1798 = vmatprep.subr.bf16.mxu0 %v6302_v4  ;;  %v6346_v13 = vld [vmem:[%s7837_s11 + $0x4] ss:$16 sps:$4 sm:$0xff]   ;;  %v6319_v16 = vld [vmem:[#allocation5 + $0xe0] ss:$16 sps:$4 sm:$0xff]   ;;  %2023 = vmatpush1.bf16.msra.mxu1 %v6436_v41  ;;  %v6443_v46 = vld [vmem:[#allocation5 + $0x6c] ss:$16 sps:$4 sm:$0xff]  }
 0x155   : > { %v6317_v15 = vld [vmem:[#allocation5 + $0xe4] ss:$16 sps:$4 sm:$0xff]   ;;  %1826 = vmatprep.mubr.bf16.mxu0 %v6346_v13  ;;  %2052 = vmatprep.mubr.bf16.mxu1 %v6346_v13  ;;  %v6322_v18 = vld [vmem:[#allocation5 + $0x100] ss:$16 sps:$4 sm:$0xff]   ;;  %v6445_v51 = vld [vmem:[#allocation5 + $0x68] ss:$16 sps:$4 sm:$0xff]  }
 0x156   : > { %v6320_v17 = vld [vmem:[#allocation5 + $0x104] ss:$16 sps:$4 sm:$0xff]   ;;  %v6325_v20 = vld [vmem:[#allocation5 + $0x120] ss:$16 sps:$4 sm:$0xff]   ;;  %2024 = vmatprep.subr.bf16.mxu1 %v6440_v42  ;;  %v6449_v52 = vld [vmem:[#allocation5 + $0x8c] ss:$16 sps:$4 sm:$0xff]  }
 0x157   : > { %1799 = vmatpush1.bf16.msra.mxu0 %v6304_v5  ;;  %v6323_v19 = vld [vmem:[#allocation5 + $0x124] ss:$16 sps:$4 sm:$0xff]   ;;  %v6328_v22 = vld [vmem:[#allocation5 + $0x140] ss:$16 sps:$4 sm:$0xff]   ;;  %v6451_v55 = vld [vmem:[#allocation5 + $0x88] ss:$16 sps:$4 sm:$0xff]  }
 0x158   : > { %1800 = vmatprep.subr.bf16.mxu0 %v6305_v6  ;;  %v6326_v21 = vld [vmem:[#allocation5 + $0x144] ss:$16 sps:$4 sm:$0xff]   ;;  %v6331_v24 = vld [vmem:[#allocation5 + $0x160] ss:$16 sps:$4 sm:$0xff]   ;;  %2025 = vmatpush1.bf16.msra.mxu1 %v6442_v45  ;;  %v6452_v56 = vld [vmem:[#allocation5 + $0xac] ss:$16 sps:$4 sm:$0xff]  }
 0x159   : > { %v6329_v23 = vld [vmem:[#allocation5 + $0x164] ss:$16 sps:$4 sm:$0xff]   ;;  %v6334_v26 = vld [vmem:[#allocation5 + $0x180] ss:$16 sps:$4 sm:$0xff]   ;;  %2026 = vmatprep.subr.bf16.mxu1 %v6443_v46  ;;  %v6454_v61 = vld [vmem:[#allocation5 + $0xa8] ss:$16 sps:$4 sm:$0xff]  }
 0x15a   : > { %v6332_v25 = vld [vmem:[#allocation5 + $0x184] ss:$16 sps:$4 sm:$0xff]   ;;  %v6337_v28 = vld [vmem:[#allocation5 + $0x1a0] ss:$16 sps:$4 sm:$0xff]   ;;  %v6458_v62 = vld [vmem:[#allocation5 + $0xcc] ss:$16 sps:$4 sm:$0xff]  }
 0x15b   : > { %1801 = vmatpush1.bf16.msra.mxu0 %v6307_v7  ;;  %v6335_v27 = vld [vmem:[#allocation5 + $0x1a4] ss:$16 sps:$4 sm:$0xff]   ;;  %v6340_v30 = vld [vmem:[#allocation5 + $0x1c0] ss:$16 sps:$4 sm:$0xff]   ;;  %v6460_v1 = vld [vmem:[#allocation5 + $0xc8] ss:$16 sps:$4 sm:$0xff]  }
 0x15c   : > { %1802 = vmatprep.subr.bf16.mxu0 %v6308_v8  ;;  %v6338_v29 = vld [vmem:[#allocation5 + $0x1c4] ss:$16 sps:$4 sm:$0xff]   ;;  %v6343_v32 = vld [vmem:[#allocation5 + $0x1e0] ss:$16 sps:$4 sm:$0xff]   ;;  %2027 = vmatpush1.bf16.msra.mxu1 %v6445_v51  ;;  %v6461_v2 = vld [vmem:[#allocation5 + $0xec] ss:$16 sps:$4 sm:$0xff]  }
 0x15d   : > { %v6341_v31 = vld [vmem:[#allocation5 + $0x1e4] ss:$16 sps:$4 sm:$0xff]   ;;  %v7861_v34 = vld [vmem:[%s7837_s11] ss:$16 sps:$4 sm:$0xff]   ;;  %2028 = vmatprep.subr.bf16.mxu1 %v6449_v52  ;;  %v6463_v7 = vld [vmem:[#allocation5 + $0xe8] ss:$16 sps:$4 sm:$0xff]  }
 0x15e   : > { %v6349_v33 = vld [vmem:[#allocation5 + $0x204] ss:$16 sps:$4 sm:$0xff]   ;;  %v6347_v37 = vld [vmem:[#allocation5 + $0x200] ss:$16 sps:$4 sm:$0xff]   ;;  %v6464_v8 = vld [vmem:[#allocation5 + $0x10c] ss:$16 sps:$4 sm:$0xff]  }
 0x15f   : > { %1803 = vmatpush1.bf16.msra.mxu0 %v6310_v9  ;;  %v6352_v39 = vld [vmem:[#allocation5 + $0x224] ss:$16 sps:$4 sm:$0xff]   ;;  %v6350_v43 = vld [vmem:[#allocation5 + $0x220] ss:$16 sps:$4 sm:$0xff]   ;;  %v6481_v38 = vld [vmem:[#allocation5 + $0x1a8] ss:$16 sps:$4 sm:$0xff]  }
 0x160   : > { %1804 = vmatprep.subr.bf16.mxu0 %v6311_v10  ;;  %v7864_v40 = vld [vmem:[%s7837_s11 + $0x24] ss:$16 sps:$4 sm:$0xff]   ;;  %v7869_v47 = vld [vmem:[%s7837_s11 + $0x20] ss:$16 sps:$4 sm:$0xff]   ;;  %2029 = vmatpush1.bf16.msra.mxu1 %v6451_v55  ;;  %v6487_v51 = vld [vmem:[#allocation5 + $0x1e8] ss:$16 sps:$4 sm:$0xff]  }
 0x161   : > { %v6358_v44 = vld [vmem:[#allocation5 + $0x244] ss:$16 sps:$4 sm:$0xff]   ;;  %v6356_v48 = vld [vmem:[#allocation5 + $0x240] ss:$16 sps:$4 sm:$0xff]   ;;  %2030 = vmatprep.subr.bf16.mxu1 %v6452_v56  ;;  %v6490_v52 = vld [vmem:[#allocation5 + $0x20c] ss:$16 sps:$4 sm:$0xff]  }
 0x162   : > { %v6361_v49 = vld [vmem:[#allocation5 + $0x264] ss:$16 sps:$4 sm:$0xff]   ;;  %v6359_v53 = vld [vmem:[#allocation5 + $0x260] ss:$16 sps:$4 sm:$0xff]   ;;  %v7925_v55 = vld [vmem:[%s7837_s11 + $0x8] ss:$16 sps:$4 sm:$0xff]  }
 0x163   : > { %1805 = vmatpush1.bf16.msra.mxu0 %v6313_v11  ;;  %v7872_v50 = vld [vmem:[%s7837_s11 + $0x44] ss:$16 sps:$4 sm:$0xff]   ;;  %v7877_v57 = vld [vmem:[%s7837_s11 + $0x40] ss:$16 sps:$4 sm:$0xff]   ;;  %v6466_v11 = vld [vmem:[#allocation5 + $0x108] ss:$16 sps:$4 sm:$0xff]  }
 0x164   : > { %1806 = vmatprep.subr.bf16.mxu0 %v6314_v12  ;;  %v6367_v54 = vld [vmem:[#allocation5 + $0x284] ss:$16 sps:$4 sm:$0xff]   ;;  %v6365_v58 = vld [vmem:[#allocation5 + $0x280] ss:$16 sps:$4 sm:$0xff]   ;;  %2031 = vmatpush1.bf16.msra.mxu1 %v6454_v61  ;;  %v6467_v12 = vld [vmem:[#allocation5 + $0x12c] ss:$16 sps:$4 sm:$0xff]  }
 0x165   : > { %v6370_v59 = vld [vmem:[#allocation5 + $0x2a4] ss:$16 sps:$4 sm:$0xff]   ;;  %v6368_v63 = vld [vmem:[#allocation5 + $0x2a0] ss:$16 sps:$4 sm:$0xff]   ;;  %2032 = vmatprep.subr.bf16.mxu1 %v6458_v62  ;;  %v6493_v56 = vld [vmem:[#allocation5 + $0x22c] ss:$16 sps:$4 sm:$0xff]  }
 0x166   : > { %v7880_v60 = vld [vmem:[%s7837_s11 + $0x64] ss:$16 sps:$4 sm:$0xff]   ;;  %v7885_v3 = vld [vmem:[%s7837_s11 + $0x60] ss:$16 sps:$4 sm:$0xff]   ;;  %v6491_v62 = vld [vmem:[#allocation5 + $0x228] ss:$16 sps:$4 sm:$0xff]  }
 0x167   : > { %1807 = vmatpush1.bf16.msra.mxu0 %v6316_v14  ;;  %v6376_v0 = vld [vmem:[#allocation5 + $0x2c4] ss:$16 sps:$4 sm:$0xff]   ;;  %v6374_v4 = vld [vmem:[#allocation5 + $0x2c0] ss:$16 sps:$4 sm:$0xff]   ;;  %s9499_s0 = sld [smem:[#allocation48_spill]]  ;;  %s9500_s5 = sld [smem:[#allocation50_spill]] }
 0x168   : > { %1808 = vmatprep.subr.bf16.mxu0 %v6317_v15  ;;  %v6379_v5 = vld [vmem:[#allocation5 + $0x2e4] ss:$16 sps:$4 sm:$0xff]   ;;  %2033 = vmatpush1.bf16.msra.mxu1 %v6460_v1  ;;  %v6377_v9 = vld [vmem:[#allocation5 + $0x2e0] ss:$16 sps:$4 sm:$0xff]   ;;  %s9501_s6 = sld [smem:[#allocation52_spill]]  ;;  %s8184_s21 = sshll.u32 %s7831_s12, 7 }
 0x169   : > { %v7888_v6 = vld [vmem:[%s7837_s11 + $0x84] ss:$16 sps:$4 sm:$0xff]   ;;  %2034 = vmatprep.subr.bf16.mxu1 %v6461_v2  ;;  %v7893_v13 = vld [vmem:[%s7837_s11 + $0x80] ss:$16 sps:$4 sm:$0xff]   ;;  %v6494_v2 = vld [vmem:[#allocation5 + $0x248] ss:$16 sps:$4 sm:$0xff]  }
 0x16a   : > { %v6385_v10 = vld [vmem:[#allocation5 + $0x304] ss:$16 sps:$4 sm:$0xff]   ;;  %v6383_v14 = vld [vmem:[#allocation5 + $0x300] ss:$16 sps:$4 sm:$0xff]   ;;  %s8197_s28 = scalar_lea.vmem [#allocation17], %s8184_s21  ;;  %s8202_s17 = scalar_lea.vmem [#allocation21], %s8184_s21 }
 0x16b   : > { %1809 = vmatpush1.bf16.msra.mxu0 %v6319_v16  ;;  %v6388_v15 = vld [vmem:[#allocation5 + $0x324] ss:$16 sps:$4 sm:$0xff]   ;;  %v6401_v35 = vld [vmem:[#allocation5 + $0x380] ss:$16 sps:$4 sm:$0xff]   ;;  %s8212_s23 = scalar_lea.vmem [#allocation23], %s8184_s21  ;;  %s9502_s8 = sld [smem:[#allocation54_spill]] }
 0x16c   : > { %1810 = vmatprep.subr.bf16.mxu0 %v6320_v17  ;;  %2035 = vmatpush1.bf16.msra.mxu1 %v6463_v7  ;;  %v7896_v16 = vld [vmem:[%s7837_s11 + $0xa4] ss:$16 sps:$4 sm:$0xff]   ;;  %v6469_v17 = vld [vmem:[#allocation5 + $0x128] ss:$16 sps:$4 sm:$0xff]   ;;  %v6404_v41 = vld [vmem:[#allocation5 + $0x3a0] ss:$16 sps:$4 sm:$0xff]  }
 0x16d   : > { %2036 = vmatprep.subr.bf16.mxu1 %v6464_v8  ;;  %v6406_v36 = vld [vmem:[#allocation5 + $0x3a4] ss:$16 sps:$4 sm:$0xff]   ;;  %v7917_v45 = vld [vmem:[%s7837_s11 + $0xe0] ss:$16 sps:$4 sm:$0xff]   ;;  %v7935_v7 = vld [vmem:[%s7837_s11 + $0x28] ss:$16 sps:$4 sm:$0xff]  }
 0x16e   : > { %v6412_v42 = vld [vmem:[#allocation5 + $0x3c4] ss:$16 sps:$4 sm:$0xff]   ;;  %v6410_v46 = vld [vmem:[#allocation5 + $0x3c0] ss:$16 sps:$4 sm:$0xff]   ;;  %s9503_s10 = sld [smem:[#allocation56_spill]]  ;;  %s8482_s7 = scalar_lea.vmem [#allocation18], %s8184_s21 }
 0x16f   : > { %1811 = vmatpush1.bf16.msra.mxu0 %v6322_v18  ;;  %v6470_v18 = vld [vmem:[#allocation5 + $0x14c] ss:$16 sps:$4 sm:$0xff]   ;;  %v6539_v1 = vld [vmem:[#allocation7 + $0x10] ss:$8 sps:$4 sm:$0xff]   ;;  %v6542_v8 = vld [vmem:[#allocation7 + $0x20] ss:$8 sps:$4 sm:$0xff]  }
 0x170   : > { %1812 = vmatprep.subr.bf16.mxu0 %v6323_v19  ;;  %2037 = vmatpush1.bf16.msra.mxu1 %v6466_v11  ;;  %v6386_v19 = vld [vmem:[#allocation5 + $0x320] ss:$16 sps:$4 sm:$0xff]   ;;  %v6538_v61 = vld [vmem:[#allocation7 + $0x4] ss:$8 sps:$4 sm:$0xff]   ;;  %s9433_s1 = sand.u32 1, %s7518_s29   ;;  %s9069_s19 = sshll.u32 %s7518_s29, 11 }
 0x171   : > { %2038 = vmatprep.subr.bf16.mxu1 %v6467_v12  ;;  %v6545_v11 = vld [vmem:[#allocation7 + $0x30] ss:$8 sps:$4 sm:$0xff]   ;;  %s9548_s22 = sld [smem:[#allocation64_spill]]  ;;  %s5150_s21 = sshll.u32 %s8482_s7, 4  ;;  %s9078_s21 = int_to_ptr.vmem [resolvable:$true] %s5150_s21 }
 0x172   : > { %v6500_v12 = vld [vmem:[#allocation5 + $0x288] ss:$16 sps:$4 sm:$0xff]   ;;  %s9082_s13 = scalar_lea.sflag [#allocation19], %s9433_s1  ;;  %p9549_p1 = scmp.ne.s32.totalorder %s9486_s3, 0 }
 0x173   : > { %1813 = vmatpush1.bf16.msra.mxu0 %v6325_v20  ;;  %v6394_v20 = vld [vmem:[#allocation5 + $0x344] ss:$16 sps:$4 sm:$0xff]   ;;  %s7378_s30 = smov [#allocation18]  }
 0x174   : > { %1814 = vmatprep.subr.bf16.mxu0 %v6326_v21  ;;  %2039 = vmatpush1.bf16.msra.mxu1 %v6469_v17  ;;  %v6472_v21 = vld [vmem:[#allocation5 + $0x148] ss:$16 sps:$4 sm:$0xff]  }
 0x175   : > { %2040 = vmatprep.subr.bf16.mxu1 %v6470_v18  ;;  %v7945_v17 = vld [vmem:[%s7837_s11 + $0x48] ss:$16 sps:$4 sm:$0xff]  }
 0x176   : > { %v6548_v18 = vld [vmem:[#allocation7 + $0x40] ss:$8 sps:$4 sm:$0xff]  }
 0x177   : > { %1815 = vmatpush1.bf16.msra.mxu0 %v6328_v22  ;;  %v6473_v22 = vld [vmem:[#allocation5 + $0x16c] ss:$16 sps:$4 sm:$0xff]  }
 0x178   : > { %1816 = vmatprep.subr.bf16.mxu0 %v6329_v23  ;;  %v7901_v23 = vld [vmem:[%s7837_s11 + $0xa0] ss:$16 sps:$4 sm:$0xff]   ;;  %2041 = vmatpush1.bf16.msra.mxu1 %v6472_v21 }
 0x179   : > { %2042 = vmatprep.subr.bf16.mxu1 %v6473_v22  ;;  %v6551_v21 = vld [vmem:[#allocation7 + $0x50] ss:$8 sps:$4 sm:$0xff]  }
 0x17a   : > { %v6506_v22 = vld [vmem:[#allocation5 + $0x2c8] ss:$16 sps:$4 sm:$0xff]  }
 0x17b   : > { %1817 = vmatpush1.bf16.msra.mxu0 %v6331_v24  ;;  %v6392_v24 = vld [vmem:[#allocation5 + $0x340] ss:$16 sps:$4 sm:$0xff]  }
 0x17c   : > { %1818 = vmatprep.subr.bf16.mxu0 %v6332_v25  ;;  %v6397_v25 = vld [vmem:[#allocation5 + $0x364] ss:$16 sps:$4 sm:$0xff]  }
 0x17f   : > { %1819 = vmatpush1.bf16.msra.mxu0 %v6334_v26  ;;  %v7904_v26 = vld [vmem:[%s7837_s11 + $0xc4] ss:$16 sps:$4 sm:$0xff]  }
 0x180   : > { %1820 = vmatprep.subr.bf16.mxu0 %v6335_v27  ;;  %v6475_v27 = vld [vmem:[#allocation5 + $0x168] ss:$16 sps:$4 sm:$0xff]  }
 0x181   : > { %2043 = vmatpush1.bf16.msra.mxu1 %v6475_v27  ;;  %v7955_v27 = vld [vmem:[%s7837_s11 + $0x68] ss:$16 sps:$4 sm:$0xff]  }
 0x183   : > { %1821 = vmatpush1.bf16.msra.mxu0 %v6337_v28  ;;  %v6476_v28 = vld [vmem:[#allocation5 + $0x18c] ss:$16 sps:$4 sm:$0xff]  }
 0x184   : > { %1822 = vmatprep.subr.bf16.mxu0 %v6338_v29  ;;  %v6395_v29 = vld [vmem:[#allocation5 + $0x360] ss:$16 sps:$4 sm:$0xff]   ;;  %2044 = vmatprep.subr.bf16.mxu1 %v6476_v28 }
 0x185   : > { %v6554_v28 = vld [vmem:[#allocation7 + $0x60] ss:$8 sps:$4 sm:$0xff]  }
 0x187   : > { %1823 = vmatpush1.bf16.msra.mxu0 %v6340_v30  ;;  %v6403_v30 = vld [vmem:[#allocation5 + $0x384] ss:$16 sps:$4 sm:$0xff]  }
 0x188   : > { %1824 = vmatprep.subr.bf16.mxu0 %v6341_v31  ;;  %v6478_v31 = vld [vmem:[#allocation5 + $0x188] ss:$16 sps:$4 sm:$0xff]  }
 0x189   : > { %2045 = vmatpush1.bf16.msra.mxu1 %v6478_v31  ;;  %v6557_v31 = vld [vmem:[#allocation7 + $0x70] ss:$8 sps:$4 sm:$0xff]  }
 0x18b   : > { %1825 = vmatpush1.bf16.msra.mxu0 %v6343_v32  ;;  %v6479_v32 = vld [vmem:[#allocation5 + $0x1ac] ss:$16 sps:$4 sm:$0xff]  }
 0x18c   : > { %1907 = vmatprep.subr.bf16.mxu0 %v6349_v33  ;;  %v7909_v33 = vld [vmem:[%s7837_s11 + $0xc0] ss:$16 sps:$4 sm:$0xff]   ;;  %2046 = vmatprep.subr.bf16.mxu1 %v6479_v32  ;;  %v6512_v32 = vld [vmem:[#allocation5 + $0x308] ss:$16 sps:$4 sm:$0xff]  }
 0x18d   : > { %2047 = vmatpush1.bf16.msra.mxu1 %v6481_v38  ;;  %v7965_v38 = vld [vmem:[%s7837_s11 + $0x88] ss:$16 sps:$4 sm:$0xff]  }
 0x18e   : > { %1827 = vmatmul.mubr.bf16.vlgmr.msra.gmra.mrb[0].mxu0 %v7861_v34 }
 0x18f   : > { %1908 = vmatpush1.bf16.msra.mxu0 %v6347_v37  ;;  %1836 = vmatprep.mubr.bf16.mxu0 %v7864_v40  ;;  %v7912_v37 = vld [vmem:[%s7837_s11 + $0xe4] ss:$16 sps:$4 sm:$0xff]  }
 0x190   : > { %1909 = vmatprep.subr.bf16.mxu0 %v6352_v39  ;;  %v6482_v39 = vld [vmem:[#allocation5 + $0x1cc] ss:$16 sps:$4 sm:$0xff]  }
 0x191   : > { %2048 = vmatprep.subr.bf16.mxu1 %v6482_v39  ;;  %v6560_v39 = vld [vmem:[#allocation7 + $0x80] ss:$8 sps:$4 sm:$0xff]  }
 0x193   : > { %1910 = vmatpush1.bf16.msra.mxu0 %v6350_v43  ;;  %v6484_v43 = vld [vmem:[#allocation5 + $0x1c8] ss:$16 sps:$4 sm:$0xff]  }
 0x194   : > { %1911 = vmatprep.subr.bf16.mxu0 %v6358_v44  ;;  %v6485_v44 = vld [vmem:[#allocation5 + $0x1ec] ss:$16 sps:$4 sm:$0xff]   ;;  %2049 = vmatpush1.bf16.msra.mxu1 %v6484_v43  ;;  %v6563_v43 = vld [vmem:[#allocation7 + $0x90] ss:$8 sps:$4 sm:$0xff]  }
 0x195   : > { %2050 = vmatprep.subr.bf16.mxu1 %v6485_v44  ;;  %v6518_v44 = vld [vmem:[#allocation5 + $0x348] ss:$16 sps:$4 sm:$0xff]  }
 0x196   : > { %1837 = vmatmul.mubr.bf16.gmra.mrb[4].mxu0 %v7869_v47 }
 0x197   : > { %1912 = vmatpush1.bf16.msra.mxu0 %v6356_v48  ;;  %1846 = vmatprep.mubr.bf16.mxu0 %v7872_v50  ;;  %v6415_v48 = vld [vmem:[#allocation5 + $0x3e4] ss:$16 sps:$4 sm:$0xff]  }
 0x198   : > { %1913 = vmatprep.subr.bf16.mxu0 %v6361_v49  ;;  %v7920_v49 = vld [vmem:[%s7837_s11 + $0xc] ss:$16 sps:$4 sm:$0xff]   ;;  %2051 = vmatpush1.bf16.msra.mxu1 %v6487_v51  ;;  %v7975_v51 = vld [vmem:[%s7837_s11 + $0xa8] ss:$16 sps:$4 sm:$0xff]  }
 0x199   : > { %2133 = vmatprep.subr.bf16.mxu1 %v6490_v52  ;;  %v6566_v52 = vld [vmem:[#allocation7 + $0xa0] ss:$8 sps:$4 sm:$0xff]  }
 0x19b   : > { %1914 = vmatpush1.bf16.msra.mxu0 %v6359_v53  ;;  %v6413_v53 = vld [vmem:[#allocation5 + $0x3e0] ss:$16 sps:$4 sm:$0xff]   ;;  %2053 = vmatmul.mubr.bf16.vlgmr.msra.gmra.mrb[0].mxu1 %v7861_v34  ;;  %v7938_v34 = vld [vmem:[%s7837_s11 + $0x4c] ss:$16 sps:$4 sm:$0xff]  }
 0x19c   : > { %1915 = vmatprep.subr.bf16.mxu0 %v6367_v54  ;;  %v6488_v54 = vld [vmem:[#allocation5 + $0x208] ss:$16 sps:$4 sm:$0xff]   ;;  %2062 = vmatprep.mubr.bf16.mxu1 %v7864_v40 }
 0x19d   : > { %2134 = vmatpush1.bf16.msra.mxu1 %v6488_v54  ;;  %v6497_v40 = vld [vmem:[#allocation5 + $0x268] ss:$16 sps:$4 sm:$0xff]   ;;  %v6526_v54 = vld [vmem:[#allocation5 + $0x38c] ss:$16 sps:$4 sm:$0xff]  }
 0x19e   : > { %1847 = vmatmul.mubr.bf16.gmra.mrb[8].mxu0 %v7877_v57  ;;  %2135 = vmatprep.subr.bf16.mxu1 %v6493_v56  ;;  %v6569_v56 = vld [vmem:[#allocation7 + $0xb0] ss:$8 sps:$4 sm:$0xff]  }
 0x19f   : > { %1916 = vmatpush1.bf16.msra.mxu0 %v6365_v58  ;;  %1856 = vmatprep.mubr.bf16.mxu0 %v7880_v60  ;;  %v7928_v58 = vld [vmem:[%s7837_s11 + $0x2c] ss:$16 sps:$4 sm:$0xff]  }
 0x1a0   : > { %1917 = vmatprep.subr.bf16.mxu0 %v6370_v59  ;;  %v6536_v59 = vld [vmem:[#allocation7] ss:$8 sps:$4 sm:$0xff]  }
 0x1a1   : > { %2136 = vmatpush1.bf16.msra.mxu1 %v6491_v62  ;;  %v6448_v62 = vld [vmem:[%s7837_s11 + $0xc8] ss:$16 sps:$4 sm:$0xff]  }
 0x1a3   : > { %1918 = vmatpush1.bf16.msra.mxu0 %v6368_v63  ;;  %v6541_v63 = vld [vmem:[#allocation7 + $0x14] ss:$8 sps:$4 sm:$0xff]   ;;  %2063 = vmatmul.mubr.bf16.gmra.mrb[4].mxu1 %v7869_v47 }
 0x1a4   : > { %1919 = vmatprep.subr.bf16.mxu0 %v6376_v0  ;;  %v6496_v0 = vld [vmem:[#allocation5 + $0x24c] ss:$16 sps:$4 sm:$0xff]   ;;  %2072 = vmatprep.mubr.bf16.mxu1 %v7872_v50  ;;  %v6503_v50 = vld [vmem:[#allocation5 + $0x2a8] ss:$16 sps:$4 sm:$0xff]  }
 0x1a5   : > { %2137 = vmatprep.subr.bf16.mxu1 %v6496_v0  ;;  %v7948_v47 = vld [vmem:[%s7837_s11 + $0x6c] ss:$16 sps:$4 sm:$0xff]   ;;  %v6527_v0 = vld [vmem:[#allocation5 + $0x3a8] ss:$16 sps:$4 sm:$0xff]  }
 0x1a6   : > { %1857 = vmatmul.mubr.bf16.gmra.mrb[12].mxu0 %v7885_v3  ;;  %2138 = vmatpush1.bf16.msra.mxu1 %v6494_v2  ;;  %v6532_v2 = vld [vmem:[#allocation5 + $0x3cc] ss:$16 sps:$4 sm:$0xff]  }
 0x1a7   : > { %1920 = vmatpush1.bf16.msra.mxu0 %v6374_v4  ;;  %1866 = vmatprep.mubr.bf16.mxu0 %v7888_v6  ;;  %v6499_v4 = vld [vmem:[#allocation5 + $0x26c] ss:$16 sps:$4 sm:$0xff]  }
 0x1a8   : > { %1921 = vmatprep.subr.bf16.mxu0 %v6379_v5  ;;  %v6544_v5 = vld [vmem:[#allocation7 + $0x24] ss:$8 sps:$4 sm:$0xff]   ;;  %2139 = vmatprep.subr.bf16.mxu1 %v6499_v4  ;;  %v6575_v4 = vld [vmem:[#allocation7 + $0xd0] ss:$8 sps:$4 sm:$0xff]  }
 0x1aa   : > { %2140 = vmatpush1.bf16.msra.mxu1 %v6497_v40  ;;  %v6533_v40 = vld [vmem:[#allocation5 + $0x3e8] ss:$16 sps:$4 sm:$0xff]  }
 0x1ab   : > { %1922 = vmatpush1.bf16.msra.mxu0 %v6377_v9  ;;  %v6547_v9 = vld [vmem:[#allocation7 + $0x34] ss:$8 sps:$4 sm:$0xff]   ;;  %2073 = vmatmul.mubr.bf16.gmra.mrb[8].mxu1 %v7877_v57 }
 0x1ac   : > { %1923 = vmatprep.subr.bf16.mxu0 %v6385_v10  ;;  %v6502_v10 = vld [vmem:[#allocation5 + $0x28c] ss:$16 sps:$4 sm:$0xff]   ;;  %2082 = vmatprep.mubr.bf16.mxu1 %v7880_v60  ;;  %v6509_v60 = vld [vmem:[#allocation5 + $0x2e8] ss:$16 sps:$4 sm:$0xff]  }
 0x1ad   : > { %2141 = vmatprep.subr.bf16.mxu1 %v6502_v10  ;;  %v7958_v57 = vld [vmem:[%s7837_s11 + $0x8c] ss:$16 sps:$4 sm:$0xff]   ;;  %v6590_v10 = vld [vmem:[#allocation8 + $0x20] ss:$8 sps:$4 sm:$0xff]  }
 0x1ae   : > { %1867 = vmatmul.mubr.bf16.gmra.mrb[16].mxu0 %v7893_v13  ;;  %2142 = vmatpush1.bf16.msra.mxu1 %v6500_v12  ;;  %v6595_v12 = vld [vmem:[#allocation8 + $0x34] ss:$8 sps:$4 sm:$0xff]  }
 0x1af   : > { %1924 = vmatpush1.bf16.msra.mxu0 %v6383_v14  ;;  %1876 = vmatprep.mubr.bf16.mxu0 %v7896_v16  ;;  %v6505_v14 = vld [vmem:[#allocation5 + $0x2ac] ss:$16 sps:$4 sm:$0xff]  }
 0x1b0   : > { %1925 = vmatprep.subr.bf16.mxu0 %v6388_v15  ;;  %v6550_v15 = vld [vmem:[#allocation7 + $0x44] ss:$8 sps:$4 sm:$0xff]   ;;  %2143 = vmatprep.subr.bf16.mxu1 %v6505_v14  ;;  %v6593_v14 = vld [vmem:[#allocation8 + $0x30] ss:$8 sps:$4 sm:$0xff]  }
 0x1b2   : > { %2144 = vmatpush1.bf16.msra.mxu1 %v6503_v50  ;;  %v6602_v50 = vld [vmem:[#allocation8 + $0x60] ss:$8 sps:$4 sm:$0xff]  }
 0x1b3   : > { %1926 = vmatpush1.bf16.msra.mxu0 %v6386_v19  ;;  %v6553_v19 = vld [vmem:[#allocation7 + $0x54] ss:$8 sps:$4 sm:$0xff]   ;;  %2083 = vmatmul.mubr.bf16.gmra.mrb[12].mxu1 %v7885_v3 }
 0x1b4   : > { %1927 = vmatprep.subr.bf16.mxu0 %v6394_v20  ;;  %v6508_v20 = vld [vmem:[#allocation5 + $0x2cc] ss:$16 sps:$4 sm:$0xff]   ;;  %2092 = vmatprep.mubr.bf16.mxu1 %v7888_v6  ;;  %v6515_v6 = vld [vmem:[#allocation5 + $0x328] ss:$16 sps:$4 sm:$0xff]  }
 0x1b5   : > { %2145 = vmatprep.subr.bf16.mxu1 %v6508_v20  ;;  %v7968_v3 = vld [vmem:[%s7837_s11 + $0xac] ss:$16 sps:$4 sm:$0xff]  }
 0x1b6   : > { %1877 = vmatmul.mubr.bf16.gmra.mrb[20].mxu0 %v7901_v23  ;;  %2146 = vmatpush1.bf16.msra.mxu1 %v6506_v22  ;;  %v6607_v20 = vld [vmem:[#allocation8 + $0x74] ss:$8 sps:$4 sm:$0xff]   ;;  %v6608_v22 = vld [vmem:[#allocation8 + $0x80] ss:$8 sps:$4 sm:$0xff]  }
 0x1b7   : > { %1928 = vmatpush1.bf16.msra.mxu0 %v6392_v24  ;;  %1886 = vmatprep.mubr.bf16.mxu0 %v7904_v26  ;;  %v6511_v24 = vld [vmem:[#allocation5 + $0x2ec] ss:$16 sps:$4 sm:$0xff]  }
 0x1b8   : > { %1929 = vmatprep.subr.bf16.mxu0 %v6397_v25  ;;  %v6556_v25 = vld [vmem:[#allocation7 + $0x64] ss:$8 sps:$4 sm:$0xff]   ;;  %2147 = vmatprep.subr.bf16.mxu1 %v6511_v24 }
 0x1b9   : > { %v6610_v24 = vld [vmem:[#allocation8 + $0x84] ss:$8 sps:$4 sm:$0xff]  }
 0x1ba   : > { %2148 = vmatpush1.bf16.msra.mxu1 %v6509_v60  ;;  %v2248_v60 = vlaneseq }
 0x1bb   : > { %1930 = vmatpush1.bf16.msra.mxu0 %v6395_v29  ;;  %v6559_v29 = vld [vmem:[#allocation7 + $0x74] ss:$8 sps:$4 sm:$0xff]   ;;  %2093 = vmatmul.mubr.bf16.gmra.mrb[16].mxu1 %v7893_v13 }
 0x1bc   : > { %1931 = vmatprep.subr.bf16.mxu0 %v6403_v30  ;;  %v6514_v30 = vld [vmem:[#allocation5 + $0x30c] ss:$16 sps:$4 sm:$0xff]   ;;  %2102 = vmatprep.mubr.bf16.mxu1 %v7896_v16  ;;  %v6521_v16 = vld [vmem:[#allocation5 + $0x368] ss:$16 sps:$4 sm:$0xff]  }
 0x1bd   : > { %2149 = vmatprep.subr.bf16.mxu1 %v6514_v30  ;;  %v7978_v13 = vld [vmem:[%s7837_s11 + $0xcc] ss:$16 sps:$4 sm:$0xff]   ;;  %v6617_v30 = vld [vmem:[#allocation8 + $0xb0] ss:$8 sps:$4 sm:$0xff]  }
 0x1be   : > { %1887 = vmatmul.mubr.bf16.gmra.mrb[24].mxu0 %v7909_v33  ;;  %2150 = vmatpush1.bf16.msra.mxu1 %v6512_v32  ;;  %v6620_v32 = vld [vmem:[#allocation8 + $0xc0] ss:$8 sps:$4 sm:$0xff]  }
 0x1bf   : > { %1932 = vmatpush1.bf16.msra.mxu0 %v6401_v35  ;;  %1896 = vmatprep.mubr.bf16.mxu0 %v7912_v37  ;;  %v6517_v35 = vld [vmem:[#allocation5 + $0x32c] ss:$16 sps:$4 sm:$0xff]  }
 0x1c0   : > { %1933 = vmatprep.subr.bf16.mxu0 %v6406_v36  ;;  %v6562_v36 = vld [vmem:[#allocation7 + $0x84] ss:$8 sps:$4 sm:$0xff]   ;;  %2151 = vmatprep.subr.bf16.mxu1 %v6517_v35 }
 0x1c1   : > { %v6622_v35 = vld [vmem:[#allocation8 + $0xc4] ss:$8 sps:$4 sm:$0xff]  }
 0x1c2   : > { %2152 = vmatpush1.bf16.msra.mxu1 %v6515_v6 }
 0x1c3   : > { %1934 = vmatpush1.bf16.msra.mxu0 %v6404_v41  ;;  %v6565_v41 = vld [vmem:[#allocation7 + $0x94] ss:$8 sps:$4 sm:$0xff]   ;;  %2103 = vmatmul.mubr.bf16.gmra.mrb[20].mxu1 %v7901_v23 }
 0x1c4   : > { %1935 = vmatprep.subr.bf16.mxu0 %v6412_v42  ;;  %v6520_v42 = vld [vmem:[#allocation5 + $0x34c] ss:$16 sps:$4 sm:$0xff]   ;;  %2112 = vmatprep.mubr.bf16.mxu1 %v7904_v26  ;;  %v6572_v26 = vld [vmem:[#allocation7 + $0xc0] ss:$8 sps:$4 sm:$0xff]  }
 0x1c5   : > { %2153 = vmatprep.subr.bf16.mxu1 %v6520_v42  ;;  %v6529_v23 = vld [vmem:[#allocation5 + $0x3ac] ss:$16 sps:$4 sm:$0xff]  }
 0x1c6   : > { %1897 = vmatmul.mubr.bf16.gmra.mrb[28].mxu0 %v7917_v45  ;;  %2154 = vmatpush1.bf16.msra.mxu1 %v6518_v44 }
 0x1c7   : > { %1936 = vmatpush1.bf16.msra.mxu0 %v6410_v46  ;;  %1939 = vmatprep.mubr.bf16.mxu0 %v7920_v49  ;;  %v6523_v46 = vld [vmem:[#allocation5 + $0x36c] ss:$16 sps:$4 sm:$0xff]  }
 0x1c8   : > { %1937 = vmatprep.subr.bf16.mxu0 %v6415_v48  ;;  %v6568_v48 = vld [vmem:[#allocation7 + $0xa4] ss:$8 sps:$4 sm:$0xff]   ;;  %2155 = vmatprep.subr.bf16.mxu1 %v6523_v46 }
 0x1ca   : > { %2156 = vmatpush1.bf16.msra.mxu1 %v6521_v16 }
 0x1cb   : > { %1938 = vmatpush1.bf16.msra.mxu0 %v6413_v53  ;;  %v6571_v53 = vld [vmem:[#allocation7 + $0xb4] ss:$8 sps:$4 sm:$0xff]   ;;  %2157 = vmatprep.subr.bf16.mxu1 %v6526_v54 }
 0x1cc   : > { %2542 = vmatprep.subr.bf16.mxu0 %v6538_v61  ;;  %v6574_v61 = vld [vmem:[#allocation7 + $0xc4] ss:$8 sps:$4 sm:$0xff]   ;;  %2113 = vmatmul.mubr.bf16.gmra.mrb[24].mxu1 %v7909_v33 }
 0x1cd   : > { %2122 = vmatprep.mubr.bf16.mxu1 %v7912_v37  ;;  %v6535_v33 = vld [vmem:[#allocation5 + $0x3ec] ss:$16 sps:$4 sm:$0xff]  }
 0x1ce   : > { %1940 = vmatmul.mubr.bf16.vlgmr.msra.gmra.mrb[0].mxu0 %v7925_v55  ;;  %v6580_v37 = vld [vmem:[#allocation7 + $0xe4] ss:$8 sps:$4 sm:$0xff]  }
 0x1cf   : > { %1949 = vmatprep.mubr.bf16.mxu0 %v7928_v58  ;;  %2543 = vmatpush1.bf16.msra.mxu0 %v6536_v59  ;;  %v6524_v59 = vld [vmem:[#allocation5 + $0x388] ss:$16 sps:$4 sm:$0xff]  }
 0x1d0   : > { %2544 = vmatprep.subr.bf16.mxu0 %v6541_v63  ;;  %v6455_v63 = vld [vmem:[%s7837_s11 + $0xec] ss:$16 sps:$4 sm:$0xff]   ;;  %2158 = vmatpush1.bf16.msra.mxu1 %v6524_v59 }
 0x1d1   : > { %2159 = vmatprep.subr.bf16.mxu1 %v6529_v23 }
 0x1d3   : > { %2545 = vmatpush1.bf16.msra.mxu0 %v6539_v1  ;;  %v6577_v1 = vld [vmem:[#allocation7 + $0xd4] ss:$8 sps:$4 sm:$0xff]  }
 0x1d4   : > { %2546 = vmatprep.subr.bf16.mxu0 %v6544_v5  ;;  %2160 = vmatpush1.bf16.msra.mxu1 %v6527_v0  ;;  %v6530_v5 = vld [vmem:[#allocation5 + $0x3c8] ss:$16 sps:$4 sm:$0xff]  }
 0x1d5   : > { %2161 = vmatprep.subr.bf16.mxu1 %v6532_v2  ;;  %2123 = vmatmul.mubr.bf16.gmra.mrb[28].mxu1 %v7917_v45  ;;  %v6578_v45 = vld [vmem:[#allocation7 + $0xe0] ss:$8 sps:$4 sm:$0xff]  }
 0x1d6   : > { %1950 = vmatmul.mubr.bf16.gmra.mrb[4].mxu0 %v7935_v7  ;;  %2165 = vmatprep.mubr.bf16.mxu1 %v7920_v49  ;;  %v6583_v49 = vld [vmem:[#allocation7 + $0xf4] ss:$8 sps:$4 sm:$0xff]  }
 0x1d7   : > { %1959 = vmatprep.mubr.bf16.mxu0 %v7938_v34  ;;  %2547 = vmatpush1.bf16.msra.mxu0 %v6542_v8  ;;  %v6457_v8 = vld [vmem:[%s7837_s11 + $0xe8] ss:$16 sps:$4 sm:$0xff]   ;;  %s9505_s11 = sld [smem:[#allocation60_spill]] }
 0x1d8   : > { %2548 = vmatprep.subr.bf16.mxu0 %v6547_v9  ;;  %2162 = vmatpush1.bf16.msra.mxu1 %v6530_v5  ;;  %v6587_v9 = vld [vmem:[#allocation8 + $0x10] ss:$8 sps:$4 sm:$0xff]  }
 0x1d9   : > { %2163 = vmatprep.subr.bf16.mxu1 %v6535_v33 }
 0x1db   : > { %2549 = vmatpush1.bf16.msra.mxu0 %v6545_v11  ;;  %v6592_v11 = vld [vmem:[#allocation8 + $0x24] ss:$8 sps:$4 sm:$0xff]  }
 0x1dc   : > { %2550 = vmatprep.subr.bf16.mxu0 %v6550_v15  ;;  %2164 = vmatpush1.bf16.msra.mxu1 %v6533_v40  ;;  %v6596_v15 = vld [vmem:[#allocation8 + $0x40] ss:$8 sps:$4 sm:$0xff]  }
 0x1de   : > { %1960 = vmatmul.mubr.bf16.gmra.mrb[8].mxu0 %v7945_v17 }
 0x1df   : > { %1969 = vmatprep.mubr.bf16.mxu0 %v7948_v47  ;;  %2551 = vmatpush1.bf16.msra.mxu0 %v6548_v18  ;;  %v6599_v18 = vld [vmem:[#allocation8 + $0x50] ss:$8 sps:$4 sm:$0xff]  }
 0x1e0   : > { %2552 = vmatprep.subr.bf16.mxu0 %v6553_v19  ;;  %2166 = vmatmul.mubr.bf16.vlgmr.msra.gmra.mrb[0].mxu1 %v7925_v55  ;;  %v6581_v55 = vld [vmem:[#allocation7 + $0xf0] ss:$8 sps:$4 sm:$0xff]   ;;  %v6604_v19 = vld [vmem:[#allocation8 + $0x64] ss:$8 sps:$4 sm:$0xff]  }
 0x1e1   : > { %2175 = vmatprep.mubr.bf16.mxu1 %v7928_v58  ;;  %v6584_v58 = vld [vmem:[#allocation8] ss:$8 sps:$4 sm:$0xff]  }
 0x1e3   : > { %2553 = vmatpush1.bf16.msra.mxu0 %v6551_v21  ;;  %v6605_v21 = vld [vmem:[#allocation8 + $0x70] ss:$8 sps:$4 sm:$0xff]  }
 0x1e4   : > { %2554 = vmatprep.subr.bf16.mxu0 %v6556_v25  ;;  %v6613_v25 = vld [vmem:[#allocation8 + $0x94] ss:$8 sps:$4 sm:$0xff]  }
 0x1e6   : > { %1970 = vmatmul.mubr.bf16.gmra.mrb[12].mxu0 %v7955_v27 }
 0x1e7   : > { %1979 = vmatprep.mubr.bf16.mxu0 %v7958_v57  ;;  %2555 = vmatpush1.bf16.msra.mxu0 %v6554_v28  ;;  %v6616_v28 = vld [vmem:[#allocation8 + $0xa4] ss:$8 sps:$4 sm:$0xff]  }
 0x1e8   : > { %2556 = vmatprep.subr.bf16.mxu0 %v6559_v29  ;;  %2176 = vmatmul.mubr.bf16.gmra.mrb[4].mxu1 %v7935_v7  ;;  %v6586_v7 = vld [vmem:[#allocation8 + $0x4] ss:$8 sps:$4 sm:$0xff]   ;;  %v6619_v29 = vld [vmem:[#allocation8 + $0xb4] ss:$8 sps:$4 sm:$0xff]  }
 0x1e9   : > { %2185 = vmatprep.mubr.bf16.mxu1 %v7938_v34  ;;  %v6589_v34 = vld [vmem:[#allocation8 + $0x14] ss:$8 sps:$4 sm:$0xff]   ;;  %2939 = vmatprep.subr.bf16.mxu1 %v6586_v7 }
 0x1ea   : > { %2940 = vmatpush1.bf16.msra.mxu1 %v6584_v58 }
 0x1eb   : > { %2557 = vmatpush1.bf16.msra.mxu0 %v6557_v31  ;;  %2941 = vmatprep.subr.bf16.mxu1 %v6589_v34  ;;  %v8003_v31 = vshrl.u32 %v2248_v60, 7 }
 0x1ec   : > { %2558 = vmatprep.subr.bf16.mxu0 %v6562_v36 }
 0x1ed   : > { %v8006_v36 = vsub.s32 0, %v8003_v31 }
 0x1ee   : > { %1980 = vmatmul.mubr.bf16.gmra.mrb[16].mxu0 %v7965_v38  ;;  %2942 = vmatpush1.bf16.msra.mxu1 %v6587_v9 }
 0x1ef   : > { %1989 = vmatprep.mubr.bf16.mxu0 %v7968_v3  ;;  %2559 = vmatpush1.bf16.msra.mxu0 %v6560_v39 }
 0x1f0   : > { %2560 = vmatprep.subr.bf16.mxu0 %v6565_v41  ;;  %2186 = vmatmul.mubr.bf16.gmra.mrb[8].mxu1 %v7945_v17  ;;  %v6598_v17 = vld [vmem:[#allocation8 + $0x44] ss:$8 sps:$4 sm:$0xff]  }
 0x1f1   : > { %2195 = vmatprep.mubr.bf16.mxu1 %v7948_v47  ;;  %2943 = vmatprep.subr.bf16.mxu1 %v6592_v11  ;;  %v6601_v47 = vld [vmem:[#allocation8 + $0x54] ss:$8 sps:$4 sm:$0xff]  }
 0x1f2   : > { %2944 = vmatpush1.bf16.msra.mxu1 %v6590_v10 }
 0x1f3   : > { %2561 = vmatpush1.bf16.msra.mxu0 %v6563_v43  ;;  %2945 = vmatprep.subr.bf16.mxu1 %v6595_v12 }
 0x1f4   : > { %2562 = vmatprep.subr.bf16.mxu0 %v6568_v48 }
 0x1f6   : > { %1990 = vmatmul.mubr.bf16.gmra.mrb[20].mxu0 %v7975_v51  ;;  %2946 = vmatpush1.bf16.msra.mxu1 %v6593_v14 }
 0x1f7   : > { %1999 = vmatprep.mubr.bf16.mxu0 %v7978_v13  ;;  %2563 = vmatpush1.bf16.msra.mxu0 %v6566_v52 }
 0x1f8   : > { %2564 = vmatprep.subr.bf16.mxu0 %v6571_v53  ;;  %2196 = vmatmul.mubr.bf16.gmra.mrb[12].mxu1 %v7955_v27  ;;  %v6611_v27 = vld [vmem:[#allocation8 + $0x90] ss:$8 sps:$4 sm:$0xff]  }
 0x1f9   : > { %2205 = vmatprep.mubr.bf16.mxu1 %v7958_v57  ;;  %2947 = vmatprep.subr.bf16.mxu1 %v6598_v17  ;;  %v6614_v57 = vld [vmem:[#allocation8 + $0xa0] ss:$8 sps:$4 sm:$0xff]  }
 0x1fa   : > { %2948 = vmatpush1.bf16.msra.mxu1 %v6596_v15 }
 0x1fb   : > { %2565 = vmatpush1.bf16.msra.mxu0 %v6569_v56  ;;  %2949 = vmatprep.subr.bf16.mxu1 %v6601_v47 }
 0x1fc   : > { %2566 = vmatprep.subr.bf16.mxu0 %v6574_v61 }
 0x1fe   : > { %2000 = vmatmul.mubr.bf16.gmra.mrb[24].mxu0 %v6448_v62  ;;  %2950 = vmatpush1.bf16.msra.mxu1 %v6599_v18 }
 0x1ff   : > { %2009 = vmatprep.mubr.bf16.mxu0 %v6455_v63  ;;  %2567 = vmatpush1.bf16.msra.mxu0 %v6572_v26 }
 0x200   : > { %2568 = vmatprep.subr.bf16.mxu0 %v6577_v1  ;;  %2206 = vmatmul.mubr.bf16.gmra.mrb[16].mxu1 %v7965_v38  ;;  %v2246_v38 = vld [vmem:[%s9499_s0] sm:$0x3]  ;;  %s9506_s0 = sld [smem:[#allocation62_spill]] }
 0x201   : > { %2215 = vmatprep.mubr.bf16.mxu1 %v7968_v3  ;;  %2951 = vmatprep.subr.bf16.mxu1 %v6604_v19  ;;  %v8012_v3 = vsub.s32 1, %v8003_v31  ;;  %v8015_v39 = vrot.slane %v2246_v38, %v8006_v36 }
 0x202   : > { %2952 = vmatpush1.bf16.msra.mxu1 %v6602_v50 }
 0x203   : > { %2569 = vmatpush1.bf16.msra.mxu0 %v6575_v4  ;;  %2953 = vmatprep.subr.bf16.mxu1 %v6607_v20  ;;  %v8018_v6 = vrot.slane %v2246_v38, %v8012_v3 }
 0x204   : > { %2570 = vmatprep.subr.bf16.mxu0 %v6580_v37 }
 0x206   : > { %2010 = vmatmul.mubr.bf16.gmra.mrb[28].mxu0 %v6457_v8  ;;  %2954 = vmatpush1.bf16.msra.mxu1 %v6605_v21 }
 0x207   : > { %2571 = vmatpush1.bf16.msra.mxu0 %v6578_v45  ;;  %2955 = vmatprep.subr.bf16.mxu1 %v6610_v24 }
 0x208   : > { %2572 = vmatprep.subr.bf16.mxu0 %v6583_v49  ;;  %2216 = vmatmul.mubr.bf16.gmra.mrb[20].mxu1 %v7975_v51 }
 0x209   : > { %2225 = vmatprep.mubr.bf16.mxu1 %v7978_v13 }
 0x20a   : > { %2956 = vmatpush1.bf16.msra.mxu1 %v6608_v22 }
 0x20b   : > { %2573 = vmatpush1.bf16.msra.mxu0 %v6581_v55  ;;  %2957 = vmatprep.subr.bf16.mxu1 %v6613_v25 }
 0x20e   : > { %2958 = vmatpush1.bf16.msra.mxu1 %v6611_v27 }
 0x20f   : > { %2959 = vmatprep.subr.bf16.mxu1 %v6616_v28 }
 0x210   : > { %2226 = vmatmul.mubr.bf16.gmra.mrb[24].mxu1 %v6448_v62 }
 0x211   : > { %2235 = vmatprep.mubr.bf16.mxu1 %v6455_v63 }
 0x212   : > { %2960 = vmatpush1.bf16.msra.mxu1 %v6614_v57 }
 0x213   : > { %2961 = vmatprep.subr.bf16.mxu1 %v6619_v29 }
 0x216   : > { %2962 = vmatpush1.bf16.msra.mxu1 %v6617_v30 }
 0x217   : > { %2963 = vmatprep.subr.bf16.mxu1 %v6622_v35 }
 0x218   : > { %2236 = vmatmul.mubr.bf16.gmra.mrb[28].mxu1 %v6457_v8 }
 0x21a   : > { %2964 = vmatpush1.bf16.msra.mxu1 %v6620_v32 }
 0x2a1   : > { %v1941_v41 = vpop.f32.mrb[0].mxu0 }
 0x2a2   : > { %v2258_v42 = vadd.f32 %v8015_v39, %v1941_v41  ;;  %v1943_v43 = vpop.f32.mrb[1].mxu0 }
 0x2a3   : > { %v2259_v44 = vadd.f32 %v8018_v6, %v1943_v43  ;;  %v1945_v46 = vpop.f32.mrb[2].mxu0 }
 0x2a4   : > { %v2260_v48 = vadd.f32 %v8015_v39, %v1945_v46  ;;  %v1947_v51 = vpop.f32.mrb[3].mxu0  ;;  %v2290_v52 = vmax.f32 %v2258_v42, 0.0 }
 0x2a5   : > { %v2261_v13 = vadd.f32 %v8018_v6, %v1947_v51  ;;  %v2291_v53 = vmax.f32 %v2259_v44, 0.0 }
 0x2a6   : > { %v2292_v16 = vmax.f32 %v2260_v48, 0.0 }
 0x2a7   : > { %v2293_v54 = vmax.f32 %v2261_v13, 0.0 }
 0x2a8   : > { %v2322_v56 = vpack.c.bf16 %v2292_v16, %v2290_v52 }
 0x2a9   : > { %v2323_v59 = vpack.c.bf16 %v2293_v54, %v2291_v53  ;;  %v1951_v23 = vpop.f32.mrb[4].mxu0 }
 0x2aa   : > { %v2262_v61 = vadd.f32 %v8015_v39, %v1951_v23  ;;  %v1953_v62 = vpop.f32.mrb[5].mxu0 }
 0x2ab   : > { %v2263_v63 = vadd.f32 %v8018_v6, %v1953_v62  ;;  %v1955_v26 = vpop.f32.mrb[6].mxu0  ;;  %2574 = vmatprep.mubr.bf16.mxu0 %v2323_v59 }
 0x2ac   : > { %v2264_v0 = vadd.f32 %v8015_v39, %v1955_v26  ;;  %v1957_v1 = vpop.f32.mrb[7].mxu0  ;;  %2575 = vmatmul.mubr.bf16.vlgmr.msra.gmra.mrb[32].mxu0 %v2322_v56  ;;  %v2294_v4 = vmax.f32 %v2262_v61, 0.0 }
 0x2ad   : > { %v2265_v2 = vadd.f32 %v8018_v6, %v1957_v1  ;;  %v2295_v33 = vmax.f32 %v2263_v63, 0.0 }
 0x2ae   : > { %v2296_v5 = vmax.f32 %v2264_v0, 0.0 }
 0x2af   : > { %v2297_v8 = vmax.f32 %v2265_v2, 0.0 }
 0x2b0   : > { %v2324_v40 = vpack.c.bf16 %v2296_v5, %v2294_v4 }
 0x2b1   : > { %v2325_v37 = vpack.c.bf16 %v2297_v8, %v2295_v33  ;;  %v1961_v45 = vpop.f32.mrb[8].mxu0 }
 0x2b2   : > { %v2266_v49 = vadd.f32 %v8015_v39, %v1961_v45  ;;  %v1963_v55 = vpop.f32.mrb[9].mxu0 }
 0x2b3   : > { %v2267_v58 = vadd.f32 %v8018_v6, %v1963_v55  ;;  %v1965_v7 = vpop.f32.mrb[10].mxu0  ;;  %2584 = vmatprep.mubr.bf16.mxu0 %v2325_v37 }
 0x2b4   : > { %v2268_v34 = vadd.f32 %v8015_v39, %v1965_v7  ;;  %v1967_v9 = vpop.f32.mrb[11].mxu0  ;;  %2585 = vmatmul.mubr.bf16.gmra.mrb[36].mxu0 %v2324_v40  ;;  %v2298_v11 = vmax.f32 %v2266_v49, 0.0 }
 0x2b5   : > { %v2269_v10 = vadd.f32 %v8018_v6, %v1967_v9  ;;  %v2299_v14 = vmax.f32 %v2267_v58, 0.0 }
 0x2b6   : > { %v2300_v12 = vmax.f32 %v2268_v34, 0.0 }
 0x2b7   : > { %v2301_v15 = vmax.f32 %v2269_v10, 0.0 }
 0x2b8   : > { %v2326_v17 = vpack.c.bf16 %v2300_v12, %v2298_v11 }
 0x2b9   : > { %v2327_v47 = vpack.c.bf16 %v2301_v15, %v2299_v14  ;;  %v1971_v18 = vpop.f32.mrb[12].mxu0 }
 0x2ba   : > { %v2270_v50 = vadd.f32 %v8015_v39, %v1971_v18  ;;  %v1973_v19 = vpop.f32.mrb[13].mxu0 }
 0x2bb   : > { %v2271_v20 = vadd.f32 %v8018_v6, %v1973_v19  ;;  %v1975_v21 = vpop.f32.mrb[14].mxu0  ;;  %2594 = vmatprep.mubr.bf16.mxu0 %v2327_v47 }
 0x2bc   : > { %v2272_v22 = vadd.f32 %v8015_v39, %v1975_v21  ;;  %v1977_v24 = vpop.f32.mrb[15].mxu0  ;;  %2595 = vmatmul.mubr.bf16.gmra.mrb[40].mxu0 %v2326_v17  ;;  %v2302_v27 = vmax.f32 %v2270_v50, 0.0 }
 0x2bd   : > { %v2273_v25 = vadd.f32 %v8018_v6, %v1977_v24  ;;  %v2303_v28 = vmax.f32 %v2271_v20, 0.0 }
 0x2be   : > { %v2304_v57 = vmax.f32 %v2272_v22, 0.0 }
 0x2bf   : > { %v2305_v60 = vmax.f32 %v2273_v25, 0.0  ;;  %v8052_v25 = vpop.f32.mrb[0].mxu1 }
 0x2c0   : > { %v2328_v29 = vpack.c.bf16 %v2304_v57, %v2302_v27 }
 0x2c1   : > { %v2329_v30 = vpack.c.bf16 %v2305_v60, %v2303_v28  ;;  %v1981_v32 = vpop.f32.mrb[16].mxu0  ;;  %v2169_v28 = vpop.f32.mrb[1].mxu1 }
 0x2c2   : > { %v2274_v35 = vadd.f32 %v8015_v39, %v1981_v32  ;;  %v1983_v38 = vpop.f32.mrb[17].mxu0 }
 0x2c3   : > { %v2275_v41 = vadd.f32 %v8018_v6, %v1983_v38  ;;  %v1985_v42 = vpop.f32.mrb[18].mxu0  ;;  %2604 = vmatprep.mubr.bf16.mxu0 %v2329_v30 }
 0x2c4   : > { %v2276_v43 = vadd.f32 %v8015_v39, %v1985_v42  ;;  %v1987_v44 = vpop.f32.mrb[19].mxu0  ;;  %2605 = vmatmul.mubr.bf16.gmra.mrb[44].mxu0 %v2328_v29  ;;  %v2306_v48 = vmax.f32 %v2274_v35, 0.0  ;;  %v2171_v29 = vpop.f32.mrb[2].mxu1 }
 0x2c5   : > { %v2277_v46 = vadd.f32 %v8018_v6, %v1987_v44  ;;  %v2307_v13 = vmax.f32 %v2275_v41, 0.0  ;;  %v2173_v32 = vpop.f32.mrb[3].mxu1 }
 0x2c6   : > { %v2308_v51 = vmax.f32 %v2276_v43, 0.0  ;;  %v8054_v35 = vpop.f32.mrb[4].mxu1 }
 0x2c7   : > { %v2309_v52 = vmax.f32 %v2277_v46, 0.0 }
 0x2c8   : > { %v2330_v16 = vpack.c.bf16 %v2308_v51, %v2306_v48 }
 0x2c9   : > { %v2331_v53 = vpack.c.bf16 %v2309_v52, %v2307_v13  ;;  %v1991_v54 = vpop.f32.mrb[20].mxu0 }
 0x2ca   : > { %v2278_v56 = vadd.f32 %v8015_v39, %v1991_v54  ;;  %v1993_v59 = vpop.f32.mrb[21].mxu0  ;;  %v6623_v54 = vld [vmem:[#allocation8 + $0xd0] ss:$8 sps:$4 sm:$0xff]  }
 0x2cb   : > { %v2279_v23 = vadd.f32 %v8018_v6, %v1993_v59  ;;  %v1995_v61 = vpop.f32.mrb[22].mxu0  ;;  %2614 = vmatprep.mubr.bf16.mxu0 %v2331_v53 }
 0x2cc   : > { %v2280_v62 = vadd.f32 %v8015_v39, %v1995_v61  ;;  %v1997_v63 = vpop.f32.mrb[23].mxu0  ;;  %2615 = vmatmul.mubr.bf16.gmra.mrb[48].mxu0 %v2330_v16  ;;  %v2310_v0 = vmax.f32 %v2278_v56, 0.0  ;;  %v6625_v16 = vld [vmem:[#allocation8 + $0xd4] ss:$8 sps:$4 sm:$0xff]   ;;  %v6626_v61 = vld [vmem:[#allocation8 + $0xe0] ss:$8 sps:$4 sm:$0xff]  }
 0x2cd   : > { %v2281_v26 = vadd.f32 %v8018_v6, %v1997_v63  ;;  %v2311_v2 = vmax.f32 %v2279_v23, 0.0  ;;  %2965 = vmatprep.subr.bf16.mxu1 %v6625_v16  ;;  %v6628_v23 = vld [vmem:[#allocation8 + $0xe4] ss:$8 sps:$4 sm:$0xff]   ;;  %v6631_v63 = vld [vmem:[#allocation8 + $0xf4] ss:$8 sps:$4 sm:$0xff]  }
 0x2ce   : > { %v2312_v1 = vmax.f32 %v2280_v62, 0.0  ;;  %2966 = vmatpush1.bf16.msra.mxu1 %v6623_v54 }
 0x2cf   : > { %v2313_v4 = vmax.f32 %v2281_v26, 0.0  ;;  %2967 = vmatprep.subr.bf16.mxu1 %v6628_v23 }
 0x2d0   : > { %v2332_v5 = vpack.c.bf16 %v2312_v1, %v2310_v0  ;;  %v6629_v0 = vld [vmem:[#allocation8 + $0xf0] ss:$8 sps:$4 sm:$0xff]  }
 0x2d1   : > { %v2333_v33 = vpack.c.bf16 %v2313_v4, %v2311_v2  ;;  %v2001_v8 = vpop.f32.mrb[24].mxu0 }
 0x2d2   : > { %v2282_v40 = vadd.f32 %v8015_v39, %v2001_v8  ;;  %v2003_v37 = vpop.f32.mrb[25].mxu0  ;;  %2968 = vmatpush1.bf16.msra.mxu1 %v6626_v61 }
 0x2d3   : > { %v2283_v45 = vadd.f32 %v8018_v6, %v2003_v37  ;;  %v2005_v49 = vpop.f32.mrb[26].mxu0  ;;  %2624 = vmatprep.mubr.bf16.mxu0 %v2333_v33  ;;  %2969 = vmatprep.subr.bf16.mxu1 %v6631_v63 }
 0x2d4   : > { %v2284_v55 = vadd.f32 %v8015_v39, %v2005_v49  ;;  %v2007_v58 = vpop.f32.mrb[27].mxu0  ;;  %2625 = vmatmul.mubr.bf16.gmra.mrb[52].mxu0 %v2332_v5  ;;  %v2314_v34 = vmax.f32 %v2282_v40, 0.0 }
 0x2d5   : > { %v2285_v7 = vadd.f32 %v8018_v6, %v2007_v58  ;;  %v2315_v10 = vmax.f32 %v2283_v45, 0.0 }
 0x2d6   : > { %v2316_v9 = vmax.f32 %v2284_v55, 0.0  ;;  %2970 = vmatpush1.bf16.msra.mxu1 %v6629_v0  ;;  %v2370_v55 = vld [vmem:[%s9500_s5] sm:$0x3]  ;;  %s9504_s5 = sld [smem:[#allocation58_spill]] }
 0x2d7   : > { %v2317_v11 = vmax.f32 %v2285_v7, 0.0  ;;  %v8114_v58 = vrot.slane %v2370_v55, %v8006_v36  ;;  %v8117_v7 = vrot.slane %v2370_v55, %v8012_v3 }
 0x2d8   : > { %v2334_v12 = vpack.c.bf16 %v2316_v9, %v2314_v34 }
 0x2d9   : > { %v2335_v14 = vpack.c.bf16 %v2317_v11, %v2315_v10  ;;  %v2011_v15 = vpop.f32.mrb[28].mxu0 }
 0x2da   : > { %v2286_v17 = vadd.f32 %v8015_v39, %v2011_v15  ;;  %v2013_v47 = vpop.f32.mrb[29].mxu0 }
 0x2db   : > { %v2287_v18 = vadd.f32 %v8018_v6, %v2013_v47  ;;  %v2015_v50 = vpop.f32.mrb[30].mxu0  ;;  %2634 = vmatprep.mubr.bf16.mxu0 %v2335_v14 }
 0x2dc   : > { %v2288_v19 = vadd.f32 %v8015_v39, %v2015_v50  ;;  %v2017_v20 = vpop.f32.mrb[31].mxu0  ;;  %2635 = vmatmul.mubr.bf16.gmra.mrb[56].mxu0 %v2334_v12  ;;  %v2318_v22 = vmax.f32 %v2286_v17, 0.0  ;;  %v8056_v39 = vpop.f32.mrb[5].mxu1 }
 0x2dd   : > { %v2289_v21 = vadd.f32 %v8018_v6, %v2017_v20  ;;  %v2319_v27 = vmax.f32 %v2287_v18, 0.0  ;;  %v8058_v38 = vpop.f32.mrb[6].mxu1 }
 0x2de   : > { %v2320_v24 = vmax.f32 %v2288_v19, 0.0  ;;  %v8060_v6 = vpop.f32.mrb[7].mxu1 }
 0x2df   : > { %v2321_v57 = vmax.f32 %v2289_v21, 0.0  ;;  %v8062_v41 = vpop.f32.mrb[8].mxu1 }
 0x2e0   : > { %v2336_v60 = vpack.c.bf16 %v2320_v24, %v2318_v22  ;;  %v8064_v42 = vpop.f32.mrb[9].mxu1 }
 0x2e1   : > { %v2337_v30 = vpack.c.bf16 %v2321_v57, %v2319_v27  ;;  %v8066_v43 = vpop.f32.mrb[10].mxu1 }
 0x2e2   : > { %v8068_v44 = vpop.f32.mrb[11].mxu1 }
 0x2e3   : > { %2644 = vmatprep.mubr.bf16.mxu0 %v2337_v30  ;;  %v8070_v46 = vpop.f32.mrb[12].mxu1 }
 0x2e4   : > { %2645 = vmatmul.mubr.bf16.gmra.mrb[60].mxu0 %v2336_v60  ;;  %v8072_v48 = vpop.f32.mrb[13].mxu1 }
 0x2e5   : > { %v8074_v51 = vpop.f32.mrb[14].mxu1 }
 0x2e6   : > { %v8076_v13 = vpop.f32.mrb[15].mxu1 }
 0x2e7   : > { %v8078_v52 = vpop.f32.mrb[16].mxu1 }
 0x2e8   : > { %v8080_v53 = vpop.f32.mrb[17].mxu1 }
 0x2e9   : > { %v8082_v56 = vpop.f32.mrb[18].mxu1 }
 0x2ea   : > { %v8084_v59 = vpop.f32.mrb[19].mxu1 }
 0x2eb   : > { %v8086_v62 = vpop.f32.mrb[20].mxu1 }
 0x2ec   : > { %v8088_v26 = vpop.f32.mrb[21].mxu1 }
 0x2ed   : > { %v8090_v1 = vpop.f32.mrb[22].mxu1 }
 0x2ee   : > { %v8092_v2 = vpop.f32.mrb[23].mxu1 }
 0x2ef   : > { %v8094_v4 = vpop.f32.mrb[24].mxu1 }
 0x2f0   : > { %v8096_v5 = vpop.f32.mrb[25].mxu1 }
 0x2f1   : > { %v8098_v33 = vpop.f32.mrb[26].mxu1 }
 0x2f2   : > { %v8100_v8 = vpop.f32.mrb[27].mxu1 }
 0x2f3   : > { %v8102_v40 = vpop.f32.mrb[28].mxu1 }
 0x2f4   : > { %v8104_v37 = vpop.f32.mrb[29].mxu1 }
 0x2f5   : > { %v8106_v45 = vpop.f32.mrb[30].mxu1 }
 0x2f6   : > { %v8108_v49 = vpop.f32.mrb[31].mxu1 }
 0x37f   : > { %v2576_v34 = vpop.f32.mrb[32].mxu0 }
 0x380   : > { %v2577_v9 = vadd.f32 %v2576_v34, %v8114_v58  ;;  %v2578_v10 = vpop.f32.mrb[33].mxu0 }
 0x381   : > { %v2579_v11 = vadd.f32 %v2578_v10, %v8117_v7  ;;  %v2580_v12 = vpop.f32.mrb[34].mxu0 }
 0x382   : > { %v2655_v14 = vmax.f32 %v2577_v9, 0.0  ;;  %v2581_v15 = vadd.f32 %v2580_v12, %v8114_v58  ;;  %v2582_v17 = vpop.f32.mrb[35].mxu0 }
 0x383   : > { %v2656_v47 = vmax.f32 %v2579_v11, 0.0  ;;  %v2583_v18 = vadd.f32 %v2582_v17, %v8117_v7 }
 0x384   : > { %v2687_v50 = vadd.f32 %v2655_v14, %v8052_v25  ;;  %v2657_v19 = vmax.f32 %v2581_v15, 0.0 }
 0x385   : > { %v2688_v20 = vadd.f32 %v2656_v47, %v2169_v28  ;;  %v2658_v21 = vmax.f32 %v2583_v18, 0.0 }
 0x386   : > { %v2689_v22 = vadd.f32 %v2657_v19, %v2171_v29 }
 0x387   : > { %v2690_v24 = vadd.f32 %v2658_v21, %v2173_v32  ;;  %v2586_v27 = vpop.f32.mrb[36].mxu0 }
 0x388   : > { %v2719_v57 = vpack.c.bf16 %v2689_v22, %v2687_v50  ;;  %v2587_v60 = vadd.f32 %v2586_v27, %v8114_v58  ;;  %v2588_v30 = vpop.f32.mrb[37].mxu0 }
 0x389   : > { %v2589_v16 = vadd.f32 %v2588_v30, %v8117_v7  ;;  %v2590_v54 = vpop.f32.mrb[38].mxu0  ;;  %v2720_v23 = vpack.c.bf16 %v2690_v24, %v2688_v20 }
 0x38a   : > { %v2659_v61 = vmax.f32 %v2587_v60, 0.0  ;;  %v2591_v63 = vadd.f32 %v2590_v54, %v8114_v58  ;;  %v2592_v0 = vpop.f32.mrb[39].mxu0 }
 0x38b   : > { %v2660_v55 = vmax.f32 %v2589_v16, 0.0  ;;  %v2593_v25 = vadd.f32 %v2592_v0, %v8117_v7  ;;  %2971 = vmatprep.mubr.bf16.mxu1 %v2720_v23 }
 0x38c   : > { %v2691_v28 = vadd.f32 %v2659_v61, %v8054_v35  ;;  %v2661_v29 = vmax.f32 %v2591_v63, 0.0  ;;  %2972 = vmatmul.mubr.bf16.vlgmr.msra.gmra.mrb[32].mxu1 %v2719_v57 }
 0x38d   : > { %v2692_v32 = vadd.f32 %v2660_v55, %v8056_v39  ;;  %v2662_v34 = vmax.f32 %v2593_v25, 0.0 }
 0x38e   : > { %v2693_v9 = vadd.f32 %v2661_v29, %v8058_v38 }
 0x38f   : > { %v2694_v10 = vadd.f32 %v2662_v34, %v8060_v6  ;;  %v2596_v11 = vpop.f32.mrb[40].mxu0 }
 0x390   : > { %v2597_v12 = vadd.f32 %v2596_v11, %v8114_v58  ;;  %v2598_v14 = vpop.f32.mrb[41].mxu0  ;;  %v2721_v15 = vpack.c.bf16 %v2693_v9, %v2691_v28 }
 0x391   : > { %v2599_v17 = vadd.f32 %v2598_v14, %v8117_v7  ;;  %v2600_v47 = vpop.f32.mrb[42].mxu0  ;;  %v2722_v18 = vpack.c.bf16 %v2694_v10, %v2692_v32 }
 0x392   : > { %v2663_v50 = vmax.f32 %v2597_v12, 0.0  ;;  %v2601_v35 = vadd.f32 %v2600_v47, %v8114_v58  ;;  %v2602_v19 = vpop.f32.mrb[43].mxu0 }
 0x393   : > { %v2664_v20 = vmax.f32 %v2599_v17, 0.0  ;;  %v2603_v39 = vadd.f32 %v2602_v19, %v8117_v7  ;;  %2981 = vmatprep.mubr.bf16.mxu1 %v2722_v18 }
 0x394   : > { %v2695_v38 = vadd.f32 %v2663_v50, %v8062_v41  ;;  %v2665_v6 = vmax.f32 %v2601_v35, 0.0  ;;  %2982 = vmatmul.mubr.bf16.gmra.mrb[36].mxu1 %v2721_v15 }
 0x395   : > { %v2696_v21 = vadd.f32 %v2664_v20, %v8064_v42  ;;  %v2666_v22 = vmax.f32 %v2603_v39, 0.0 }
 0x396   : > { %v2697_v24 = vadd.f32 %v2665_v6, %v8066_v43 }
 0x397   : > { %v2698_v27 = vadd.f32 %v2666_v22, %v8068_v44  ;;  %v2606_v57 = vpop.f32.mrb[44].mxu0 }
 0x398   : > { %v2607_v60 = vadd.f32 %v2606_v57, %v8114_v58  ;;  %v2608_v30 = vpop.f32.mrb[45].mxu0  ;;  %v2723_v16 = vpack.c.bf16 %v2697_v24, %v2695_v38 }
 0x399   : > { %v2609_v54 = vadd.f32 %v2608_v30, %v8117_v7  ;;  %v2610_v23 = vpop.f32.mrb[46].mxu0  ;;  %v2724_v61 = vpack.c.bf16 %v2698_v27, %v2696_v21 }
 0x39a   : > { %v2667_v63 = vmax.f32 %v2607_v60, 0.0  ;;  %v2611_v41 = vadd.f32 %v2610_v23, %v8114_v58  ;;  %v2612_v0 = vpop.f32.mrb[47].mxu0 }
 0x39b   : > { %v2668_v55 = vmax.f32 %v2609_v54, 0.0  ;;  %v2613_v42 = vadd.f32 %v2612_v0, %v8117_v7  ;;  %2991 = vmatprep.mubr.bf16.mxu1 %v2724_v61 }
 0x39c   : > { %v2699_v43 = vadd.f32 %v2667_v63, %v8070_v46  ;;  %v2669_v44 = vmax.f32 %v2611_v41, 0.0  ;;  %2992 = vmatmul.mubr.bf16.gmra.mrb[40].mxu1 %v2723_v16 }
 0x39d   : > { %v2700_v25 = vadd.f32 %v2668_v55, %v8072_v48  ;;  %v2670_v28 = vmax.f32 %v2613_v42, 0.0 }
 0x39e   : > { %v2701_v29 = vadd.f32 %v2669_v44, %v8074_v51 }
 0x39f   : > { %v2702_v32 = vadd.f32 %v2670_v28, %v8076_v13  ;;  %v2616_v34 = vpop.f32.mrb[48].mxu0 }
 0x3a0   : > { %v2617_v9 = vadd.f32 %v2616_v34, %v8114_v58  ;;  %v2618_v10 = vpop.f32.mrb[49].mxu0  ;;  %v2725_v11 = vpack.c.bf16 %v2701_v29, %v2699_v43 }
 0x3a1   : > { %v2619_v12 = vadd.f32 %v2618_v10, %v8117_v7  ;;  %v2620_v14 = vpop.f32.mrb[50].mxu0  ;;  %v2726_v15 = vpack.c.bf16 %v2702_v32, %v2700_v25 }
 0x3a2   : > { %v2671_v17 = vmax.f32 %v2617_v9, 0.0  ;;  %v2621_v46 = vadd.f32 %v2620_v14, %v8114_v58  ;;  %v2622_v47 = vpop.f32.mrb[51].mxu0 }
 0x3a3   : > { %v2672_v18 = vmax.f32 %v2619_v12, 0.0  ;;  %v2623_v48 = vadd.f32 %v2622_v47, %v8117_v7  ;;  %3001 = vmatprep.mubr.bf16.mxu1 %v2726_v15 }
 0x3a4   : > { %v2703_v51 = vadd.f32 %v2671_v17, %v8078_v52  ;;  %v2673_v13 = vmax.f32 %v2621_v46, 0.0  ;;  %3002 = vmatmul.mubr.bf16.gmra.mrb[44].mxu1 %v2725_v11 }
 0x3a5   : > { %v2704_v50 = vadd.f32 %v2672_v18, %v8080_v53  ;;  %v2674_v35 = vmax.f32 %v2623_v48, 0.0 }
 0x3a6   : > { %v2705_v19 = vadd.f32 %v2673_v13, %v8082_v56 }
 0x3a7   : > { %v2706_v20 = vadd.f32 %v2674_v35, %v8084_v59  ;;  %v2626_v39 = vpop.f32.mrb[52].mxu0 }
 0x3a8   : > { %v2627_v38 = vadd.f32 %v2626_v39, %v8114_v58  ;;  %v2628_v6 = vpop.f32.mrb[53].mxu0  ;;  %v2727_v21 = vpack.c.bf16 %v2705_v19, %v2703_v51 }
 0x3a9   : > { %v2629_v22 = vadd.f32 %v2628_v6, %v8117_v7  ;;  %v2630_v24 = vpop.f32.mrb[54].mxu0  ;;  %v2728_v27 = vpack.c.bf16 %v2706_v20, %v2704_v50 }
 0x3aa   : > { %v2675_v57 = vmax.f32 %v2627_v38, 0.0  ;;  %v2631_v52 = vadd.f32 %v2630_v24, %v8114_v58  ;;  %v2632_v60 = vpop.f32.mrb[55].mxu0  ;;  %v6633_v38 = vld [vmem:[#allocation10 + $0x8] sm:$0xff]  }
 0x3ab   : > { %v2676_v30 = vmax.f32 %v2629_v22, 0.0  ;;  %v2633_v53 = vadd.f32 %v2632_v60, %v8117_v7  ;;  %3011 = vmatprep.mubr.bf16.mxu1 %v2728_v27 }
 0x3ac   : > { %v2707_v56 = vadd.f32 %v2675_v57, %v8086_v62  ;;  %v2677_v59 = vmax.f32 %v2631_v52, 0.0  ;;  %3012 = vmatmul.mubr.bf16.gmra.mrb[48].mxu1 %v2727_v21 }
 0x3ad   : > { %v2708_v16 = vadd.f32 %v2676_v30, %v8088_v26  ;;  %v2678_v54 = vmax.f32 %v2633_v53, 0.0 }
 0x3ae   : > { %v2709_v23 = vadd.f32 %v2677_v59, %v8090_v1 }
 0x3af   : > { %v2710_v61 = vadd.f32 %v2678_v54, %v8092_v2  ;;  %v2636_v63 = vpop.f32.mrb[56].mxu0 }
 0x3b0   : > { %v2637_v41 = vadd.f32 %v2636_v63, %v8114_v58  ;;  %v2638_v0 = vpop.f32.mrb[57].mxu0  ;;  %v2729_v55 = vpack.c.bf16 %v2709_v23, %v2707_v56 }
 0x3b1   : > { %v2639_v42 = vadd.f32 %v2638_v0, %v8117_v7  ;;  %v2640_v43 = vpop.f32.mrb[58].mxu0  ;;  %v2730_v44 = vpack.c.bf16 %v2710_v61, %v2708_v16 }
 0x3b2   : > { %v2679_v25 = vmax.f32 %v2637_v41, 0.0  ;;  %v2641_v62 = vadd.f32 %v2640_v43, %v8114_v58  ;;  %v2642_v28 = vpop.f32.mrb[59].mxu0 }
 0x3b3   : > { %v2680_v29 = vmax.f32 %v2639_v42, 0.0  ;;  %v2643_v26 = vadd.f32 %v2642_v28, %v8117_v7  ;;  %3021 = vmatprep.mubr.bf16.mxu1 %v2730_v44 }
 0x3b4   : > { %v2711_v1 = vadd.f32 %v2679_v25, %v8094_v4  ;;  %v2681_v2 = vmax.f32 %v2641_v62, 0.0  ;;  %3022 = vmatmul.mubr.bf16.gmra.mrb[52].mxu1 %v2729_v55 }
 0x3b5   : > { %v2712_v32 = vadd.f32 %v2680_v29, %v8096_v5  ;;  %v2682_v34 = vmax.f32 %v2643_v26, 0.0 }
 0x3b6   : > { %v2713_v9 = vadd.f32 %v2681_v2, %v8098_v33 }
 0x3b7   : > { %v2714_v10 = vadd.f32 %v2682_v34, %v8100_v8  ;;  %v2646_v11 = vpop.f32.mrb[60].mxu0 }
 0x3b8   : > { %v2647_v12 = vadd.f32 %v2646_v11, %v8114_v58  ;;  %v2648_v14 = vpop.f32.mrb[61].mxu0  ;;  %v2731_v15 = vpack.c.bf16 %v2713_v9, %v2711_v1  ;;  %v6637_v11 = vld [vmem:[#allocation10 + $0x28] sm:$0xff]  }
 0x3b9   : > { %v2649_v17 = vadd.f32 %v2648_v14, %v8117_v7  ;;  %v2650_v46 = vpop.f32.mrb[62].mxu0  ;;  %v2732_v47 = vpack.c.bf16 %v2714_v10, %v2712_v32 }
 0x3ba   : > { %v2683_v18 = vmax.f32 %v2647_v12, 0.0  ;;  %v2651_v4 = vadd.f32 %v2650_v46, %v8114_v58  ;;  %v2652_v48 = vpop.f32.mrb[63].mxu0  ;;  %v6632_v58 = vld [vmem:[#allocation10] sm:$0xff]  }
 0x3bb   : > { %v2684_v51 = vmax.f32 %v2649_v17, 0.0  ;;  %v2653_v5 = vadd.f32 %v2652_v48, %v8117_v7  ;;  %3031 = vmatprep.mubr.bf16.mxu1 %v2732_v47  ;;  %5946 = vmatprep.subr.bf16.mxu0 %v6632_v58  ;;  %v6635_v7 = vld [vmem:[#allocation10 + $0x18] sm:$0xff]  }
 0x3bc   : > { %v2715_v33 = vadd.f32 %v2683_v18, %v8102_v40  ;;  %v2685_v8 = vmax.f32 %v2651_v4, 0.0  ;;  %3032 = vmatmul.mubr.bf16.gmra.mrb[56].mxu1 %v2731_v15  ;;  %5947 = vmatpush3.bf16.msra.mxu0 %v6632_v58  ;;  %v6634_v40 = vld [vmem:[#allocation10 + $0x10] sm:$0xff]  }
 0x3bd   : > { %v2716_v13 = vadd.f32 %v2684_v51, %v8104_v37  ;;  %v2686_v50 = vmax.f32 %v2653_v5, 0.0  ;;  %5948 = vmatprep.subr.bf16.mxu0 %v6633_v38  ;;  %v6636_v37 = vld [vmem:[#allocation10 + $0x20] sm:$0xff]  }
 0x3be   : > { %v2717_v35 = vadd.f32 %v2685_v8, %v8106_v45  ;;  %v2767_v45 = vld [vmem:[%s9501_s6] sm:$0x3]  ;;  %s7162_s6 = sshll.u32 %s7378_s30, 4  ;;  %s7163_s6 = int_to_ptr.vmem [resolvable:$false] %s7162_s6 }
 0x3bf   : > { %v2718_v19 = vadd.f32 %v2686_v50, %v8108_v49  ;;  %v8187_v49 = vrot.slane %v2767_v45, %v8006_v36  ;;  %v8190_v6 = vrot.slane %v2767_v45, %v8012_v3  ;;  %p7165_p13 = scmp.lt.s32.totalorder %s9078_s21, %s7163_s6 }
 0x3c0   : > { %v2733_v20 = vpack.c.bf16 %v2717_v35, %v2715_v33  ;;  %5949 = vmatpush3.bf16.msra.mxu0 %v6633_v38 }
 0x3c1   : > { %v2734_v39 = vpack.c.bf16 %v2718_v19, %v2716_v13  ;;  %5950 = vmatprep.subr.bf16.mxu0 %v6634_v40 }
 0x3c3   : > { %3041 = vmatprep.mubr.bf16.mxu1 %v2734_v39 }
 0x3c4   : > { %3042 = vmatmul.mubr.bf16.gmra.mrb[60].mxu1 %v2733_v20  ;;  %5951 = vmatpush3.bf16.msra.mxu0 %v6634_v40  ;;  %v6638_v20 = vld [vmem:[#allocation10 + $0x30] sm:$0xff]  }
 0x3c5   : > { %5952 = vmatprep.subr.bf16.mxu0 %v6635_v7 }
 0x3c8   : > { %5953 = vmatpush3.bf16.msra.mxu0 %v6635_v7 }
 0x3c9   : > { %5954 = vmatprep.subr.bf16.mxu0 %v6636_v37 }
 0x3cc   : > { %5955 = vmatpush3.bf16.msra.mxu0 %v6636_v37  ;;  %v6639_v37 = vld [vmem:[#allocation10 + $0x38] sm:$0xff]  }
 0x3cd   : > { %5956 = vmatprep.subr.bf16.mxu0 %v6637_v11 }
 0x3d0   : > { %5957 = vmatpush3.bf16.msra.mxu0 %v6637_v11  ;;  %v6643_v11 = vld [vmem:[#allocation11 + $0x18] sm:$0xff]  }
 0x3d1   : > { %5958 = vmatprep.subr.bf16.mxu0 %v6638_v20 }
 0x3d4   : > { %5959 = vmatpush3.bf16.msra.mxu0 %v6638_v20 }
 0x3d5   : > { %5960 = vmatprep.subr.bf16.mxu0 %v6639_v37 }
 0x3d8   : > { %5961 = vmatpush3.bf16.msra.mxu0 %v6639_v37 }
 0x45f   : > { %v2973_v21 = vpop.f32.mrb[32].mxu1 }
 0x460   : > { %v8193_v22 = vadd.f32 %v2973_v21, %v8187_v49  ;;  %v2975_v24 = vpop.f32.mrb[33].mxu1 }
 0x461   : > { %v2976_v27 = vadd.f32 %v2975_v24, %v8190_v6  ;;  %v2977_v57 = vpop.f32.mrb[34].mxu1 }
 0x462   : > { %4812 = vst [vmem:[%s8197_s28] sm:$0xff] %v8193_v22  ;;  %5068 = vst [vmem:[%s8202_s17] sm:$0xff] %v8193_v22  ;;  %v8207_v52 = vadd.f32 %v2977_v57, %v8187_v49  ;;  %v2979_v60 = vpop.f32.mrb[35].mxu1  ;;  %v3052_v30 = vmul.f32 %v8193_v22, %v8193_v22 }
 0x463   : > { %5084 = vst [vmem:[%s8212_s23] sm:$0xff] %v2976_v27  ;;  %v2980_v53 = vadd.f32 %v2979_v60, %v8190_v6 }
 0x464   : > { %4813 = vst [vmem:[%s8197_s28 + $0x8] sm:$0xff] %v8207_v52  ;;  %5069 = vst [vmem:[%s8202_s17 + $0x8] sm:$0xff] %v8207_v52  ;;  %3068 = vadd.xlane.f32.xlu0 %v3052_v30  ;;  %v3053_v56 = vmul.f32 %v8207_v52, %v8207_v52 }
 0x465   : > { %5085 = vst [vmem:[%s8212_s23 + $0x8] sm:$0xff] %v2980_v53 }
 0x467   : > { %v2983_v59 = vpop.f32.mrb[36].mxu1 }
 0x468   : > { %v8224_v16 = vadd.f32 %v2983_v59, %v8187_v49  ;;  %v2985_v54 = vpop.f32.mrb[37].mxu1  ;;  %3070 = vadd.xlane.f32.xlu0 %v3053_v56 }
 0x469   : > { %v2986_v23 = vadd.f32 %v2985_v54, %v8190_v6  ;;  %v2987_v61 = vpop.f32.mrb[38].mxu1 }
 0x46a   : > { %4814 = vst [vmem:[%s8197_s28 + $0x10] sm:$0xff] %v8224_v16  ;;  %5070 = vst [vmem:[%s8202_s17 + $0x10] sm:$0xff] %v8224_v16  ;;  %v8232_v63 = vadd.f32 %v2987_v61, %v8187_v49  ;;  %v2989_v41 = vpop.f32.mrb[39].mxu1  ;;  %v3054_v0 = vmul.f32 %v8224_v16, %v8224_v16 }
 0x46b   : > { %5086 = vst [vmem:[%s8212_s23 + $0x10] sm:$0xff] %v2986_v23  ;;  %v2990_v55 = vadd.f32 %v2989_v41, %v8190_v6 }
 0x46c   : > { %4815 = vst [vmem:[%s8197_s28 + $0x18] sm:$0xff] %v8232_v63  ;;  %5071 = vst [vmem:[%s8202_s17 + $0x18] sm:$0xff] %v8232_v63  ;;  %3072 = vadd.xlane.f32.xlu1 %v3054_v0  ;;  %v3055_v42 = vmul.f32 %v8232_v63, %v8232_v63 }
 0x46d   : > { %5087 = vst [vmem:[%s8212_s23 + $0x18] sm:$0xff] %v2990_v55 }
 0x46f   : > { %v2993_v43 = vpop.f32.mrb[40].mxu1 }
 0x470   : > { %v8246_v44 = vadd.f32 %v2993_v43, %v8187_v49  ;;  %v2995_v25 = vpop.f32.mrb[41].mxu1  ;;  %3074 = vadd.xlane.f32.xlu1 %v3055_v42 }
 0x471   : > { %v2996_v62 = vadd.f32 %v2995_v25, %v8190_v6  ;;  %v2997_v28 = vpop.f32.mrb[42].mxu1 }
 0x472   : > { %4816 = vst [vmem:[%s8197_s28 + $0x20] sm:$0xff] %v8246_v44  ;;  %5072 = vst [vmem:[%s8202_s17 + $0x20] sm:$0xff] %v8246_v44  ;;  %v8254_v29 = vadd.f32 %v2997_v28, %v8187_v49  ;;  %v2999_v26 = vpop.f32.mrb[43].mxu1  ;;  %v3056_v1 = vmul.f32 %v8246_v44, %v8246_v44 }
 0x473   : > { %5088 = vst [vmem:[%s8212_s23 + $0x20] sm:$0xff] %v2996_v62  ;;  %v3000_v2 = vadd.f32 %v2999_v26, %v8190_v6 }
 0x474   : > { %4817 = vst [vmem:[%s8197_s28 + $0x28] sm:$0xff] %v8254_v29  ;;  %5073 = vst [vmem:[%s8202_s17 + $0x28] sm:$0xff] %v8254_v29  ;;  %3076 = vadd.xlane.f32.xlu0 %v3056_v1  ;;  %v3057_v32 = vmul.f32 %v8254_v29, %v8254_v29 }
 0x475   : > { %5089 = vst [vmem:[%s8212_s23 + $0x28] sm:$0xff] %v3000_v2 }
 0x476   : > { %3078 = vadd.xlane.f32.xlu1 %v3057_v32 }
 0x477   : > { %v3003_v34 = vpop.f32.mrb[44].mxu1 }
 0x478   : > { %v8268_v9 = vadd.f32 %v3003_v34, %v8187_v49  ;;  %v3005_v10 = vpop.f32.mrb[45].mxu1  ;;  %v6640_v34 = vld [vmem:[#allocation11] sm:$0xff]  }
 0x479   : > { %v3006_v12 = vadd.f32 %v3005_v10, %v8190_v6  ;;  %v3007_v14 = vpop.f32.mrb[46].mxu1  ;;  %5978 = vmatprep.subr.bf16.mxu1 %v6640_v34  ;;  %v6642_v10 = vld [vmem:[#allocation11 + $0x10] sm:$0xff]  }
 0x47a   : > { %4818 = vst [vmem:[%s8197_s28 + $0x30] sm:$0xff] %v8268_v9  ;;  %5074 = vst [vmem:[%s8202_s17 + $0x30] sm:$0xff] %v8268_v9  ;;  %v8276_v15 = vadd.f32 %v3007_v14, %v8187_v49  ;;  %v3009_v17 = vpop.f32.mrb[47].mxu1  ;;  %v3058_v46 = vmul.f32 %v8268_v9, %v8268_v9  ;;  %5979 = vmatpush3.bf16.msra.mxu1 %v6640_v34  ;;  %v6646_v14 = vld [vmem:[#allocation11 + $0x30] sm:$0xff]  }
 0x47b   : > { %5090 = vst [vmem:[%s8212_s23 + $0x30] sm:$0xff] %v3006_v12  ;;  %v3010_v47 = vadd.f32 %v3009_v17, %v8190_v6  ;;  %v6645_v12 = vld [vmem:[#allocation11 + $0x28] sm:$0xff]  }
 0x47c   : > { %4819 = vst [vmem:[%s8197_s28 + $0x38] sm:$0xff] %v8276_v15  ;;  %5075 = vst [vmem:[%s8202_s17 + $0x38] sm:$0xff] %v8276_v15  ;;  %3080 = vadd.xlane.f32.xlu0 %v3058_v46  ;;  %v3059_v18 = vmul.f32 %v8276_v15, %v8276_v15 }
 0x47d   : > { %5091 = vst [vmem:[%s8212_s23 + $0x38] sm:$0xff] %v3010_v47 }
 0x47e   : > { %3082 = vadd.xlane.f32.xlu1 %v3059_v18 }
 0x47f   : > { %v3013_v4 = vpop.f32.mrb[48].mxu1 }
 0x480   : > { %v8290_v48 = vadd.f32 %v3013_v4, %v8187_v49  ;;  %v3015_v51 = vpop.f32.mrb[49].mxu1 }
 0x481   : > { %v3016_v5 = vadd.f32 %v3015_v51, %v8190_v6  ;;  %v3017_v33 = vpop.f32.mrb[50].mxu1 }
 0x482   : > { %4820 = vst [vmem:[%s8197_s28 + $0x40] sm:$0xff] %v8290_v48  ;;  %5076 = vst [vmem:[%s8202_s17 + $0x40] sm:$0xff] %v8290_v48  ;;  %v8298_v8 = vadd.f32 %v3017_v33, %v8187_v49  ;;  %v3019_v13 = vpop.f32.mrb[51].mxu1  ;;  %v3060_v50 = vmul.f32 %v8290_v48, %v8290_v48 }
 0x483   : > { %5092 = vst [vmem:[%s8212_s23 + $0x40] sm:$0xff] %v3016_v5  ;;  %v3020_v35 = vadd.f32 %v3019_v13, %v8190_v6 }
 0x484   : > { %4821 = vst [vmem:[%s8197_s28 + $0x48] sm:$0xff] %v8298_v8  ;;  %5077 = vst [vmem:[%s8202_s17 + $0x48] sm:$0xff] %v8298_v8  ;;  %3084 = vadd.xlane.f32.xlu0 %v3060_v50  ;;  %v3061_v19 = vmul.f32 %v8298_v8, %v8298_v8 }
 0x485   : > { %5093 = vst [vmem:[%s8212_s23 + $0x48] sm:$0xff] %v3020_v35 }
 0x486   : > { %3086 = vadd.xlane.f32.xlu1 %v3061_v19 }
 0x487   : > { %v3023_v39 = vpop.f32.mrb[52].mxu1 }
 0x488   : > { %v8312_v58 = vadd.f32 %v3023_v39, %v8187_v49  ;;  %v3025_v38 = vpop.f32.mrb[53].mxu1 }
 0x489   : > { %v3026_v40 = vadd.f32 %v3025_v38, %v8190_v6  ;;  %v3027_v7 = vpop.f32.mrb[54].mxu1 }
 0x48a   : > { %4822 = vst [vmem:[%s8197_s28 + $0x50] sm:$0xff] %v8312_v58  ;;  %5078 = vst [vmem:[%s8202_s17 + $0x50] sm:$0xff] %v8312_v58  ;;  %v8320_v45 = vadd.f32 %v3027_v7, %v8187_v49  ;;  %v3029_v21 = vpop.f32.mrb[55].mxu1  ;;  %v3062_v24 = vmul.f32 %v8312_v58, %v8312_v58 }
 0x48b   : > { %5094 = vst [vmem:[%s8212_s23 + $0x50] sm:$0xff] %v3026_v40  ;;  %v3030_v27 = vadd.f32 %v3029_v21, %v8190_v6 }
 0x48c   : > { %4823 = vst [vmem:[%s8197_s28 + $0x58] sm:$0xff] %v8320_v45  ;;  %5079 = vst [vmem:[%s8202_s17 + $0x58] sm:$0xff] %v8320_v45  ;;  %3088 = vadd.xlane.f32.xlu0 %v3062_v24  ;;  %v3063_v57 = vmul.f32 %v8320_v45, %v8320_v45 }
 0x48d   : > { %5095 = vst [vmem:[%s8212_s23 + $0x58] sm:$0xff] %v3030_v27 }
 0x48e   : > { %3090 = vadd.xlane.f32.xlu1 %v3063_v57 }
 0x48f   : > { %v3033_v60 = vpop.f32.mrb[56].mxu1 }
 0x490   : > { %v8334_v30 = vadd.f32 %v3033_v60, %v8187_v49  ;;  %v3035_v53 = vpop.f32.mrb[57].mxu1 }
 0x491   : > { %v3036_v56 = vadd.f32 %v3035_v53, %v8190_v6  ;;  %v3037_v59 = vpop.f32.mrb[58].mxu1 }
 0x492   : > { %4824 = vst [vmem:[%s8197_s28 + $0x60] sm:$0xff] %v8334_v30  ;;  %5080 = vst [vmem:[%s8202_s17 + $0x60] sm:$0xff] %v8334_v30  ;;  %v8342_v54 = vadd.f32 %v3037_v59, %v8187_v49  ;;  %v3039_v23 = vpop.f32.mrb[59].mxu1  ;;  %v3064_v61 = vmul.f32 %v8334_v30, %v8334_v30 }
 0x493   : > { %5096 = vst [vmem:[%s8212_s23 + $0x60] sm:$0xff] %v3036_v56  ;;  %v3040_v41 = vadd.f32 %v3039_v23, %v8190_v6 }
 0x494   : > { %4825 = vst [vmem:[%s8197_s28 + $0x68] sm:$0xff] %v8342_v54  ;;  %5081 = vst [vmem:[%s8202_s17 + $0x68] sm:$0xff] %v8342_v54  ;;  %3092 = vadd.xlane.f32.xlu0 %v3064_v61  ;;  %v3065_v0 = vmul.f32 %v8342_v54, %v8342_v54 }
 0x495   : > { %5097 = vst [vmem:[%s8212_s23 + $0x68] sm:$0xff] %v3040_v41 }
 0x496   : > { %3094 = vadd.xlane.f32.xlu1 %v3065_v0 }
 0x497   : > { %v3043_v55 = vpop.f32.mrb[60].mxu1 }
 0x498   : > { %v8356_v42 = vadd.f32 %v3043_v55, %v8187_v49  ;;  %v3045_v43 = vpop.f32.mrb[61].mxu1 }
 0x499   : > { %v3046_v25 = vadd.f32 %v3045_v43, %v8190_v6  ;;  %v3047_v62 = vpop.f32.mrb[62].mxu1 }
 0x49a   : > { %4826 = vst [vmem:[%s8197_s28 + $0x70] sm:$0xff] %v8356_v42  ;;  %5082 = vst [vmem:[%s8202_s17 + $0x70] sm:$0xff] %v8356_v42  ;;  %v8364_v28 = vadd.f32 %v3047_v62, %v8187_v49  ;;  %v3049_v26 = vpop.f32.mrb[63].mxu1  ;;  %v3066_v1 = vmul.f32 %v8356_v42, %v8356_v42  ;;  %v6641_v49 = vld [vmem:[#allocation11 + $0x8] sm:$0xff]  }
 0x49b   : > { %5098 = vst [vmem:[%s8212_s23 + $0x70] sm:$0xff] %v3046_v25  ;;  %v3050_v2 = vadd.f32 %v3049_v26, %v8190_v6  ;;  %5980 = vmatprep.subr.bf16.mxu1 %v6641_v49  ;;  %v6644_v6 = vld [vmem:[#allocation11 + $0x20] sm:$0xff]  }
 0x49c   : > { %4827 = vst [vmem:[%s8197_s28 + $0x78] sm:$0xff] %v8364_v28  ;;  %5083 = vst [vmem:[%s8202_s17 + $0x78] sm:$0xff] %v8364_v28  ;;  %3096 = vadd.xlane.f32.xlu0 %v3066_v1  ;;  %v3067_v32 = vmul.f32 %v8364_v28, %v8364_v28  ;;  %5981 = vmatpush3.bf16.msra.mxu1 %v6641_v49 }
 0x49d   : > { %5099 = vst [vmem:[%s8212_s23 + $0x78] sm:$0xff] %v3050_v2  ;;  %5982 = vmatprep.subr.bf16.mxu1 %v6642_v10 }
 0x49e   : > { %3098 = vadd.xlane.f32.xlu1 %v3067_v32 }
 0x4a0   : > { %5983 = vmatpush3.bf16.msra.mxu1 %v6642_v10 }
 0x4a1   : > { %5984 = vmatprep.subr.bf16.mxu1 %v6643_v11 }
 0x4a4   : > { %5985 = vmatpush3.bf16.msra.mxu1 %v6643_v11 }
 0x4a5   : > { %5986 = vmatprep.subr.bf16.mxu1 %v6644_v6 }
 0x4a8   : > { %5987 = vmatpush3.bf16.msra.mxu1 %v6644_v6 }
 0x4a9   : > { %5988 = vmatprep.subr.bf16.mxu1 %v6645_v12 }
 0x4ac   : > { %5989 = vmatpush3.bf16.msra.mxu1 %v6645_v12 }
 0x4ad   : > { %5990 = vmatprep.subr.bf16.mxu1 %v6646_v14 }
 0x4b0   : > { %5991 = vmatpush3.bf16.msra.mxu1 %v6646_v14 }
 0x4f1   : > { %v3069_v17 = vpop.xlane.xlu0 %3068 }
 0x4f2   : > { %v3100_v46 = vmax.f32 %v3069_v17, 1e-24 }
 0x4f4   : > { %6712 = vrsqrt.f32 %v3100_v46 }
 0x4f5   : > { %v3071_v47 = vpop.xlane.xlu0 %3070 }
 0x4f6   : > { %v3101_v18 = vmax.f32 %v3071_v47, 1e-24 }
 0x4f8   : > { %6714 = vrsqrt.f32 %v3101_v18 }
 0x4f9   : > { %v3073_v4 = vpop.xlane.xlu1 %3072 }
 0x4fa   : > { %v3102_v51 = vmax.f32 %v3073_v4, 1e-24 }
 0x4fc   : > { %6716 = vrsqrt.f32 %v3102_v51 }
 0x4fd   : > { %v3075_v5 = vpop.xlane.xlu1 %3074 }
 0x4fe   : > { %v3103_v33 = vmax.f32 %v3075_v5, 1e-24  ;;  %v6713_v13 = vpop.eup %6712 }
 0x4ff   : > { %v8378_v39 = vmul.f32 %v6713_v13, %v8193_v22 }
 0x500   : > { %6718 = vrsqrt.f32 %v3103_v33 }
 0x501   : > { %v3077_v50 = vpop.xlane.xlu0 %3076 }
 0x502   : > { %v6715_v35 = vpop.eup %6714  ;;  %v3104_v19 = vmax.f32 %v3077_v50, 1e-24 }
 0x503   : > { %v3079_v20 = vpop.xlane.xlu1 %3078  ;;  %v8381_v38 = vmul.f32 %v6715_v35, %v8207_v52 }
 0x504   : > { %6720 = vrsqrt.f32 %v3104_v19  ;;  %v3105_v40 = vmax.f32 %v3079_v20, 1e-24 }
 0x505   : > { %v3148_v7 = vpack.c.bf16 %v8381_v38, %v8378_v39 }
 0x506   : > { %6722 = vrsqrt.f32 %v3105_v40  ;;  %v6717_v37 = vpop.eup %6716 }
 0x507   : > { %5962 = vmatprep.mubr.bf16.mxu0 %v3148_v7  ;;  %v8386_v57 = vmul.f32 %v6717_v37, %v8224_v16  ;;  %v6649_v37 = vld [vmem:[#allocation13 + $0x8] sm:$0xff]  }
 0x509   : > { %v3081_v21 = vpop.xlane.xlu0 %3080 }
 0x50a   : > { %v6719_v24 = vpop.eup %6718  ;;  %v3106_v27 = vmax.f32 %v3081_v21, 1e-24  ;;  %v6650_v21 = vld [vmem:[#allocation13 + $0x10] sm:$0xff]  }
 0x50b   : > { %v8389_v22 = vmul.f32 %v6719_v24, %v8232_v63  ;;  %v3083_v60 = vpop.xlane.xlu1 %3082  ;;  %v6653_v24 = vld [vmem:[#allocation13 + $0x28] sm:$0xff]  }
 0x50c   : > { %6724 = vrsqrt.f32 %v3106_v27  ;;  %v3107_v52 = vmax.f32 %v3083_v60, 1e-24  ;;  %v5724_v27 = vld [vmem:[%s9502_s8] ss:$0 sm:$0xff] }
 0x50d   : > { %v3149_v53 = vpack.c.bf16 %v8389_v22, %v8386_v57 }
 0x50e   : > { %v6721_v56 = vpop.eup %6720  ;;  %6726 = vrsqrt.f32 %v3107_v52 }
 0x50f   : > { %5963 = vmatmul.mubr.bf16.vlgmr.msra.gmra.mrb[64].mxu0 %v3149_v53  ;;  %v8394_v61 = vmul.f32 %v6721_v56, %v8246_v44 }
 0x510   : > { %v6723_v59 = vpop.eup %6722 }
 0x511   : > { %v3085_v23 = vpop.xlane.xlu0 %3084  ;;  %v8397_v16 = vmul.f32 %v6723_v59, %v8254_v29 }
 0x512   : > { %v3108_v41 = vmax.f32 %v3085_v23, 1e-24 }
 0x513   : > { %v3087_v63 = vpop.xlane.xlu1 %3086  ;;  %v3150_v0 = vpack.c.bf16 %v8397_v16, %v8394_v61 }
 0x514   : > { %6728 = vrsqrt.f32 %v3108_v41  ;;  %v3109_v55 = vmax.f32 %v3087_v63, 1e-24 }
 0x515   : > { %5966 = vmatprep.mubr.bf16.mxu0 %v3150_v0 }
 0x516   : > { %v6725_v43 = vpop.eup %6724  ;;  %6730 = vrsqrt.f32 %v3109_v55 }
 0x517   : > { %v8402_v26 = vmul.f32 %v6725_v43, %v8268_v9 }
 0x518   : > { %v6727_v25 = vpop.eup %6726 }
 0x519   : > { %v3089_v62 = vpop.xlane.xlu0 %3088  ;;  %v8405_v44 = vmul.f32 %v6727_v25, %v8276_v15 }
 0x51a   : > { %v3110_v29 = vmax.f32 %v3089_v62, 1e-24 }
 0x51b   : > { %v3091_v1 = vpop.xlane.xlu1 %3090  ;;  %v3151_v2 = vpack.c.bf16 %v8405_v44, %v8402_v26 }
 0x51c   : > { %6732 = vrsqrt.f32 %v3110_v29  ;;  %v3111_v32 = vmax.f32 %v3091_v1, 1e-24 }
 0x51d   : > { %5967 = vmatmul.mubr.bf16.gmra.mrb[68].mxu0 %v3151_v2 }
 0x51e   : > { %v6729_v34 = vpop.eup %6728  ;;  %6734 = vrsqrt.f32 %v3111_v32 }
 0x51f   : > { %v8410_v11 = vmul.f32 %v6729_v34, %v8290_v48 }
 0x520   : > { %v6731_v49 = vpop.eup %6730 }
 0x521   : > { %v3093_v10 = vpop.xlane.xlu0 %3092  ;;  %v8413_v9 = vmul.f32 %v6731_v49, %v8298_v8 }
 0x522   : > { %v3112_v15 = vmax.f32 %v3093_v10, 1e-24 }
 0x523   : > { %v3095_v6 = vpop.xlane.xlu1 %3094  ;;  %v3152_v12 = vpack.c.bf16 %v8413_v9, %v8410_v11 }
 0x524   : > { %6736 = vrsqrt.f32 %v3112_v15  ;;  %v3113_v14 = vmax.f32 %v3095_v6, 1e-24 }
 0x525   : > { %5970 = vmatprep.mubr.bf16.mxu0 %v3152_v12 }
 0x526   : > { %v6733_v17 = vpop.eup %6732  ;;  %6738 = vrsqrt.f32 %v3113_v14 }
 0x527   : > { %v8418_v18 = vmul.f32 %v6733_v17, %v8312_v58 }
 0x528   : > { %v6735_v46 = vpop.eup %6734 }
 0x529   : > { %v3097_v47 = vpop.xlane.xlu0 %3096  ;;  %v8421_v48 = vmul.f32 %v6735_v46, %v8320_v45 }
 0x52a   : > { %v3114_v8 = vmax.f32 %v3097_v47, 1e-24 }
 0x52b   : > { %v3099_v4 = vpop.xlane.xlu1 %3098  ;;  %v3153_v51 = vpack.c.bf16 %v8421_v48, %v8418_v18 }
 0x52c   : > { %6740 = vrsqrt.f32 %v3114_v8  ;;  %v3115_v5 = vmax.f32 %v3099_v4, 1e-24 }
 0x52d   : > { %5971 = vmatmul.mubr.bf16.gmra.mrb[72].mxu0 %v3153_v51 }
 0x52e   : > { %v6737_v33 = vpop.eup %6736  ;;  %6742 = vrsqrt.f32 %v3115_v5 }
 0x52f   : > { %v8426_v50 = vmul.f32 %v6737_v33, %v8334_v30  ;;  %v6647_v30 = vld [vmem:[#allocation11 + $0x38] sm:$0xff]  }
 0x530   : > { %v6739_v13 = vpop.eup %6738  ;;  %5992 = vmatprep.subr.bf16.mxu1 %v6647_v30 }
 0x531   : > { %v8429_v58 = vmul.f32 %v6739_v13, %v8342_v54  ;;  %5993 = vmatpush3.bf16.msra.mxu1 %v6647_v30  ;;  %v6648_v54 = vld [vmem:[#allocation13] sm:$0xff]  }
 0x532   : > { %6010 = vmatprep.subr.bf16.mxu0 %v6648_v54 }
 0x533   : > { %v3154_v45 = vpack.c.bf16 %v8429_v58, %v8426_v50  ;;  %6011 = vmatpush3.bf16.msra.mxu0 %v6648_v54 }
 0x534   : > { %6012 = vmatprep.subr.bf16.mxu0 %v6649_v37 }
 0x535   : > { %5974 = vmatprep.mubr.bf16.mxu0 %v3154_v45 }
 0x536   : > { %v6741_v35 = vpop.eup %6740 }
 0x537   : > { %v8434_v20 = vmul.f32 %v6741_v35, %v8356_v42  ;;  %6013 = vmatpush3.bf16.msra.mxu0 %v6649_v37  ;;  %v6651_v42 = vld [vmem:[#allocation13 + $0x18] sm:$0xff]  }
 0x538   : > { %v6743_v19 = vpop.eup %6742  ;;  %6014 = vmatprep.subr.bf16.mxu0 %v6650_v21 }
 0x539   : > { %v8437_v40 = vmul.f32 %v6743_v19, %v8364_v28  ;;  %v6652_v28 = vld [vmem:[#allocation13 + $0x20] sm:$0xff]  }
 0x53b   : > { %v3155_v7 = vpack.c.bf16 %v8437_v40, %v8434_v20  ;;  %6015 = vmatpush3.bf16.msra.mxu0 %v6650_v21 }
 0x53c   : > { %6016 = vmatprep.subr.bf16.mxu0 %v6651_v42 }
 0x53d   : > { %5975 = vmatmul.mubr.bf16.gmra.mrb[76].mxu0 %v3155_v7 }
 0x53f   : > { %6017 = vmatpush3.bf16.msra.mxu0 %v6651_v42 }
 0x540   : > { %6018 = vmatprep.subr.bf16.mxu0 %v6652_v28 }
 0x543   : > { %6019 = vmatpush3.bf16.msra.mxu0 %v6652_v28 }
 0x544   : > { %6020 = vmatprep.subr.bf16.mxu0 %v6653_v24 }
 0x547   : > { %6021 = vmatpush3.bf16.msra.mxu0 %v6653_v24 }
 0x5e2   : > { %v5964_v60 = vpop.f32.mrb[64].mxu0 }
 0x5e3   : > { %v3270_v52 = vadd.f32 %v5964_v60, %v5724_v27  ;;  %v3261_v53 = vpop.f32.mrb[65].mxu0 }
 0x5e4   : > { %v3262_v56 = vadd.f32 %v5724_v27, %v3261_v53  ;;  %v5965_v59 = vpop.f32.mrb[66].mxu0 }
 0x5e5   : > { %v3273_v23 = vadd.f32 %v5965_v59, %v5724_v27  ;;  %v3264_v41 = vpop.f32.mrb[67].mxu0  ;;  %v3326_v0 = vmax.f32 %v3270_v52, 0.0 }
 0x5e6   : > { %v3265_v63 = vadd.f32 %v5724_v27, %v3264_v41  ;;  %v3324_v43 = vmax.f32 %v3262_v56, 0.0 }
 0x5e7   : > { %v3327_v55 = vmax.f32 %v3273_v23, 0.0 }
 0x5e8   : > { %v3325_v25 = vmax.f32 %v3265_v63, 0.0 }
 0x5e9   : > { %v3341_v62 = vpack.c.bf16 %v3327_v55, %v3326_v0 }
 0x5ea   : > { %v3340_v29 = vpack.c.bf16 %v3325_v25, %v3324_v43 }
 0x5ec   : > { %5994 = vmatprep.mubr.bf16.mxu1 %v3340_v29  ;;  %v6655_v29 = vld [vmem:[#allocation13 + $0x38] sm:$0xff]  }
 0x5ed   : > { %5995 = vmatmul.mubr.bf16.vlgmr.msra.gmra.mrb[64].mxu1 %v3341_v62  ;;  %v6654_v62 = vld [vmem:[#allocation13 + $0x30] sm:$0xff]  }
 0x5ee   : > { %6022 = vmatprep.subr.bf16.mxu0 %v6654_v62 }
 0x5ef   : > { %6023 = vmatpush3.bf16.msra.mxu0 %v6654_v62 }
 0x5f0   : > { %v5968_v1 = vpop.f32.mrb[68].mxu0  ;;  %6024 = vmatprep.subr.bf16.mxu0 %v6655_v29 }
 0x5f1   : > { %v3286_v2 = vadd.f32 %v5968_v1, %v5724_v27  ;;  %v3277_v32 = vpop.f32.mrb[69].mxu0  ;;  %v6656_v1 = vld [vmem:[#allocation14] sm:$0xff]  }
 0x5f2   : > { %v3278_v34 = vadd.f32 %v5724_v27, %v3277_v32  ;;  %v5969_v49 = vpop.f32.mrb[70].mxu0  ;;  %6042 = vmatprep.subr.bf16.mxu1 %v6656_v1  ;;  %v6659_v32 = vld [vmem:[#allocation14 + $0x18] sm:$0xff]  }
 0x5f3   : > { %v3289_v10 = vadd.f32 %v5969_v49, %v5724_v27  ;;  %v3280_v15 = vpop.f32.mrb[71].mxu0  ;;  %v3330_v12 = vmax.f32 %v3286_v2, 0.0  ;;  %6025 = vmatpush3.bf16.msra.mxu0 %v6655_v29  ;;  %v6657_v2 = vld [vmem:[#allocation14 + $0x8] sm:$0xff]   ;;  %6043 = vmatpush3.bf16.msra.mxu1 %v6656_v1 }
 0x5f4   : > { %v3281_v6 = vadd.f32 %v5724_v27, %v3280_v15  ;;  %v3328_v17 = vmax.f32 %v3278_v34, 0.0  ;;  %6044 = vmatprep.subr.bf16.mxu1 %v6657_v2  ;;  %v6660_v34 = vld [vmem:[#allocation14 + $0x20] sm:$0xff]   ;;  %v6661_v49 = vld [vmem:[#allocation14 + $0x28] sm:$0xff]  }
 0x5f5   : > { %v3331_v14 = vmax.f32 %v3289_v10, 0.0  ;;  %v5733_v10 = vld [vmem:[%s9503_s10] ss:$0 sm:$0xff] }
 0x5f6   : > { %v3329_v46 = vmax.f32 %v3281_v6, 0.0 }
 0x5f7   : > { %v3343_v47 = vpack.c.bf16 %v3331_v14, %v3330_v12  ;;  %6045 = vmatpush3.bf16.msra.mxu1 %v6657_v2 }
 0x5f8   : > { %v3342_v8 = vpack.c.bf16 %v3329_v46, %v3328_v17 }
 0x5fa   : > { %5998 = vmatprep.mubr.bf16.mxu1 %v3342_v8 }
 0x5fb   : > { %5999 = vmatmul.mubr.bf16.gmra.mrb[68].mxu1 %v3343_v47 }
 0x600   : > { %v5972_v4 = vpop.f32.mrb[72].mxu0 }
 0x601   : > { %v3302_v51 = vadd.f32 %v5972_v4, %v5724_v27  ;;  %v3293_v5 = vpop.f32.mrb[73].mxu0 }
 0x602   : > { %v3294_v33 = vadd.f32 %v5724_v27, %v3293_v5  ;;  %v5973_v13 = vpop.f32.mrb[74].mxu0 }
 0x603   : > { %v3305_v45 = vadd.f32 %v5973_v13, %v5724_v27  ;;  %v3296_v35 = vpop.f32.mrb[75].mxu0  ;;  %v3334_v7 = vmax.f32 %v3302_v51, 0.0 }
 0x604   : > { %v3297_v19 = vadd.f32 %v5724_v27, %v3296_v35  ;;  %v3332_v54 = vmax.f32 %v3294_v33, 0.0 }
 0x605   : > { %v3335_v30 = vmax.f32 %v3305_v45, 0.0 }
 0x606   : > { %v3333_v37 = vmax.f32 %v3297_v19, 0.0 }
 0x607   : > { %v3345_v21 = vpack.c.bf16 %v3335_v30, %v3334_v7 }
 0x608   : > { %v3344_v42 = vpack.c.bf16 %v3333_v37, %v3332_v54 }
 0x60a   : > { %6002 = vmatprep.mubr.bf16.mxu1 %v3344_v42 }
 0x60b   : > { %6003 = vmatmul.mubr.bf16.gmra.mrb[72].mxu1 %v3345_v21 }
 0x610   : > { %v5976_v28 = vpop.f32.mrb[76].mxu0 }
 0x611   : > { %v3318_v24 = vadd.f32 %v5976_v28, %v5724_v27  ;;  %v3309_v60 = vpop.f32.mrb[77].mxu0 }
 0x612   : > { %v3310_v52 = vadd.f32 %v5724_v27, %v3309_v60  ;;  %v5977_v53 = vpop.f32.mrb[78].mxu0 }
 0x613   : > { %v3321_v56 = vadd.f32 %v5977_v53, %v5724_v27  ;;  %v3312_v59 = vpop.f32.mrb[79].mxu0  ;;  %v3338_v41 = vmax.f32 %v3318_v24, 0.0 }
 0x614   : > { %v3313_v23 = vadd.f32 %v5724_v27, %v3312_v59  ;;  %v3336_v0 = vmax.f32 %v3310_v52, 0.0  ;;  %v6658_v27 = vld [vmem:[#allocation14 + $0x10] sm:$0xff]  }
 0x615   : > { %v3339_v63 = vmax.f32 %v3321_v56, 0.0  ;;  %6046 = vmatprep.subr.bf16.mxu1 %v6658_v27 }
 0x616   : > { %v3337_v55 = vmax.f32 %v3313_v23, 0.0  ;;  %6047 = vmatpush3.bf16.msra.mxu1 %v6658_v27 }
 0x617   : > { %v3347_v43 = vpack.c.bf16 %v3339_v63, %v3338_v41  ;;  %6048 = vmatprep.subr.bf16.mxu1 %v6659_v32 }
 0x618   : > { %v3346_v25 = vpack.c.bf16 %v3337_v55, %v3336_v0 }
 0x61a   : > { %6006 = vmatprep.mubr.bf16.mxu1 %v3346_v25  ;;  %6049 = vmatpush3.bf16.msra.mxu1 %v6659_v32 }
 0x61b   : > { %6007 = vmatmul.mubr.bf16.gmra.mrb[76].mxu1 %v3347_v43  ;;  %6050 = vmatprep.subr.bf16.mxu1 %v6660_v34 }
 0x61e   : > { %6051 = vmatpush3.bf16.msra.mxu1 %v6660_v34 }
 0x61f   : > { %6052 = vmatprep.subr.bf16.mxu1 %v6661_v49 }
 0x622   : > { %6053 = vmatpush3.bf16.msra.mxu1 %v6661_v49 }
 0x6c0   : > { %v5996_v15 = vpop.f32.mrb[64].mxu1 }
 0x6c1   : > { %v3462_v6 = vadd.f32 %v5996_v15, %v5733_v10  ;;  %v3453_v12 = vpop.f32.mrb[65].mxu1 }
 0x6c2   : > { %v3454_v14 = vadd.f32 %v5733_v10, %v3453_v12  ;;  %v5997_v17 = vpop.f32.mrb[66].mxu1 }
 0x6c3   : > { %v3465_v46 = vadd.f32 %v5997_v17, %v5733_v10  ;;  %v3456_v47 = vpop.f32.mrb[67].mxu1  ;;  %v3518_v4 = vmax.f32 %v3462_v6, 0.0 }
 0x6c4   : > { %v3457_v8 = vadd.f32 %v5733_v10, %v3456_v47  ;;  %v3516_v5 = vmax.f32 %v3454_v14, 0.0 }
 0x6c5   : > { %v3519_v51 = vmax.f32 %v3465_v46, 0.0 }
 0x6c6   : > { %v3517_v33 = vmax.f32 %v3457_v8, 0.0 }
 0x6c7   : > { %v3533_v13 = vpack.c.bf16 %v3519_v51, %v3518_v4 }
 0x6c8   : > { %v3532_v45 = vpack.c.bf16 %v3517_v33, %v3516_v5 }
 0x6ca   : > { %6026 = vmatprep.mubr.bf16.mxu0 %v3532_v45  ;;  %v6663_v45 = vld [vmem:[#allocation14 + $0x38] sm:$0xff]  }
 0x6cb   : > { %6027 = vmatmul.mubr.bf16.vlgmr.msra.gmra.mrb[80].mxu0 %v3533_v13  ;;  %v6662_v13 = vld [vmem:[#allocation14 + $0x30] sm:$0xff]  }
 0x6cc   : > { %6054 = vmatprep.subr.bf16.mxu1 %v6662_v13 }
 0x6cd   : > { %6055 = vmatpush3.bf16.msra.mxu1 %v6662_v13 }
 0x6ce   : > { %v6000_v35 = vpop.f32.mrb[68].mxu1  ;;  %6056 = vmatprep.subr.bf16.mxu1 %v6663_v45 }
 0x6cf   : > { %v3478_v19 = vadd.f32 %v6000_v35, %v5733_v10  ;;  %v3469_v7 = vpop.f32.mrb[69].mxu1  ;;  %v6664_v35 = vld [vmem:[#allocation16] ss:$16 sps:$4 sm:$0xff]  }
 0x6d0   : > { %v3470_v30 = vadd.f32 %v5733_v10, %v3469_v7  ;;  %v6001_v54 = vpop.f32.mrb[70].mxu1  ;;  %v6669_v7 = vld [vmem:[#allocation16 + $0xc] ss:$16 sps:$4 sm:$0xff]  }
 0x6d1   : > { %v3481_v37 = vadd.f32 %v6001_v54, %v5733_v10  ;;  %v3472_v21 = vpop.f32.mrb[71].mxu1  ;;  %v3522_v28 = vmax.f32 %v3478_v19, 0.0  ;;  %6057 = vmatpush3.bf16.msra.mxu1 %v6663_v45  ;;  %v6666_v19 = vld [vmem:[#allocation16 + $0x4] ss:$16 sps:$4 sm:$0xff]   ;;  %v6685_v45 = vld [vmem:[#allocation16 + $0x68] ss:$16 sps:$4 sm:$0xff]  }
 0x6d2   : > { %v3473_v42 = vadd.f32 %v5733_v10, %v3472_v21  ;;  %v3520_v60 = vmax.f32 %v3470_v30, 0.0  ;;  %v6672_v30 = vld [vmem:[#allocation16 + $0x24] ss:$16 sps:$4 sm:$0xff]   ;;  %4154 = vmatprep.subr.bf16.mxu0 %v6666_v19  ;;  %4267 = vmatprep.subr.bf16.mxu1 %v6669_v7  ;;  %v6693_v19 = vld [vmem:[#allocation16 + $0x8c] ss:$16 sps:$4 sm:$0xff]  }
 0x6d3   : > { %v3523_v24 = vmax.f32 %v3481_v37, 0.0  ;;  %4155 = vmatpush1.bf16.msra.mxu0 %v6664_v35  ;;  %v6678_v54 = vld [vmem:[#allocation16 + $0x44] ss:$16 sps:$4 sm:$0xff]   ;;  %v6676_v37 = vld [vmem:[#allocation16 + $0x40] ss:$16 sps:$4 sm:$0xff]  }
 0x6d4   : > { %v3521_v52 = vmax.f32 %v3473_v42, 0.0  ;;  %4156 = vmatprep.subr.bf16.mxu0 %v6672_v30  ;;  %v6684_v21 = vld [vmem:[#allocation16 + $0x64] ss:$16 sps:$4 sm:$0xff]   ;;  %v6682_v42 = vld [vmem:[#allocation16 + $0x60] ss:$16 sps:$4 sm:$0xff]  }
 0x6d5   : > { %v3535_v53 = vpack.c.bf16 %v3523_v24, %v3522_v28  ;;  %v6690_v28 = vld [vmem:[#allocation16 + $0x84] ss:$16 sps:$4 sm:$0xff]   ;;  %v6688_v24 = vld [vmem:[#allocation16 + $0x80] ss:$16 sps:$4 sm:$0xff]   ;;  %v6691_v30 = vld [vmem:[#allocation16 + $0x88] ss:$16 sps:$4 sm:$0xff]  }
 0x6d6   : > { %v3534_v56 = vpack.c.bf16 %v3521_v52, %v3520_v60  ;;  %v8450_v60 = vld [vmem:[%s9504_s5] ss:$0 sm:$0xff]  ;;  %s7164_s5 = scalar_lea.vmem %s7163_s6, 4096 }
 0x6d8   : > { %6030 = vmatprep.mubr.bf16.mxu0 %v3534_v56 }
 0x6d9   : > { %6031 = vmatmul.mubr.bf16.gmra.mrb[84].mxu0 %v3535_v53 }
 0x6de   : > { %v6004_v59 = vpop.f32.mrb[72].mxu1 }
 0x6df   : > { %v3494_v23 = vadd.f32 %v6004_v59, %v5733_v10  ;;  %v3485_v41 = vpop.f32.mrb[73].mxu1 }
 0x6e0   : > { %v3486_v63 = vadd.f32 %v5733_v10, %v3485_v41  ;;  %v6005_v0 = vpop.f32.mrb[74].mxu1 }
 0x6e1   : > { %v3497_v55 = vadd.f32 %v6005_v0, %v5733_v10  ;;  %v3488_v43 = vpop.f32.mrb[75].mxu1  ;;  %v3526_v62 = vmax.f32 %v3494_v23, 0.0 }
 0x6e2   : > { %v3489_v25 = vadd.f32 %v5733_v10, %v3488_v43  ;;  %v3524_v1 = vmax.f32 %v3486_v63, 0.0 }
 0x6e3   : > { %v3527_v29 = vmax.f32 %v3497_v55, 0.0 }
 0x6e4   : > { %v3525_v2 = vmax.f32 %v3489_v25, 0.0 }
 0x6e5   : > { %v3537_v27 = vpack.c.bf16 %v3527_v29, %v3526_v62 }
 0x6e6   : > { %v3536_v32 = vpack.c.bf16 %v3525_v2, %v3524_v1  ;;  %v6667_v2 = vld [vmem:[#allocation16 + $0x8] ss:$16 sps:$4 sm:$0xff]  }
 0x6e8   : > { %6034 = vmatprep.mubr.bf16.mxu0 %v3536_v32  ;;  %v6673_v32 = vld [vmem:[#allocation16 + $0x28] ss:$16 sps:$4 sm:$0xff]  }
 0x6e9   : > { %6035 = vmatmul.mubr.bf16.gmra.mrb[88].mxu0 %v3537_v27  ;;  %v6675_v27 = vld [vmem:[#allocation16 + $0x2c] ss:$16 sps:$4 sm:$0xff]  }
 0x6ee   : > { %v6008_v34 = vpop.f32.mrb[76].mxu1 }
 0x6ef   : > { %v3510_v49 = vadd.f32 %v6008_v34, %v5733_v10  ;;  %v3501_v15 = vpop.f32.mrb[77].mxu1  ;;  %v6681_v34 = vld [vmem:[#allocation16 + $0x4c] ss:$16 sps:$4 sm:$0xff]  }
 0x6f0   : > { %v3502_v6 = vadd.f32 %v5733_v10, %v3501_v15  ;;  %v6009_v12 = vpop.f32.mrb[78].mxu1 }
 0x6f1   : > { %v3513_v14 = vadd.f32 %v6009_v12, %v5733_v10  ;;  %v3504_v17 = vpop.f32.mrb[79].mxu1  ;;  %v3530_v47 = vmax.f32 %v3510_v49, 0.0 }
 0x6f2   : > { %v3505_v46 = vadd.f32 %v5733_v10, %v3504_v17  ;;  %v3528_v4 = vmax.f32 %v3502_v6, 0.0  ;;  %v6670_v10 = vld [vmem:[#allocation16 + $0x20] ss:$16 sps:$4 sm:$0xff]   ;;  %v6679_v17 = vld [vmem:[#allocation16 + $0x48] ss:$16 sps:$4 sm:$0xff]  }
 0x6f3   : > { %v3531_v8 = vmax.f32 %v3513_v14, 0.0  ;;  %4157 = vmatpush1.bf16.msra.mxu0 %v6670_v10 }
 0x6f4   : > { %v3529_v51 = vmax.f32 %v3505_v46, 0.0  ;;  %4158 = vmatprep.subr.bf16.mxu0 %v6678_v54 }
 0x6f5   : > { %v3539_v5 = vpack.c.bf16 %v3531_v8, %v3530_v47  ;;  %v6687_v8 = vld [vmem:[#allocation16 + $0x6c] ss:$16 sps:$4 sm:$0xff]  }
 0x6f6   : > { %v3538_v33 = vpack.c.bf16 %v3529_v51, %v3528_v4 }
 0x6f7   : > { %4159 = vmatpush1.bf16.msra.mxu0 %v6676_v37 }
 0x6f8   : > { %6038 = vmatprep.mubr.bf16.mxu0 %v3538_v33  ;;  %4160 = vmatprep.subr.bf16.mxu0 %v6684_v21 }
 0x6f9   : > { %6039 = vmatmul.mubr.bf16.gmra.mrb[92].mxu0 %v3539_v5 }
 0x6fb   : > { %4161 = vmatpush1.bf16.msra.mxu0 %v6682_v42 }
 0x6fc   : > { %4162 = vmatprep.subr.bf16.mxu0 %v6690_v28 }
 0x6ff   : > { %4163 = vmatpush1.bf16.msra.mxu0 %v6688_v24 }
 0x79e   : > { %v6028_v52 = vpop.f32.mrb[80].mxu0 }
 0x79f   : > { %v3654_v53 = vadd.f32 %v6028_v52, %v8450_v60  ;;  %v3645_v56 = vpop.f32.mrb[81].mxu0 }
 0x7a0   : > { %v3646_v59 = vadd.f32 %v8450_v60, %v3645_v56  ;;  %v6029_v23 = vpop.f32.mrb[82].mxu0 }
 0x7a1   : > { %v3657_v41 = vadd.f32 %v6029_v23, %v8450_v60  ;;  %v3648_v63 = vpop.f32.mrb[83].mxu0  ;;  %v3710_v55 = vmax.f32 %v3654_v53, 0.0 }
 0x7a2   : > { %v3649_v0 = vadd.f32 %v8450_v60, %v3648_v63  ;;  %v3708_v25 = vmax.f32 %v3646_v59, 0.0 }
 0x7a3   : > { %v3711_v43 = vmax.f32 %v3657_v41, 0.0 }
 0x7a4   : > { %v3709_v62 = vmax.f32 %v3649_v0, 0.0 }
 0x7a5   : > { %v3725_v29 = vpack.c.bf16 %v3711_v43, %v3710_v55 }
 0x7a6   : > { %v3724_v1 = vpack.c.bf16 %v3709_v62, %v3708_v25 }
 0x7a8   : > { %6058 = vmatprep.mubr.bf16.mxu1 %v3724_v1 }
 0x7a9   : > { %6059 = vmatmul.mubr.bf16.vlgmr.msra.gmra.mrb[80].mxu1 %v3725_v29 }
 0x7aa   : > { %4268 = vmatpush1.bf16.msra.mxu1 %v6667_v2 }
 0x7ab   : > { %4269 = vmatprep.subr.bf16.mxu1 %v6675_v27 }
 0x7ac   : > { %v6032_v49 = vpop.f32.mrb[84].mxu0 }
 0x7ad   : > { %v3670_v15 = vadd.f32 %v6032_v49, %v8450_v60  ;;  %v3661_v6 = vpop.f32.mrb[85].mxu0 }
 0x7ae   : > { %v3662_v12 = vadd.f32 %v8450_v60, %v3661_v6  ;;  %v6033_v14 = vpop.f32.mrb[86].mxu0  ;;  %4270 = vmatpush1.bf16.msra.mxu1 %v6673_v32 }
 0x7af   : > { %v3673_v46 = vadd.f32 %v6033_v14, %v8450_v60  ;;  %v3664_v47 = vpop.f32.mrb[87].mxu0  ;;  %4271 = vmatprep.subr.bf16.mxu1 %v6681_v34  ;;  %v3714_v51 = vmax.f32 %v3670_v15, 0.0  ;;  %v6699_v14 = vld [vmem:[#allocation16 + $0xac] ss:$16 sps:$4 sm:$0xff]  }
 0x7b0   : > { %v3665_v4 = vadd.f32 %v8450_v60, %v3664_v47  ;;  %v3712_v33 = vmax.f32 %v3662_v12, 0.0  ;;  %v6696_v12 = vld [vmem:[#allocation16 + $0xa4] ss:$16 sps:$4 sm:$0xff]  }
 0x7b1   : > { %v3715_v5 = vmax.f32 %v3673_v46, 0.0  ;;  %v6697_v46 = vld [vmem:[#allocation16 + $0xa8] ss:$16 sps:$4 sm:$0xff]   ;;  %4164 = vmatprep.subr.bf16.mxu0 %v6696_v12  ;;  %v6702_v47 = vld [vmem:[#allocation16 + $0xc4] ss:$16 sps:$4 sm:$0xff]  }
 0x7b2   : > { %v3713_v13 = vmax.f32 %v3665_v4, 0.0  ;;  %4272 = vmatpush1.bf16.msra.mxu1 %v6679_v17  ;;  %v6694_v17 = vld [vmem:[#allocation16 + $0xa0] ss:$16 sps:$4 sm:$0xff]  }
 0x7b3   : > { %v3727_v35 = vpack.c.bf16 %v3715_v5, %v3714_v51  ;;  %4273 = vmatprep.subr.bf16.mxu1 %v6687_v8  ;;  %4165 = vmatpush1.bf16.msra.mxu0 %v6694_v17  ;;  %v6705_v8 = vld [vmem:[#allocation16 + $0xcc] ss:$16 sps:$4 sm:$0xff]   ;;  %v6700_v4 = vld [vmem:[#allocation16 + $0xc0] ss:$16 sps:$4 sm:$0xff]   ;;  %v6708_v51 = vld [vmem:[#allocation16 + $0xe4] ss:$16 sps:$4 sm:$0xff]  }
 0x7b4   : > { %v3726_v7 = vpack.c.bf16 %v3713_v13, %v3712_v33  ;;  %4166 = vmatprep.subr.bf16.mxu0 %v6702_v47  ;;  %v6711_v5 = vld [vmem:[#allocation16 + $0xec] ss:$16 sps:$4 sm:$0xff]   ;;  %v6706_v33 = vld [vmem:[#allocation16 + $0xe0] ss:$16 sps:$4 sm:$0xff]   ;;  %v6709_v13 = vld [vmem:[#allocation16 + $0xe8] ss:$16 sps:$4 sm:$0xff]  }
 0x7b6   : > { %6062 = vmatprep.mubr.bf16.mxu1 %v3726_v7  ;;  %4274 = vmatpush1.bf16.msra.mxu1 %v6685_v45  ;;  %v7377_v45 = vmov 0  }
 0x7b7   : > { %6063 = vmatmul.mubr.bf16.gmra.mrb[84].mxu1 %v3727_v35  ;;  %4275 = vmatprep.subr.bf16.mxu1 %v6693_v19  ;;  %v8473_v35 = vld [vmem:[%s9505_s11] ss:$0 sm:$0xff]  ;;  %s9075_s11 = scalar_lea.hbm %s9548_s22, %s9069_s19 }
 0x7b8   : > { %4167 = vmatpush1.bf16.msra.mxu0 %v6700_v4  ;;  %4186 = vmatprep.mubr.bf16.mxu0 %v7377_v45 }
 0x7b9   : > { %4168 = vmatprep.subr.bf16.mxu0 %v6708_v51 }
 0x7ba   : > { %4276 = vmatpush1.bf16.msra.mxu1 %v6691_v30 }
 0x7bb   : > { %4277 = vmatprep.subr.bf16.mxu1 %v6699_v14 }
 0x7bc   : > { %v6036_v10 = vpop.f32.mrb[88].mxu0  ;;  %4169 = vmatpush1.bf16.msra.mxu0 %v6706_v33 }
 0x7bd   : > { %v3686_v54 = vadd.f32 %v6036_v10, %v8450_v60  ;;  %v3677_v37 = vpop.f32.mrb[89].mxu0 }
 0x7be   : > { %v3678_v21 = vadd.f32 %v8450_v60, %v3677_v37  ;;  %v6037_v42 = vpop.f32.mrb[90].mxu0  ;;  %4278 = vmatpush1.bf16.msra.mxu1 %v6697_v46 }
 0x7bf   : > { %v3689_v28 = vadd.f32 %v6037_v42, %v8450_v60  ;;  %v3680_v24 = vpop.f32.mrb[91].mxu0  ;;  %v3718_v53 = vmax.f32 %v3686_v54, 0.0  ;;  %4279 = vmatprep.subr.bf16.mxu1 %v6705_v8 }
 0x7c0   : > { %v3681_v52 = vadd.f32 %v8450_v60, %v3680_v24  ;;  %v3716_v59 = vmax.f32 %v3678_v21, 0.0 }
 0x7c1   : > { %v3719_v56 = vmax.f32 %v3689_v28, 0.0 }
 0x7c2   : > { %v3717_v23 = vmax.f32 %v3681_v52, 0.0 }
 0x7c3   : > { %v3729_v41 = vpack.c.bf16 %v3719_v56, %v3718_v53 }
 0x7c4   : > { %v3728_v63 = vpack.c.bf16 %v3717_v23, %v3716_v59 }
 0x7c6   : > { %6066 = vmatprep.mubr.bf16.mxu1 %v3728_v63 }
 0x7c7   : > { %6067 = vmatmul.mubr.bf16.gmra.mrb[88].mxu1 %v3729_v41 }
 0x7cc   : > { %v6040_v0 = vpop.f32.mrb[92].mxu0 }
 0x7cd   : > { %v3702_v55 = vadd.f32 %v6040_v0, %v8450_v60  ;;  %v3693_v43 = vpop.f32.mrb[93].mxu0 }
 0x7ce   : > { %v3694_v25 = vadd.f32 %v8450_v60, %v3693_v43  ;;  %v6041_v62 = vpop.f32.mrb[94].mxu0 }
 0x7cf   : > { %v3705_v29 = vadd.f32 %v6041_v62, %v8450_v60  ;;  %v3696_v1 = vpop.f32.mrb[95].mxu0  ;;  %v3722_v27 = vmax.f32 %v3702_v55, 0.0 }
 0x7d0   : > { %v3697_v2 = vadd.f32 %v8450_v60, %v3696_v1  ;;  %v3720_v34 = vmax.f32 %v3694_v25, 0.0  ;;  %v6703_v60 = vld [vmem:[#allocation16 + $0xc8] ss:$16 sps:$4 sm:$0xff]  }
 0x7d1   : > { %v3723_v32 = vmax.f32 %v3705_v29, 0.0  ;;  %4280 = vmatpush1.bf16.msra.mxu1 %v6703_v60 }
 0x7d2   : > { %v3721_v49 = vmax.f32 %v3697_v2, 0.0  ;;  %4281 = vmatprep.subr.bf16.mxu1 %v6711_v5 }
 0x7d3   : > { %v3731_v15 = vpack.c.bf16 %v3723_v32, %v3722_v27 }
 0x7d4   : > { %v3730_v6 = vpack.c.bf16 %v3721_v49, %v3720_v34 }
 0x7d5   : > { %4282 = vmatpush1.bf16.msra.mxu1 %v6709_v13 }
 0x7d6   : > { %6070 = vmatprep.mubr.bf16.mxu1 %v3730_v6 }
 0x7d7   : > { %6071 = vmatmul.mubr.bf16.gmra.mrb[92].mxu1 %v3731_v15 }
 0x7d8   : > { %4299 = vmatprep.mubr.bf16.mxu1 %v7377_v45 }
 0x87c   : > { %v6060_v19 = vpop.f32.mrb[80].mxu1 }
 0x87d   : > { %v3846_v7 = vadd.f32 %v6060_v19, %v8473_v35  ;;  %v3837_v30 = vpop.f32.mrb[81].mxu1 }
 0x87e   : > { %v3838_v10 = vadd.f32 %v8473_v35, %v3837_v30  ;;  %v6061_v54 = vpop.f32.mrb[82].mxu1 }
 0x87f   : > { %v3902_v37 = vmax.f32 %v3846_v7, 0.0  ;;  %v3849_v21 = vadd.f32 %v6061_v54, %v8473_v35  ;;  %v3840_v42 = vpop.f32.mrb[83].mxu1 }
 0x880   : > { %v3900_v28 = vmax.f32 %v3838_v10, 0.0  ;;  %v3841_v24 = vadd.f32 %v8473_v35, %v3840_v42 }
 0x881   : > { %v3918_v52 = vadd.f32 %v3902_v37, %v8386_v57  ;;  %v3903_v53 = vmax.f32 %v3849_v21, 0.0 }
 0x882   : > { %v3916_v56 = vadd.f32 %v3900_v28, %v8378_v39  ;;  %v3901_v59 = vmax.f32 %v3841_v24, 0.0 }
 0x883   : > { %4830 = vst [vmem:[%s8482_s7 + $0x10] sm:$0xff] %v3918_v52  ;;  %v3919_v23 = vadd.f32 %v3903_v53, %v8389_v22 }
 0x884   : > { %4828 = vst [vmem:[%s8482_s7] sm:$0xff] %v3916_v56  ;;  %v3917_v41 = vadd.f32 %v3901_v59, %v8381_v38 }
 0x885   : > { %4831 = vst [vmem:[%s8482_s7 + $0x18] sm:$0xff] %v3919_v23  ;;  %v3933_v63 = vpack.c.bf16 %v3919_v23, %v3918_v52 }
 0x886   : > { %v3932_v0 = vpack.c.bf16 %v3917_v41, %v3916_v56  ;;  %4829 = vst [vmem:[%s8482_s7 + $0x8] sm:$0xff] %v3917_v41 }
 0x888   : > { %4187 = vmatmul.mubr.bf16.vlgmr.msra.gmra.mrb[96].mxu0 %v3932_v0  ;;  %4300 = vmatmul.mubr.bf16.vlgmr.msra.gmra.mrb[96].mxu1 %v3932_v0 }
 0x889   : > { %4196 = vmatprep.mubr.bf16.mxu0 %v7377_v45  ;;  %4309 = vmatprep.mubr.bf16.mxu1 %v7377_v45 }
 0x88a   : > { %v6064_v39 = vpop.f32.mrb[84].mxu1 }
 0x88b   : > { %v3862_v57 = vadd.f32 %v6064_v39, %v8473_v35  ;;  %v3853_v55 = vpop.f32.mrb[85].mxu1 }
 0x88c   : > { %v3854_v22 = vadd.f32 %v8473_v35, %v3853_v55  ;;  %v6065_v43 = vpop.f32.mrb[86].mxu1 }
 0x88d   : > { %v3906_v38 = vmax.f32 %v3862_v57, 0.0  ;;  %v3865_v25 = vadd.f32 %v6065_v43, %v8473_v35  ;;  %v3856_v62 = vpop.f32.mrb[87].mxu1 }
 0x88e   : > { %v3904_v29 = vmax.f32 %v3854_v22, 0.0  ;;  %v3857_v1 = vadd.f32 %v8473_v35, %v3856_v62 }
 0x88f   : > { %v3922_v2 = vadd.f32 %v3906_v38, %v8402_v26  ;;  %v3907_v27 = vmax.f32 %v3865_v25, 0.0 }
 0x890   : > { %v3920_v32 = vadd.f32 %v3904_v29, %v8394_v61  ;;  %v3905_v34 = vmax.f32 %v3857_v1, 0.0  ;;  %4197 = vmatmul.mubr.bf16.gmra.mrb[100].mxu0 %v3933_v63  ;;  %4310 = vmatmul.mubr.bf16.gmra.mrb[100].mxu1 %v3933_v63  ;;  %v3988_v63 = vsub.s32 3, %v8003_v31 }
 0x891   : > { %4834 = vst [vmem:[%s8482_s7 + $0x30] sm:$0xff] %v3922_v2  ;;  %v3923_v49 = vadd.f32 %v3907_v27, %v8405_v44  ;;  %4206 = vmatprep.mubr.bf16.mxu0 %v7377_v45  ;;  %4319 = vmatprep.mubr.bf16.mxu1 %v7377_v45 }
 0x892   : > { %4832 = vst [vmem:[%s8482_s7 + $0x20] sm:$0xff] %v3920_v32  ;;  %v3921_v15 = vadd.f32 %v3905_v34, %v8397_v16 }
 0x893   : > { %4835 = vst [vmem:[%s8482_s7 + $0x38] sm:$0xff] %v3923_v49  ;;  %v3935_v6 = vpack.c.bf16 %v3923_v49, %v3922_v2 }
 0x894   : > { %4833 = vst [vmem:[%s8482_s7 + $0x28] sm:$0xff] %v3921_v15  ;;  %v3934_v26 = vpack.c.bf16 %v3921_v15, %v3920_v32 }
 0x898   : > { %4207 = vmatmul.mubr.bf16.gmra.mrb[104].mxu0 %v3934_v26  ;;  %4320 = vmatmul.mubr.bf16.gmra.mrb[104].mxu1 %v3934_v26 }
 0x899   : > { %4216 = vmatprep.mubr.bf16.mxu0 %v7377_v45  ;;  %4329 = vmatprep.mubr.bf16.mxu1 %v7377_v45 }
 0x89a   : > { %v6068_v61 = vpop.f32.mrb[88].mxu1 }
 0x89b   : > { %v3878_v44 = vadd.f32 %v6068_v61, %v8473_v35  ;;  %v3869_v12 = vpop.f32.mrb[89].mxu1 }
 0x89c   : > { %v3870_v14 = vadd.f32 %v8473_v35, %v3869_v12  ;;  %v6069_v17 = vpop.f32.mrb[90].mxu1 }
 0x89d   : > { %v3910_v16 = vmax.f32 %v3878_v44, 0.0  ;;  %v3881_v46 = vadd.f32 %v6069_v17, %v8473_v35  ;;  %v3872_v47 = vpop.f32.mrb[91].mxu1 }
 0x89e   : > { %v3908_v8 = vmax.f32 %v3870_v14, 0.0  ;;  %v3873_v4 = vadd.f32 %v8473_v35, %v3872_v47 }
 0x89f   : > { %v3926_v60 = vadd.f32 %v3910_v16, %v8418_v18  ;;  %v3911_v51 = vmax.f32 %v3881_v46, 0.0 }
 0x8a0   : > { %v3924_v5 = vadd.f32 %v3908_v8, %v8410_v11  ;;  %v3909_v33 = vmax.f32 %v3873_v4, 0.0  ;;  %4217 = vmatmul.mubr.bf16.gmra.mrb[108].mxu0 %v3935_v6  ;;  %4330 = vmatmul.mubr.bf16.gmra.mrb[108].mxu1 %v3935_v6 }
 0x8a1   : > { %4838 = vst [vmem:[%s8482_s7 + $0x50] sm:$0xff] %v3926_v60  ;;  %v3927_v13 = vadd.f32 %v3911_v51, %v8421_v48  ;;  %4226 = vmatprep.mubr.bf16.mxu0 %v7377_v45  ;;  %4339 = vmatprep.mubr.bf16.mxu1 %v7377_v45 }
 0x8a2   : > { %4836 = vst [vmem:[%s8482_s7 + $0x40] sm:$0xff] %v3924_v5  ;;  %v3925_v19 = vadd.f32 %v3909_v33, %v8413_v9 }
 0x8a3   : > { %4839 = vst [vmem:[%s8482_s7 + $0x58] sm:$0xff] %v3927_v13  ;;  %v3937_v7 = vpack.c.bf16 %v3927_v13, %v3926_v60 }
 0x8a4   : > { %4837 = vst [vmem:[%s8482_s7 + $0x48] sm:$0xff] %v3925_v19  ;;  %v3936_v18 = vpack.c.bf16 %v3925_v19, %v3924_v5 }
 0x8a8   : > { %4227 = vmatmul.mubr.bf16.gmra.mrb[112].mxu0 %v3936_v18  ;;  %4340 = vmatmul.mubr.bf16.gmra.mrb[112].mxu1 %v3936_v18 }
 0x8a9   : > { %4236 = vmatprep.mubr.bf16.mxu0 %v7377_v45  ;;  %4349 = vmatprep.mubr.bf16.mxu1 %v7377_v45 }
 0x8aa   : > { %v6072_v11 = vpop.f32.mrb[92].mxu1 }
 0x8ab   : > { %v3894_v48 = vadd.f32 %v6072_v11, %v8473_v35  ;;  %v3885_v30 = vpop.f32.mrb[93].mxu1 }
 0x8ac   : > { %v3886_v10 = vadd.f32 %v8473_v35, %v3885_v30  ;;  %v6073_v54 = vpop.f32.mrb[94].mxu1 }
 0x8ad   : > { %v3914_v9 = vmax.f32 %v3894_v48, 0.0  ;;  %v3897_v37 = vadd.f32 %v6073_v54, %v8473_v35  ;;  %v3888_v21 = vpop.f32.mrb[95].mxu1 }
 0x8ae   : > { %v3912_v42 = vmax.f32 %v3886_v10, 0.0  ;;  %v3889_v28 = vadd.f32 %v8473_v35, %v3888_v21 }
 0x8af   : > { %v3930_v24 = vadd.f32 %v3914_v9, %v8434_v20  ;;  %v3915_v52 = vmax.f32 %v3897_v37, 0.0 }
 0x8b0   : > { %v3928_v53 = vadd.f32 %v3912_v42, %v8426_v50  ;;  %v3913_v56 = vmax.f32 %v3889_v28, 0.0  ;;  %4237 = vmatmul.mubr.bf16.gmra.mrb[116].mxu0 %v3937_v7  ;;  %4350 = vmatmul.mubr.bf16.gmra.mrb[116].mxu1 %v3937_v7  ;;  %v3972_v50 = vld [vmem:[%s9506_s0] sm:$0xf]  ;;  %s7158_s0 = scalar_lea.vmem %s9078_s21, 2048 }
 0x8b1   : > { %4842 = vst [vmem:[%s8482_s7 + $0x70] sm:$0xff] %v3930_v24  ;;  %v3931_v59 = vadd.f32 %v3915_v52, %v8437_v40  ;;  %4246 = vmatprep.mubr.bf16.mxu0 %v7377_v45  ;;  %4359 = vmatprep.mubr.bf16.mxu1 %v7377_v45  ;;  %v3984_v40 = vsub.s32 2, %v8003_v31  ;;  %v8548_v41 = vrot.slane %v3972_v50, %v8012_v3  ;;  %p7159_p10 = scmp.ne.s32.totalorder %s9078_s21, %s7158_s0  ;;  %p7166_p8 = scmp.lt.s32.totalorder %s7164_s5, %s7158_s0 }
 0x8b2   : > { %4840 = vst [vmem:[%s8482_s7 + $0x60] sm:$0xff] %v3928_v53  ;;  %v3929_v23 = vadd.f32 %v3913_v56, %v8429_v58  ;;  %v8545_v58 = vrot.slane %v3972_v50, %v8006_v36  ;;  %v8559_v38 = vrot.slane %v3972_v50, %v3988_v63 }
 0x8b3   : > { %4843 = vst [vmem:[%s8482_s7 + $0x78] sm:$0xff] %v3931_v59  ;;  %v3939_v35 = vpack.c.bf16 %v3931_v59, %v3930_v24  ;;  %v8551_v39 = vrot.slane %v3972_v50, %v3984_v40  ;;  %p7160_p11 = pnand %p7159_p10, %p9549_p1  ;;  %p7167_p7 = por %p7166_p8, %p7165_p13 }
 0x8b4   : > { %4841 = vst [vmem:[%s8482_s7 + $0x68] sm:$0xff] %v3929_v23  ;;  %v3938_v20 = vpack.c.bf16 %v3929_v23, %v3928_v53 }
 0x8b5   : > { %p7161_p12 = pneg %p7160_p11 }
 0x8b7   : > { %p7168_p9 = pnand %p7167_p7, %p7161_p12 }
 0x8b8   : > { %4247 = vmatmul.mubr.bf16.gmra.mrb[120].mxu0 %v3938_v20  ;;  %4360 = vmatmul.mubr.bf16.gmra.mrb[120].mxu1 %v3938_v20 }
 0x8b9   : > { %4256 = vmatprep.mubr.bf16.mxu0 %v7377_v45  ;;  %4369 = vmatprep.mubr.bf16.mxu1 %v7377_v45 }
 0x8c0   : > { %4257 = vmatmul.mubr.bf16.gmra.mrb[124].mxu0 %v3939_v35  ;;  %4370 = vmatmul.mubr.bf16.gmra.mrb[124].mxu1 %v3939_v35 }
 0x95b   : > { %v4188_v0 = vpop.f32.mrb[96].mxu0  ;;  %v4301_v45 = vpop.f32.mrb[96].mxu1 }
 0x95c   : > { %v8554_v57 = vadd.f32 %v4188_v0, %v8545_v58  ;;  %v4190_v55 = vpop.f32.mrb[97].mxu0  ;;  %v4303_v22 = vpop.f32.mrb[97].mxu1  ;;  %v8565_v29 = vadd.f32 %v4301_v45, %v8551_v39 }
 0x95d   : > { %v8557_v43 = vadd.f32 %v4190_v55, %v8548_v41  ;;  %v4192_v36 = vpop.f32.mrb[98].mxu0  ;;  %v4305_v25 = vpop.f32.mrb[98].mxu1  ;;  %v8573_v27 = vadd.f32 %v4303_v22, %v8559_v38 }
 0x95e   : > { %v8562_v3 = vadd.f32 %v4192_v36, %v8545_v58  ;;  %v4194_v31 = vpop.f32.mrb[99].mxu0  ;;  %v4307_v62 = vpop.f32.mrb[99].mxu1  ;;  %v8576_v32 = vadd.f32 %v4305_v25, %v8551_v39 }
 0x95f   : > { %v4380_v1 = vmax.f32 %v8554_v57, %v8557_v43  ;;  %v8570_v2 = vadd.f32 %v4194_v31, %v8548_v41  ;;  %v8582_v15 = vadd.f32 %v4307_v62, %v8559_v38 }
 0x961   : > { %v4385_v34 = vmax.f32 %v8562_v3, %v8570_v2  ;;  %v4381_v49 = vmax.f32 %v4380_v1, %v8565_v29 }
 0x963   : > { %v4198_v6 = vpop.f32.mrb[100].mxu0  ;;  %v4311_v26 = vpop.f32.mrb[100].mxu1  ;;  %v4382_v61 = vmax.f32 %v4381_v49, %v8573_v27  ;;  %v4386_v44 = vmax.f32 %v4385_v34, %v8576_v32 }
 0x964   : > { %v8587_v12 = vadd.f32 %v4198_v6, %v8545_v58  ;;  %v4200_v14 = vpop.f32.mrb[101].mxu0  ;;  %v4313_v17 = vpop.f32.mrb[101].mxu1  ;;  %v8597_v5 = vadd.f32 %v4311_v26, %v8551_v39 }
 0x965   : > { %v8590_v16 = vadd.f32 %v4200_v14, %v8548_v41  ;;  %v4202_v46 = vpop.f32.mrb[102].mxu0  ;;  %v4315_v47 = vpop.f32.mrb[102].mxu1  ;;  %4383 = vmax.xlane.f32.xlu0 %v4382_v61  ;;  %v4387_v8 = vmax.f32 %v4386_v44, %v8582_v15  ;;  %v8605_v19 = vadd.f32 %v4313_v17, %v8559_v38 }
 0x966   : > { %v8594_v4 = vadd.f32 %v4202_v46, %v8545_v58  ;;  %v4204_v60 = vpop.f32.mrb[103].mxu0  ;;  %v4317_v51 = vpop.f32.mrb[103].mxu1  ;;  %v8608_v7 = vadd.f32 %v4315_v47, %v8551_v39 }
 0x967   : > { %v4390_v33 = vmax.f32 %v8587_v12, %v8590_v16  ;;  %v8602_v13 = vadd.f32 %v4204_v60, %v8548_v41  ;;  %4388 = vmax.xlane.f32.xlu1 %v4387_v8  ;;  %v8614_v48 = vadd.f32 %v4317_v51, %v8559_v38 }
 0x969   : > { %v4395_v18 = vmax.f32 %v8594_v4, %v8602_v13  ;;  %v4391_v11 = vmax.f32 %v4390_v33, %v8597_v5 }
 0x96b   : > { %v4208_v30 = vpop.f32.mrb[104].mxu0  ;;  %v4321_v10 = vpop.f32.mrb[104].mxu1  ;;  %v4392_v54 = vmax.f32 %v4391_v11, %v8605_v19  ;;  %v4396_v9 = vmax.f32 %v4395_v18, %v8608_v7 }
 0x96c   : > { %v8619_v37 = vadd.f32 %v4208_v30, %v8545_v58  ;;  %v4210_v21 = vpop.f32.mrb[105].mxu0  ;;  %v4323_v42 = vpop.f32.mrb[105].mxu1  ;;  %v8629_v35 = vadd.f32 %v4321_v10, %v8551_v39 }
 0x96d   : > { %v8622_v28 = vadd.f32 %v4210_v21, %v8548_v41  ;;  %v4212_v24 = vpop.f32.mrb[106].mxu0  ;;  %v4325_v52 = vpop.f32.mrb[106].mxu1  ;;  %4393 = vmax.xlane.f32.xlu0 %v4392_v54  ;;  %v4397_v53 = vmax.f32 %v4396_v9, %v8614_v48  ;;  %v8637_v40 = vadd.f32 %v4323_v42, %v8559_v38 }
 0x96e   : > { %v8626_v56 = vadd.f32 %v4212_v24, %v8545_v58  ;;  %v4214_v59 = vpop.f32.mrb[107].mxu0  ;;  %v4327_v23 = vpop.f32.mrb[107].mxu1  ;;  %v8640_v63 = vadd.f32 %v4325_v52, %v8551_v39 }
 0x96f   : > { %v4400_v20 = vmax.f32 %v8619_v37, %v8622_v28  ;;  %v8634_v50 = vadd.f32 %v4214_v59, %v8548_v41  ;;  %4398 = vmax.xlane.f32.xlu1 %v4397_v53  ;;  %v8646_v55 = vadd.f32 %v4327_v23, %v8559_v38 }
 0x971   : > { %v4405_v0 = vmax.f32 %v8626_v56, %v8634_v50  ;;  %v4401_v45 = vmax.f32 %v4400_v20, %v8629_v35 }
 0x973   : > { %v4218_v22 = vpop.f32.mrb[108].mxu0  ;;  %v4331_v36 = vpop.f32.mrb[108].mxu1  ;;  %v4402_v25 = vmax.f32 %v4401_v45, %v8637_v40  ;;  %v4406_v31 = vmax.f32 %v4405_v0, %v8640_v63 }
 0x974   : > { %v8651_v62 = vadd.f32 %v4218_v22, %v8545_v58  ;;  %v4220_v1 = vpop.f32.mrb[109].mxu0  ;;  %v4333_v34 = vpop.f32.mrb[109].mxu1  ;;  %v8661_v46 = vadd.f32 %v4331_v36, %v8551_v39 }
 0x975   : > { %v8654_v49 = vadd.f32 %v4220_v1, %v8548_v41  ;;  %v4222_v6 = vpop.f32.mrb[110].mxu0  ;;  %v4335_v26 = vpop.f32.mrb[110].mxu1  ;;  %4403 = vmax.xlane.f32.xlu0 %v4402_v25  ;;  %v4407_v61 = vmax.f32 %v4406_v31, %v8646_v55  ;;  %v8669_v60 = vadd.f32 %v4333_v34, %v8559_v38 }
 0x976   : > { %v8658_v44 = vadd.f32 %v4222_v6, %v8545_v58  ;;  %v4224_v14 = vpop.f32.mrb[111].mxu0  ;;  %v4337_v17 = vpop.f32.mrb[111].mxu1  ;;  %v8672_v51 = vadd.f32 %v4335_v26, %v8551_v39 }
 0x977   : > { %v4410_v47 = vmax.f32 %v8651_v62, %v8654_v49  ;;  %v8666_v8 = vadd.f32 %v4224_v14, %v8548_v41  ;;  %4408 = vmax.xlane.f32.xlu1 %v4407_v61  ;;  %v8678_v11 = vadd.f32 %v4337_v17, %v8559_v38 }
 0x979   : > { %v4415_v33 = vmax.f32 %v8658_v44, %v8666_v8  ;;  %v4411_v18 = vmax.f32 %v4410_v47, %v8661_v46 }
 0x97b   : > { %v4228_v30 = vpop.f32.mrb[112].mxu0  ;;  %v4341_v10 = vpop.f32.mrb[112].mxu1  ;;  %v4412_v54 = vmax.f32 %v4411_v18, %v8669_v60  ;;  %v4416_v9 = vmax.f32 %v4415_v33, %v8672_v51 }
 0x97c   : > { %v8683_v21 = vadd.f32 %v4228_v30, %v8545_v58  ;;  %v4230_v42 = vpop.f32.mrb[113].mxu0  ;;  %v4343_v24 = vpop.f32.mrb[113].mxu1  ;;  %v8693_v22 = vadd.f32 %v4341_v10, %v8551_v39 }
 0x97d   : > { %v8686_v52 = vadd.f32 %v4230_v42, %v8548_v41  ;;  %v4232_v53 = vpop.f32.mrb[114].mxu0  ;;  %v4345_v59 = vpop.f32.mrb[114].mxu1  ;;  %4413 = vmax.xlane.f32.xlu0 %v4412_v54  ;;  %v4417_v23 = vmax.f32 %v4416_v9, %v8678_v11  ;;  %v8701_v31 = vadd.f32 %v4343_v24, %v8559_v38 }
 0x97e   : > { %v8690_v20 = vadd.f32 %v4232_v53, %v8545_v58  ;;  %v4234_v0 = vpop.f32.mrb[115].mxu0  ;;  %v4347_v45 = vpop.f32.mrb[115].mxu1  ;;  %v8704_v1 = vadd.f32 %v4345_v59, %v8551_v39 }
 0x97f   : > { %v4420_v36 = vmax.f32 %v8683_v21, %v8686_v52  ;;  %v8698_v25 = vadd.f32 %v4234_v0, %v8548_v41  ;;  %4418 = vmax.xlane.f32.xlu1 %v4417_v23  ;;  %v8710_v26 = vadd.f32 %v4347_v45, %v8559_v38 }
 0x981   : > { %v4425_v34 = vmax.f32 %v8690_v20, %v8698_v25  ;;  %v4421_v6 = vmax.f32 %v4420_v36, %v8693_v22 }
 0x983   : > { %v4238_v61 = vpop.f32.mrb[116].mxu0  ;;  %v4351_v14 = vpop.f32.mrb[116].mxu1  ;;  %v4422_v17 = vmax.f32 %v4421_v6, %v8701_v31  ;;  %v4426_v47 = vmax.f32 %v4425_v34, %v8704_v1 }
 0x984   : > { %v8715_v33 = vadd.f32 %v4238_v61, %v8545_v58  ;;  %v4240_v18 = vpop.f32.mrb[117].mxu0  ;;  %v4353_v30 = vpop.f32.mrb[117].mxu1  ;;  %v8725_v23 = vadd.f32 %v4351_v14, %v8551_v39 }
 0x985   : > { %v8718_v10 = vadd.f32 %v4240_v18, %v8548_v41  ;;  %v4242_v54 = vpop.f32.mrb[118].mxu0  ;;  %v4355_v9 = vpop.f32.mrb[118].mxu1  ;;  %4423 = vmax.xlane.f32.xlu0 %v4422_v17  ;;  %v4427_v42 = vmax.f32 %v4426_v47, %v8710_v26  ;;  %v8733_v36 = vadd.f32 %v4353_v30, %v8559_v38 }
 0x986   : > { %v8722_v24 = vadd.f32 %v4242_v54, %v8545_v58  ;;  %v4244_v53 = vpop.f32.mrb[119].mxu0  ;;  %v4357_v59 = vpop.f32.mrb[119].mxu1  ;;  %9508 = vst [vmem:[#allocation33_spill] sm:$0xff] %v8725_v23  ;;  %v8736_v34 = vadd.f32 %v4355_v9, %v8551_v39 }
 0x987   : > { %v4430_v0 = vmax.f32 %v8715_v33, %v8718_v10  ;;  %v8730_v45 = vadd.f32 %v4244_v53, %v8548_v41  ;;  %4428 = vmax.xlane.f32.xlu1 %v4427_v42  ;;  %9510 = vst [vmem:[#allocation35_spill] sm:$0xff] %v8733_v36  ;;  %v8742_v14 = vadd.f32 %v4357_v59, %v8559_v38 }
 0x988   : > { %9507 = vst [vmem:[#allocation32_spill] sm:$0xff] %v8722_v24  ;;  %9511 = vst [vmem:[#allocation36_spill] sm:$0xff] %v8736_v34 }
 0x989   : > { %9509 = vst [vmem:[#allocation34_spill] sm:$0xff] %v8730_v45  ;;  %v4435_v6 = vmax.f32 %v8722_v24, %v8730_v45  ;;  %v4431_v61 = vmax.f32 %v4430_v0, %v8725_v23  ;;  %9512 = vst [vmem:[#allocation37_spill] sm:$0xff] %v8742_v14 }
 0x98b   : > { %v4248_v17 = vpop.f32.mrb[120].mxu0  ;;  %v4361_v47 = vpop.f32.mrb[120].mxu1  ;;  %v4432_v18 = vmax.f32 %v4431_v61, %v8733_v36  ;;  %v4436_v54 = vmax.f32 %v4435_v6, %v8736_v34 }
 0x98c   : > { %v8747_v30 = vadd.f32 %v4248_v17, %v8545_v58  ;;  %v4250_v42 = vpop.f32.mrb[121].mxu0  ;;  %v4363_v9 = vpop.f32.mrb[121].mxu1  ;;  %v8757_v6 = vadd.f32 %v4361_v47, %v8551_v39 }
 0x98d   : > { %v8750_v53 = vadd.f32 %v4250_v42, %v8548_v41  ;;  %4433 = vmax.xlane.f32.xlu0 %v4432_v18  ;;  %v4252_v45 = vpop.f32.mrb[122].mxu0  ;;  %v4365_v0 = vpop.f32.mrb[122].mxu1  ;;  %v4437_v59 = vmax.f32 %v4436_v54, %v8742_v14  ;;  %v8765_v18 = vadd.f32 %v4363_v9, %v8559_v38 }
 0x98e   : > { %9513 = vst [vmem:[#allocation38_spill] sm:$0xff] %v8747_v30  ;;  %v8754_v24 = vadd.f32 %v4252_v45, %v8545_v58  ;;  %v4254_v23 = vpop.f32.mrb[123].mxu0  ;;  %v4367_v61 = vpop.f32.mrb[123].mxu1  ;;  %9516 = vst [vmem:[#allocation41_spill] sm:$0xff] %v8757_v6  ;;  %v8768_v54 = vadd.f32 %v4365_v0, %v8551_v39 }
 0x98f   : > { %9514 = vst [vmem:[#allocation39_spill] sm:$0xff] %v8750_v53  ;;  %v4440_v17 = vmax.f32 %v8747_v30, %v8750_v53  ;;  %v8762_v34 = vadd.f32 %v4254_v23, %v8548_v41  ;;  %4438 = vmax.xlane.f32.xlu1 %v4437_v59  ;;  %v8774_v47 = vadd.f32 %v4367_v61, %v8559_v38 }
 0x990   : > { %9515 = vst [vmem:[#allocation40_spill] sm:$0xff] %v8754_v24  ;;  %9518 = vst [vmem:[#allocation43_spill] sm:$0xff] %v8768_v54 }
 0x991   : > { %9517 = vst [vmem:[#allocation42_spill] sm:$0xff] %v8762_v34  ;;  %v4445_v45 = vmax.f32 %v8754_v24, %v8762_v34  ;;  %v4441_v42 = vmax.f32 %v4440_v17, %v8757_v6 }
 0x993   : > { %v4258_v14 = vpop.f32.mrb[124].mxu0  ;;  %v4371_v53 = vpop.f32.mrb[124].mxu1  ;;  %v4442_v23 = vmax.f32 %v4441_v42, %v8765_v18  ;;  %v4446_v59 = vmax.f32 %v4445_v45, %v8768_v54 }
 0x994   : > { %v8779_v9 = vadd.f32 %v4258_v14, %v8545_v58  ;;  %v4260_v30 = vpop.f32.mrb[125].mxu0  ;;  %v4373_v0 = vpop.f32.mrb[125].mxu1  ;;  %v8789_v45 = vadd.f32 %v4371_v53, %v8551_v39 }
 0x995   : > { %v8782_v36 = vadd.f32 %v4260_v30, %v8548_v41  ;;  %v4262_v34 = vpop.f32.mrb[126].mxu0  ;;  %v4375_v24 = vpop.f32.mrb[126].mxu1  ;;  %4443 = vmax.xlane.f32.xlu0 %v4442_v23  ;;  %v4447_v61 = vmax.f32 %v4446_v59, %v8774_v47  ;;  %v8797_v30 = vadd.f32 %v4373_v0, %v8559_v38 }
 0x996   : > { %v8786_v17 = vadd.f32 %v4262_v34, %v8545_v58  ;;  %v4264_v6 = vpop.f32.mrb[127].mxu0  ;;  %v4377_v42 = vpop.f32.mrb[127].mxu1  ;;  %v8800_v23 = vadd.f32 %v4375_v24, %v8551_v39 }
 0x997   : > { %v4450_v14 = vmax.f32 %v8779_v9, %v8782_v36  ;;  %v8794_v54 = vadd.f32 %v4264_v6, %v8548_v41  ;;  %4448 = vmax.xlane.f32.xlu1 %v4447_v61  ;;  %v8806_v53 = vadd.f32 %v4377_v42, %v8559_v38 }
 0x998   : > { %9519 = vst [vmem:[#allocation44_spill] sm:$0xff] %v8786_v17 }
 0x999   : > { %9520 = vst [vmem:[#allocation45_spill] sm:$0xff] %v8794_v54  ;;  %v4455_v58 = vmax.f32 %v8786_v17, %v8794_v54  ;;  %v4451_v34 = vmax.f32 %v4450_v14, %v8789_v45 }
 0x99b   : > { %v4452_v59 = vmax.f32 %v4451_v34, %v8797_v30  ;;  %v4456_v41 = vmax.f32 %v4455_v58, %v8800_v23 }
 0x99d   : > { %4453 = vmax.xlane.f32.xlu0 %v4452_v59  ;;  %v4457_v6 = vmax.f32 %v4456_v41, %v8806_v53 }
 0x99f   : > { %4458 = vmax.xlane.f32.xlu1 %v4457_v6 }
 0x9f2   : > { %v4384_v0 = vpop.xlane.xlu0 %4383 }
 0x9f3   : > { %v4460_v39 = vsub.f32 %v8554_v57, %v4384_v0  ;;  %v4461_v24 = vsub.f32 %v8557_v43, %v4384_v0  ;;  %v4462_v61 = vsub.f32 %v8565_v29, %v4384_v0  ;;  %v4463_v14 = vsub.f32 %v8573_v27, %v4384_v0 }
 0x9f4   : > { %v4389_v54 = vpop.xlane.xlu1 %4388 }
 0x9f5   : > { %v4524_v38 = vmul.f32 1.442695, %v4460_v39  ;;  %v4526_v42 = vmul.f32 1.442695, %v4461_v24  ;;  %v4528_v17 = vmul.f32 1.442695, %v4462_v61  ;;  %v4464_v34 = vsub.f32 %v8562_v3, %v4389_v54 }
 0x9f6   : > { %v4530_v58 = vmul.f32 1.442695, %v4463_v14  ;;  %v4465_v59 = vsub.f32 %v8570_v2, %v4389_v54  ;;  %v4466_v41 = vsub.f32 %v8576_v32, %v4389_v54  ;;  %v4467_v6 = vsub.f32 %v8582_v15, %v4389_v54 }
 0x9f7   : > { %6744 = vpow2.f32 %v4524_v38  ;;  %v4532_v57 = vmul.f32 1.442695, %v4464_v34 }
 0x9f8   : > { %6746 = vpow2.f32 %v4526_v42  ;;  %v4534_v43 = vmul.f32 1.442695, %v4465_v59  ;;  %v4536_v29 = vmul.f32 1.442695, %v4466_v41  ;;  %v4538_v27 = vmul.f32 1.442695, %v4467_v6 }
 0x9f9   : > { %6748 = vpow2.f32 %v4528_v17 }
 0x9fa   : > { %6750 = vpow2.f32 %v4530_v58  ;;  %v4394_v0 = vpop.xlane.xlu0 %4393 }
 0x9fb   : > { %6752 = vpow2.f32 %v4532_v57  ;;  %v4468_v39 = vsub.f32 %v8587_v12, %v4394_v0  ;;  %v4469_v3 = vsub.f32 %v8590_v16, %v4394_v0  ;;  %v4470_v2 = vsub.f32 %v8597_v5, %v4394_v0 }
 0x9fc   : > { %6754 = vpow2.f32 %v4534_v43  ;;  %v4471_v32 = vsub.f32 %v8605_v19, %v4394_v0  ;;  %v4399_v15 = vpop.xlane.xlu1 %4398 }
 0x9fd   : > { %6756 = vpow2.f32 %v4536_v29  ;;  %v4540_v54 = vmul.f32 1.442695, %v4468_v39  ;;  %v4542_v24 = vmul.f32 1.442695, %v4469_v3  ;;  %v4544_v61 = vmul.f32 1.442695, %v4470_v2 }
 0x9fe   : > { %6758 = vpow2.f32 %v4538_v27  ;;  %v4546_v17 = vmul.f32 1.442695, %v4471_v32  ;;  %v4472_v14 = vsub.f32 %v8594_v4, %v4399_v15  ;;  %v4473_v38 = vsub.f32 %v8602_v13, %v4399_v15 }
 0x9ff   : > { %6760 = vpow2.f32 %v4540_v54  ;;  %v4474_v12 = vsub.f32 %v8608_v7, %v4399_v15  ;;  %v4475_v16 = vsub.f32 %v8614_v48, %v4399_v15 }
 0xa00   : > { %6762 = vpow2.f32 %v4542_v24  ;;  %v4548_v5 = vmul.f32 1.442695, %v4472_v14  ;;  %v4550_v42 = vmul.f32 1.442695, %v4473_v38 }
 0xa01   : > { %v8827_v19 = vpop.eup %6744  ;;  %6764 = vpow2.f32 %v4544_v61  ;;  %v4552_v34 = vmul.f32 1.442695, %v4474_v12  ;;  %v4554_v59 = vmul.f32 1.442695, %v4475_v16 }
 0xa02   : > { %v8829_v58 = vpop.eup %6746  ;;  %6766 = vpow2.f32 %v4546_v17  ;;  %v4404_v41 = vpop.xlane.xlu0 %4403 }
 0xa03   : > { %v8831_v4 = vpop.eup %6748  ;;  %6768 = vpow2.f32 %v4548_v5  ;;  %v4476_v13 = vsub.f32 %v8619_v37, %v4404_v41  ;;  %v4477_v7 = vsub.f32 %v8622_v28, %v4404_v41  ;;  %v4478_v48 = vsub.f32 %v8629_v35, %v4404_v41 }
 0xa04   : > { %v8836_v6 = vpop.eup %6750  ;;  %6770 = vpow2.f32 %v4550_v42  ;;  %v4479_v57 = vsub.f32 %v8637_v40, %v4404_v41  ;;  %v4409_v43 = vpop.xlane.xlu1 %4408  ;;  %v4652_v29 = vadd.f32 %v8829_v58, %v8827_v19 }
 0xa05   : > { %v8841_v27 = vpop.eup %6752  ;;  %6772 = vpow2.f32 %v4552_v34  ;;  %v4556_v0 = vmul.f32 1.442695, %v4476_v13  ;;  %v4558_v39 = vmul.f32 1.442695, %v4477_v7  ;;  %v4560_v3 = vmul.f32 1.442695, %v4478_v48 }
 0xa06   : > { %v8843_v37 = vpop.eup %6754  ;;  %6774 = vpow2.f32 %v4554_v59  ;;  %v4562_v28 = vmul.f32 1.442695, %v4479_v57  ;;  %v4480_v35 = vsub.f32 %v8626_v56, %v4409_v43  ;;  %v4481_v2 = vsub.f32 %v8634_v50, %v4409_v43 }
 0xa07   : > { %v8847_v32 = vpop.eup %6756  ;;  %6776 = vpow2.f32 %v4556_v0  ;;  %v4482_v40 = vsub.f32 %v8640_v63, %v4409_v43  ;;  %v4483_v15 = vsub.f32 %v8646_v55, %v4409_v43  ;;  %v4653_v54 = vadd.f32 %v8831_v4, %v4652_v29 }
 0xa08   : > { %v8852_v24 = vpop.eup %6758  ;;  %6778 = vpow2.f32 %v4558_v39  ;;  %v4564_v61 = vmul.f32 1.442695, %v4480_v35  ;;  %v4566_v17 = vmul.f32 1.442695, %v4481_v2  ;;  %v4657_v14 = vadd.f32 %v8843_v37, %v8841_v27 }
 0xa09   : > { %v8856_v56 = vpop.eup %6760  ;;  %6780 = vpow2.f32 %v4560_v3  ;;  %v4568_v50 = vmul.f32 1.442695, %v4482_v40  ;;  %v4654_v38 = vadd.f32 %v8836_v6, %v4653_v54  ;;  %v4570_v63 = vmul.f32 1.442695, %v4483_v15 }
 0xa0a   : > { %v8859_v12 = vpop.eup %6762  ;;  %6782 = vpow2.f32 %v4562_v28  ;;  %v4414_v55 = vpop.xlane.xlu0 %4413  ;;  %v4658_v16 = vadd.f32 %v8847_v32, %v4657_v14 }
 0xa0b   : > { %v8862_v5 = vpop.eup %6764  ;;  %6784 = vpow2.f32 %v4564_v61  ;;  %4655 = vadd.xlane.f32.xlu0 %v4654_v38  ;;  %v4484_v42 = vsub.f32 %v8651_v62, %v4414_v55  ;;  %v4485_v34 = vsub.f32 %v8654_v49, %v4414_v55  ;;  %v4486_v59 = vsub.f32 %v8661_v46, %v4414_v55 }
 0xa0c   : > { %v8867_v41 = vpop.eup %6766  ;;  %6786 = vpow2.f32 %v4566_v17  ;;  %v4487_v13 = vsub.f32 %v8669_v60, %v4414_v55  ;;  %v4659_v7 = vadd.f32 %v8852_v24, %v4658_v16  ;;  %v4419_v48 = vpop.xlane.xlu1 %4418  ;;  %v4662_v57 = vadd.f32 %v8859_v12, %v8856_v56 }
 0xa0d   : > { %v8873_v43 = vpop.eup %6768  ;;  %6788 = vpow2.f32 %v4568_v50  ;;  %v4572_v29 = vmul.f32 1.442695, %v4484_v42  ;;  %v4574_v62 = vmul.f32 1.442695, %v4485_v34  ;;  %v4576_v0 = vmul.f32 1.442695, %v4486_v59 }
 0xa0e   : > { %v8875_v49 = vpop.eup %6770  ;;  %6790 = vpow2.f32 %v4570_v63  ;;  %v4578_v46 = vmul.f32 1.442695, %v4487_v13  ;;  %4660 = vadd.xlane.f32.xlu1 %v4659_v7  ;;  %v4488_v39 = vsub.f32 %v8658_v44, %v4419_v48  ;;  %v4489_v60 = vsub.f32 %v8666_v8, %v4419_v48 }
 0xa0f   : > { %v8879_v3 = vpop.eup %6772  ;;  %6792 = vpow2.f32 %v4572_v29  ;;  %v4490_v28 = vsub.f32 %v8672_v51, %v4419_v48  ;;  %v4491_v35 = vsub.f32 %v8678_v11, %v4419_v48  ;;  %v4663_v2 = vadd.f32 %v8862_v5, %v4662_v57 }
 0xa10   : > { %v8884_v40 = vpop.eup %6774  ;;  %6794 = vpow2.f32 %v4574_v62  ;;  %v4580_v15 = vmul.f32 1.442695, %v4488_v39  ;;  %v4582_v54 = vmul.f32 1.442695, %v4489_v60  ;;  %v4667_v61 = vadd.f32 %v8875_v49, %v8873_v43 }
 0xa11   : > { %v8888_v44 = vpop.eup %6776  ;;  %6796 = vpow2.f32 %v4576_v0  ;;  %v4584_v8 = vmul.f32 1.442695, %v4490_v28  ;;  %v4664_v17 = vadd.f32 %v8867_v41, %v4663_v2  ;;  %v4586_v51 = vmul.f32 1.442695, %v4491_v35 }
 0xa12   : > { %v8891_v14 = vpop.eup %6778  ;;  %6798 = vpow2.f32 %v4578_v46  ;;  %v4424_v11 = vpop.xlane.xlu0 %4423  ;;  %v4668_v50 = vadd.f32 %v8879_v3, %v4667_v61 }
 0xa13   : > { %v8894_v38 = vpop.eup %6780  ;;  %6800 = vpow2.f32 %v4580_v15  ;;  %4665 = vadd.xlane.f32.xlu0 %v4664_v17  ;;  %v4492_v63 = vsub.f32 %v8683_v21, %v4424_v11  ;;  %v4493_v55 = vsub.f32 %v8686_v52, %v4424_v11  ;;  %v4494_v16 = vsub.f32 %v8693_v22, %v4424_v11 }
 0xa14   : > { %v8899_v42 = vpop.eup %6782  ;;  %6802 = vpow2.f32 %v4582_v54  ;;  %v4495_v34 = vsub.f32 %v8701_v31, %v4424_v11  ;;  %v4669_v59 = vadd.f32 %v8884_v40, %v4668_v50  ;;  %v4429_v13 = vpop.xlane.xlu1 %4428  ;;  %v4672_v7 = vadd.f32 %v8891_v14, %v8888_v44  ;;  %v9521_v50 = vld [vmem:[#allocation33_spill] sm:$0xff] }
 0xa15   : > { %v8905_v48 = vpop.eup %6784  ;;  %6804 = vpow2.f32 %v4584_v8  ;;  %v4588_v57 = vmul.f32 1.442695, %v4492_v63  ;;  %v4590_v21 = vmul.f32 1.442695, %v4493_v55  ;;  %v4592_v29 = vmul.f32 1.442695, %v4494_v16 }
 0xa16   : > { %v8907_v52 = vpop.eup %6786  ;;  %6806 = vpow2.f32 %v4586_v51  ;;  %v4594_v22 = vmul.f32 1.442695, %v4495_v34  ;;  %4670 = vadd.xlane.f32.xlu1 %v4669_v59  ;;  %v4496_v62 = vsub.f32 %v8690_v20, %v4429_v13  ;;  %v4497_v31 = vsub.f32 %v8698_v25, %v4429_v13  ;;  %v9522_v16 = vld [vmem:[#allocation35_spill] sm:$0xff] }
 0xa17   : > { %v8911_v0 = vpop.eup %6788  ;;  %6808 = vpow2.f32 %v4588_v57  ;;  %v4498_v46 = vsub.f32 %v8704_v1, %v4429_v13  ;;  %v4499_v39 = vsub.f32 %v8710_v26, %v4429_v13  ;;  %v4673_v60 = vadd.f32 %v8894_v38, %v4672_v7 }
 0xa18   : > { %v8916_v28 = vpop.eup %6790  ;;  %6810 = vpow2.f32 %v4590_v21  ;;  %v4596_v35 = vmul.f32 1.442695, %v4496_v62  ;;  %v4598_v2 = vmul.f32 1.442695, %v4497_v31  ;;  %v4677_v15 = vadd.f32 %v8907_v52, %v8905_v48  ;;  %v9523_v62 = vld [vmem:[#allocation32_spill] sm:$0xff] }
 0xa19   : > { %v8920_v20 = vpop.eup %6792  ;;  %6812 = vpow2.f32 %v4592_v29  ;;  %v4600_v25 = vmul.f32 1.442695, %v4498_v46  ;;  %v4674_v54 = vadd.f32 %v8899_v42, %v4673_v60  ;;  %v4602_v1 = vmul.f32 1.442695, %v4499_v39  ;;  %v9524_v46 = vld [vmem:[#allocation34_spill] sm:$0xff] }
 0xa1a   : > { %v8923_v61 = vpop.eup %6794  ;;  %6814 = vpow2.f32 %v4594_v22  ;;  %v4434_v26 = vpop.xlane.xlu0 %4433  ;;  %v4678_v8 = vadd.f32 %v8911_v0, %v4677_v15  ;;  %v9526_v15 = vld [vmem:[#allocation37_spill] sm:$0xff] }
 0xa1b   : > { %v8926_v17 = vpop.eup %6796  ;;  %6816 = vpow2.f32 %v4596_v35  ;;  %4675 = vadd.xlane.f32.xlu0 %v4674_v54  ;;  %v4500_v51 = vsub.f32 %v8715_v33, %v4434_v26  ;;  %v4501_v11 = vsub.f32 %v8718_v10, %v4434_v26  ;;  %v4502_v63 = vsub.f32 %v9521_v50, %v4434_v26  ;;  %v9525_v35 = vld [vmem:[#allocation36_spill] sm:$0xff] }
 0xa1c   : > { %v8931_v55 = vpop.eup %6798  ;;  %6818 = vpow2.f32 %v4598_v2  ;;  %v4503_v34 = vsub.f32 %v9522_v16, %v4434_v26  ;;  %v4679_v59 = vadd.f32 %v8916_v28, %v4678_v8  ;;  %v4439_v13 = vpop.xlane.xlu1 %4438  ;;  %v4682_v7 = vadd.f32 %v8923_v61, %v8920_v20 }
 0xa1d   : > { %v8937_v57 = vpop.eup %6800  ;;  %6820 = vpow2.f32 %v4600_v25  ;;  %v4604_v21 = vmul.f32 1.442695, %v4500_v51  ;;  %v4606_v33 = vmul.f32 1.442695, %v4501_v11  ;;  %v4608_v29 = vmul.f32 1.442695, %v4502_v63 }
 0xa1e   : > { %v8939_v10 = vpop.eup %6802  ;;  %6822 = vpow2.f32 %v4602_v1  ;;  %v4610_v22 = vmul.f32 1.442695, %v4503_v34  ;;  %4680 = vadd.xlane.f32.xlu1 %v4679_v59  ;;  %v4504_v31 = vsub.f32 %v9523_v62, %v4439_v13  ;;  %v4505_v39 = vsub.f32 %v9524_v46, %v4439_v13  ;;  %v9530_v62 = vld [vmem:[#allocation39_spill] sm:$0xff]  ;;  %v9531_v46 = vld [vmem:[#allocation41_spill] sm:$0xff] }
 0xa1f   : > { %v8943_v60 = vpop.eup %6804  ;;  %6824 = vpow2.f32 %v4604_v21  ;;  %v4506_v2 = vsub.f32 %v9525_v35, %v4439_v13  ;;  %v4507_v54 = vsub.f32 %v9526_v15, %v4439_v13  ;;  %v4683_v25 = vadd.f32 %v8926_v17, %v4682_v7  ;;  %v9529_v21 = vld [vmem:[#allocation38_spill] sm:$0xff] }
 0xa20   : > { %v8948_v26 = vpop.eup %6806  ;;  %6826 = vpow2.f32 %v4606_v33  ;;  %v4612_v8 = vmul.f32 1.442695, %v4504_v31  ;;  %v4614_v1 = vmul.f32 1.442695, %v4505_v39  ;;  %v4687_v51 = vadd.f32 %v8939_v10, %v8937_v57 }
 0xa21   : > { %v8952_v11 = vpop.eup %6808  ;;  %6828 = vpow2.f32 %v4608_v29  ;;  %v4616_v50 = vmul.f32 1.442695, %v4506_v2  ;;  %v4684_v63 = vadd.f32 %v8931_v55, %v4683_v25  ;;  %v4618_v34 = vmul.f32 1.442695, %v4507_v54 }
 0xa22   : > { %9527 = vst [vmem:[#allocation33_spill] sm:$0xff] %v8952_v11  ;;  %v8955_v16 = vpop.eup %6810  ;;  %6830 = vpow2.f32 %v4610_v22  ;;  %v4688_v59 = vadd.f32 %v8943_v60, %v4687_v51  ;;  %v4444_v13 = vpop.xlane.xlu0 %4443 }
 0xa23   : > { %9528 = vst [vmem:[#allocation35_spill] sm:$0xff] %v8955_v16  ;;  %v8958_v7 = vpop.eup %6812  ;;  %6832 = vpow2.f32 %v4612_v8  ;;  %4685 = vadd.xlane.f32.xlu0 %v4684_v63  ;;  %v4508_v33 = vsub.f32 %v9529_v21, %v4444_v13  ;;  %v4509_v31 = vsub.f32 %v9530_v62, %v4444_v13  ;;  %v4510_v29 = vsub.f32 %v9531_v46, %v4444_v13 }
 0xa24   : > { %v8963_v39 = vpop.eup %6814  ;;  %6834 = vpow2.f32 %v4614_v1  ;;  %v4689_v35 = vadd.f32 %v8948_v26, %v4688_v59  ;;  %v4511_v22 = vsub.f32 %v8765_v18, %v4444_v13  ;;  %v4449_v2 = vpop.xlane.xlu1 %4448  ;;  %v4692_v15 = vadd.f32 %v8955_v16, %v8952_v11  ;;  %v9532_v1 = vld [vmem:[#allocation40_spill] sm:$0xff]  ;;  %v9533_v59 = vld [vmem:[#allocation42_spill] sm:$0xff]  ;;  %v9534_v13 = vld [vmem:[#allocation43_spill] sm:$0xff] }
 0xa25   : > { %v8969_v54 = vpop.eup %6816  ;;  %6836 = vpow2.f32 %v4616_v50  ;;  %v4620_v25 = vmul.f32 1.442695, %v4508_v33  ;;  %v4622_v8 = vmul.f32 1.442695, %v4509_v31  ;;  %v4624_v51 = vmul.f32 1.442695, %v4510_v29 }
 0xa26   : > { %v8971_v63 = vpop.eup %6818  ;;  %6838 = vpow2.f32 %v4618_v34  ;;  %4690 = vadd.xlane.f32.xlu1 %v4689_v35  ;;  %v4626_v21 = vmul.f32 1.442695, %v4511_v22  ;;  %v4512_v62 = vsub.f32 %v9532_v1, %v4449_v2  ;;  %v4513_v46 = vsub.f32 %v9533_v59, %v4449_v2 }
 0xa27   : > { %v8975_v18 = vpop.eup %6820  ;;  %6840 = vpow2.f32 %v4620_v25  ;;  %v4514_v16 = vsub.f32 %v9534_v13, %v4449_v2  ;;  %v4515_v11 = vsub.f32 %v8774_v47, %v4449_v2  ;;  %v4693_v50 = vadd.f32 %v8958_v7, %v4692_v15 }
 0xa28   : > { %v8980_v33 = vpop.eup %6822  ;;  %6842 = vpow2.f32 %v4622_v8  ;;  %v4628_v31 = vmul.f32 1.442695, %v4512_v62  ;;  %v4630_v34 = vmul.f32 1.442695, %v4513_v46  ;;  %v4697_v29 = vadd.f32 %v8971_v63, %v8969_v54 }
 0xa29   : > { %9535 = vst [vmem:[#allocation32_spill] sm:$0xff] %v8980_v33  ;;  %v8984_v35 = vpop.eup %6824  ;;  %6844 = vpow2.f32 %v4624_v51  ;;  %v4632_v22 = vmul.f32 1.442695, %v4514_v16  ;;  %v4694_v25 = vadd.f32 %v8963_v39, %v4693_v50  ;;  %v4634_v47 = vmul.f32 1.442695, %v4515_v11 }
 0xa2a   : > { %v8987_v1 = vpop.eup %6826  ;;  %6846 = vpow2.f32 %v4626_v21  ;;  %v4698_v2 = vadd.f32 %v8975_v18, %v4697_v29  ;;  %v4454_v15 = vpop.xlane.xlu0 %4453 }
 0xa2b   : > { %9536 = vst [vmem:[#allocation34_spill] sm:$0xff] %v8987_v1  ;;  %v8990_v59 = vpop.eup %6828  ;;  %6848 = vpow2.f32 %v4628_v31  ;;  %4695 = vadd.xlane.f32.xlu0 %v4694_v25  ;;  %v4516_v8 = vsub.f32 %v8779_v9, %v4454_v15  ;;  %v4517_v62 = vsub.f32 %v8782_v36, %v4454_v15  ;;  %v4518_v51 = vsub.f32 %v8789_v45, %v4454_v15 }
 0xa2c   : > { %v8995_v16 = vpop.eup %6830  ;;  %6850 = vpow2.f32 %v4630_v34  ;;  %v4699_v46 = vadd.f32 %v8980_v33, %v4698_v2  ;;  %v4519_v11 = vsub.f32 %v8797_v30, %v4454_v15  ;;  %v4459_v21 = vpop.xlane.xlu1 %4458  ;;  %v4702_v13 = vadd.f32 %v8987_v1, %v8984_v35  ;;  %v9537_v34 = vld [vmem:[#allocation44_spill] sm:$0xff]  ;;  %v9538_v2 = vld [vmem:[#allocation45_spill] sm:$0xff] }
 0xa2d   : > { %v9001_v50 = vpop.eup %6832  ;;  %6852 = vpow2.f32 %v4632_v22  ;;  %v4636_v31 = vmul.f32 1.442695, %v4516_v8  ;;  %v4638_v9 = vmul.f32 1.442695, %v4517_v62  ;;  %v4640_v29 = vmul.f32 1.442695, %v4518_v51 }
 0xa2e   : > { %v9003_v36 = vpop.eup %6834  ;;  %6854 = vpow2.f32 %v4634_v47  ;;  %4700 = vadd.xlane.f32.xlu1 %v4699_v46  ;;  %v4642_v45 = vmul.f32 1.442695, %v4519_v11  ;;  %v4520_v25 = vsub.f32 %v9537_v34, %v4459_v21  ;;  %v4521_v33 = vsub.f32 %v9538_v2, %v4459_v21 }
 0xa2f   : > { %v9007_v30 = vpop.eup %6836  ;;  %6856 = vpow2.f32 %v4636_v31  ;;  %v4522_v15 = vsub.f32 %v8800_v23, %v4459_v21  ;;  %v4523_v1 = vsub.f32 %v8806_v53, %v4459_v21  ;;  %v4703_v22 = vadd.f32 %v8990_v59, %v4702_v13 }
 0xa30   : > { %v9012_v8 = vpop.eup %6838  ;;  %6858 = vpow2.f32 %v4638_v9  ;;  %v4644_v62 = vmul.f32 1.442695, %v4520_v25  ;;  %v4646_v47 = vmul.f32 1.442695, %v4521_v33  ;;  %v4707_v51 = vadd.f32 %v9003_v36, %v9001_v50 }
 0xa31   : > { %v9016_v46 = vpop.eup %6840  ;;  %6860 = vpow2.f32 %v4640_v29  ;;  %v4704_v11 = vadd.f32 %v8995_v16, %v4703_v22  ;;  %v4648_v23 = vmul.f32 1.442695, %v4522_v15  ;;  %v4650_v9 = vmul.f32 1.442695, %v4523_v1 }
 0xa32   : > { %v9019_v31 = vpop.eup %6842  ;;  %6862 = vpow2.f32 %v4642_v45  ;;  %v4708_v53 = vadd.f32 %v9007_v30, %v4707_v51 }
 0xa33   : > { %v9022_v21 = vpop.eup %6844  ;;  %6864 = vpow2.f32 %v4644_v62  ;;  %4705 = vadd.xlane.f32.xlu0 %v4704_v11  ;;  %v4712_v33 = vadd.f32 %v9019_v31, %v9016_v46 }
 0xa34   : > { %v9026_v13 = vpop.eup %6846  ;;  %6866 = vpow2.f32 %v4646_v47  ;;  %v4709_v29 = vadd.f32 %v9012_v8, %v4708_v53 }
 0xa35   : > { %v9029_v34 = vpop.eup %6848  ;;  %v4713_v45 = vadd.f32 %v9022_v21, %v4712_v33  ;;  %6868 = vpow2.f32 %v4648_v23 }
 0xa36   : > { %v9032_v25 = vpop.eup %6850  ;;  %4710 = vadd.xlane.f32.xlu1 %v4709_v29  ;;  %6870 = vpow2.f32 %v4650_v9 }
 0xa37   : > { %v9034_v2 = vpop.eup %6852  ;;  %v4714_v15 = vadd.f32 %v9026_v13, %v4713_v45  ;;  %v4717_v22 = vadd.f32 %v9032_v25, %v9029_v34 }
 0xa38   : > { %v9039_v62 = vpop.eup %6854 }
 0xa39   : > { %9539 = vst [vmem:[#allocation36_spill] sm:$0xff] %v9039_v62  ;;  %v9041_v1 = vpop.eup %6856  ;;  %4715 = vadd.xlane.f32.xlu0 %v4714_v15  ;;  %v4718_v47 = vadd.f32 %v9034_v2, %v4717_v22 }
 0xa3a   : > { %9540 = vst [vmem:[#allocation37_spill] sm:$0xff] %v9041_v1  ;;  %v9044_v51 = vpop.eup %6858 }
 0xa3b   : > { %9541 = vst [vmem:[#allocation38_spill] sm:$0xff] %v9044_v51  ;;  %v9046_v11 = vpop.eup %6860  ;;  %v4719_v23 = vadd.f32 %v9039_v62, %v4718_v47  ;;  %v4722_v53 = vadd.f32 %v9044_v51, %v9041_v1 }
 0xa3c   : > { %9542 = vst [vmem:[#allocation39_spill] sm:$0xff] %v9046_v11  ;;  %v9051_v33 = vpop.eup %6862 }
 0xa3d   : > { %9543 = vst [vmem:[#allocation41_spill] sm:$0xff] %v9051_v33  ;;  %v9053_v9 = vpop.eup %6864  ;;  %4720 = vadd.xlane.f32.xlu1 %v4719_v23  ;;  %v4723_v29 = vadd.f32 %v9046_v11, %v4722_v53 }
 0xa3e   : > { %9544 = vst [vmem:[#allocation40_spill] sm:$0xff] %v9053_v9  ;;  %v9056_v45 = vpop.eup %6866 }
 0xa3f   : > { %9545 = vst [vmem:[#allocation42_spill] sm:$0xff] %v9056_v45  ;;  %v4724_v15 = vadd.f32 %v9051_v33, %v4723_v29  ;;  %v4727_v22 = vadd.f32 %v9056_v45, %v9053_v9  ;;  %v9061_v47 = vpop.eup %6868 }
 0xa40   : > { %9546 = vst [vmem:[#allocation43_spill] sm:$0xff] %v9061_v47  ;;  %v9064_v1 = vpop.eup %6870 }
 0xa41   : > { %4725 = vadd.xlane.f32.xlu0 %v4724_v15  ;;  %v4728_v51 = vadd.f32 %v9061_v47, %v4727_v22  ;;  %9547 = vst [vmem:[#allocation44_spill] sm:$0xff] %v9064_v1 }
 0xa43   : > { %v4729_v23 = vadd.f32 %v9064_v1, %v4728_v51 }
 0xa45   : > { %4730 = vadd.xlane.f32.xlu1 %v4729_v23 }
 0xa46   : > { %7171 = shalt.err (!%p7168_p9)
}
 0xa47   : > { %s7172_s7 = scalar_lea.hbm %s9075_s11, 2048  ;;  %s7176_s30 = scalar_lea.hbm %s9548_s22, 4096 }
 0xa48   : > { %p7173_p4 = scmp.ne.s32.totalorder %s9075_s11, %s7172_s7  ;;  %p7177_p2 = scmp.lt.u32.totalorder %s9075_s11, %s9548_s22 }
 0xa49   : > { %p7178_p6 = scmp.lt.u32.totalorder %s7176_s30, %s7172_s7  ;;  %p7180_p10 = scmp.lt.u32.totalorder %s7172_s7, %s9075_s11 }
 0xa4a   : > { %p7174_p3 = pnand %p7173_p4, %p9549_p1 }
 0xa4b   : > { %p7179_p5 = por %p7178_p6, %p7177_p2 }
 0xa4c   : > { %p7175_p0 = pneg %p7174_p3 }
 0xa4d   : > { %p7181_p11 = por %p7180_p10, %p7179_p5 }
 0xa4f   : > { %p7182_p12 = pnand %p7181_p11, %p7175_p0 }
 0xa51   : > { %7185 = shalt.err (!%p7182_p12)
}
 0xa52   : > { %s9435_s0 = smov 128   ;;  %s7380_s1 = smov 8  }
 0xa53   : > { %6173 = dma.vmem_to_hbm [thread:$0]  (%p9549_p1), %s9078_s21, 2048, %s9075_s11, %s9082_s13, %s9435_s0, %s9435_s0, %s7380_s1  }
 0xa54   : > { %s9550_s7 = sld [smem:[#allocation66_spill]]  ;;  %s5183_s30 = sshll.u32 %s8202_s17, 4  ;;  %s9116_s30 = int_to_ptr.vmem [resolvable:$true] %s5183_s30 }
 0xa55   : > { %s9551_s6 = sand.u32 1, %s7518_s29   ;;  %s7186_s14 = scalar_lea.vmem %s9116_s30, 2048 }
 0xa56   : > { %s9120_s10 = scalar_lea.sflag [#allocation22], %s9551_s6  ;;  %p7187_p13 = scmp.ne.s32.totalorder %s9116_s30, %s7186_s14 }
 0xa57   : > { %s7381_s11 = smov [#allocation21]  }
 0xa58   : > { %p7188_p8 = pnand %p7187_p13, %p9549_p1  ;;  %s7190_s21 = sshll.u32 %s7381_s11, 4  ;;  %s7191_s21 = int_to_ptr.vmem [resolvable:$false] %s7190_s21 }
 0xa59   : > { %s7192_s8 = scalar_lea.vmem %s7191_s21, 4096  ;;  %p7193_p9 = scmp.lt.s32.totalorder %s9116_s30, %s7191_s21 }
 0xa5a   : > { %s9113_s24 = scalar_lea.hbm %s9550_s7, %s9069_s19  ;;  %p7189_p7 = pneg %p7188_p8 }
 0xa5b   : > { %p7194_p4 = scmp.lt.s32.totalorder %s7192_s8, %s7186_s14 }
 0xa5d   : > { %p7195_p3 = por %p7194_p4, %p7193_p9 }
 0xa5f   : > { %p7196_p0 = pnand %p7195_p3, %p7189_p7 }
 0xa61   : > { %7199 = shalt.err (!%p7196_p0)
}
 0xa62   : > { %s7200_s17 = scalar_lea.hbm %s9113_s24, 2048  ;;  %s7204_s11 = scalar_lea.hbm %s9550_s7, 4096 }
 0xa63   : > { %p7201_p2 = scmp.ne.s32.totalorder %s9113_s24, %s7200_s17  ;;  %p7205_p10 = scmp.lt.u32.totalorder %s9113_s24, %s9550_s7 }
 0xa64   : > { %p7206_p11 = scmp.lt.u32.totalorder %s7204_s11, %s7200_s17  ;;  %p7208_p13 = scmp.lt.u32.totalorder %s7200_s17, %s9113_s24 }
 0xa65   : > { %p7202_p6 = pnand %p7201_p2, %p9549_p1 }
 0xa66   : > { %p7207_p12 = por %p7206_p11, %p7205_p10 }
 0xa67   : > { %p7203_p5 = pneg %p7202_p6 }
 0xa68   : > { %p7209_p8 = por %p7208_p13, %p7207_p12 }
 0xa6a   : > { %p7210_p7 = pnand %p7209_p8, %p7203_p5 }
 0xa6c   : > { %7213 = shalt.err (!%p7210_p7)
}
 0xa6d   : > { %s9552_s14 = smov 128   ;;  %s9553_s5 = sld [smem:[#allocation63_spill]] }
 0xa6e   : > { %6175 = dma.vmem_to_hbm [thread:$0]  (%p9549_p1), %s9116_s30, 2048, %s9113_s24, %s9120_s10, %s9552_s14, %s9552_s14, %s7380_s1  }
 0xa6f   : > { %s5134_s6 = sshll.u32 %s8197_s28, 4  ;;  %s5101_s11 = scalar_lea.sflag [#allocation4], %s7831_s12  ;;  %s9154_s6 = int_to_ptr.vmem [resolvable:$true] %s5134_s6 }
 0xa70   : > { %s7214_s21 = scalar_lea.vmem %s9154_s6, 2048  ;;  %s7382_s7 = smov [#allocation17]  }
 0xa71   : > { %p7215_p9 = scmp.ne.s32.totalorder %s9154_s6, %s7214_s21  ;;  %s7218_s15 = sshll.u32 %s7382_s7, 4  ;;  %s7219_s15 = int_to_ptr.vmem [resolvable:$false] %s7218_s15 }
 0xa72   : > { %s7220_s24 = scalar_lea.vmem %s7219_s15, 4096  ;;  %p7221_p0 = scmp.lt.s32.totalorder %s9154_s6, %s7219_s15 }
 0xa73   : > { %s9151_s17 = scalar_lea.hbm %s9553_s5, %s9069_s19  ;;  %p7216_p4 = pnand %p7215_p9, %p9549_p1 }
 0xa74   : > { %p7222_p2 = scmp.lt.s32.totalorder %s7220_s24, %s7214_s21 }
 0xa75   : > { %p7217_p3 = pneg %p7216_p4 }
 0xa76   : > { %p7223_p6 = por %p7222_p2, %p7221_p0 }
 0xa78   : > { %p7224_p5 = pnand %p7223_p6, %p7217_p3 }
 0xa7a   : > { %7227 = shalt.err (!%p7224_p5)
}
 0xa7b   : > { %s7228_s28 = scalar_lea.hbm %s9151_s17, 2048  ;;  %s7232_s7 = scalar_lea.hbm %s9553_s5, 4096 }
 0xa7c   : > { %p7229_p10 = scmp.ne.s32.totalorder %s9151_s17, %s7228_s28  ;;  %p7233_p13 = scmp.lt.u32.totalorder %s9151_s17, %s9553_s5 }
 0xa7d   : > { %p7234_p8 = scmp.lt.u32.totalorder %s7232_s7, %s7228_s28  ;;  %p7236_p9 = scmp.lt.u32.totalorder %s7228_s28, %s9151_s17 }
 0xa7e   : > { %p7230_p11 = pnand %p7229_p10, %p9549_p1 }
 0xa7f   : > { %p7235_p7 = por %p7234_p8, %p7233_p13 }
 0xa80   : > { %p7231_p12 = pneg %p7230_p11 }
 0xa81   : > { %p7237_p4 = por %p7236_p9, %p7235_p7 }
 0xa83   : > { %p7238_p3 = pnand %p7237_p4, %p7231_p12 }
 0xa85   : > { %7241 = shalt.err (!%p7238_p3)
}
 0xa86   : > { %6172 = dma.vmem_to_hbm [thread:$0]  (%p9549_p1), %s9154_s6, 2048, %s9151_s17, %s5101_s11, %s9552_s14, %s9552_s14, %s7380_s1  }
 0xa87   : > { %s9554_s30 = sld [smem:[#allocation67_spill]]  ;;  %s5199_s0 = sshll.u32 %s8212_s23, 4  ;;  %s9190_s0 = int_to_ptr.vmem [resolvable:$true] %s5199_s0 }
 0xa88   : > { %s7242_s7 = scalar_lea.vmem %s9190_s0, 2048  ;;  %s7383_s8 = smov [#allocation23]  }
 0xa89   : > { %p7243_p0 = scmp.ne.s32.totalorder %s9190_s0, %s7242_s7  ;;  %s7246_s15 = sshll.u32 %s7383_s8, 4  ;;  %s7247_s15 = int_to_ptr.vmem [resolvable:$false] %s7246_s15 }
 0xa8a   : > { %s7248_s17 = scalar_lea.vmem %s7247_s15, 4096  ;;  %p7249_p5 = scmp.lt.s32.totalorder %s9190_s0, %s7247_s15 }
 0xa8b   : > { %p7244_p2 = pnand %p7243_p0, %p9549_p1  ;;  %p7250_p10 = scmp.lt.s32.totalorder %s7248_s17, %s7242_s7 }
 0xa8d   : > { %s9187_s28 = scalar_lea.hbm %s9554_s30, %s9069_s19  ;;  %p7245_p6 = pneg %p7244_p2 }
 0xa8e   : > { %p7251_p11 = por %p7250_p10, %p7249_p5 }
 0xa90   : > { %p7252_p12 = pnand %p7251_p11, %p7245_p6 }
 0xa92   : > { %7255 = shalt.err (!%p7252_p12)
}
 0xa93   : > { %s7256_s23 = scalar_lea.hbm %s9187_s28, 2048  ;;  %s7260_s11 = scalar_lea.hbm %s9554_s30, 4096 }
 0xa94   : > { %p7257_p13 = scmp.ne.s32.totalorder %s9187_s28, %s7256_s23  ;;  %p7261_p9 = scmp.lt.u32.totalorder %s9187_s28, %s9554_s30 }
 0xa95   : > { %p7262_p4 = scmp.lt.u32.totalorder %s7260_s11, %s7256_s23  ;;  %p7264_p0 = scmp.lt.u32.totalorder %s7256_s23, %s9187_s28 }
 0xa96   : > { %p7258_p8 = pnand %p7257_p13, %p9549_p1 }
 0xa97   : > { %p7263_p3 = por %p7262_p4, %p7261_p9 }
 0xa98   : > { %p7259_p7 = pneg %p7258_p8 }
 0xa99   : > { %p7265_p2 = por %p7264_p0, %p7263_p3 }
 0xa9b   : > { %p7266_p6 = pnand %p7265_p2, %p7259_p7 }
 0xa9d   : > { %7269 = shalt.err (!%p7266_p6)
}
 0xa9e   : > { %6176 = dma.vmem_to_hbm [thread:$0]  (%p9549_p1), %s9190_s0, 2048, %s9187_s28, %s9120_s10, %s9552_s14, %s9552_s14, %s7380_s1   ;;  %v4656_v51 = vpop.xlane.xlu0 %4655  ;;  %v4661_v53 = vpop.xlane.xlu1 %4660 }
 0xa9f   : > { %6872 = vrcp.f32 %v4656_v51  ;;  %s9555_s10 = sshll.u32 %s7831_s12, 8  ;;  %s5879_s12 = sshll.u32 %s7518_s29, 12 }
 0xaa0   : > { %6874 = vrcp.f32 %v4661_v53  ;;  %s9227_s1 = scalar_lea.vmem [#allocation20], %s9555_s10  ;;  %s9569_s7 = sld [smem:[#allocation65_spill]] }
 0xaa1   : > { %s5167_s14 = sshll.u32 %s9227_s1, 4  ;;  %s7384_s15 = smov [#allocation20]   ;;  %s9322_s14 = int_to_ptr.vmem [resolvable:$true] %s5167_s14 }
 0xaa2   : > { %v4666_v29 = vpop.xlane.xlu0 %4665  ;;  %s7270_s29 = scalar_lea.vmem %s9322_s14, 4096  ;;  %s7274_s17 = sshll.u32 %s7384_s15, 4  ;;  %s7275_s17 = int_to_ptr.vmem [resolvable:$false] %s7274_s17 }
 0xaa3   : > { %6876 = vrcp.f32 %v4666_v29  ;;  %v4671_v22 = vpop.xlane.xlu1 %4670  ;;  %p7271_p5 = scmp.ne.s32.totalorder %s9322_s14, %s7270_s29  ;;  %s7276_s23 = scalar_lea.vmem %s7275_s17, 8192 }
 0xaa4   : > { %6878 = vrcp.f32 %v4671_v22  ;;  %p7277_p12 = scmp.lt.s32.totalorder %s9322_s14, %s7275_s17  ;;  %p7278_p13 = scmp.lt.s32.totalorder %s7276_s23, %s7270_s29 }
 0xaa5   : > { %p7272_p10 = pnand %p7271_p5, %p9549_p1 }
 0xaa6   : > { %s9320_s8 = scalar_lea.hbm %s9569_s7, %s5879_s12  ;;  %p7279_p8 = por %p7278_p13, %p7277_p12 }
 0xaa7   : > { %p7273_p11 = pneg %p7272_p10 }
 0xaa9   : > { %v6873_v15 = vpop.eup %6872  ;;  %p7280_p7 = pnand %p7279_p8, %p7273_p11 }
 0xaaa   : > { %v4748_v23 = vmul.f32 %v6873_v15, %v8827_v19  ;;  %v4749_v1 = vmul.f32 %v6873_v15, %v8829_v58  ;;  %v4750_v47 = vmul.f32 %v6873_v15, %v8831_v4  ;;  %v4751_v45 = vmul.f32 %v6873_v15, %v8836_v6  ;;  %v6875_v9 = vpop.eup %6874  ;;  %v4676_v19 = vpop.xlane.xlu0 %4675 }
 0xaab   : > { %v4752_v51 = vmul.f32 %v6875_v9, %v8841_v27  ;;  %v4753_v53 = vmul.f32 %v6875_v9, %v8843_v37  ;;  %v4754_v29 = vmul.f32 %v6875_v9, %v8847_v32  ;;  %v4755_v62 = vmul.f32 %v6875_v9, %v8852_v24  ;;  %v4681_v27 = vpop.xlane.xlu1 %4680 }
 0xaac   : > { %v5844_v33 = vpack.c.bf16 %v4749_v1, %v4748_v23  ;;  %v5845_v11 = vpack.c.bf16 %v4751_v45, %v4750_v47  ;;  %6880 = vrcp.f32 %v4676_v19 }
 0xaad   : > { %v5846_v58 = vpack.c.bf16 %v4753_v53, %v4752_v51  ;;  %v5847_v4 = vpack.c.bf16 %v4755_v62, %v4754_v29  ;;  %v6877_v6 = vpop.eup %6876  ;;  %6882 = vrcp.f32 %v4681_v27 }
 0xaae   : > { %5036 = vst [vmem:[%s9227_s1] sm:$0xff] %v5844_v33  ;;  %5037 = vst [vmem:[%s9227_s1 + $0x8] sm:$0xff] %v5845_v11  ;;  %v4756_v37 = vmul.f32 %v6877_v6, %v8856_v56  ;;  %v4757_v32 = vmul.f32 %v6877_v6, %v8859_v12  ;;  %v4758_v24 = vmul.f32 %v6877_v6, %v8862_v5  ;;  %v6879_v9 = vpop.eup %6878 }
 0xaaf   : > { %5038 = vst [vmem:[%s9227_s1 + $0x10] sm:$0xff] %v5846_v58  ;;  %5039 = vst [vmem:[%s9227_s1 + $0x18] sm:$0xff] %v5847_v4  ;;  %v4759_v1 = vmul.f32 %v6877_v6, %v8867_v41  ;;  %v4760_v62 = vmul.f32 %v6879_v9, %v8873_v43  ;;  %v4761_v45 = vmul.f32 %v6879_v9, %v8875_v49 }
 0xab0   : > { %v5848_v11 = vpack.c.bf16 %v4757_v32, %v4756_v37  ;;  %v4762_v56 = vmul.f32 %v6879_v9, %v8879_v3  ;;  %v4763_v12 = vmul.f32 %v6879_v9, %v8884_v40  ;;  %v4686_v47 = vpop.xlane.xlu0 %4685 }
 0xab1   : > { %v5849_v33 = vpack.c.bf16 %v4759_v1, %v4758_v24  ;;  %6884 = vrcp.f32 %v4686_v47  ;;  %v5850_v5 = vpack.c.bf16 %v4761_v45, %v4760_v62  ;;  %v9556_v62 = vld [vmem:[#allocation33_spill] sm:$0xff] }
 0xab2   : > { %5040 = vst [vmem:[%s9227_s1 + $0x20] sm:$0xff] %v5848_v11  ;;  %v5851_v41 = vpack.c.bf16 %v4763_v12, %v4762_v56  ;;  %v9557_v56 = vld [vmem:[#allocation35_spill] sm:$0xff] }
 0xab3   : > { %5041 = vst [vmem:[%s9227_s1 + $0x28] sm:$0xff] %v5849_v33  ;;  %v4691_v22 = vpop.xlane.xlu1 %4690  ;;  %5042 = vst [vmem:[%s9227_s1 + $0x30] sm:$0xff] %v5850_v5 }
 0xab4   : > { %5043 = vst [vmem:[%s9227_s1 + $0x38] sm:$0xff] %v5851_v41  ;;  %6886 = vrcp.f32 %v4691_v22 }
 0xab6   : > { %v6881_v15 = vpop.eup %6880 }
 0xab7   : > { %v4764_v23 = vmul.f32 %v6881_v15, %v8888_v44  ;;  %v4765_v43 = vmul.f32 %v6881_v15, %v8891_v14  ;;  %v4766_v49 = vmul.f32 %v6881_v15, %v8894_v38  ;;  %v4767_v3 = vmul.f32 %v6881_v15, %v8899_v42  ;;  %v6883_v53 = vpop.eup %6882 }
 0xab8   : > { %v4768_v29 = vmul.f32 %v6883_v53, %v8905_v48  ;;  %v4769_v19 = vmul.f32 %v6883_v53, %v8907_v52  ;;  %v4770_v44 = vmul.f32 %v6883_v53, %v8911_v0  ;;  %v4771_v14 = vmul.f32 %v6883_v53, %v8916_v28  ;;  %v4696_v58 = vpop.xlane.xlu0 %4695 }
 0xab9   : > { %v5852_v40 = vpack.c.bf16 %v4765_v43, %v4764_v23  ;;  %v5853_v51 = vpack.c.bf16 %v4767_v3, %v4766_v49  ;;  %6888 = vrcp.f32 %v4696_v58  ;;  %v9558_v23 = vld [vmem:[#allocation32_spill] sm:$0xff] }
 0xaba   : > { %v5854_v38 = vpack.c.bf16 %v4769_v19, %v4768_v29  ;;  %v5855_v42 = vpack.c.bf16 %v4771_v14, %v4770_v44 }
 0xabb   : > { %5044 = vst [vmem:[%s9227_s1 + $0x40] sm:$0xff] %v5852_v40  ;;  %5045 = vst [vmem:[%s9227_s1 + $0x48] sm:$0xff] %v5853_v51  ;;  %v6885_v4 = vpop.eup %6884  ;;  %v4701_v6 = vpop.xlane.xlu1 %4700  ;;  %v9559_v51 = vld [vmem:[#allocation34_spill] sm:$0xff] }
 0xabc   : > { %5046 = vst [vmem:[%s9227_s1 + $0x50] sm:$0xff] %v5854_v38  ;;  %5047 = vst [vmem:[%s9227_s1 + $0x58] sm:$0xff] %v5855_v42  ;;  %v4772_v27 = vmul.f32 %v6885_v4, %v8920_v20  ;;  %v4773_v48 = vmul.f32 %v6885_v4, %v8923_v61  ;;  %v4774_v52 = vmul.f32 %v6885_v4, %v8926_v17  ;;  %6890 = vrcp.f32 %v4701_v6 }
 0xabd   : > { %v4775_v0 = vmul.f32 %v6885_v4, %v8931_v55 }
 0xabe   : > { %v5856_v28 = vpack.c.bf16 %v4773_v48, %v4772_v27  ;;  %v6887_v32 = vpop.eup %6886 }
 0xabf   : > { %v5857_v37 = vpack.c.bf16 %v4775_v0, %v4774_v52  ;;  %v4776_v24 = vmul.f32 %v6887_v32, %v8937_v57  ;;  %v4777_v1 = vmul.f32 %v6887_v32, %v8939_v10  ;;  %v4778_v20 = vmul.f32 %v6887_v32, %v8943_v60 }
 0xac0   : > { %5048 = vst [vmem:[%s9227_s1 + $0x60] sm:$0xff] %v5856_v28  ;;  %v4779_v61 = vmul.f32 %v6887_v32, %v8948_v26  ;;  %v4706_v11 = vpop.xlane.xlu0 %4705  ;;  %v9561_v32 = vld [vmem:[#allocation37_spill] sm:$0xff] }
 0xac1   : > { %5049 = vst [vmem:[%s9227_s1 + $0x68] sm:$0xff] %v5857_v37  ;;  %6892 = vrcp.f32 %v4706_v11  ;;  %v5858_v17 = vpack.c.bf16 %v4777_v1, %v4776_v24  ;;  %v9562_v1 = vld [vmem:[#allocation38_spill] sm:$0xff] }
 0xac2   : > { %v5859_v55 = vpack.c.bf16 %v4779_v61, %v4778_v20  ;;  %v9563_v20 = vld [vmem:[#allocation39_spill] sm:$0xff] }
 0xac3   : > { %v6889_v33 = vpop.eup %6888  ;;  %v4711_v9 = vpop.xlane.xlu1 %4710  ;;  %5050 = vst [vmem:[%s9227_s1 + $0x70] sm:$0xff] %v5858_v17 }
 0xac4   : > { %5051 = vst [vmem:[%s9227_s1 + $0x78] sm:$0xff] %v5859_v55  ;;  %v4780_v45 = vmul.f32 %v6889_v33, %v9556_v62  ;;  %v4781_v57 = vmul.f32 %v6889_v33, %v9557_v56  ;;  %v4782_v10 = vmul.f32 %v6889_v33, %v8958_v7  ;;  %v4783_v60 = vmul.f32 %v6889_v33, %v8963_v39  ;;  %v9565_v33 = vld [vmem:[#allocation40_spill] sm:$0xff]  ;;  %v9566_v62 = vld [vmem:[#allocation42_spill] sm:$0xff]  ;;  %v9567_v56 = vld [vmem:[#allocation43_spill] sm:$0xff] }
 0xac5   : > { %6894 = vrcp.f32 %v4711_v9 }
 0xac6   : > { %v5860_v26 = vpack.c.bf16 %v4781_v57, %v4780_v45  ;;  %v5861_v12 = vpack.c.bf16 %v4783_v60, %v4782_v10  ;;  %v4716_v47 = vpop.xlane.xlu0 %4715  ;;  %v6891_v5 = vpop.eup %6890  ;;  %v9568_v10 = vld [vmem:[#allocation44_spill] sm:$0xff] }
 0xac7   : > { %6896 = vrcp.f32 %v4716_v47  ;;  %v4784_v41 = vmul.f32 %v6891_v5, %v8969_v54  ;;  %v4785_v15 = vmul.f32 %v6891_v5, %v8971_v63  ;;  %v4786_v22 = vmul.f32 %v6891_v5, %v8975_v18 }
 0xac8   : > { %5052 = vst [vmem:[%s9227_s1 + $0x80] sm:$0xff] %v5860_v26  ;;  %5053 = vst [vmem:[%s9227_s1 + $0x88] sm:$0xff] %v5861_v12  ;;  %v4787_v7 = vmul.f32 %v6891_v5, %v9558_v23 }
 0xac9   : > { %v5862_v43 = vpack.c.bf16 %v4785_v15, %v4784_v41 }
 0xaca   : > { %v5863_v39 = vpack.c.bf16 %v4787_v7, %v4786_v22  ;;  %v4721_v49 = vpop.xlane.xlu1 %4720 }
 0xacb   : > { %v6893_v3 = vpop.eup %6892  ;;  %6898 = vrcp.f32 %v4721_v49  ;;  %5054 = vst [vmem:[%s9227_s1 + $0x90] sm:$0xff] %v5862_v43 }
 0xacc   : > { %5055 = vst [vmem:[%s9227_s1 + $0x98] sm:$0xff] %v5863_v39  ;;  %v4788_v40 = vmul.f32 %v6893_v3, %v8984_v35  ;;  %v4789_v53 = vmul.f32 %v6893_v3, %v9559_v51  ;;  %v4790_v54 = vmul.f32 %v6893_v3, %v8990_v59  ;;  %v4791_v63 = vmul.f32 %v6893_v3, %v8995_v16 }
 0xace   : > { %v5864_v18 = vpack.c.bf16 %v4789_v53, %v4788_v40  ;;  %v5865_v29 = vpack.c.bf16 %v4791_v63, %v4790_v54  ;;  %v4726_v19 = vpop.xlane.xlu0 %4725 }
 0xacf   : > { %v6895_v44 = vpop.eup %6894  ;;  %6900 = vrcp.f32 %v4726_v19 }
 0xad0   : > { %5056 = vst [vmem:[%s9227_s1 + $0xa0] sm:$0xff] %v5864_v18  ;;  %5057 = vst [vmem:[%s9227_s1 + $0xa8] sm:$0xff] %v5865_v29  ;;  %v4792_v14 = vmul.f32 %v6895_v44, %v9001_v50  ;;  %v4793_v58 = vmul.f32 %v6895_v44, %v9003_v36  ;;  %v4794_v35 = vmul.f32 %v6895_v44, %v9007_v30 }
 0xad1   : > { %v4795_v59 = vmul.f32 %v6895_v44, %v9012_v8  ;;  %v6897_v38 = vpop.eup %6896 }
 0xad2   : > { %v5866_v16 = vpack.c.bf16 %v4793_v58, %v4792_v14  ;;  %v4796_v4 = vmul.f32 %v6897_v38, %v9016_v46  ;;  %v4797_v6 = vmul.f32 %v6897_v38, %v9019_v31  ;;  %v4731_v27 = vpop.xlane.xlu1 %4730  ;;  %v4798_v48 = vmul.f32 %v6897_v38, %v9022_v21  ;;  %v9560_v21 = vld [vmem:[#allocation36_spill] sm:$0xff] }
 0xad3   : > { %v5867_v42 = vpack.c.bf16 %v4795_v59, %v4794_v35  ;;  %v4799_v50 = vmul.f32 %v6897_v38, %v9026_v13  ;;  %6902 = vrcp.f32 %v4731_v27 }
 0xad4   : > { %5058 = vst [vmem:[%s9227_s1 + $0xb0] sm:$0xff] %v5866_v16  ;;  %v5868_v36 = vpack.c.bf16 %v4797_v6, %v4796_v4 }
 0xad5   : > { %5059 = vst [vmem:[%s9227_s1 + $0xb8] sm:$0xff] %v5867_v42  ;;  %v6899_v30 = vpop.eup %6898  ;;  %v5869_v8 = vpack.c.bf16 %v4799_v50, %v4798_v48 }
 0xad6   : > { %5060 = vst [vmem:[%s9227_s1 + $0xc0] sm:$0xff] %v5868_v36  ;;  %v4800_v52 = vmul.f32 %v6899_v30, %v9029_v34  ;;  %v4801_v46 = vmul.f32 %v6899_v30, %v9032_v25  ;;  %v4802_v31 = vmul.f32 %v6899_v30, %v9034_v2  ;;  %v4803_v0 = vmul.f32 %v6899_v30, %v9560_v21  ;;  %v9564_v25 = vld [vmem:[#allocation41_spill] sm:$0xff] }
 0xad7   : > { %5061 = vst [vmem:[%s9227_s1 + $0xc8] sm:$0xff] %v5869_v8 }
 0xad8   : > { %v5870_v13 = vpack.c.bf16 %v4801_v46, %v4800_v52  ;;  %v5871_v28 = vpack.c.bf16 %v4803_v0, %v4802_v31 }
 0xad9   : > { %v6901_v37 = vpop.eup %6900 }
 0xada   : > { %5062 = vst [vmem:[%s9227_s1 + $0xd0] sm:$0xff] %v5870_v13  ;;  %5063 = vst [vmem:[%s9227_s1 + $0xd8] sm:$0xff] %v5871_v28  ;;  %v4804_v24 = vmul.f32 %v6901_v37, %v9561_v32  ;;  %v4805_v34 = vmul.f32 %v6901_v37, %v9562_v1  ;;  %v4806_v61 = vmul.f32 %v6901_v37, %v9563_v20 }
 0xadb   : > { %v4807_v11 = vmul.f32 %v6901_v37, %v9564_v25 }
 0xadc   : > { %v5872_v2 = vpack.c.bf16 %v4805_v34, %v4804_v24 }
 0xadd   : > { %v5873_v17 = vpack.c.bf16 %v4807_v11, %v4806_v61  ;;  %v6903_v55 = vpop.eup %6902 }
 0xade   : > { %5064 = vst [vmem:[%s9227_s1 + $0xe0] sm:$0xff] %v5872_v2  ;;  %v4808_v9 = vmul.f32 %v6903_v55, %v9565_v33  ;;  %v4809_v45 = vmul.f32 %v6903_v55, %v9566_v62  ;;  %v4810_v57 = vmul.f32 %v6903_v55, %v9567_v56  ;;  %v4811_v60 = vmul.f32 %v6903_v55, %v9568_v10 }
 0xadf   : > { %5065 = vst [vmem:[%s9227_s1 + $0xe8] sm:$0xff] %v5873_v17 }
 0xae0   : > { %v5874_v26 = vpack.c.bf16 %v4809_v45, %v4808_v9  ;;  %v5875_v12 = vpack.c.bf16 %v4811_v60, %v4810_v57 }
 0xae2   : > { %5066 = vst [vmem:[%s9227_s1 + $0xf0] sm:$0xff] %v5874_v26  ;;  %5067 = vst [vmem:[%s9227_s1 + $0xf8] sm:$0xff] %v5875_v12 }
 0xae3   : > { %7283 = shalt.err (!%p7280_p7)
}
 0xae4   : > { %s7284_s19 = scalar_lea.hbm %s9320_s8, 4096  ;;  %s7288_s21 = scalar_lea.hbm %s9569_s7, 8192 }
 0xae5   : > { %p7285_p9 = scmp.ne.s32.totalorder %s9320_s8, %s7284_s19  ;;  %p7289_p0 = scmp.lt.u32.totalorder %s9320_s8, %s9569_s7 }
 0xae6   : > { %p7290_p2 = scmp.lt.u32.totalorder %s7288_s21, %s7284_s19  ;;  %p7292_p5 = scmp.lt.u32.totalorder %s7284_s19, %s9320_s8 }
 0xae7   : > { %p7286_p4 = pnand %p7285_p9, %p9549_p1 }
 0xae8   : > { %p7291_p6 = por %p7290_p2, %p7289_p0 }
 0xae9   : > { %p7287_p3 = pneg %p7286_p4 }
 0xaea   : > { %p7293_p10 = por %p7292_p5, %p7291_p6 }
 0xaec   : > { %p7294_p11 = pnand %p7293_p10, %p7287_p3 }
 0xaee   : > { %7297 = shalt.err (!%p7294_p11)
}
 0xaef   : > { %s7385_s1 = smov 256   ;;  %s7386_s12 = smov 16  }
 0xaf0   : > { %6174 = dma.vmem_to_hbm [thread:$0]  (%p9549_p1), %s9322_s14, 4096, %s9320_s8, %s9082_s13, %s7385_s1, %s7385_s1, %s7386_s12  }
 0xaf1 PF: > { %s5214_s28 = sand.u32 1, %s7348_s2   ;;  %p9570_p12 = scmp.ne.s32.totalorder %s9487_s9, 0 }
 0xaf2   : > { %p9571_p13 = scmp.ge.s32.totalorder %s7360_s27, 2  ;;  %s5215_s0 = scalar_lea.sflag [#allocation4], %s5214_s28 }
 0xaf4   : > { %p6212_p8 = pnand %p9571_p13, %p9570_p12 }
 0xaf6   : > { %7335 = dma.done.wait (!%p6212_p8), %s5215_s0, 2048  }
 0xaf7   : > { %7337 = vsyncadd (!%p6212_p8), %s5215_s0, 4294965248  ;;  %s9572_s29 = sadd.s32 4294967294, %s7360_s27  }
 0xaf8   : > { %s5223_s15 = sand.u32 1, %s9572_s29  }
 0xaf9   : > { %s5224_s17 = scalar_lea.sflag [#allocation19], %s5223_s15 }
 0xafa   : > { %7339 = dma.done.wait (!%p6212_p8), %s5224_s17, 6144  }
 0xafb   : > { %7341 = vsyncadd (!%p6212_p8), %s5224_s17, 4294961152  ;;  %s5242_s23 = scalar_lea.sflag [#allocation22], %s5223_s15 }
 0xafc   : > { %7343 = dma.done.wait (!%p6212_p8), %s5242_s23, 4096  }
 0xafd   : > { %7345 = vsyncadd (!%p6212_p8), %s5242_s23, 4294963200  ;;  %p45_p1 = scmp.ge.s32.totalorder %s7747_s4, 4   ;;  %s9573_s2 = smov %s7352_s25 }
 0xafe   : > { %s9574_s25 = smov %s7356_s26  ;;  %s9575_s26 = smov %s7758_s16 }
 0xaff   : > { %s9576_s27 = smov %s7747_s4  ;;  %47 = sbr.rel (!%p45_p1) target bundleno = 36 (0x24), region = 229 }
 0xb06   :  { %5256 = vsyncpa [#allocation3], 1 }
 0xb07   :  { %5258 = vsyncpa [#allocation3 + $0x1], 1 }
 0xb08   :  { %5259 = vsyncpa [#allocation6], 1 }
 0xb09   :  { %5260 = vsyncpa [#allocation9], 1 }
 0xb0a   :  { %5261 = vsyncpa [#allocation12], 1 }
 0xb0b   :  { %5262 = vsyncpa [#allocation15], 1 }
 0xb0c   :  { %5263 = vsyncpa [#allocation4], 1 }
 0xb0d   :  { %5265 = vsyncpa [#allocation4 + $0x1], 1 }
 0xb0e   :  { %5266 = vsyncpa [#allocation19], 1 }
 0xb0f   :  { %5268 = vsyncpa [#allocation19 + $0x1], 1 }
 0xb10   :  { %5269 = vsyncpa [#allocation22], 1 }
 0xb11   :  { %5271 = vsyncpa [#allocation22 + $0x1], 1 }

// kernel: tpu_custom_call.1
= control target key start
LH: loop header
LB: loop body
LE: loop exit
PB: predicated region body
PF: predicated region fallthrough
CT: control target
= control target key end

     0   :  { %s9368_s0 = inlined_call_operand.hbm [shape: bf16[256,512], index: 0, kind: input, shape index: {}]   ;;  %s9369_s1 = inlined_call_operand.hbm [shape: bf16[512,512], index: 1, kind: input, shape index: {}]   ;;  %s9370_s2 = inlined_call_operand.vmem [shape: f32[1,256], index: 2, kind: input, shape index: {}]   ;;  %s9371_s3 = inlined_call_operand.hbm [shape: bf16[256,256], index: 3, kind: input, shape index: {}]   ;;  %s9372_s4 = inlined_call_operand.vmem [shape: f32[1,256], index: 4, kind: input, shape index: {}]   ;;  %s9373_s5 = inlined_call_operand.hbm [shape: bf16[256,256], index: 5, kind: input, shape index: {}]   ;;  %s9374_s6 = inlined_call_operand.vmem [shape: f32[1,256], index: 6, kind: input, shape index: {}]   ;;  %s9375_s7 = inlined_call_operand.hbm [shape: bf16[128,128], index: 7, kind: input, shape index: {}]   ;;  %s9376_s8 = inlined_call_operand.vmem [shape: f32[1,128], index: 8, kind: input, shape index: {}]   ;;  %s9377_s9 = inlined_call_operand.hbm [shape: bf16[128,128], index: 9, kind: input, shape index: {}]   ;;  %s9378_s10 = inlined_call_operand.vmem [shape: f32[1,128], index: 10, kind: input, shape index: {}]   ;;  %s9379_s11 = inlined_call_operand.hbm [shape: bf16[128,128], index: 11, kind: input, shape index: {}]   ;;  %s9380_s12 = inlined_call_operand.vmem [shape: f32[1,128], index: 12, kind: input, shape index: {}]   ;;  %s9381_s13 = inlined_call_operand.hbm [shape: bf16[128,128], index: 13, kind: input, shape index: {}]   ;;  %s9382_s14 = inlined_call_operand.vmem [shape: f32[1,128], index: 14, kind: input, shape index: {}]   ;;  %s9383_s15 = inlined_call_operand.hbm [shape: bf16[128,512], index: 15, kind: input, shape index: {}]   ;;  %s9384_s16 = inlined_call_operand.vmem [shape: f32[1,512], index: 16, kind: input, shape index: {}]   ;;  %s9385_s17 = inlined_call_operand.hbm [shape: f32[256,128], index: 17, kind: output, shape index: {0}]   ;;  %s9386_s18 = inlined_call_operand.hbm [shape: f32[256,128], index: 18, kind: output, shape index: {1}]   ;;  %s9387_s19 = inlined_call_operand.hbm [shape: bf16[256,512], index: 19, kind: output, shape index: {2}]   ;;  %s9388_s20 = inlined_call_operand.hbm [shape: f32[256,128], index: 20, kind: output, shape index: {3}]   ;;  %s9389_s21 = inlined_call_operand.hbm [shape: f32[256,128], index: 21, kind: output, shape index: {4}]  }
   0x1   :  { %9445 = sst [smem:[#allocation46_spill]] %s9368_s0 }
   0x2   :  { %9446 = sst [smem:[#allocation47_spill]] %s9369_s1 }
   0x3   :  { %9447 = sst [smem:[#allocation48_spill]] %s9370_s2 }
   0x4   :  { %9448 = sst [smem:[#allocation49_spill]] %s9371_s3 }
   0x5   :  { %9449 = sst [smem:[#allocation50_spill]] %s9372_s4 }
   0x6   :  { %9450 = sst [smem:[#allocation51_spill]] %s9373_s5 }
   0x7   :  { %9451 = sst [smem:[#allocation52_spill]] %s9374_s6 }
   0x8   :  { %9452 = sst [smem:[#allocation53_spill]] %s9375_s7 }
   0x9   :  { %9453 = sst [smem:[#allocation54_spill]] %s9376_s8 }
   0xa   :  { %9454 = sst [smem:[#allocation55_spill]] %s9377_s9 }
   0xb   :  { %9455 = sst [smem:[#allocation56_spill]] %s9378_s10 }
   0xc   :  { %9456 = sst [smem:[#allocation57_spill]] %s9379_s11 }
   0xd   :  { %9457 = sst [smem:[#allocation58_spill]] %s9380_s12 }
   0xe   :  { %9458 = sst [smem:[#allocation59_spill]] %s9381_s13 }
   0xf   :  { %9459 = sst [smem:[#allocation60_spill]] %s9382_s14 }
  0x10   :  { %9460 = sst [smem:[#allocation61_spill]] %s9383_s15 }
  0x11   :  { %9461 = sst [smem:[#allocation62_spill]] %s9384_s16 }
  0x12   :  { %9462 = sst [smem:[#allocation63_spill]] %s9385_s17 }
  0x13   :  { %9463 = sst [smem:[#allocation64_spill]] %s9386_s18 }
  0x14   :  { %9464 = sst [smem:[#allocation65_spill]] %s9387_s19 }
  0x15   :  { %9465 = sst [smem:[#allocation66_spill]] %s9388_s20 }
  0x16   :  { %9466 = sst [smem:[#allocation67_spill]] %s9389_s21 }
  0x17   :  { %27 = vsyncpa [#allocation3], 0 }
  0x18   :  { %29 = vsyncpa [#allocation3 + $0x1], 0 }
  0x19   :  { %30 = vsyncpa [#allocation6], 0 }
  0x1a   :  { %31 = vsyncpa [#allocation9], 0 }
  0x1b   :  { %32 = vsyncpa [#allocation12], 0 }
  0x1c   :  { %33 = vsyncpa [#allocation15], 0 }
  0x1d   :  { %34 = vsyncpa [#allocation4], 0 }
  0x1e   :  { %36 = vsyncpa [#allocation4 + $0x1], 0 }
  0x1f   :  { %37 = vsyncpa [#allocation19], 0 }
  0x20   :  { %39 = vsyncpa [#allocation19 + $0x1], 0 }
  0x21   :  { %40 = vsyncpa [#allocation22], 0 }
  0x22   :  { %42 = vsyncpa [#allocation22 + $0x1], 0  ;;  %s7497_s2 = smov 0   ;;  %s7499_s25 = smov 0  }
  0x23   :  { %s7501_s26 = smov 0   ;;  %s7503_s27 = smov 0  }
  0x24 LB: > { %s7362_s3 = smov [#allocation5]   ;;  %s7518_s29 = sadd.s32 4294967295, %s7360_s27   ;;  %s7360_s27 = sphi %s7503_s27, %s9576_s27   ;;  %s7356_s26 = sphi %s7501_s26, %s9575_s26   ;;  %s7352_s25 = sphi %s7499_s25, %s9574_s25   ;;  %s7348_s2 = sphi %s7497_s2, %s9573_s2  }
  0x25   : > { %s557_s28 = sshll.u32 %s7362_s3, 4  ;;  %p5471_p0 = scmp.ge.s32.totalorder %s7360_s27, 1  ;;  %s7523_s28 = int_to_ptr.vmem [resolvable:$true] %s557_s28 }
  0x26   : > { %p9404_p1 = scmp.eq.s32.totalorder %s7518_s29, 0  ;;  %p545_p2 = scmp.lt.s32.totalorder %s7360_s27, 3 }
  0x27   : > { %s7363_s30 = smov [#allocation8]   ;;  %s9469_s1 = sld [smem:[#allocation47_spill]] }
  0x28   : > { %p7525_p3 = pnand %p5471_p0, %p545_p2  ;;  %s589_s5 = sshll.u32 %s7363_s30, 4  ;;  %s7538_s5 = int_to_ptr.vmem [resolvable:$true] %s589_s5 }
  0x2a   : > { %s9467_s0 = scalar_select %p7525_p3, 1, 0 }
  0x2b   : > { %p6182_p5 = pneg %p7525_p3 }
  0x2d   : > { %p7534_p6 = pnand %p6182_p5, %p9404_p1  ;;  %s6904_s24 = scalar_lea.hbm %s9469_s1, 16384 }
  0x2e   : > { %p6905_p7 = scmp.ne.s32.totalorder %s9469_s1, %s6904_s24  ;;  %p6911_p11 = scmp.lt.u32.totalorder %s6904_s24, %s9469_s1 }
  0x2f   : > { %p7548_p8 = pneg %p7534_p6 }
  0x31   : > { %p6907_p9 = pnand %p7548_p8, %p6905_p7 }
  0x33   : > { %p6908_p10 = pneg %p6907_p9 }
  0x35   : > { %p6913_p12 = pnand %p6911_p11, %p6908_p10 }
  0x37   : > { %6916 = shalt.err (!%p6913_p12)
}
  0x38   : > { %s6917_s19 = scalar_lea.vmem %s7523_s28, 16384  ;;  %p6925_p5 = scmp.lt.s32.totalorder %s7523_s28, %s7523_s28 }
  0x39   : > { %p6918_p13 = scmp.ne.s32.totalorder %s7523_s28, %s6917_s19  ;;  %p6926_p4 = scmp.lt.s32.totalorder %s6917_s19, %s6917_s19 }
  0x3b   : > { %p6920_p0 = pnand %p6918_p13, %p7548_p8  ;;  %p6927_p7 = por %p6926_p4, %p6925_p5 }
  0x3d   : > { %p6921_p2 = pneg %p6920_p0 }
  0x3f   : > { %p6928_p9 = pnand %p6927_p7, %p6921_p2 }
  0x41   : > { %6931 = shalt.err (!%p6928_p9)
}
  0x42   : > { %s9399_s22 = smov 256   ;;  %s9401_s17 = smov 16  }
  0x43   : > { %6185 = dma.hbm_to_vmem [thread:$0]  (!%p7534_p6), %s9469_s1, 16384, %s7523_s28, [#allocation6], %s9399_s22, %s9399_s22, %s9401_s17  }
  0x44   : > { %s9471_s20 = sld [smem:[#allocation51_spill]] }
  0x4a   : > { %s6932_s19 = scalar_lea.hbm %s9471_s20, 4096 }
  0x4b   : > { %p6933_p4 = scmp.ne.s32.totalorder %s9471_s20, %s6932_s19  ;;  %p6939_p12 = scmp.lt.u32.totalorder %s6932_s19, %s9471_s20 }
  0x4d   : > { %p6935_p10 = pnand %p6933_p4, %p7548_p8 }
  0x4f   : > { %p6936_p11 = pneg %p6935_p10 }
  0x51   : > { %p6941_p13 = pnand %p6939_p12, %p6936_p11 }
  0x53   : > { %6944 = shalt.err (!%p6941_p13)
}
  0x54   : > { %s6945_s28 = scalar_lea.vmem %s7538_s5, 4096  ;;  %p6953_p7 = scmp.lt.s32.totalorder %s7538_s5, %s7538_s5 }
  0x55   : > { %p6946_p0 = scmp.ne.s32.totalorder %s7538_s5, %s6945_s28  ;;  %p6954_p9 = scmp.lt.s32.totalorder %s6945_s28, %s6945_s28 }
  0x57   : > { %p6948_p2 = pnand %p6946_p0, %p7548_p8  ;;  %p6955_p4 = por %p6954_p9, %p6953_p7 }
  0x59   : > { %p6949_p5 = pneg %p6948_p2 }
  0x5b   : > { %p6956_p10 = pnand %p6955_p4, %p6949_p5 }
  0x5d   : > { %6959 = shalt.err (!%p6956_p10)
}
  0x5e   : > { %s9406_s16 = smov 128   ;;  %s9407_s12 = smov 8  }
  0x5f   : > { %6191 = dma.hbm_to_vmem [thread:$0]  (!%p7534_p6), %s9471_s20, 4096, %s7538_s5, [#allocation9], %s9406_s16, %s9406_s16, %s9407_s12  }
  0x60   : > { %s7368_s23 = smov [#allocation11]   ;;  %s7369_s3 = smov [#allocation14]  }
  0x61   : > { %s621_s24 = sshll.u32 %s7368_s23, 4  ;;  %s653_s30 = sshll.u32 %s7369_s3, 4  ;;  %s622_s24 = int_to_ptr.vmem [resolvable:$true] %s621_s24  ;;  %s7598_s30 = int_to_ptr.vmem [resolvable:$true] %s653_s30 }
  0x62   : > { %s9472_s9 = sld [smem:[#allocation55_spill]] }
  0x68   : > { %s6960_s22 = scalar_lea.hbm %s9472_s9, 1024 }
  0x69   : > { %p6961_p11 = scmp.ne.s32.totalorder %s9472_s9, %s6960_s22  ;;  %p6967_p0 = scmp.lt.u32.totalorder %s6960_s22, %s9472_s9 }
  0x6b   : > { %p6963_p12 = pnand %p6961_p11, %p7548_p8 }
  0x6d   : > { %p6964_p13 = pneg %p6963_p12 }
  0x6f   : > { %p6969_p2 = pnand %p6967_p0, %p6964_p13 }
  0x71   : > { %6972 = shalt.err (!%p6969_p2)
}
  0x72   : > { %s6973_s18 = scalar_lea.vmem %s622_s24, 1024  ;;  %p6981_p4 = scmp.lt.s32.totalorder %s622_s24, %s622_s24 }
  0x73   : > { %p6974_p5 = scmp.ne.s32.totalorder %s622_s24, %s6973_s18  ;;  %p6982_p10 = scmp.lt.s32.totalorder %s6973_s18, %s6973_s18 }
  0x75   : > { %p6976_p7 = pnand %p6974_p5, %p7548_p8  ;;  %p6983_p1 = por %p6982_p10, %p6981_p4 }
  0x77   : > { %p6977_p9 = pneg %p6976_p7 }
  0x79   : > { %p6984_p3 = pnand %p6983_p1, %p6977_p9 }
  0x7b   : > { %6987 = shalt.err (!%p6984_p3)
}
  0x7c   : > { %s9408_s1 = smov 64   ;;  %s7371_s17 = smov 4  }
  0x7d   : > { %6197 = dma.hbm_to_vmem [thread:$0]  (!%p7534_p6), %s9472_s9, 1024, %s622_s24, [#allocation12], %s9408_s1, %s9408_s1, %s7371_s17  }
  0x7e   : > { %s9473_s13 = sld [smem:[#allocation59_spill]] }
  0x84   : > { %s6988_s28 = scalar_lea.hbm %s9473_s13, 1024 }
  0x85   : > { %p6989_p1 = scmp.ne.s32.totalorder %s9473_s13, %s6988_s28  ;;  %p6995_p12 = scmp.lt.u32.totalorder %s6988_s28, %s9473_s13 }
  0x87   : > { %p6991_p3 = pnand %p6989_p1, %p7548_p8 }
  0x89   : > { %p6992_p11 = pneg %p6991_p3 }
  0x8b   : > { %p6997_p13 = pnand %p6995_p12, %p6992_p11 }
  0x8d   : > { %7000 = shalt.err (!%p6997_p13)
}
  0x8e   : > { %s7001_s24 = scalar_lea.vmem %s7598_s30, 1024  ;;  %p7009_p7 = scmp.lt.s32.totalorder %s7598_s30, %s7598_s30 }
  0x8f   : > { %p7002_p0 = scmp.ne.s32.totalorder %s7598_s30, %s7001_s24  ;;  %p7010_p9 = scmp.lt.s32.totalorder %s7001_s24, %s7001_s24 }
  0x91   : > { %p7004_p2 = pnand %p7002_p0, %p7548_p8  ;;  %p7011_p4 = por %p7010_p9, %p7009_p7 }
  0x93   : > { %p7005_p5 = pneg %p7004_p2 }
  0x95   : > { %p7012_p10 = pnand %p7011_p4, %p7005_p5 }
  0x97   : > { %7015 = shalt.err (!%p7012_p10)
}
  0x98   : > { %6203 = dma.hbm_to_vmem [thread:$0]  (!%p7534_p6), %s9473_s13, 1024, %s7598_s30, [#allocation15], %s9408_s1, %s9408_s1, %s7371_s17  }
  0x99   : > { %s7372_s23 = smov [#allocation7]   ;;  %s7373_s19 = smov [#allocation10]  }
  0x9a   : > { %s573_s3 = sshll.u32 %s7372_s23, 4  ;;  %s605_s28 = sshll.u32 %s7373_s19, 4  ;;  %s574_s3 = int_to_ptr.vmem [resolvable:$true] %s573_s3  ;;  %s7647_s28 = int_to_ptr.vmem [resolvable:$true] %s605_s28 }
  0x9b   : > { %s9474_s18 = sld [smem:[#allocation49_spill]] }
  0xa1   : > { %s7016_s24 = scalar_lea.hbm %s9474_s18, 4096 }
  0xa2   : > { %p7017_p1 = scmp.ne.s32.totalorder %s9474_s18, %s7016_s24  ;;  %p7023_p12 = scmp.lt.u32.totalorder %s7016_s24, %s9474_s18 }
  0xa4   : > { %p7019_p3 = pnand %p7017_p1, %p7548_p8 }
  0xa6   : > { %p7020_p11 = pneg %p7019_p3 }
  0xa8   : > { %p7025_p13 = pnand %p7023_p12, %p7020_p11 }
  0xaa   : > { %7028 = shalt.err (!%p7025_p13)
}
  0xab   : > { %s7029_s22 = scalar_lea.vmem %s574_s3, 4096  ;;  %p7037_p7 = scmp.lt.s32.totalorder %s574_s3, %s574_s3 }
  0xac   : > { %p7030_p0 = scmp.ne.s32.totalorder %s574_s3, %s7029_s22  ;;  %p7038_p9 = scmp.lt.s32.totalorder %s7029_s22, %s7029_s22 }
  0xae   : > { %p7032_p2 = pnand %p7030_p0, %p7548_p8  ;;  %p7039_p4 = por %p7038_p9, %p7037_p7 }
  0xb0   : > { %p7033_p5 = pneg %p7032_p2 }
  0xb2   : > { %p7040_p10 = pnand %p7039_p4, %p7033_p5 }
  0xb4   : > { %7043 = shalt.err (!%p7040_p10)
}
  0xb5   : > { %s9475_s9 = smov 8   ;;  %s9476_s12 = smov 128  }
  0xb6   : > { %6188 = dma.hbm_to_vmem [thread:$0]  (!%p7534_p6), %s9474_s18, 4096, %s574_s3, [#allocation6], %s9476_s12, %s9476_s12, %s9475_s9  }
  0xb7   : > { %s9477_s7 = sld [smem:[#allocation53_spill]] }
  0xbd   : > { %s7044_s24 = scalar_lea.hbm %s9477_s7, 1024 }
  0xbe   : > { %p7045_p1 = scmp.ne.s32.totalorder %s9477_s7, %s7044_s24  ;;  %p7051_p12 = scmp.lt.u32.totalorder %s7044_s24, %s9477_s7 }
  0xc0   : > { %p7047_p3 = pnand %p7045_p1, %p7548_p8 }
  0xc2   : > { %p7048_p11 = pneg %p7047_p3 }
  0xc4   : > { %p7053_p13 = pnand %p7051_p12, %p7048_p11 }
  0xc6   : > { %7056 = shalt.err (!%p7053_p13)
}
  0xc7   : > { %s7057_s3 = scalar_lea.vmem %s7647_s28, 1024  ;;  %p7065_p7 = scmp.lt.s32.totalorder %s7647_s28, %s7647_s28 }
  0xc8   : > { %p7058_p0 = scmp.ne.s32.totalorder %s7647_s28, %s7057_s3  ;;  %p7066_p9 = scmp.lt.s32.totalorder %s7057_s3, %s7057_s3 }
  0xca   : > { %p7060_p2 = pnand %p7058_p0, %p7548_p8  ;;  %p7067_p4 = por %p7066_p9, %p7065_p7 }
  0xcc   : > { %p7061_p5 = pneg %p7060_p2 }
  0xce   : > { %p7068_p10 = pnand %p7067_p4, %p7061_p5 }
  0xd0   : > { %7071 = shalt.err (!%p7068_p10)
}
  0xd1   : > { %s9478_s1 = smov 64   ;;  %s7374_s23 = smov [#allocation13]  }
  0xd2   : > { %6194 = dma.hbm_to_vmem [thread:$0]  (!%p7534_p6), %s9477_s7, 1024, %s7647_s28, [#allocation9], %s9478_s1, %s9478_s1, %s7371_s17  }
  0xd3   : > { %s637_s19 = sshll.u32 %s7374_s23, 4  ;;  %s7375_s14 = smov [#allocation16]   ;;  %s638_s19 = int_to_ptr.vmem [resolvable:$true] %s637_s19 }
  0xd4   : > { %s669_s5 = sshll.u32 %s7375_s14, 4  ;;  %s9479_s11 = sld [smem:[#allocation57_spill]]  ;;  %s7696_s5 = int_to_ptr.vmem [resolvable:$true] %s669_s5 }
  0xda   : > { %s7072_s30 = scalar_lea.hbm %s9479_s11, 1024 }
  0xdb   : > { %p7073_p1 = scmp.ne.s32.totalorder %s9479_s11, %s7072_s30  ;;  %p7079_p12 = scmp.lt.u32.totalorder %s7072_s30, %s9479_s11 }
  0xdd   : > { %p7075_p3 = pnand %p7073_p1, %p7548_p8 }
  0xdf   : > { %p7076_p11 = pneg %p7075_p3 }
  0xe1   : > { %p7081_p13 = pnand %p7079_p12, %p7076_p11 }
  0xe3   : > { %7084 = shalt.err (!%p7081_p13)
}
  0xe4   : > { %s7085_s12 = scalar_lea.vmem %s638_s19, 1024  ;;  %p7093_p7 = scmp.lt.s32.totalorder %s638_s19, %s638_s19 }
  0xe5   : > { %p7086_p0 = scmp.ne.s32.totalorder %s638_s19, %s7085_s12  ;;  %p7094_p9 = scmp.lt.s32.totalorder %s7085_s12, %s7085_s12 }
  0xe7   : > { %p7088_p2 = pnand %p7086_p0, %p7548_p8  ;;  %p7095_p4 = por %p7094_p9, %p7093_p7 }
  0xe9   : > { %p7089_p5 = pneg %p7088_p2 }
  0xeb   : > { %p7096_p10 = pnand %p7095_p4, %p7089_p5 }
  0xed   : > { %7099 = shalt.err (!%p7096_p10)
}
  0xee   : > { %6200 = dma.hbm_to_vmem [thread:$0]  (!%p7534_p6), %s9479_s11, 1024, %s638_s19, [#allocation12], %s9478_s1, %s9478_s1, %s7371_s17  }
  0xef   : > { %s9480_s15 = sld [smem:[#allocation61_spill]] }
  0xf5   : > { %s7100_s30 = scalar_lea.hbm %s9480_s15, 4096 }
  0xf6   : > { %p7101_p1 = scmp.ne.s32.totalorder %s9480_s15, %s7100_s30  ;;  %p7107_p12 = scmp.lt.u32.totalorder %s7100_s30, %s9480_s15 }
  0xf8   : > { %p7103_p3 = pnand %p7101_p1, %p7548_p8 }
  0xfa   : > { %p7104_p11 = pneg %p7103_p3 }
  0xfc   : > { %p7109_p13 = pnand %p7107_p12, %p7104_p11 }
  0xfe   : > { %7112 = shalt.err (!%p7109_p13)
}
  0xff   : > { %s7113_s17 = scalar_lea.vmem %s7696_s5, 4096  ;;  %p7121_p7 = scmp.lt.s32.totalorder %s7696_s5, %s7696_s5 }
 0x100   : > { %p7114_p0 = scmp.ne.s32.totalorder %s7696_s5, %s7113_s17  ;;  %p7122_p9 = scmp.lt.s32.totalorder %s7113_s17, %s7113_s17 }
 0x102   : > { %p7116_p2 = pnand %p7114_p0, %p7548_p8  ;;  %p7123_p4 = por %p7122_p9, %p7121_p7 }
 0x104   : > { %p7117_p5 = pneg %p7116_p2 }
 0x106   : > { %p7124_p10 = pnand %p7123_p4, %p7117_p5 }
 0x108   : > { %7127 = shalt.err (!%p7124_p10)
}
 0x109   : > { %s9481_s1 = smov 16   ;;  %s9482_s19 = smov 256  }
 0x10a   : > { %6206 = dma.hbm_to_vmem [thread:$0]  (!%p7534_p6), %s9480_s15, 4096, %s7696_s5, [#allocation15], %s9482_s19, %s9482_s19, %s9481_s1  }
 0x10b   : > { %s9410_s21 = sadd.s32 4294967294, %s7360_s27   ;;  %s7747_s4 = sadd.s32 1, %s7360_s27  }
 0x10c   : > { %s52_s14 = ssub.s32 %s7360_s27, %s7747_s4  ;;  %s55_s24 = sadd.s32 1, %s7356_s26 }
 0x10d   : > { %p53_p8 = scmp.eq.s32.totalorder %s52_s14, 0  ;;  %p62_p1 = scmp.ne.s32.totalorder %s7356_s26, %s7352_s25 }
 0x10e   : > { %p63_p3 = scmp.eq.s32.totalorder %s7360_s27, 0  ;;  %p68_p11 = scmp.ne.s32.totalorder %s7352_s25, %s7348_s2 }
 0x10f   : > { %s7758_s16 = scalar_select %p53_p8, %s7356_s26, %s55_s24  }
 0x110   : > { %p7760_p12 = por %p63_p3, %p62_p1  ;;  %p9484_p13 = scmp.eq.s32.totalorder %s7518_s29, 0 }
 0x111   : > { %p428_p0 = scmp.eq.s32.totalorder %s7518_s29, 1  ;;  %p434_p2 = scmp.eq.s32.totalorder %s9410_s21, 1 }
 0x112   : > { %p7766_p6 = por %p9484_p13, %p68_p11  ;;  %p6235_p5 = scmp.lt.s32.totalorder %s7360_s27, 2 }
 0x113   : > { %s686_s22 = sand.u32 1, %s7356_s26   ;;  %p7775_p7 = por %p428_p0, %p62_p1 }
 0x114   : > { %p7779_p9 = por %p434_p2, %p68_p11  ;;  %s5481_s28 = sshll.u32 %s686_s22, 8 }
 0x115   : > { %s9486_s3 = scalar_select %p7775_p7, 1, 0 }
 0x116   : > { %s9487_s9 = scalar_select %p7779_p9, 1, 0 }
 0x117   : > { %s5843_s17 = sshll.u32 %s7360_s27, 12  ;;  %s9488_s14 = sld [smem:[#allocation46_spill]] }
 0x118   : > { %s690_s21 = scalar_lea.vmem [#allocation2], %s5481_s28  ;;  %p7793_p4 = pnand %p6235_p5, %p7760_p12 }
 0x119   : > { %s698_s7 = sshll.u32 %s690_s21, 4  ;;  %s7797_s13 = scalar_lea.sflag [#allocation3], %s686_s22  ;;  %s7789_s7 = int_to_ptr.vmem [resolvable:$true] %s698_s7 }
 0x11a   : > { %p7130_p8 = pneg %p7793_p4 }
 0x11d   : > { %s7787_s24 = scalar_lea.hbm %s9488_s14, %s5843_s17  ;;  %s7133_s30 = scalar_lea.hbm %s9488_s14, 8192 }
 0x11e   : > { %s7128_s12 = scalar_lea.hbm %s7787_s24, 4096  ;;  %p7134_p11 = scmp.lt.u32.totalorder %s7787_s24, %s9488_s14 }
 0x11f   : > { %p7129_p10 = scmp.ne.s32.totalorder %s7787_s24, %s7128_s12  ;;  %p7135_p12 = scmp.lt.u32.totalorder %s7133_s30, %s7128_s12 }
 0x120   : > { %p7137_p0 = scmp.lt.u32.totalorder %s7128_s12, %s7787_s24 }
 0x121   : > { %p7131_p1 = pnand %p7130_p8, %p7129_p10  ;;  %p7136_p13 = por %p7135_p12, %p7134_p11 }
 0x123   : > { %p7132_p3 = pneg %p7131_p1  ;;  %p7138_p2 = por %p7137_p0, %p7136_p13 }
 0x125   : > { %p7139_p5 = pnand %p7138_p2, %p7132_p3 }
 0x127   : > { %7142 = shalt.err (!%p7139_p5)
}
 0x128   : > { %s7143_s22 = scalar_lea.vmem %s7789_s7, 4096  ;;  %s7376_s21 = smov [#allocation2]  }
 0x129   : > { %p7144_p10 = scmp.ne.s32.totalorder %s7789_s7, %s7143_s22  ;;  %s7148_s28 = sshll.u32 %s7376_s21, 4  ;;  %s7149_s28 = int_to_ptr.vmem [resolvable:$false] %s7148_s28 }
 0x12a   : > { %s7150_s17 = scalar_lea.vmem %s7149_s28, 8192  ;;  %p7151_p7 = scmp.lt.s32.totalorder %s7789_s7, %s7149_s28 }
 0x12b   : > { %p7146_p1 = pnand %p7144_p10, %p7130_p8  ;;  %p7152_p11 = scmp.lt.s32.totalorder %s7150_s17, %s7143_s22 }
 0x12d   : > { %p7147_p9 = pneg %p7146_p1  ;;  %p7153_p12 = por %p7152_p11, %p7151_p7 }
 0x12f   : > { %p7154_p13 = pnand %p7153_p12, %p7147_p9 }
 0x131   : > { %7157 = shalt.err (!%p7154_p13)
}
 0x132   : > { %6210 = dma.hbm_to_vmem [thread:$0]  (!%p7793_p4), %s7787_s24, 4096, %s7789_s7, %s7797_s13, %s9482_s19, %s9482_s19, %s9481_s1  }
 0x133   : > { %p9490_p8 = scmp.ne.s32.totalorder %s9467_s0, 0 }
 0x135   : > { %710 = sbr.rel (%p9490_p8) target bundleno = 2801 (0xaf1), region = 88 }
 0x13c   : > { %s7831_s12 = sand.u32 1, %s7352_s25  }
 0x13d   : > { %s9432_s30 = sshll.u32 %s7831_s12, 8  ;;  %s713_s23 = scalar_lea.sflag [#allocation3], %s7831_s12 }
 0x13e   : > { %s7837_s11 = scalar_lea.vmem [#allocation2], %s9432_s30 }
 0x13f   : > { %7315 = dma.done.wait (%p7766_p6), %s713_s23, 4096  }
 0x140   : > { %7317 = vsyncadd (%p7766_p6), %s713_s23, 4294963200  ;;  %p9491_p7 = scmp.eq.s32.totalorder %s7518_s29, 0 }
 0x142   : > { %7319 = dma.done.wait (%p9491_p7), [#allocation6], 20480   ;;  %p9492_p9 = pmov %p9491_p7 }
 0x143   : > { %p9493_p4 = pmov %p9491_p7 }
 0x144   : > { %7321 = vsyncadd (%p9492_p9), [#allocation6], 4294946816 }
 0x145   : > { %7323 = dma.done.wait (%p9493_p4), [#allocation9], 5120   ;;  %p9494_p3 = pmov %p9493_p4 }
 0x147   : > { %7325 = vsyncadd (%p9494_p3), [#allocation9], 4294962176  ;;  %p9495_p0 = pmov %p9494_p3 }
 0x149   : > { %7327 = dma.done.wait (%p9495_p0), [#allocation12], 2048   ;;  %p9496_p2 = pmov %p9495_p0 }
 0x14a   : > { %p9497_p6 = pmov %p9495_p0 }
 0x14b   : > { %7329 = vsyncadd (%p9496_p2), [#allocation12], 4294965248 }
 0x14c   : > { %7331 = dma.done.wait (%p9497_p6), [#allocation15], 5120   ;;  %p9498_p5 = pmov %p9495_p0 }
 0x14d   : > { %v6296_v0 = vld [vmem:[#allocation5 + $0x4] ss:$16 sps:$4 sm:$0xff]   ;;  %v6298_v1 = vld [vmem:[#allocation5] ss:$16 sps:$4 sm:$0xff]   ;;  %v6431_v35 = vld [vmem:[#allocation5 + $0xc] ss:$16 sps:$4 sm:$0xff]  }
 0x14e   : > { %7333 = vsyncadd (%p9498_p5), [#allocation15], 4294962176  ;;  %1794 = vmatprep.subr.bf16.mxu0 %v6296_v0  ;;  %v6299_v2 = vld [vmem:[#allocation5 + $0x24] ss:$16 sps:$4 sm:$0xff]   ;;  %v6301_v3 = vld [vmem:[#allocation5 + $0x20] ss:$16 sps:$4 sm:$0xff]   ;;  %2020 = vmatprep.subr.bf16.mxu1 %v6431_v35 }
 0x14f   : > { %1795 = vmatpush1.bf16.msra.mxu0 %v6298_v1  ;;  %v6302_v4 = vld [vmem:[#allocation5 + $0x44] ss:$16 sps:$4 sm:$0xff]   ;;  %v6304_v5 = vld [vmem:[#allocation5 + $0x40] ss:$16 sps:$4 sm:$0xff]   ;;  %v6433_v36 = vld [vmem:[#allocation5 + $0x8] ss:$16 sps:$4 sm:$0xff]  }
 0x150   : > { %1796 = vmatprep.subr.bf16.mxu0 %v6299_v2  ;;  %v6305_v6 = vld [vmem:[#allocation5 + $0x64] ss:$16 sps:$4 sm:$0xff]   ;;  %v6307_v7 = vld [vmem:[#allocation5 + $0x60] ss:$16 sps:$4 sm:$0xff]   ;;  %v6434_v38 = vld [vmem:[#allocation5 + $0x2c] ss:$16 sps:$4 sm:$0xff]   ;;  %2021 = vmatpush1.bf16.msra.mxu1 %v6433_v36 }
 0x151   : > { %v6308_v8 = vld [vmem:[#allocation5 + $0x84] ss:$16 sps:$4 sm:$0xff]   ;;  %v6310_v9 = vld [vmem:[#allocation5 + $0x80] ss:$16 sps:$4 sm:$0xff]   ;;  %2022 = vmatprep.subr.bf16.mxu1 %v6434_v38  ;;  %v6436_v41 = vld [vmem:[#allocation5 + $0x28] ss:$16 sps:$4 sm:$0xff]  }
 0x152   : > { %v6311_v10 = vld [vmem:[#allocation5 + $0xa4] ss:$16 sps:$4 sm:$0xff]   ;;  %v6313_v11 = vld [vmem:[#allocation5 + $0xa0] ss:$16 sps:$4 sm:$0xff]   ;;  %v6440_v42 = vld [vmem:[#allocation5 + $0x4c] ss:$16 sps:$4 sm:$0xff]  }
 0x153   : > { %1797 = vmatpush1.bf16.msra.mxu0 %v6301_v3  ;;  %v6314_v12 = vld [vmem:[#allocation5 + $0xc4] ss:$16 sps:$4 sm:$0xff]   ;;  %v6316_v14 = vld [vmem:[#allocation5 + $0xc0] ss:$16 sps:$4 sm:$0xff]   ;;  %v6442_v45 = vld [vmem:[#allocation5 + $0x48] ss:$16 sps:$4 sm:$0xff]  }
 0x154   : > { %1798 = vmatprep.subr.bf16.mxu0 %v6302_v4  ;;  %v6346_v13 = vld [vmem:[%s7837_s11 + $0x4] ss:$16 sps:$4 sm:$0xff]   ;;  %v6319_v16 = vld [vmem:[#allocation5 + $0xe0] ss:$16 sps:$4 sm:$0xff]   ;;  %2023 = vmatpush1.bf16.msra.mxu1 %v6436_v41  ;;  %v6443_v46 = vld [vmem:[#allocation5 + $0x6c] ss:$16 sps:$4 sm:$0xff]  }
 0x155   : > { %v6317_v15 = vld [vmem:[#allocation5 + $0xe4] ss:$16 sps:$4 sm:$0xff]   ;;  %1826 = vmatprep.mubr.bf16.mxu0 %v6346_v13  ;;  %2052 = vmatprep.mubr.bf16.mxu1 %v6346_v13  ;;  %v6322_v18 = vld [vmem:[#allocation5 + $0x100] ss:$16 sps:$4 sm:$0xff]   ;;  %v6445_v51 = vld [vmem:[#allocation5 + $0x68] ss:$16 sps:$4 sm:$0xff]  }
 0x156   : > { %v6320_v17 = vld [vmem:[#allocation5 + $0x104] ss:$16 sps:$4 sm:$0xff]   ;;  %v6325_v20 = vld [vmem:[#allocation5 + $0x120] ss:$16 sps:$4 sm:$0xff]   ;;  %2024 = vmatprep.subr.bf16.mxu1 %v6440_v42  ;;  %v6449_v52 = vld [vmem:[#allocation5 + $0x8c] ss:$16 sps:$4 sm:$0xff]  }
 0x157   : > { %1799 = vmatpush1.bf16.msra.mxu0 %v6304_v5  ;;  %v6323_v19 = vld [vmem:[#allocation5 + $0x124] ss:$16 sps:$4 sm:$0xff]   ;;  %v6328_v22 = vld [vmem:[#allocation5 + $0x140] ss:$16 sps:$4 sm:$0xff]   ;;  %v6451_v55 = vld [vmem:[#allocation5 + $0x88] ss:$16 sps:$4 sm:$0xff]  }
 0x158   : > { %1800 = vmatprep.subr.bf16.mxu0 %v6305_v6  ;;  %v6326_v21 = vld [vmem:[#allocation5 + $0x144] ss:$16 sps:$4 sm:$0xff]   ;;  %v6331_v24 = vld [vmem:[#allocation5 + $0x160] ss:$16 sps:$4 sm:$0xff]   ;;  %2025 = vmatpush1.bf16.msra.mxu1 %v6442_v45  ;;  %v6452_v56 = vld [vmem:[#allocation5 + $0xac] ss:$16 sps:$4 sm:$0xff]  }
 0x159   : > { %v6329_v23 = vld [vmem:[#allocation5 + $0x164] ss:$16 sps:$4 sm:$0xff]   ;;  %v6334_v26 = vld [vmem:[#allocation5 + $0x180] ss:$16 sps:$4 sm:$0xff]   ;;  %2026 = vmatprep.subr.bf16.mxu1 %v6443_v46  ;;  %v6454_v61 = vld [vmem:[#allocation5 + $0xa8] ss:$16 sps:$4 sm:$0xff]  }
 0x15a   : > { %v6332_v25 = vld [vmem:[#allocation5 + $0x184] ss:$16 sps:$4 sm:$0xff]   ;;  %v6337_v28 = vld [vmem:[#allocation5 + $0x1a0] ss:$16 sps:$4 sm:$0xff]   ;;  %v6458_v62 = vld [vmem:[#allocation5 + $0xcc] ss:$16 sps:$4 sm:$0xff]  }
 0x15b   : > { %1801 = vmatpush1.bf16.msra.mxu0 %v6307_v7  ;;  %v6335_v27 = vld [vmem:[#allocation5 + $0x1a4] ss:$16 sps:$4 sm:$0xff]   ;;  %v6340_v30 = vld [vmem:[#allocation5 + $0x1c0] ss:$16 sps:$4 sm:$0xff]   ;;  %v6460_v1 = vld [vmem:[#allocation5 + $0xc8] ss:$16 sps:$4 sm:$0xff]  }
 0x15c   : > { %1802 = vmatprep.subr.bf16.mxu0 %v6308_v8  ;;  %v6338_v29 = vld [vmem:[#allocation5 + $0x1c4] ss:$16 sps:$4 sm:$0xff]   ;;  %v6343_v32 = vld [vmem:[#allocation5 + $0x1e0] ss:$16 sps:$4 sm:$0xff]   ;;  %2027 = vmatpush1.bf16.msra.mxu1 %v6445_v51  ;;  %v6461_v2 = vld [vmem:[#allocation5 + $0xec] ss:$16 sps:$4 sm:$0xff]  }
 0x15d   : > { %v6341_v31 = vld [vmem:[#allocation5 + $0x1e4] ss:$16 sps:$4 sm:$0xff]   ;;  %v7861_v34 = vld [vmem:[%s7837_s11] ss:$16 sps:$4 sm:$0xff]   ;;  %2028 = vmatprep.subr.bf16.mxu1 %v6449_v52  ;;  %v6463_v7 = vld [vmem:[#allocation5 + $0xe8] ss:$16 sps:$4 sm:$0xff]  }
 0x15e   : > { %v6349_v33 = vld [vmem:[#allocation5 + $0x204] ss:$16 sps:$4 sm:$0xff]   ;;  %v6347_v37 = vld [vmem:[#allocation5 + $0x200] ss:$16 sps:$4 sm:$0xff]   ;;  %v6464_v8 = vld [vmem:[#allocation5 + $0x10c] ss:$16 sps:$4 sm:$0xff]  }
 0x15f   : > { %1803 = vmatpush1.bf16.msra.mxu0 %v6310_v9  ;;  %v6352_v39 = vld [vmem:[#allocation5 + $0x224] ss:$16 sps:$4 sm:$0xff]   ;;  %v6350_v43 = vld [vmem:[#allocation5 + $0x220] ss:$16 sps:$4 sm:$0xff]   ;;  %v6481_v38 = vld [vmem:[#allocation5 + $0x1a8] ss:$16 sps:$4 sm:$0xff]  }
 0x160   : > { %1804 = vmatprep.subr.bf16.mxu0 %v6311_v10  ;;  %v7864_v40 = vld [vmem:[%s7837_s11 + $0x24] ss:$16 sps:$4 sm:$0xff]   ;;  %v7869_v47 = vld [vmem:[%s7837_s11 + $0x20] ss:$16 sps:$4 sm:$0xff]   ;;  %2029 = vmatpush1.bf16.msra.mxu1 %v6451_v55  ;;  %v6487_v51 = vld [vmem:[#allocation5 + $0x1e8] ss:$16 sps:$4 sm:$0xff]  }
 0x161   : > { %v6358_v44 = vld [vmem:[#allocation5 + $0x244] ss:$16 sps:$4 sm:$0xff]   ;;  %v6356_v48 = vld [vmem:[#allocation5 + $0x240] ss:$16 sps:$4 sm:$0xff]   ;;  %2030 = vmatprep.subr.bf16.mxu1 %v6452_v56  ;;  %v6490_v52 = vld [vmem:[#allocation5 + $0x20c] ss:$16 sps:$4 sm:$0xff]  }
 0x162   : > { %v6361_v49 = vld [vmem:[#allocation5 + $0x264] ss:$16 sps:$4 sm:$0xff]   ;;  %v6359_v53 = vld [vmem:[#allocation5 + $0x260] ss:$16 sps:$4 sm:$0xff]   ;;  %v7925_v55 = vld [vmem:[%s7837_s11 + $0x8] ss:$16 sps:$4 sm:$0xff]  }
 0x163   : > { %1805 = vmatpush1.bf16.msra.mxu0 %v6313_v11  ;;  %v7872_v50 = vld [vmem:[%s7837_s11 + $0x44] ss:$16 sps:$4 sm:$0xff]   ;;  %v7877_v57 = vld [vmem:[%s7837_s11 + $0x40] ss:$16 sps:$4 sm:$0xff]   ;;  %v6466_v11 = vld [vmem:[#allocation5 + $0x108] ss:$16 sps:$4 sm:$0xff]  }
 0x164   : > { %1806 = vmatprep.subr.bf16.mxu0 %v6314_v12  ;;  %v6367_v54 = vld [vmem:[#allocation5 + $0x284] ss:$16 sps:$4 sm:$0xff]   ;;  %v6365_v58 = vld [vmem:[#allocation5 + $0x280] ss:$16 sps:$4 sm:$0xff]   ;;  %2031 = vmatpush1.bf16.msra.mxu1 %v6454_v61  ;;  %v6467_v12 = vld [vmem:[#allocation5 + $0x12c] ss:$16 sps:$4 sm:$0xff]  }
 0x165   : > { %v6370_v59 = vld [vmem:[#allocation5 + $0x2a4] ss:$16 sps:$4 sm:$0xff]   ;;  %v6368_v63 = vld [vmem:[#allocation5 + $0x2a0] ss:$16 sps:$4 sm:$0xff]   ;;  %2032 = vmatprep.subr.bf16.mxu1 %v6458_v62  ;;  %v6493_v56 = vld [vmem:[#allocation5 + $0x22c] ss:$16 sps:$4 sm:$0xff]  }
 0x166   : > { %v7880_v60 = vld [vmem:[%s7837_s11 + $0x64] ss:$16 sps:$4 sm:$0xff]   ;;  %v7885_v3 = vld [vmem:[%s7837_s11 + $0x60] ss:$16 sps:$4 sm:$0xff]   ;;  %v6491_v62 = vld [vmem:[#allocation5 + $0x228] ss:$16 sps:$4 sm:$0xff]  }
 0x167   : > { %1807 = vmatpush1.bf16.msra.mxu0 %v6316_v14  ;;  %v6376_v0 = vld [vmem:[#allocation5 + $0x2c4] ss:$16 sps:$4 sm:$0xff]   ;;  %v6374_v4 = vld [vmem:[#allocation5 + $0x2c0] ss:$16 sps:$4 sm:$0xff]   ;;  %s9499_s0 = sld [smem:[#allocation48_spill]]  ;;  %s9500_s5 = sld [smem:[#allocation50_spill]] }
 0x168   : > { %1808 = vmatprep.subr.bf16.mxu0 %v6317_v15  ;;  %v6379_v5 = vld [vmem:[#allocation5 + $0x2e4] ss:$16 sps:$4 sm:$0xff]   ;;  %2033 = vmatpush1.bf16.msra.mxu1 %v6460_v1  ;;  %v6377_v9 = vld [vmem:[#allocation5 + $0x2e0] ss:$16 sps:$4 sm:$0xff]   ;;  %s9501_s6 = sld [smem:[#allocation52_spill]]  ;;  %s8184_s21 = sshll.u32 %s7831_s12, 7 }
 0x169   : > { %v7888_v6 = vld [vmem:[%s7837_s11 + $0x84] ss:$16 sps:$4 sm:$0xff]   ;;  %2034 = vmatprep.subr.bf16.mxu1 %v6461_v2  ;;  %v7893_v13 = vld [vmem:[%s7837_s11 + $0x80] ss:$16 sps:$4 sm:$0xff]   ;;  %v6494_v2 = vld [vmem:[#allocation5 + $0x248] ss:$16 sps:$4 sm:$0xff]  }
 0x16a   : > { %v6385_v10 = vld [vmem:[#allocation5 + $0x304] ss:$16 sps:$4 sm:$0xff]   ;;  %v6383_v14 = vld [vmem:[#allocation5 + $0x300] ss:$16 sps:$4 sm:$0xff]   ;;  %s8197_s28 = scalar_lea.vmem [#allocation17], %s8184_s21  ;;  %s8202_s17 = scalar_lea.vmem [#allocation21], %s8184_s21 }
 0x16b   : > { %1809 = vmatpush1.bf16.msra.mxu0 %v6319_v16  ;;  %v6388_v15 = vld [vmem:[#allocation5 + $0x324] ss:$16 sps:$4 sm:$0xff]   ;;  %v6401_v35 = vld [vmem:[#allocation5 + $0x380] ss:$16 sps:$4 sm:$0xff]   ;;  %s8212_s23 = scalar_lea.vmem [#allocation23], %s8184_s21  ;;  %s9502_s8 = sld [smem:[#allocation54_spill]] }
 0x16c   : > { %1810 = vmatprep.subr.bf16.mxu0 %v6320_v17  ;;  %2035 = vmatpush1.bf16.msra.mxu1 %v6463_v7  ;;  %v7896_v16 = vld [vmem:[%s7837_s11 + $0xa4] ss:$16 sps:$4 sm:$0xff]   ;;  %v6469_v17 = vld [vmem:[#allocation5 + $0x128] ss:$16 sps:$4 sm:$0xff]   ;;  %v6404_v41 = vld [vmem:[#allocation5 + $0x3a0] ss:$16 sps:$4 sm:$0xff]  }
 0x16d   : > { %2036 = vmatprep.subr.bf16.mxu1 %v6464_v8  ;;  %v6406_v36 = vld [vmem:[#allocation5 + $0x3a4] ss:$16 sps:$4 sm:$0xff]   ;;  %v7917_v45 = vld [vmem:[%s7837_s11 + $0xe0] ss:$16 sps:$4 sm:$0xff]   ;;  %v7935_v7 = vld [vmem:[%s7837_s11 + $0x28] ss:$16 sps:$4 sm:$0xff]  }
 0x16e   : > { %v6412_v42 = vld [vmem:[#allocation5 + $0x3c4] ss:$16 sps:$4 sm:$0xff]   ;;  %v6410_v46 = vld [vmem:[#allocation5 + $0x3c0] ss:$16 sps:$4 sm:$0xff]   ;;  %s9503_s10 = sld [smem:[#allocation56_spill]]  ;;  %s8482_s7 = scalar_lea.vmem [#allocation18], %s8184_s21 }
 0x16f   : > { %1811 = vmatpush1.bf16.msra.mxu0 %v6322_v18  ;;  %v6470_v18 = vld [vmem:[#allocation5 + $0x14c] ss:$16 sps:$4 sm:$0xff]   ;;  %v6539_v1 = vld [vmem:[#allocation7 + $0x10] ss:$8 sps:$4 sm:$0xff]   ;;  %v6542_v8 = vld [vmem:[#allocation7 + $0x20] ss:$8 sps:$4 sm:$0xff]  }
 0x170   : > { %1812 = vmatprep.subr.bf16.mxu0 %v6323_v19  ;;  %2037 = vmatpush1.bf16.msra.mxu1 %v6466_v11  ;;  %v6386_v19 = vld [vmem:[#allocation5 + $0x320] ss:$16 sps:$4 sm:$0xff]   ;;  %v6538_v61 = vld [vmem:[#allocation7 + $0x4] ss:$8 sps:$4 sm:$0xff]   ;;  %s9433_s1 = sand.u32 1, %s7518_s29   ;;  %s9069_s19 = sshll.u32 %s7518_s29, 11 }
 0x171   : > { %2038 = vmatprep.subr.bf16.mxu1 %v6467_v12  ;;  %v6545_v11 = vld [vmem:[#allocation7 + $0x30] ss:$8 sps:$4 sm:$0xff]   ;;  %s9548_s22 = sld [smem:[#allocation64_spill]]  ;;  %s5150_s21 = sshll.u32 %s8482_s7, 4  ;;  %s9078_s21 = int_to_ptr.vmem [resolvable:$true] %s5150_s21 }
 0x172   : > { %v6500_v12 = vld [vmem:[#allocation5 + $0x288] ss:$16 sps:$4 sm:$0xff]   ;;  %s9082_s13 = scalar_lea.sflag [#allocation19], %s9433_s1  ;;  %p9549_p1 = scmp.ne.s32.totalorder %s9486_s3, 0 }
 0x173   : > { %1813 = vmatpush1.bf16.msra.mxu0 %v6325_v20  ;;  %v6394_v20 = vld [vmem:[#allocation5 + $0x344] ss:$16 sps:$4 sm:$0xff]   ;;  %s7378_s30 = smov [#allocation18]  }
 0x174   : > { %1814 = vmatprep.subr.bf16.mxu0 %v6326_v21  ;;  %2039 = vmatpush1.bf16.msra.mxu1 %v6469_v17  ;;  %v6472_v21 = vld [vmem:[#allocation5 + $0x148] ss:$16 sps:$4 sm:$0xff]  }
 0x175   : > { %2040 = vmatprep.subr.bf16.mxu1 %v6470_v18  ;;  %v7945_v17 = vld [vmem:[%s7837_s11 + $0x48] ss:$16 sps:$4 sm:$0xff]  }
 0x176   : > { %v6548_v18 = vld [vmem:[#allocation7 + $0x40] ss:$8 sps:$4 sm:$0xff]  }
 0x177   : > { %1815 = vmatpush1.bf16.msra.mxu0 %v6328_v22  ;;  %v6473_v22 = vld [vmem:[#allocation5 + $0x16c] ss:$16 sps:$4 sm:$0xff]  }
 0x178   : > { %1816 = vmatprep.subr.bf16.mxu0 %v6329_v23  ;;  %v7901_v23 = vld [vmem:[%s7837_s11 + $0xa0] ss:$16 sps:$4 sm:$0xff]   ;;  %2041 = vmatpush1.bf16.msra.mxu1 %v6472_v21 }
 0x179   : > { %2042 = vmatprep.subr.bf16.mxu1 %v6473_v22  ;;  %v6551_v21 = vld [vmem:[#allocation7 + $0x50] ss:$8 sps:$4 sm:$0xff]  }
 0x17a   : > { %v6506_v22 = vld [vmem:[#allocation5 + $0x2c8] ss:$16 sps:$4 sm:$0xff]  }
 0x17b   : > { %1817 = vmatpush1.bf16.msra.mxu0 %v6331_v24  ;;  %v6392_v24 = vld [vmem:[#allocation5 + $0x340] ss:$16 sps:$4 sm:$0xff]  }
 0x17c   : > { %1818 = vmatprep.subr.bf16.mxu0 %v6332_v25  ;;  %v6397_v25 = vld [vmem:[#allocation5 + $0x364] ss:$16 sps:$4 sm:$0xff]  }
 0x17f   : > { %1819 = vmatpush1.bf16.msra.mxu0 %v6334_v26  ;;  %v7904_v26 = vld [vmem:[%s7837_s11 + $0xc4] ss:$16 sps:$4 sm:$0xff]  }
 0x180   : > { %1820 = vmatprep.subr.bf16.mxu0 %v6335_v27  ;;  %v6475_v27 = vld [vmem:[#allocation5 + $0x168] ss:$16 sps:$4 sm:$0xff]  }
 0x181   : > { %2043 = vmatpush1.bf16.msra.mxu1 %v6475_v27  ;;  %v7955_v27 = vld [vmem:[%s7837_s11 + $0x68] ss:$16 sps:$4 sm:$0xff]  }
 0x183   : > { %1821 = vmatpush1.bf16.msra.mxu0 %v6337_v28  ;;  %v6476_v28 = vld [vmem:[#allocation5 + $0x18c] ss:$16 sps:$4 sm:$0xff]  }
 0x184   : > { %1822 = vmatprep.subr.bf16.mxu0 %v6338_v29  ;;  %v6395_v29 = vld [vmem:[#allocation5 + $0x360] ss:$16 sps:$4 sm:$0xff]   ;;  %2044 = vmatprep.subr.bf16.mxu1 %v6476_v28 }
 0x185   : > { %v6554_v28 = vld [vmem:[#allocation7 + $0x60] ss:$8 sps:$4 sm:$0xff]  }
 0x187   : > { %1823 = vmatpush1.bf16.msra.mxu0 %v6340_v30  ;;  %v6403_v30 = vld [vmem:[#allocation5 + $0x384] ss:$16 sps:$4 sm:$0xff]  }
 0x188   : > { %1824 = vmatprep.subr.bf16.mxu0 %v6341_v31  ;;  %v6478_v31 = vld [vmem:[#allocation5 + $0x188] ss:$16 sps:$4 sm:$0xff]  }
 0x189   : > { %2045 = vmatpush1.bf16.msra.mxu1 %v6478_v31  ;;  %v6557_v31 = vld [vmem:[#allocation7 + $0x70] ss:$8 sps:$4 sm:$0xff]  }
 0x18b   : > { %1825 = vmatpush1.bf16.msra.mxu0 %v6343_v32  ;;  %v6479_v32 = vld [vmem:[#allocation5 + $0x1ac] ss:$16 sps:$4 sm:$0xff]  }
 0x18c   : > { %1907 = vmatprep.subr.bf16.mxu0 %v6349_v33  ;;  %v7909_v33 = vld [vmem:[%s7837_s11 + $0xc0] ss:$16 sps:$4 sm:$0xff]   ;;  %2046 = vmatprep.subr.bf16.mxu1 %v6479_v32  ;;  %v6512_v32 = vld [vmem:[#allocation5 + $0x308] ss:$16 sps:$4 sm:$0xff]  }
 0x18d   : > { %2047 = vmatpush1.bf16.msra.mxu1 %v6481_v38  ;;  %v7965_v38 = vld [vmem:[%s7837_s11 + $0x88] ss:$16 sps:$4 sm:$0xff]  }
 0x18e   : > { %1827 = vmatmul.mubr.bf16.vlgmr.msra.gmra.mrb[0].mxu0 %v7861_v34 }
 0x18f   : > { %1908 = vmatpush1.bf16.msra.mxu0 %v6347_v37  ;;  %1836 = vmatprep.mubr.bf16.mxu0 %v7864_v40  ;;  %v7912_v37 = vld [vmem:[%s7837_s11 + $0xe4] ss:$16 sps:$4 sm:$0xff]  }
 0x190   : > { %1909 = vmatprep.subr.bf16.mxu0 %v6352_v39  ;;  %v6482_v39 = vld [vmem:[#allocation5 + $0x1cc] ss:$16 sps:$4 sm:$0xff]  }
 0x191   : > { %2048 = vmatprep.subr.bf16.mxu1 %v6482_v39  ;;  %v6560_v39 = vld [vmem:[#allocation7 + $0x80] ss:$8 sps:$4 sm:$0xff]  }
 0x193   : > { %1910 = vmatpush1.bf16.msra.mxu0 %v6350_v43  ;;  %v6484_v43 = vld [vmem:[#allocation5 + $0x1c8] ss:$16 sps:$4 sm:$0xff]  }
 0x194   : > { %1911 = vmatprep.subr.bf16.mxu0 %v6358_v44  ;;  %v6485_v44 = vld [vmem:[#allocation5 + $0x1ec] ss:$16 sps:$4 sm:$0xff]   ;;  %2049 = vmatpush1.bf16.msra.mxu1 %v6484_v43  ;;  %v6563_v43 = vld [vmem:[#allocation7 + $0x90] ss:$8 sps:$4 sm:$0xff]  }
 0x195   : > { %2050 = vmatprep.subr.bf16.mxu1 %v6485_v44  ;;  %v6518_v44 = vld [vmem:[#allocation5 + $0x348] ss:$16 sps:$4 sm:$0xff]  }
 0x196   : > { %1837 = vmatmul.mubr.bf16.gmra.mrb[4].mxu0 %v7869_v47 }
 0x197   : > { %1912 = vmatpush1.bf16.msra.mxu0 %v6356_v48  ;;  %1846 = vmatprep.mubr.bf16.mxu0 %v7872_v50  ;;  %v6415_v48 = vld [vmem:[#allocation5 + $0x3e4] ss:$16 sps:$4 sm:$0xff]  }
 0x198   : > { %1913 = vmatprep.subr.bf16.mxu0 %v6361_v49  ;;  %v7920_v49 = vld [vmem:[%s7837_s11 + $0xc] ss:$16 sps:$4 sm:$0xff]   ;;  %2051 = vmatpush1.bf16.msra.mxu1 %v6487_v51  ;;  %v7975_v51 = vld [vmem:[%s7837_s11 + $0xa8] ss:$16 sps:$4 sm:$0xff]  }
 0x199   : > { %2133 = vmatprep.subr.bf16.mxu1 %v6490_v52  ;;  %v6566_v52 = vld [vmem:[#allocation7 + $0xa0] ss:$8 sps:$4 sm:$0xff]  }
 0x19b   : > { %1914 = vmatpush1.bf16.msra.mxu0 %v6359_v53  ;;  %v6413_v53 = vld [vmem:[#allocation5 + $0x3e0] ss:$16 sps:$4 sm:$0xff]   ;;  %2053 = vmatmul.mubr.bf16.vlgmr.msra.gmra.mrb[0].mxu1 %v7861_v34  ;;  %v7938_v34 = vld [vmem:[%s7837_s11 + $0x4c] ss:$16 sps:$4 sm:$0xff]  }
 0x19c   : > { %1915 = vmatprep.subr.bf16.mxu0 %v6367_v54  ;;  %v6488_v54 = vld [vmem:[#allocation5 + $0x208] ss:$16 sps:$4 sm:$0xff]   ;;  %2062 = vmatprep.mubr.bf16.mxu1 %v7864_v40 }
 0x19d   : > { %2134 = vmatpush1.bf16.msra.mxu1 %v6488_v54  ;;  %v6497_v40 = vld [vmem:[#allocation5 + $0x268] ss:$16 sps:$4 sm:$0xff]   ;;  %v6526_v54 = vld [vmem:[#allocation5 + $0x38c] ss:$16 sps:$4 sm:$0xff]  }
 0x19e   : > { %1847 = vmatmul.mubr.bf16.gmra.mrb[8].mxu0 %v7877_v57  ;;  %2135 = vmatprep.subr.bf16.mxu1 %v6493_v56  ;;  %v6569_v56 = vld [vmem:[#allocation7 + $0xb0] ss:$8 sps:$4 sm:$0xff]  }
 0x19f   : > { %1916 = vmatpush1.bf16.msra.mxu0 %v6365_v58  ;;  %1856 = vmatprep.mubr.bf16.mxu0 %v7880_v60  ;;  %v7928_v58 = vld [vmem:[%s7837_s11 + $0x2c] ss:$16 sps:$4 sm:$0xff]  }
 0x1a0   : > { %1917 = vmatprep.subr.bf16.mxu0 %v6370_v59  ;;  %v6536_v59 = vld [vmem:[#allocation7] ss:$8 sps:$4 sm:$0xff]  }
 0x1a1   : > { %2136 = vmatpush1.bf16.msra.mxu1 %v6491_v62  ;;  %v6448_v62 = vld [vmem:[%s7837_s11 + $0xc8] ss:$16 sps:$4 sm:$0xff]  }
 0x1a3   : > { %1918 = vmatpush1.bf16.msra.mxu0 %v6368_v63  ;;  %v6541_v63 = vld [vmem:[#allocation7 + $0x14] ss:$8 sps:$4 sm:$0xff]   ;;  %2063 = vmatmul.mubr.bf16.gmra.mrb[4].mxu1 %v7869_v47 }
 0x1a4   : > { %1919 = vmatprep.subr.bf16.mxu0 %v6376_v0  ;;  %v6496_v0 = vld [vmem:[#allocation5 + $0x24c] ss:$16 sps:$4 sm:$0xff]   ;;  %2072 = vmatprep.mubr.bf16.mxu1 %v7872_v50  ;;  %v6503_v50 = vld [vmem:[#allocation5 + $0x2a8] ss:$16 sps:$4 sm:$0xff]  }
 0x1a5   : > { %2137 = vmatprep.subr.bf16.mxu1 %v6496_v0  ;;  %v7948_v47 = vld [vmem:[%s7837_s11 + $0x6c] ss:$16 sps:$4 sm:$0xff]   ;;  %v6527_v0 = vld [vmem:[#allocation5 + $0x3a8] ss:$16 sps:$4 sm:$0xff]  }
 0x1a6   : > { %1857 = vmatmul.mubr.bf16.gmra.mrb[12].mxu0 %v7885_v3  ;;  %2138 = vmatpush1.bf16.msra.mxu1 %v6494_v2  ;;  %v6532_v2 = vld [vmem:[#allocation5 + $0x3cc] ss:$16 sps:$4 sm:$0xff]  }
 0x1a7   : > { %1920 = vmatpush1.bf16.msra.mxu0 %v6374_v4  ;;  %1866 = vmatprep.mubr.bf16.mxu0 %v7888_v6  ;;  %v6499_v4 = vld [vmem:[#allocation5 + $0x26c] ss:$16 sps:$4 sm:$0xff]  }
 0x1a8   : > { %1921 = vmatprep.subr.bf16.mxu0 %v6379_v5  ;;  %v6544_v5 = vld [vmem:[#allocation7 + $0x24] ss:$8 sps:$4 sm:$0xff]   ;;  %2139 = vmatprep.subr.bf16.mxu1 %v6499_v4  ;;  %v6575_v4 = vld [vmem:[#allocation7 + $0xd0] ss:$8 sps:$4 sm:$0xff]  }
 0x1aa   : > { %2140 = vmatpush1.bf16.msra.mxu1 %v6497_v40  ;;  %v6533_v40 = vld [vmem:[#allocation5 + $0x3e8] ss:$16 sps:$4 sm:$0xff]  }
 0x1ab   : > { %1922 = vmatpush1.bf16.msra.mxu0 %v6377_v9  ;;  %v6547_v9 = vld [vmem:[#allocation7 + $0x34] ss:$8 sps:$4 sm:$0xff]   ;;  %2073 = vmatmul.mubr.bf16.gmra.mrb[8].mxu1 %v7877_v57 }
 0x1ac   : > { %1923 = vmatprep.subr.bf16.mxu0 %v6385_v10  ;;  %v6502_v10 = vld [vmem:[#allocation5 + $0x28c] ss:$16 sps:$4 sm:$0xff]   ;;  %2082 = vmatprep.mubr.bf16.mxu1 %v7880_v60  ;;  %v6509_v60 = vld [vmem:[#allocation5 + $0x2e8] ss:$16 sps:$4 sm:$0xff]  }
 0x1ad   : > { %2141 = vmatprep.subr.bf16.mxu1 %v6502_v10  ;;  %v7958_v57 = vld [vmem:[%s7837_s11 + $0x8c] ss:$16 sps:$4 sm:$0xff]   ;;  %v6590_v10 = vld [vmem:[#allocation8 + $0x20] ss:$8 sps:$4 sm:$0xff]  }
 0x1ae   : > { %1867 = vmatmul.mubr.bf16.gmra.mrb[16].mxu0 %v7893_v13  ;;  %2142 = vmatpush1.bf16.msra.mxu1 %v6500_v12  ;;  %v6595_v12 = vld [vmem:[#allocation8 + $0x34] ss:$8 sps:$4 sm:$0xff]  }
 0x1af   : > { %1924 = vmatpush1.bf16.msra.mxu0 %v6383_v14  ;;  %1876 = vmatprep.mubr.bf16.mxu0 %v7896_v16  ;;  %v6505_v14 = vld [vmem:[#allocation5 + $0x2ac] ss:$16 sps:$4 sm:$0xff]  }
 0x1b0   : > { %1925 = vmatprep.subr.bf16.mxu0 %v6388_v15  ;;  %v6550_v15 = vld [vmem:[#allocation7 + $0x44] ss:$8 sps:$4 sm:$0xff]   ;;  %2143 = vmatprep.subr.bf16.mxu1 %v6505_v14  ;;  %v6593_v14 = vld [vmem:[#allocation8 + $0x30] ss:$8 sps:$4 sm:$0xff]  }
 0x1b2   : > { %2144 = vmatpush1.bf16.msra.mxu1 %v6503_v50  ;;  %v6602_v50 = vld [vmem:[#allocation8 + $0x60] ss:$8 sps:$4 sm:$0xff]  }
 0x1b3   : > { %1926 = vmatpush1.bf16.msra.mxu0 %v6386_v19  ;;  %v6553_v19 = vld [vmem:[#allocation7 + $0x54] ss:$8 sps:$4 sm:$0xff]   ;;  %2083 = vmatmul.mubr.bf16.gmra.mrb[12].mxu1 %v7885_v3 }
 0x1b4   : > { %1927 = vmatprep.subr.bf16.mxu0 %v6394_v20  ;;  %v6508_v20 = vld [vmem:[#allocation5 + $0x2cc] ss:$16 sps:$4 sm:$0xff]   ;;  %2092 = vmatprep.mubr.bf16.mxu1 %v7888_v6  ;;  %v6515_v6 = vld [vmem:[#allocation5 + $0x328] ss:$16 sps:$4 sm:$0xff]  }
 0x1b5   : > { %2145 = vmatprep.subr.bf16.mxu1 %v6508_v20  ;;  %v7968_v3 = vld [vmem:[%s7837_s11 + $0xac] ss:$16 sps:$4 sm:$0xff]  }
 0x1b6   : > { %1877 = vmatmul.mubr.bf16.gmra.mrb[20].mxu0 %v7901_v23  ;;  %2146 = vmatpush1.bf16.msra.mxu1 %v6506_v22  ;;  %v6607_v20 = vld [vmem:[#allocation8 + $0x74] ss:$8 sps:$4 sm:$0xff]   ;;  %v6608_v22 = vld [vmem:[#allocation8 + $0x80] ss:$8 sps:$4 sm:$0xff]  }
 0x1b7   : > { %1928 = vmatpush1.bf16.msra.mxu0 %v6392_v24  ;;  %1886 = vmatprep.mubr.bf16.mxu0 %v7904_v26  ;;  %v6511_v24 = vld [vmem:[#allocation5 + $0x2ec] ss:$16 sps:$4 sm:$0xff]  }
 0x1b8   : > { %1929 = vmatprep.subr.bf16.mxu0 %v6397_v25  ;;  %v6556_v25 = vld [vmem:[#allocation7 + $0x64] ss:$8 sps:$4 sm:$0xff]   ;;  %2147 = vmatprep.subr.bf16.mxu1 %v6511_v24 }
 0x1b9   : > { %v6610_v24 = vld [vmem:[#allocation8 + $0x84] ss:$8 sps:$4 sm:$0xff]  }
 0x1ba   : > { %2148 = vmatpush1.bf16.msra.mxu1 %v6509_v60  ;;  %v2248_v60 = vlaneseq }
 0x1bb   : > { %1930 = vmatpush1.bf16.msra.mxu0 %v6395_v29  ;;  %v6559_v29 = vld [vmem:[#allocation7 + $0x74] ss:$8 sps:$4 sm:$0xff]   ;;  %2093 = vmatmul.mubr.bf16.gmra.mrb[16].mxu1 %v7893_v13 }
 0x1bc   : > { %1931 = vmatprep.subr.bf16.mxu0 %v6403_v30  ;;  %v6514_v30 = vld [vmem:[#allocation5 + $0x30c] ss:$16 sps:$4 sm:$0xff]   ;;  %2102 = vmatprep.mubr.bf16.mxu1 %v7896_v16  ;;  %v6521_v16 = vld [vmem:[#allocation5 + $0x368] ss:$16 sps:$4 sm:$0xff]  }
 0x1bd   : > { %2149 = vmatprep.subr.bf16.mxu1 %v6514_v30  ;;  %v7978_v13 = vld [vmem:[%s7837_s11 + $0xcc] ss:$16 sps:$4 sm:$0xff]   ;;  %v6617_v30 = vld [vmem:[#allocation8 + $0xb0] ss:$8 sps:$4 sm:$0xff]  }
 0x1be   : > { %1887 = vmatmul.mubr.bf16.gmra.mrb[24].mxu0 %v7909_v33  ;;  %2150 = vmatpush1.bf16.msra.mxu1 %v6512_v32  ;;  %v6620_v32 = vld [vmem:[#allocation8 + $0xc0] ss:$8 sps:$4 sm:$0xff]  }
 0x1bf   : > { %1932 = vmatpush1.bf16.msra.mxu0 %v6401_v35  ;;  %1896 = vmatprep.mubr.bf16.mxu0 %v7912_v37  ;;  %v6517_v35 = vld [vmem:[#allocation5 + $0x32c] ss:$16 sps:$4 sm:$0xff]  }
 0x1c0   : > { %1933 = vmatprep.subr.bf16.mxu0 %v6406_v36  ;;  %v6562_v36 = vld [vmem:[#allocation7 + $0x84] ss:$8 sps:$4 sm:$0xff]   ;;  %2151 = vmatprep.subr.bf16.mxu1 %v6517_v35 }
 0x1c1   : > { %v6622_v35 = vld [vmem:[#allocation8 + $0xc4] ss:$8 sps:$4 sm:$0xff]  }
 0x1c2   : > { %2152 = vmatpush1.bf16.msra.mxu1 %v6515_v6 }
 0x1c3   : > { %1934 = vmatpush1.bf16.msra.mxu0 %v6404_v41  ;;  %v6565_v41 = vld [vmem:[#allocation7 + $0x94] ss:$8 sps:$4 sm:$0xff]   ;;  %2103 = vmatmul.mubr.bf16.gmra.mrb[20].mxu1 %v7901_v23 }
 0x1c4   : > { %1935 = vmatprep.subr.bf16.mxu0 %v6412_v42  ;;  %v6520_v42 = vld [vmem:[#allocation5 + $0x34c] ss:$16 sps:$4 sm:$0xff]   ;;  %2112 = vmatprep.mubr.bf16.mxu1 %v7904_v26  ;;  %v6572_v26 = vld [vmem:[#allocation7 + $0xc0] ss:$8 sps:$4 sm:$0xff]  }
 0x1c5   : > { %2153 = vmatprep.subr.bf16.mxu1 %v6520_v42  ;;  %v6529_v23 = vld [vmem:[#allocation5 + $0x3ac] ss:$16 sps:$4 sm:$0xff]  }
 0x1c6   : > { %1897 = vmatmul.mubr.bf16.gmra.mrb[28].mxu0 %v7917_v45  ;;  %2154 = vmatpush1.bf16.msra.mxu1 %v6518_v44 }
 0x1c7   : > { %1936 = vmatpush1.bf16.msra.mxu0 %v6410_v46  ;;  %1939 = vmatprep.mubr.bf16.mxu0 %v7920_v49  ;;  %v6523_v46 = vld [vmem:[#allocation5 + $0x36c] ss:$16 sps:$4 sm:$0xff]  }
 0x1c8   : > { %1937 = vmatprep.subr.bf16.mxu0 %v6415_v48  ;;  %v6568_v48 = vld [vmem:[#allocation7 + $0xa4] ss:$8 sps:$4 sm:$0xff]   ;;  %2155 = vmatprep.subr.bf16.mxu1 %v6523_v46 }
 0x1ca   : > { %2156 = vmatpush1.bf16.msra.mxu1 %v6521_v16 }
 0x1cb   : > { %1938 = vmatpush1.bf16.msra.mxu0 %v6413_v53  ;;  %v6571_v53 = vld [vmem:[#allocation7 + $0xb4] ss:$8 sps:$4 sm:$0xff]   ;;  %2157 = vmatprep.subr.bf16.mxu1 %v6526_v54 }
 0x1cc   : > { %2542 = vmatprep.subr.bf16.mxu0 %v6538_v61  ;;  %v6574_v61 = vld [vmem:[#allocation7 + $0xc4] ss:$8 sps:$4 sm:$0xff]   ;;  %2113 = vmatmul.mubr.bf16.gmra.mrb[24].mxu1 %v7909_v33 }
 0x1cd   : > { %2122 = vmatprep.mubr.bf16.mxu1 %v7912_v37  ;;  %v6535_v33 = vld [vmem:[#allocation5 + $0x3ec] ss:$16 sps:$4 sm:$0xff]  }
 0x1ce   : > { %1940 = vmatmul.mubr.bf16.vlgmr.msra.gmra.mrb[0].mxu0 %v7925_v55  ;;  %v6580_v37 = vld [vmem:[#allocation7 + $0xe4] ss:$8 sps:$4 sm:$0xff]  }
 0x1cf   : > { %1949 = vmatprep.mubr.bf16.mxu0 %v7928_v58  ;;  %2543 = vmatpush1.bf16.msra.mxu0 %v6536_v59  ;;  %v6524_v59 = vld [vmem:[#allocation5 + $0x388] ss:$16 sps:$4 sm:$0xff]  }
 0x1d0   : > { %2544 = vmatprep.subr.bf16.mxu0 %v6541_v63  ;;  %v6455_v63 = vld [vmem:[%s7837_s11 + $0xec] ss:$16 sps:$4 sm:$0xff]   ;;  %2158 = vmatpush1.bf16.msra.mxu1 %v6524_v59 }
 0x1d1   : > { %2159 = vmatprep.subr.bf16.mxu1 %v6529_v23 }
 0x1d3   : > { %2545 = vmatpush1.bf16.msra.mxu0 %v6539_v1  ;;  %v6577_v1 = vld [vmem:[#allocation7 + $0xd4] ss:$8 sps:$4 sm:$0xff]  }
 0x1d4   : > { %2546 = vmatprep.subr.bf16.mxu0 %v6544_v5  ;;  %2160 = vmatpush1.bf16.msra.mxu1 %v6527_v0  ;;  %v6530_v5 = vld [vmem:[#allocation5 + $0x3c8] ss:$16 sps:$4 sm:$0xff]  }
 0x1d5   : > { %2161 = vmatprep.subr.bf16.mxu1 %v6532_v2  ;;  %2123 = vmatmul.mubr.bf16.gmra.mrb[28].mxu1 %v7917_v45  ;;  %v6578_v45 = vld [vmem:[#allocation7 + $0xe0] ss:$8 sps:$4 sm:$0xff]  }
 0x1d6   : > { %1950 = vmatmul.mubr.bf16.gmra.mrb[4].mxu0 %v7935_v7  ;;  %2165 = vmatprep.mubr.bf16.mxu1 %v7920_v49  ;;  %v6583_v49 = vld [vmem:[#allocation7 + $0xf4] ss:$8 sps:$4 sm:$0xff]  }
 0x1d7   : > { %1959 = vmatprep.mubr.bf16.mxu0 %v7938_v34  ;;  %2547 = vmatpush1.bf16.msra.mxu0 %v6542_v8  ;;  %v6457_v8 = vld [vmem:[%s7837_s11 + $0xe8] ss:$16 sps:$4 sm:$0xff]   ;;  %s9505_s11 = sld [smem:[#allocation60_spill]] }
 0x1d8   : > { %2548 = vmatprep.subr.bf16.mxu0 %v6547_v9  ;;  %2162 = vmatpush1.bf16.msra.mxu1 %v6530_v5  ;;  %v6587_v9 = vld [vmem:[#allocation8 + $0x10] ss:$8 sps:$4 sm:$0xff]  }
 0x1d9   : > { %2163 = vmatprep.subr.bf16.mxu1 %v6535_v33 }
 0x1db   : > { %2549 = vmatpush1.bf16.msra.mxu0 %v6545_v11  ;;  %v6592_v11 = vld [vmem:[#allocation8 + $0x24] ss:$8 sps:$4 sm:$0xff]  }
 0x1dc   : > { %2550 = vmatprep.subr.bf16.mxu0 %v6550_v15  ;;  %2164 = vmatpush1.bf16.msra.mxu1 %v6533_v40  ;;  %v6596_v15 = vld [vmem:[#allocation8 + $0x40] ss:$8 sps:$4 sm:$0xff]  }
 0x1de   : > { %1960 = vmatmul.mubr.bf16.gmra.mrb[8].mxu0 %v7945_v17 }
 0x1df   : > { %1969 = vmatprep.mubr.bf16.mxu0 %v7948_v47  ;;  %2551 = vmatpush1.bf16.msra.mxu0 %v6548_v18  ;;  %v6599_v18 = vld [vmem:[#allocation8 + $0x50] ss:$8 sps:$4 sm:$0xff]  }
 0x1e0   : > { %2552 = vmatprep.subr.bf16.mxu0 %v6553_v19  ;;  %2166 = vmatmul.mubr.bf16.vlgmr.msra.gmra.mrb[0].mxu1 %v7925_v55  ;;  %v6581_v55 = vld [vmem:[#allocation7 + $0xf0] ss:$8 sps:$4 sm:$0xff]   ;;  %v6604_v19 = vld [vmem:[#allocation8 + $0x64] ss:$8 sps:$4 sm:$0xff]  }
 0x1e1   : > { %2175 = vmatprep.mubr.bf16.mxu1 %v7928_v58  ;;  %v6584_v58 = vld [vmem:[#allocation8] ss:$8 sps:$4 sm:$0xff]  }
 0x1e3   : > { %2553 = vmatpush1.bf16.msra.mxu0 %v6551_v21  ;;  %v6605_v21 = vld [vmem:[#allocation8 + $0x70] ss:$8 sps:$4 sm:$0xff]  }
 0x1e4   : > { %2554 = vmatprep.subr.bf16.mxu0 %v6556_v25  ;;  %v6613_v25 = vld [vmem:[#allocation8 + $0x94] ss:$8 sps:$4 sm:$0xff]  }
 0x1e6   : > { %1970 = vmatmul.mubr.bf16.gmra.mrb[12].mxu0 %v7955_v27 }
 0x1e7   : > { %1979 = vmatprep.mubr.bf16.mxu0 %v7958_v57  ;;  %2555 = vmatpush1.bf16.msra.mxu0 %v6554_v28  ;;  %v6616_v28 = vld [vmem:[#allocation8 + $0xa4] ss:$8 sps:$4 sm:$0xff]  }
 0x1e8   : > { %2556 = vmatprep.subr.bf16.mxu0 %v6559_v29  ;;  %2176 = vmatmul.mubr.bf16.gmra.mrb[4].mxu1 %v7935_v7  ;;  %v6586_v7 = vld [vmem:[#allocation8 + $0x4] ss:$8 sps:$4 sm:$0xff]   ;;  %v6619_v29 = vld [vmem:[#allocation8 + $0xb4] ss:$8 sps:$4 sm:$0xff]  }
 0x1e9   : > { %2185 = vmatprep.mubr.bf16.mxu1 %v7938_v34  ;;  %v6589_v34 = vld [vmem:[#allocation8 + $0x14] ss:$8 sps:$4 sm:$0xff]   ;;  %2939 = vmatprep.subr.bf16.mxu1 %v6586_v7 }
 0x1ea   : > { %2940 = vmatpush1.bf16.msra.mxu1 %v6584_v58 }
 0x1eb   : > { %2557 = vmatpush1.bf16.msra.mxu0 %v6557_v31  ;;  %2941 = vmatprep.subr.bf16.mxu1 %v6589_v34  ;;  %v8003_v31 = vshrl.u32 %v2248_v60, 7 }
 0x1ec   : > { %2558 = vmatprep.subr.bf16.mxu0 %v6562_v36 }
 0x1ed   : > { %v8006_v36 = vsub.s32 0, %v8003_v31 }
 0x1ee   : > { %1980 = vmatmul.mubr.bf16.gmra.mrb[16].mxu0 %v7965_v38  ;;  %2942 = vmatpush1.bf16.msra.mxu1 %v6587_v9 }
 0x1ef   : > { %1989 = vmatprep.mubr.bf16.mxu0 %v7968_v3  ;;  %2559 = vmatpush1.bf16.msra.mxu0 %v6560_v39 }
 0x1f0   : > { %2560 = vmatprep.subr.bf16.mxu0 %v6565_v41  ;;  %2186 = vmatmul.mubr.bf16.gmra.mrb[8].mxu1 %v7945_v17  ;;  %v6598_v17 = vld [vmem:[#allocation8 + $0x44] ss:$8 sps:$4 sm:$0xff]  }
 0x1f1   : > { %2195 = vmatprep.mubr.bf16.mxu1 %v7948_v47  ;;  %2943 = vmatprep.subr.bf16.mxu1 %v6592_v11  ;;  %v6601_v47 = vld [vmem:[#allocation8 + $0x54] ss:$8 sps:$4 sm:$0xff]  }
 0x1f2   : > { %2944 = vmatpush1.bf16.msra.mxu1 %v6590_v10 }
 0x1f3   : > { %2561 = vmatpush1.bf16.msra.mxu0 %v6563_v43  ;;  %2945 = vmatprep.subr.bf16.mxu1 %v6595_v12 }
 0x1f4   : > { %2562 = vmatprep.subr.bf16.mxu0 %v6568_v48 }
 0x1f6   : > { %1990 = vmatmul.mubr.bf16.gmra.mrb[20].mxu0 %v7975_v51  ;;  %2946 = vmatpush1.bf16.msra.mxu1 %v6593_v14 }
 0x1f7   : > { %1999 = vmatprep.mubr.bf16.mxu0 %v7978_v13  ;;  %2563 = vmatpush1.bf16.msra.mxu0 %v6566_v52 }
 0x1f8   : > { %2564 = vmatprep.subr.bf16.mxu0 %v6571_v53  ;;  %2196 = vmatmul.mubr.bf16.gmra.mrb[12].mxu1 %v7955_v27  ;;  %v6611_v27 = vld [vmem:[#allocation8 + $0x90] ss:$8 sps:$4 sm:$0xff]  }
 0x1f9   : > { %2205 = vmatprep.mubr.bf16.mxu1 %v7958_v57  ;;  %2947 = vmatprep.subr.bf16.mxu1 %v6598_v17  ;;  %v6614_v57 = vld [vmem:[#allocation8 + $0xa0] ss:$8 sps:$4 sm:$0xff]  }
 0x1fa   : > { %2948 = vmatpush1.bf16.msra.mxu1 %v6596_v15 }
 0x1fb   : > { %2565 = vmatpush1.bf16.msra.mxu0 %v6569_v56  ;;  %2949 = vmatprep.subr.bf16.mxu1 %v6601_v47 }
 0x1fc   : > { %2566 = vmatprep.subr.bf16.mxu0 %v6574_v61 }
 0x1fe   : > { %2000 = vmatmul.mubr.bf16.gmra.mrb[24].mxu0 %v6448_v62  ;;  %2950 = vmatpush1.bf16.msra.mxu1 %v6599_v18 }
 0x1ff   : > { %2009 = vmatprep.mubr.bf16.mxu0 %v6455_v63  ;;  %2567 = vmatpush1.bf16.msra.mxu0 %v6572_v26 }
 0x200   : > { %2568 = vmatprep.subr.bf16.mxu0 %v6577_v1  ;;  %2206 = vmatmul.mubr.bf16.gmra.mrb[16].mxu1 %v7965_v38  ;;  %v2246_v38 = vld [vmem:[%s9499_s0] sm:$0x3]  ;;  %s9506_s0 = sld [smem:[#allocation62_spill]] }
 0x201   : > { %2215 = vmatprep.mubr.bf16.mxu1 %v7968_v3  ;;  %2951 = vmatprep.subr.bf16.mxu1 %v6604_v19  ;;  %v8012_v3 = vsub.s32 1, %v8003_v31  ;;  %v8015_v39 = vrot.slane %v2246_v38, %v8006_v36 }
 0x202   : > { %2952 = vmatpush1.bf16.msra.mxu1 %v6602_v50 }
 0x203   : > { %2569 = vmatpush1.bf16.msra.mxu0 %v6575_v4  ;;  %2953 = vmatprep.subr.bf16.mxu1 %v6607_v20  ;;  %v8018_v6 = vrot.slane %v2246_v38, %v8012_v3 }
 0x204   : > { %2570 = vmatprep.subr.bf16.mxu0 %v6580_v37 }
 0x206   : > { %2010 = vmatmul.mubr.bf16.gmra.mrb[28].mxu0 %v6457_v8  ;;  %2954 = vmatpush1.bf16.msra.mxu1 %v6605_v21 }
 0x207   : > { %2571 = vmatpush1.bf16.msra.mxu0 %v6578_v45  ;;  %2955 = vmatprep.subr.bf16.mxu1 %v6610_v24 }
 0x208   : > { %2572 = vmatprep.subr.bf16.mxu0 %v6583_v49  ;;  %2216 = vmatmul.mubr.bf16.gmra.mrb[20].mxu1 %v7975_v51 }
 0x209   : > { %2225 = vmatprep.mubr.bf16.mxu1 %v7978_v13 }
 0x20a   : > { %2956 = vmatpush1.bf16.msra.mxu1 %v6608_v22 }
 0x20b   : > { %2573 = vmatpush1.bf16.msra.mxu0 %v6581_v55  ;;  %2957 = vmatprep.subr.bf16.mxu1 %v6613_v25 }
 0x20e   : > { %2958 = vmatpush1.bf16.msra.mxu1 %v6611_v27 }
 0x20f   : > { %2959 = vmatprep.subr.bf16.mxu1 %v6616_v28 }
 0x210   : > { %2226 = vmatmul.mubr.bf16.gmra.mrb[24].mxu1 %v6448_v62 }
 0x211   : > { %2235 = vmatprep.mubr.bf16.mxu1 %v6455_v63 }
 0x212   : > { %2960 = vmatpush1.bf16.msra.mxu1 %v6614_v57 }
 0x213   : > { %2961 = vmatprep.subr.bf16.mxu1 %v6619_v29 }
 0x216   : > { %2962 = vmatpush1.bf16.msra.mxu1 %v6617_v30 }
 0x217   : > { %2963 = vmatprep.subr.bf16.mxu1 %v6622_v35 }
 0x218   : > { %2236 = vmatmul.mubr.bf16.gmra.mrb[28].mxu1 %v6457_v8 }
 0x21a   : > { %2964 = vmatpush1.bf16.msra.mxu1 %v6620_v32 }
 0x2a1   : > { %v1941_v41 = vpop.f32.mrb[0].mxu0 }
 0x2a2   : > { %v2258_v42 = vadd.f32 %v8015_v39, %v1941_v41  ;;  %v1943_v43 = vpop.f32.mrb[1].mxu0 }
 0x2a3   : > { %v2259_v44 = vadd.f32 %v8018_v6, %v1943_v43  ;;  %v1945_v46 = vpop.f32.mrb[2].mxu0 }
 0x2a4   : > { %v2260_v48 = vadd.f32 %v8015_v39, %v1945_v46  ;;  %v1947_v51 = vpop.f32.mrb[3].mxu0  ;;  %v2290_v52 = vmax.f32 %v2258_v42, 0.0 }
 0x2a5   : > { %v2261_v13 = vadd.f32 %v8018_v6, %v1947_v51  ;;  %v2291_v53 = vmax.f32 %v2259_v44, 0.0 }
 0x2a6   : > { %v2292_v16 = vmax.f32 %v2260_v48, 0.0 }
 0x2a7   : > { %v2293_v54 = vmax.f32 %v2261_v13, 0.0 }
 0x2a8   : > { %v2322_v56 = vpack.c.bf16 %v2292_v16, %v2290_v52 }
 0x2a9   : > { %v2323_v59 = vpack.c.bf16 %v2293_v54, %v2291_v53  ;;  %v1951_v23 = vpop.f32.mrb[4].mxu0 }
 0x2aa   : > { %v2262_v61 = vadd.f32 %v8015_v39, %v1951_v23  ;;  %v1953_v62 = vpop.f32.mrb[5].mxu0 }
 0x2ab   : > { %v2263_v63 = vadd.f32 %v8018_v6, %v1953_v62  ;;  %v1955_v26 = vpop.f32.mrb[6].mxu0  ;;  %2574 = vmatprep.mubr.bf16.mxu0 %v2323_v59 }
 0x2ac   : > { %v2264_v0 = vadd.f32 %v8015_v39, %v1955_v26  ;;  %v1957_v1 = vpop.f32.mrb[7].mxu0  ;;  %2575 = vmatmul.mubr.bf16.vlgmr.msra.gmra.mrb[32].mxu0 %v2322_v56  ;;  %v2294_v4 = vmax.f32 %v2262_v61, 0.0 }
 0x2ad   : > { %v2265_v2 = vadd.f32 %v8018_v6, %v1957_v1  ;;  %v2295_v33 = vmax.f32 %v2263_v63, 0.0 }
 0x2ae   : > { %v2296_v5 = vmax.f32 %v2264_v0, 0.0 }
 0x2af   : > { %v2297_v8 = vmax.f32 %v2265_v2, 0.0 }
 0x2b0   : > { %v2324_v40 = vpack.c.bf16 %v2296_v5, %v2294_v4 }
 0x2b1   : > { %v2325_v37 = vpack.c.bf16 %v2297_v8, %v2295_v33  ;;  %v1961_v45 = vpop.f32.mrb[8].mxu0 }
 0x2b2   : > { %v2266_v49 = vadd.f32 %v8015_v39, %v1961_v45  ;;  %v1963_v55 = vpop.f32.mrb[9].mxu0 }
 0x2b3   : > { %v2267_v58 = vadd.f32 %v8018_v6, %v1963_v55  ;;  %v1965_v7 = vpop.f32.mrb[10].mxu0  ;;  %2584 = vmatprep.mubr.bf16.mxu0 %v2325_v37 }
 0x2b4   : > { %v2268_v34 = vadd.f32 %v8015_v39, %v1965_v7  ;;  %v1967_v9 = vpop.f32.mrb[11].mxu0  ;;  %2585 = vmatmul.mubr.bf16.gmra.mrb[36].mxu0 %v2324_v40  ;;  %v2298_v11 = vmax.f32 %v2266_v49, 0.0 }
 0x2b5   : > { %v2269_v10 = vadd.f32 %v8018_v6, %v1967_v9  ;;  %v2299_v14 = vmax.f32 %v2267_v58, 0.0 }
 0x2b6   : > { %v2300_v12 = vmax.f32 %v2268_v34, 0.0 }
 0x2b7   : > { %v2301_v15 = vmax.f32 %v2269_v10, 0.0 }
 0x2b8   : > { %v2326_v17 = vpack.c.bf16 %v2300_v12, %v2298_v11 }
 0x2b9   : > { %v2327_v47 = vpack.c.bf16 %v2301_v15, %v2299_v14  ;;  %v1971_v18 = vpop.f32.mrb[12].mxu0 }
 0x2ba   : > { %v2270_v50 = vadd.f32 %v8015_v39, %v1971_v18  ;;  %v1973_v19 = vpop.f32.mrb[13].mxu0 }
 0x2bb   : > { %v2271_v20 = vadd.f32 %v8018_v6, %v1973_v19  ;;  %v1975_v21 = vpop.f32.mrb[14].mxu0  ;;  %2594 = vmatprep.mubr.bf16.mxu0 %v2327_v47 }
 0x2bc   : > { %v2272_v22 = vadd.f32 %v8015_v39, %v1975_v21  ;;  %v1977_v24 = vpop.f32.mrb[15].mxu0  ;;  %2595 = vmatmul.mubr.bf16.gmra.mrb[40].mxu0 %v2326_v17  ;;  %v2302_v27 = vmax.f32 %v2270_v50, 0.0 }
 0x2bd   : > { %v2273_v25 = vadd.f32 %v8018_v6, %v1977_v24  ;;  %v2303_v28 = vmax.f32 %v2271_v20, 0.0 }
 0x2be   : > { %v2304_v57 = vmax.f32 %v2272_v22, 0.0 }
 0x2bf   : > { %v2305_v60 = vmax.f32 %v2273_v25, 0.0  ;;  %v8052_v25 = vpop.f32.mrb[0].mxu1 }
 0x2c0   : > { %v2328_v29 = vpack.c.bf16 %v2304_v57, %v2302_v27 }
 0x2c1   : > { %v2329_v30 = vpack.c.bf16 %v2305_v60, %v2303_v28  ;;  %v1981_v32 = vpop.f32.mrb[16].mxu0  ;;  %v2169_v28 = vpop.f32.mrb[1].mxu1 }
 0x2c2   : > { %v2274_v35 = vadd.f32 %v8015_v39, %v1981_v32  ;;  %v1983_v38 = vpop.f32.mrb[17].mxu0 }
 0x2c3   : > { %v2275_v41 = vadd.f32 %v8018_v6, %v1983_v38  ;;  %v1985_v42 = vpop.f32.mrb[18].mxu0  ;;  %2604 = vmatprep.mubr.bf16.mxu0 %v2329_v30 }
 0x2c4   : > { %v2276_v43 = vadd.f32 %v8015_v39, %v1985_v42  ;;  %v1987_v44 = vpop.f32.mrb[19].mxu0  ;;  %2605 = vmatmul.mubr.bf16.gmra.mrb[44].mxu0 %v2328_v29  ;;  %v2306_v48 = vmax.f32 %v2274_v35, 0.0  ;;  %v2171_v29 = vpop.f32.mrb[2].mxu1 }
 0x2c5   : > { %v2277_v46 = vadd.f32 %v8018_v6, %v1987_v44  ;;  %v2307_v13 = vmax.f32 %v2275_v41, 0.0  ;;  %v2173_v32 = vpop.f32.mrb[3].mxu1 }
 0x2c6   : > { %v2308_v51 = vmax.f32 %v2276_v43, 0.0  ;;  %v8054_v35 = vpop.f32.mrb[4].mxu1 }
 0x2c7   : > { %v2309_v52 = vmax.f32 %v2277_v46, 0.0 }
 0x2c8   : > { %v2330_v16 = vpack.c.bf16 %v2308_v51, %v2306_v48 }
 0x2c9   : > { %v2331_v53 = vpack.c.bf16 %v2309_v52, %v2307_v13  ;;  %v1991_v54 = vpop.f32.mrb[20].mxu0 }
 0x2ca   : > { %v2278_v56 = vadd.f32 %v8015_v39, %v1991_v54  ;;  %v1993_v59 = vpop.f32.mrb[21].mxu0  ;;  %v6623_v54 = vld [vmem:[#allocation8 + $0xd0] ss:$8 sps:$4 sm:$0xff]  }
 0x2cb   : > { %v2279_v23 = vadd.f32 %v8018_v6, %v1993_v59  ;;  %v1995_v61 = vpop.f32.mrb[22].mxu0  ;;  %2614 = vmatprep.mubr.bf16.mxu0 %v2331_v53 }
 0x2cc   : > { %v2280_v62 = vadd.f32 %v8015_v39, %v1995_v61  ;;  %v1997_v63 = vpop.f32.mrb[23].mxu0  ;;  %2615 = vmatmul.mubr.bf16.gmra.mrb[48].mxu0 %v2330_v16  ;;  %v2310_v0 = vmax.f32 %v2278_v56, 0.0  ;;  %v6625_v16 = vld [vmem:[#allocation8 + $0xd4] ss:$8 sps:$4 sm:$0xff]   ;;  %v6626_v61 = vld [vmem:[#allocation8 + $0xe0] ss:$8 sps:$4 sm:$0xff]  }
 0x2cd   : > { %v2281_v26 = vadd.f32 %v8018_v6, %v1997_v63  ;;  %v2311_v2 = vmax.f32 %v2279_v23, 0.0  ;;  %2965 = vmatprep.subr.bf16.mxu1 %v6625_v16  ;;  %v6628_v23 = vld [vmem:[#allocation8 + $0xe4] ss:$8 sps:$4 sm:$0xff]   ;;  %v6631_v63 = vld [vmem:[#allocation8 + $0xf4] ss:$8 sps:$4 sm:$0xff]  }
 0x2ce   : > { %v2312_v1 = vmax.f32 %v2280_v62, 0.0  ;;  %2966 = vmatpush1.bf16.msra.mxu1 %v6623_v54 }
 0x2cf   : > { %v2313_v4 = vmax.f32 %v2281_v26, 0.0  ;;  %2967 = vmatprep.subr.bf16.mxu1 %v6628_v23 }
 0x2d0   : > { %v2332_v5 = vpack.c.bf16 %v2312_v1, %v2310_v0  ;;  %v6629_v0 = vld [vmem:[#allocation8 + $0xf0] ss:$8 sps:$4 sm:$0xff]  }
 0x2d1   : > { %v2333_v33 = vpack.c.bf16 %v2313_v4, %v2311_v2  ;;  %v2001_v8 = vpop.f32.mrb[24].mxu0 }
 0x2d2   : > { %v2282_v40 = vadd.f32 %v8015_v39, %v2001_v8  ;;  %v2003_v37 = vpop.f32.mrb[25].mxu0  ;;  %2968 = vmatpush1.bf16.msra.mxu1 %v6626_v61 }
 0x2d3   : > { %v2283_v45 = vadd.f32 %v8018_v6, %v2003_v37  ;;  %v2005_v49 = vpop.f32.mrb[26].mxu0  ;;  %2624 = vmatprep.mubr.bf16.mxu0 %v2333_v33  ;;  %2969 = vmatprep.subr.bf16.mxu1 %v6631_v63 }
 0x2d4   : > { %v2284_v55 = vadd.f32 %v8015_v39, %v2005_v49  ;;  %v2007_v58 = vpop.f32.mrb[27].mxu0  ;;  %2625 = vmatmul.mubr.bf16.gmra.mrb[52].mxu0 %v2332_v5  ;;  %v2314_v34 = vmax.f32 %v2282_v40, 0.0 }
 0x2d5   : > { %v2285_v7 = vadd.f32 %v8018_v6, %v2007_v58  ;;  %v2315_v10 = vmax.f32 %v2283_v45, 0.0 }
 0x2d6   : > { %v2316_v9 = vmax.f32 %v2284_v55, 0.0  ;;  %2970 = vmatpush1.bf16.msra.mxu1 %v6629_v0  ;;  %v2370_v55 = vld [vmem:[%s9500_s5] sm:$0x3]  ;;  %s9504_s5 = sld [smem:[#allocation58_spill]] }
 0x2d7   : > { %v2317_v11 = vmax.f32 %v2285_v7, 0.0  ;;  %v8114_v58 = vrot.slane %v2370_v55, %v8006_v36  ;;  %v8117_v7 = vrot.slane %v2370_v55, %v8012_v3 }
 0x2d8   : > { %v2334_v12 = vpack.c.bf16 %v2316_v9, %v2314_v34 }
 0x2d9   : > { %v2335_v14 = vpack.c.bf16 %v2317_v11, %v2315_v10  ;;  %v2011_v15 = vpop.f32.mrb[28].mxu0 }
 0x2da   : > { %v2286_v17 = vadd.f32 %v8015_v39, %v2011_v15  ;;  %v2013_v47 = vpop.f32.mrb[29].mxu0 }
 0x2db   : > { %v2287_v18 = vadd.f32 %v8018_v6, %v2013_v47  ;;  %v2015_v50 = vpop.f32.mrb[30].mxu0  ;;  %2634 = vmatprep.mubr.bf16.mxu0 %v2335_v14 }
 0x2dc   : > { %v2288_v19 = vadd.f32 %v8015_v39, %v2015_v50  ;;  %v2017_v20 = vpop.f32.mrb[31].mxu0  ;;  %2635 = vmatmul.mubr.bf16.gmra.mrb[56].mxu0 %v2334_v12  ;;  %v2318_v22 = vmax.f32 %v2286_v17, 0.0  ;;  %v8056_v39 = vpop.f32.mrb[5].mxu1 }
 0x2dd   : > { %v2289_v21 = vadd.f32 %v8018_v6, %v2017_v20  ;;  %v2319_v27 = vmax.f32 %v2287_v18, 0.0  ;;  %v8058_v38 = vpop.f32.mrb[6].mxu1 }
 0x2de   : > { %v2320_v24 = vmax.f32 %v2288_v19, 0.0  ;;  %v8060_v6 = vpop.f32.mrb[7].mxu1 }
 0x2df   : > { %v2321_v57 = vmax.f32 %v2289_v21, 0.0  ;;  %v8062_v41 = vpop.f32.mrb[8].mxu1 }
 0x2e0   : > { %v2336_v60 = vpack.c.bf16 %v2320_v24, %v2318_v22  ;;  %v8064_v42 = vpop.f32.mrb[9].mxu1 }
 0x2e1   : > { %v2337_v30 = vpack.c.bf16 %v2321_v57, %v2319_v27  ;;  %v8066_v43 = vpop.f32.mrb[10].mxu1 }
 0x2e2   : > { %v8068_v44 = vpop.f32.mrb[11].mxu1 }
 0x2e3   : > { %2644 = vmatprep.mubr.bf16.mxu0 %v2337_v30  ;;  %v8070_v46 = vpop.f32.mrb[12].mxu1 }
 0x2e4   : > { %2645 = vmatmul.mubr.bf16.gmra.mrb[60].mxu0 %v2336_v60  ;;  %v8072_v48 = vpop.f32.mrb[13].mxu1 }
 0x2e5   : > { %v8074_v51 = vpop.f32.mrb[14].mxu1 }
 0x2e6   : > { %v8076_v13 = vpop.f32.mrb[15].mxu1 }
 0x2e7   : > { %v8078_v52 = vpop.f32.mrb[16].mxu1 }
 0x2e8   : > { %v8080_v53 = vpop.f32.mrb[17].mxu1 }
 0x2e9   : > { %v8082_v56 = vpop.f32.mrb[18].mxu1 }
 0x2ea   : > { %v8084_v59 = vpop.f32.mrb[19].mxu1 }
 0x2eb   : > { %v8086_v62 = vpop.f32.mrb[20].mxu1 }
 0x2ec   : > { %v8088_v26 = vpop.f32.mrb[21].mxu1 }
 0x2ed   : > { %v8090_v1 = vpop.f32.mrb[22].mxu1 }
 0x2ee   : > { %v8092_v2 = vpop.f32.mrb[23].mxu1 }
 0x2ef   : > { %v8094_v4 = vpop.f32.mrb[24].mxu1 }
 0x2f0   : > { %v8096_v5 = vpop.f32.mrb[25].mxu1 }
 0x2f1   : > { %v8098_v33 = vpop.f32.mrb[26].mxu1 }
 0x2f2   : > { %v8100_v8 = vpop.f32.mrb[27].mxu1 }
 0x2f3   : > { %v8102_v40 = vpop.f32.mrb[28].mxu1 }
 0x2f4   : > { %v8104_v37 = vpop.f32.mrb[29].mxu1 }
 0x2f5   : > { %v8106_v45 = vpop.f32.mrb[30].mxu1 }
 0x2f6   : > { %v8108_v49 = vpop.f32.mrb[31].mxu1 }
 0x37f   : > { %v2576_v34 = vpop.f32.mrb[32].mxu0 }
 0x380   : > { %v2577_v9 = vadd.f32 %v2576_v34, %v8114_v58  ;;  %v2578_v10 = vpop.f32.mrb[33].mxu0 }
 0x381   : > { %v2579_v11 = vadd.f32 %v2578_v10, %v8117_v7  ;;  %v2580_v12 = vpop.f32.mrb[34].mxu0 }
 0x382   : > { %v2655_v14 = vmax.f32 %v2577_v9, 0.0  ;;  %v2581_v15 = vadd.f32 %v2580_v12, %v8114_v58  ;;  %v2582_v17 = vpop.f32.mrb[35].mxu0 }
 0x383   : > { %v2656_v47 = vmax.f32 %v2579_v11, 0.0  ;;  %v2583_v18 = vadd.f32 %v2582_v17, %v8117_v7 }
 0x384   : > { %v2687_v50 = vadd.f32 %v2655_v14, %v8052_v25  ;;  %v2657_v19 = vmax.f32 %v2581_v15, 0.0 }
 0x385   : > { %v2688_v20 = vadd.f32 %v2656_v47, %v2169_v28  ;;  %v2658_v21 = vmax.f32 %v2583_v18, 0.0 }
 0x386   : > { %v2689_v22 = vadd.f32 %v2657_v19, %v2171_v29 }
 0x387   : > { %v2690_v24 = vadd.f32 %v2658_v21, %v2173_v32  ;;  %v2586_v27 = vpop.f32.mrb[36].mxu0 }
 0x388   : > { %v2719_v57 = vpack.c.bf16 %v2689_v22, %v2687_v50  ;;  %v2587_v60 = vadd.f32 %v2586_v27, %v8114_v58  ;;  %v2588_v30 = vpop.f32.mrb[37].mxu0 }
 0x389   : > { %v2589_v16 = vadd.f32 %v2588_v30, %v8117_v7  ;;  %v2590_v54 = vpop.f32.mrb[38].mxu0  ;;  %v2720_v23 = vpack.c.bf16 %v2690_v24, %v2688_v20 }
 0x38a   : > { %v2659_v61 = vmax.f32 %v2587_v60, 0.0  ;;  %v2591_v63 = vadd.f32 %v2590_v54, %v8114_v58  ;;  %v2592_v0 = vpop.f32.mrb[39].mxu0 }
 0x38b   : > { %v2660_v55 = vmax.f32 %v2589_v16, 0.0  ;;  %v2593_v25 = vadd.f32 %v2592_v0, %v8117_v7  ;;  %2971 = vmatprep.mubr.bf16.mxu1 %v2720_v23 }
 0x38c   : > { %v2691_v28 = vadd.f32 %v2659_v61, %v8054_v35  ;;  %v2661_v29 = vmax.f32 %v2591_v63, 0.0  ;;  %2972 = vmatmul.mubr.bf16.vlgmr.msra.gmra.mrb[32].mxu1 %v2719_v57 }
 0x38d   : > { %v2692_v32 = vadd.f32 %v2660_v55, %v8056_v39  ;;  %v2662_v34 = vmax.f32 %v2593_v25, 0.0 }
 0x38e   : > { %v2693_v9 = vadd.f32 %v2661_v29, %v8058_v38 }
 0x38f   : > { %v2694_v10 = vadd.f32 %v2662_v34, %v8060_v6  ;;  %v2596_v11 = vpop.f32.mrb[40].mxu0 }
 0x390   : > { %v2597_v12 = vadd.f32 %v2596_v11, %v8114_v58  ;;  %v2598_v14 = vpop.f32.mrb[41].mxu0  ;;  %v2721_v15 = vpack.c.bf16 %v2693_v9, %v2691_v28 }
 0x391   : > { %v2599_v17 = vadd.f32 %v2598_v14, %v8117_v7  ;;  %v2600_v47 = vpop.f32.mrb[42].mxu0  ;;  %v2722_v18 = vpack.c.bf16 %v2694_v10, %v2692_v32 }
 0x392   : > { %v2663_v50 = vmax.f32 %v2597_v12, 0.0  ;;  %v2601_v35 = vadd.f32 %v2600_v47, %v8114_v58  ;;  %v2602_v19 = vpop.f32.mrb[43].mxu0 }
 0x393   : > { %v2664_v20 = vmax.f32 %v2599_v17, 0.0  ;;  %v2603_v39 = vadd.f32 %v2602_v19, %v8117_v7  ;;  %2981 = vmatprep.mubr.bf16.mxu1 %v2722_v18 }
 0x394   : > { %v2695_v38 = vadd.f32 %v2663_v50, %v8062_v41  ;;  %v2665_v6 = vmax.f32 %v2601_v35, 0.0  ;;  %2982 = vmatmul.mubr.bf16.gmra.mrb[36].mxu1 %v2721_v15 }
 0x395   : > { %v2696_v21 = vadd.f32 %v2664_v20, %v8064_v42  ;;  %v2666_v22 = vmax.f32 %v2603_v39, 0.0 }
 0x396   : > { %v2697_v24 = vadd.f32 %v2665_v6, %v8066_v43 }
 0x397   : > { %v2698_v27 = vadd.f32 %v2666_v22, %v8068_v44  ;;  %v2606_v57 = vpop.f32.mrb[44].mxu0 }
 0x398   : > { %v2607_v60 = vadd.f32 %v2606_v57, %v8114_v58  ;;  %v2608_v30 = vpop.f32.mrb[45].mxu0  ;;  %v2723_v16 = vpack.c.bf16 %v2697_v24, %v2695_v38 }
 0x399   : > { %v2609_v54 = vadd.f32 %v2608_v30, %v8117_v7  ;;  %v2610_v23 = vpop.f32.mrb[46].mxu0  ;;  %v2724_v61 = vpack.c.bf16 %v2698_v27, %v2696_v21 }
 0x39a   : > { %v2667_v63 = vmax.f32 %v2607_v60, 0.0  ;;  %v2611_v41 = vadd.f32 %v2610_v23, %v8114_v58  ;;  %v2612_v0 = vpop.f32.mrb[47].mxu0 }
 0x39b   : > { %v2668_v55 = vmax.f32 %v2609_v54, 0.0  ;;  %v2613_v42 = vadd.f32 %v2612_v0, %v8117_v7  ;;  %2991 = vmatprep.mubr.bf16.mxu1 %v2724_v61 }
 0x39c   : > { %v2699_v43 = vadd.f32 %v2667_v63, %v8070_v46  ;;  %v2669_v44 = vmax.f32 %v2611_v41, 0.0  ;;  %2992 = vmatmul.mubr.bf16.gmra.mrb[40].mxu1 %v2723_v16 }
 0x39d   : > { %v2700_v25 = vadd.f32 %v2668_v55, %v8072_v48  ;;  %v2670_v28 = vmax.f32 %v2613_v42, 0.0 }
 0x39e   : > { %v2701_v29 = vadd.f32 %v2669_v44, %v8074_v51 }
 0x39f   : > { %v2702_v32 = vadd.f32 %v2670_v28, %v8076_v13  ;;  %v2616_v34 = vpop.f32.mrb[48].mxu0 }
 0x3a0   : > { %v2617_v9 = vadd.f32 %v2616_v34, %v8114_v58  ;;  %v2618_v10 = vpop.f32.mrb[49].mxu0  ;;  %v2725_v11 = vpack.c.bf16 %v2701_v29, %v2699_v43 }
 0x3a1   : > { %v2619_v12 = vadd.f32 %v2618_v10, %v8117_v7  ;;  %v2620_v14 = vpop.f32.mrb[50].mxu0  ;;  %v2726_v15 = vpack.c.bf16 %v2702_v32, %v2700_v25 }
 0x3a2   : > { %v2671_v17 = vmax.f32 %v2617_v9, 0.0  ;;  %v2621_v46 = vadd.f32 %v2620_v14, %v8114_v58  ;;  %v2622_v47 = vpop.f32.mrb[51].mxu0 }
 0x3a3   : > { %v2672_v18 = vmax.f32 %v2619_v12, 0.0  ;;  %v2623_v48 = vadd.f32 %v2622_v47, %v8117_v7  ;;  %3001 = vmatprep.mubr.bf16.mxu1 %v2726_v15 }
 0x3a4   : > { %v2703_v51 = vadd.f32 %v2671_v17, %v8078_v52  ;;  %v2673_v13 = vmax.f32 %v2621_v46, 0.0  ;;  %3002 = vmatmul.mubr.bf16.gmra.mrb[44].mxu1 %v2725_v11 }
 0x3a5   : > { %v2704_v50 = vadd.f32 %v2672_v18, %v8080_v53  ;;  %v2674_v35 = vmax.f32 %v2623_v48, 0.0 }
 0x3a6   : > { %v2705_v19 = vadd.f32 %v2673_v13, %v8082_v56 }
 0x3a7   : > { %v2706_v20 = vadd.f32 %v2674_v35, %v8084_v59  ;;  %v2626_v39 = vpop.f32.mrb[52].mxu0 }
 0x3a8   : > { %v2627_v38 = vadd.f32 %v2626_v39, %v8114_v58  ;;  %v2628_v6 = vpop.f32.mrb[53].mxu0  ;;  %v2727_v21 = vpack.c.bf16 %v2705_v19, %v2703_v51 }
 0x3a9   : > { %v2629_v22 = vadd.f32 %v2628_v6, %v8117_v7  ;;  %v2630_v24 = vpop.f32.mrb[54].mxu0  ;;  %v2728_v27 = vpack.c.bf16 %v2706_v20, %v2704_v50 }
 0x3aa   : > { %v2675_v57 = vmax.f32 %v2627_v38, 0.0  ;;  %v2631_v52 = vadd.f32 %v2630_v24, %v8114_v58  ;;  %v2632_v60 = vpop.f32.mrb[55].mxu0  ;;  %v6633_v38 = vld [vmem:[#allocation10 + $0x8] sm:$0xff]  }
 0x3ab   : > { %v2676_v30 = vmax.f32 %v2629_v22, 0.0  ;;  %v2633_v53 = vadd.f32 %v2632_v60, %v8117_v7  ;;  %3011 = vmatprep.mubr.bf16.mxu1 %v2728_v27 }
 0x3ac   : > { %v2707_v56 = vadd.f32 %v2675_v57, %v8086_v62  ;;  %v2677_v59 = vmax.f32 %v2631_v52, 0.0  ;;  %3012 = vmatmul.mubr.bf16.gmra.mrb[48].mxu1 %v2727_v21 }
 0x3ad   : > { %v2708_v16 = vadd.f32 %v2676_v30, %v8088_v26  ;;  %v2678_v54 = vmax.f32 %v2633_v53, 0.0 }
 0x3ae   : > { %v2709_v23 = vadd.f32 %v2677_v59, %v8090_v1 }
 0x3af   : > { %v2710_v61 = vadd.f32 %v2678_v54, %v8092_v2  ;;  %v2636_v63 = vpop.f32.mrb[56].mxu0 }
 0x3b0   : > { %v2637_v41 = vadd.f32 %v2636_v63, %v8114_v58  ;;  %v2638_v0 = vpop.f32.mrb[57].mxu0  ;;  %v2729_v55 = vpack.c.bf16 %v2709_v23, %v2707_v56 }
 0x3b1   : > { %v2639_v42 = vadd.f32 %v2638_v0, %v8117_v7  ;;  %v2640_v43 = vpop.f32.mrb[58].mxu0  ;;  %v2730_v44 = vpack.c.bf16 %v2710_v61, %v2708_v16 }
 0x3b2   : > { %v2679_v25 = vmax.f32 %v2637_v41, 0.0  ;;  %v2641_v62 = vadd.f32 %v2640_v43, %v8114_v58  ;;  %v2642_v28 = vpop.f32.mrb[59].mxu0 }
 0x3b3   : > { %v2680_v29 = vmax.f32 %v2639_v42, 0.0  ;;  %v2643_v26 = vadd.f32 %v2642_v28, %v8117_v7  ;;  %3021 = vmatprep.mubr.bf16.mxu1 %v2730_v44 }
 0x3b4   : > { %v2711_v1 = vadd.f32 %v2679_v25, %v8094_v4  ;;  %v2681_v2 = vmax.f32 %v2641_v62, 0.0  ;;  %3022 = vmatmul.mubr.bf16.gmra.mrb[52].mxu1 %v2729_v55 }
 0x3b5   : > { %v2712_v32 = vadd.f32 %v2680_v29, %v8096_v5  ;;  %v2682_v34 = vmax.f32 %v2643_v26, 0.0 }
 0x3b6   : > { %v2713_v9 = vadd.f32 %v2681_v2, %v8098_v33 }
 0x3b7   : > { %v2714_v10 = vadd.f32 %v2682_v34, %v8100_v8  ;;  %v2646_v11 = vpop.f32.mrb[60].mxu0 }
 0x3b8   : > { %v2647_v12 = vadd.f32 %v2646_v11, %v8114_v58  ;;  %v2648_v14 = vpop.f32.mrb[61].mxu0  ;;  %v2731_v15 = vpack.c.bf16 %v2713_v9, %v2711_v1  ;;  %v6637_v11 = vld [vmem:[#allocation10 + $0x28] sm:$0xff]  }
 0x3b9   : > { %v2649_v17 = vadd.f32 %v2648_v14, %v8117_v7  ;;  %v2650_v46 = vpop.f32.mrb[62].mxu0  ;;  %v2732_v47 = vpack.c.bf16 %v2714_v10, %v2712_v32 }
 0x3ba   : > { %v2683_v18 = vmax.f32 %v2647_v12, 0.0  ;;  %v2651_v4 = vadd.f32 %v2650_v46, %v8114_v58  ;;  %v2652_v48 = vpop.f32.mrb[63].mxu0  ;;  %v6632_v58 = vld [vmem:[#allocation10] sm:$0xff]  }
 0x3bb   : > { %v2684_v51 = vmax.f32 %v2649_v17, 0.0  ;;  %v2653_v5 = vadd.f32 %v2652_v48, %v8117_v7  ;;  %3031 = vmatprep.mubr.bf16.mxu1 %v2732_v47  ;;  %5946 = vmatprep.subr.bf16.mxu0 %v6632_v58  ;;  %v6635_v7 = vld [vmem:[#allocation10 + $0x18] sm:$0xff]  }
 0x3bc   : > { %v2715_v33 = vadd.f32 %v2683_v18, %v8102_v40  ;;  %v2685_v8 = vmax.f32 %v2651_v4, 0.0  ;;  %3032 = vmatmul.mubr.bf16.gmra.mrb[56].mxu1 %v2731_v15  ;;  %5947 = vmatpush3.bf16.msra.mxu0 %v6632_v58  ;;  %v6634_v40 = vld [vmem:[#allocation10 + $0x10] sm:$0xff]  }
 0x3bd   : > { %v2716_v13 = vadd.f32 %v2684_v51, %v8104_v37  ;;  %v2686_v50 = vmax.f32 %v2653_v5, 0.0  ;;  %5948 = vmatprep.subr.bf16.mxu0 %v6633_v38  ;;  %v6636_v37 = vld [vmem:[#allocation10 + $0x20] sm:$0xff]  }
 0x3be   : > { %v2717_v35 = vadd.f32 %v2685_v8, %v8106_v45  ;;  %v2767_v45 = vld [vmem:[%s9501_s6] sm:$0x3]  ;;  %s7162_s6 = sshll.u32 %s7378_s30, 4  ;;  %s7163_s6 = int_to_ptr.vmem [resolvable:$false] %s7162_s6 }
 0x3bf   : > { %v2718_v19 = vadd.f32 %v2686_v50, %v8108_v49  ;;  %v8187_v49 = vrot.slane %v2767_v45, %v8006_v36  ;;  %v8190_v6 = vrot.slane %v2767_v45, %v8012_v3  ;;  %p7165_p13 = scmp.lt.s32.totalorder %s9078_s21, %s7163_s6 }
 0x3c0   : > { %v2733_v20 = vpack.c.bf16 %v2717_v35, %v2715_v33  ;;  %5949 = vmatpush3.bf16.msra.mxu0 %v6633_v38 }
 0x3c1   : > { %v2734_v39 = vpack.c.bf16 %v2718_v19, %v2716_v13  ;;  %5950 = vmatprep.subr.bf16.mxu0 %v6634_v40 }
 0x3c3   : > { %3041 = vmatprep.mubr.bf16.mxu1 %v2734_v39 }
 0x3c4   : > { %3042 = vmatmul.mubr.bf16.gmra.mrb[60].mxu1 %v2733_v20  ;;  %5951 = vmatpush3.bf16.msra.mxu0 %v6634_v40  ;;  %v6638_v20 = vld [vmem:[#allocation10 + $0x30] sm:$0xff]  }
 0x3c5   : > { %5952 = vmatprep.subr.bf16.mxu0 %v6635_v7 }
 0x3c8   : > { %5953 = vmatpush3.bf16.msra.mxu0 %v6635_v7 }
 0x3c9   : > { %5954 = vmatprep.subr.bf16.mxu0 %v6636_v37 }
 0x3cc   : > { %5955 = vmatpush3.bf16.msra.mxu0 %v6636_v37  ;;  %v6639_v37 = vld [vmem:[#allocation10 + $0x38] sm:$0xff]  }
 0x3cd   : > { %5956 = vmatprep.subr.bf16.mxu0 %v6637_v11 }
 0x3d0   : > { %5957 = vmatpush3.bf16.msra.mxu0 %v6637_v11  ;;  %v6643_v11 = vld [vmem:[#allocation11 + $0x18] sm:$0xff]  }
 0x3d1   : > { %5958 = vmatprep.subr.bf16.mxu0 %v6638_v20 }
 0x3d4   : > { %5959 = vmatpush3.bf16.msra.mxu0 %v6638_v20 }
 0x3d5   : > { %5960 = vmatprep.subr.bf16.mxu0 %v6639_v37 }
 0x3d8   : > { %5961 = vmatpush3.bf16.msra.mxu0 %v6639_v37 }
 0x45f   : > { %v2973_v21 = vpop.f32.mrb[32].mxu1 }
 0x460   : > { %v8193_v22 = vadd.f32 %v2973_v21, %v8187_v49  ;;  %v2975_v24 = vpop.f32.mrb[33].mxu1 }
 0x461   : > { %v2976_v27 = vadd.f32 %v2975_v24, %v8190_v6  ;;  %v2977_v57 = vpop.f32.mrb[34].mxu1 }
 0x462   : > { %4812 = vst [vmem:[%s8197_s28] sm:$0xff] %v8193_v22  ;;  %5068 = vst [vmem:[%s8202_s17] sm:$0xff] %v8193_v22  ;;  %v8207_v52 = vadd.f32 %v2977_v57, %v8187_v49  ;;  %v2979_v60 = vpop.f32.mrb[35].mxu1  ;;  %v3052_v30 = vmul.f32 %v8193_v22, %v8193_v22 }
 0x463   : > { %5084 = vst [vmem:[%s8212_s23] sm:$0xff] %v2976_v27  ;;  %v2980_v53 = vadd.f32 %v2979_v60, %v8190_v6 }
 0x464   : > { %4813 = vst [vmem:[%s8197_s28 + $0x8] sm:$0xff] %v8207_v52  ;;  %5069 = vst [vmem:[%s8202_s17 + $0x8] sm:$0xff] %v8207_v52  ;;  %3068 = vadd.xlane.f32.xlu0 %v3052_v30  ;;  %v3053_v56 = vmul.f32 %v8207_v52, %v8207_v52 }
 0x465   : > { %5085 = vst [vmem:[%s8212_s23 + $0x8] sm:$0xff] %v2980_v53 }
 0x467   : > { %v2983_v59 = vpop.f32.mrb[36].mxu1 }
 0x468   : > { %v8224_v16 = vadd.f32 %v2983_v59, %v8187_v49  ;;  %v2985_v54 = vpop.f32.mrb[37].mxu1  ;;  %3070 = vadd.xlane.f32.xlu0 %v3053_v56 }
 0x469   : > { %v2986_v23 = vadd.f32 %v2985_v54, %v8190_v6  ;;  %v2987_v61 = vpop.f32.mrb[38].mxu1 }
 0x46a   : > { %4814 = vst [vmem:[%s8197_s28 + $0x10] sm:$0xff] %v8224_v16  ;;  %5070 = vst [vmem:[%s8202_s17 + $0x10] sm:$0xff] %v8224_v16  ;;  %v8232_v63 = vadd.f32 %v2987_v61, %v8187_v49  ;;  %v2989_v41 = vpop.f32.mrb[39].mxu1  ;;  %v3054_v0 = vmul.f32 %v8224_v16, %v8224_v16 }
 0x46b   : > { %5086 = vst [vmem:[%s8212_s23 + $0x10] sm:$0xff] %v2986_v23  ;;  %v2990_v55 = vadd.f32 %v2989_v41, %v8190_v6 }
 0x46c   : > { %4815 = vst [vmem:[%s8197_s28 + $0x18] sm:$0xff] %v8232_v63  ;;  %5071 = vst [vmem:[%s8202_s17 + $0x18] sm:$0xff] %v8232_v63  ;;  %3072 = vadd.xlane.f32.xlu1 %v3054_v0  ;;  %v3055_v42 = vmul.f32 %v8232_v63, %v8232_v63 }
 0x46d   : > { %5087 = vst [vmem:[%s8212_s23 + $0x18] sm:$0xff] %v2990_v55 }
 0x46f   : > { %v2993_v43 = vpop.f32.mrb[40].mxu1 }
 0x470   : > { %v8246_v44 = vadd.f32 %v2993_v43, %v8187_v49  ;;  %v2995_v25 = vpop.f32.mrb[41].mxu1  ;;  %3074 = vadd.xlane.f32.xlu1 %v3055_v42 }
 0x471   : > { %v2996_v62 = vadd.f32 %v2995_v25, %v8190_v6  ;;  %v2997_v28 = vpop.f32.mrb[42].mxu1 }
 0x472   : > { %4816 = vst [vmem:[%s8197_s28 + $0x20] sm:$0xff] %v8246_v44  ;;  %5072 = vst [vmem:[%s8202_s17 + $0x20] sm:$0xff] %v8246_v44  ;;  %v8254_v29 = vadd.f32 %v2997_v28, %v8187_v49  ;;  %v2999_v26 = vpop.f32.mrb[43].mxu1  ;;  %v3056_v1 = vmul.f32 %v8246_v44, %v8246_v44 }
 0x473   : > { %5088 = vst [vmem:[%s8212_s23 + $0x20] sm:$0xff] %v2996_v62  ;;  %v3000_v2 = vadd.f32 %v2999_v26, %v8190_v6 }
 0x474   : > { %4817 = vst [vmem:[%s8197_s28 + $0x28] sm:$0xff] %v8254_v29  ;;  %5073 = vst [vmem:[%s8202_s17 + $0x28] sm:$0xff] %v8254_v29  ;;  %3076 = vadd.xlane.f32.xlu0 %v3056_v1  ;;  %v3057_v32 = vmul.f32 %v8254_v29, %v8254_v29 }
 0x475   : > { %5089 = vst [vmem:[%s8212_s23 + $0x28] sm:$0xff] %v3000_v2 }
 0x476   : > { %3078 = vadd.xlane.f32.xlu1 %v3057_v32 }
 0x477   : > { %v3003_v34 = vpop.f32.mrb[44].mxu1 }
 0x478   : > { %v8268_v9 = vadd.f32 %v3003_v34, %v8187_v49  ;;  %v3005_v10 = vpop.f32.mrb[45].mxu1  ;;  %v6640_v34 = vld [vmem:[#allocation11] sm:$0xff]  }
 0x479   : > { %v3006_v12 = vadd.f32 %v3005_v10, %v8190_v6  ;;  %v3007_v14 = vpop.f32.mrb[46].mxu1  ;;  %5978 = vmatprep.subr.bf16.mxu1 %v6640_v34  ;;  %v6642_v10 = vld [vmem:[#allocation11 + $0x10] sm:$0xff]  }
 0x47a   : > { %4818 = vst [vmem:[%s8197_s28 + $0x30] sm:$0xff] %v8268_v9  ;;  %5074 = vst [vmem:[%s8202_s17 + $0x30] sm:$0xff] %v8268_v9  ;;  %v8276_v15 = vadd.f32 %v3007_v14, %v8187_v49  ;;  %v3009_v17 = vpop.f32.mrb[47].mxu1  ;;  %v3058_v46 = vmul.f32 %v8268_v9, %v8268_v9  ;;  %5979 = vmatpush3.bf16.msra.mxu1 %v6640_v34  ;;  %v6646_v14 = vld [vmem:[#allocation11 + $0x30] sm:$0xff]  }
 0x47b   : > { %5090 = vst [vmem:[%s8212_s23 + $0x30] sm:$0xff] %v3006_v12  ;;  %v3010_v47 = vadd.f32 %v3009_v17, %v8190_v6  ;;  %v6645_v12 = vld [vmem:[#allocation11 + $0x28] sm:$0xff]  }
 0x47c   : > { %4819 = vst [vmem:[%s8197_s28 + $0x38] sm:$0xff] %v8276_v15  ;;  %5075 = vst [vmem:[%s8202_s17 + $0x38] sm:$0xff] %v8276_v15  ;;  %3080 = vadd.xlane.f32.xlu0 %v3058_v46  ;;  %v3059_v18 = vmul.f32 %v8276_v15, %v8276_v15 }
 0x47d   : > { %5091 = vst [vmem:[%s8212_s23 + $0x38] sm:$0xff] %v3010_v47 }
 0x47e   : > { %3082 = vadd.xlane.f32.xlu1 %v3059_v18 }
 0x47f   : > { %v3013_v4 = vpop.f32.mrb[48].mxu1 }
 0x480   : > { %v8290_v48 = vadd.f32 %v3013_v4, %v8187_v49  ;;  %v3015_v51 = vpop.f32.mrb[49].mxu1 }
 0x481   : > { %v3016_v5 = vadd.f32 %v3015_v51, %v8190_v6  ;;  %v3017_v33 = vpop.f32.mrb[50].mxu1 }
 0x482   : > { %4820 = vst [vmem:[%s8197_s28 + $0x40] sm:$0xff] %v8290_v48  ;;  %5076 = vst [vmem:[%s8202_s17 + $0x40] sm:$0xff] %v8290_v48  ;;  %v8298_v8 = vadd.f32 %v3017_v33, %v8187_v49  ;;  %v3019_v13 = vpop.f32.mrb[51].mxu1  ;;  %v3060_v50 = vmul.f32 %v8290_v48, %v8290_v48 }
 0x483   : > { %5092 = vst [vmem:[%s8212_s23 + $0x40] sm:$0xff] %v3016_v5  ;;  %v3020_v35 = vadd.f32 %v3019_v13, %v8190_v6 }
 0x484   : > { %4821 = vst [vmem:[%s8197_s28 + $0x48] sm:$0xff] %v8298_v8  ;;  %5077 = vst [vmem:[%s8202_s17 + $0x48] sm:$0xff] %v8298_v8  ;;  %3084 = vadd.xlane.f32.xlu0 %v3060_v50  ;;  %v3061_v19 = vmul.f32 %v8298_v8, %v8298_v8 }
 0x485   : > { %5093 = vst [vmem:[%s8212_s23 + $0x48] sm:$0xff] %v3020_v35 }
 0x486   : > { %3086 = vadd.xlane.f32.xlu1 %v3061_v19 }
 0x487   : > { %v3023_v39 = vpop.f32.mrb[52].mxu1 }
 0x488   : > { %v8312_v58 = vadd.f32 %v3023_v39, %v8187_v49  ;;  %v3025_v38 = vpop.f32.mrb[53].mxu1 }
 0x489   : > { %v3026_v40 = vadd.f32 %v3025_v38, %v8190_v6  ;;  %v3027_v7 = vpop.f32.mrb[54].mxu1 }
 0x48a   : > { %4822 = vst [vmem:[%s8197_s28 + $0x50] sm:$0xff] %v8312_v58  ;;  %5078 = vst [vmem:[%s8202_s17 + $0x50] sm:$0xff] %v8312_v58  ;;  %v8320_v45 = vadd.f32 %v3027_v7, %v8187_v49  ;;  %v3029_v21 = vpop.f32.mrb[55].mxu1  ;;  %v3062_v24 = vmul.f32 %v8312_v58, %v8312_v58 }
 0x48b   : > { %5094 = vst [vmem:[%s8212_s23 + $0x50] sm:$0xff] %v3026_v40  ;;  %v3030_v27 = vadd.f32 %v3029_v21, %v8190_v6 }
 0x48c   : > { %4823 = vst [vmem:[%s8197_s28 + $0x58] sm:$0xff] %v8320_v45  ;;  %5079 = vst [vmem:[%s8202_s17 + $0x58] sm:$0xff] %v8320_v45  ;;  %3088 = vadd.xlane.f32.xlu0 %v3062_v24  ;;  %v3063_v57 = vmul.f32 %v8320_v45, %v8320_v45 }
 0x48d   : > { %5095 = vst [vmem:[%s8212_s23 + $0x58] sm:$0xff] %v3030_v27 }
 0x48e   : > { %3090 = vadd.xlane.f32.xlu1 %v3063_v57 }
 0x48f   : > { %v3033_v60 = vpop.f32.mrb[56].mxu1 }
 0x490   : > { %v8334_v30 = vadd.f32 %v3033_v60, %v8187_v49  ;;  %v3035_v53 = vpop.f32.mrb[57].mxu1 }
 0x491   : > { %v3036_v56 = vadd.f32 %v3035_v53, %v8190_v6  ;;  %v3037_v59 = vpop.f32.mrb[58].mxu1 }
 0x492   : > { %4824 = vst [vmem:[%s8197_s28 + $0x60] sm:$0xff] %v8334_v30  ;;  %5080 = vst [vmem:[%s8202_s17 + $0x60] sm:$0xff] %v8334_v30  ;;  %v8342_v54 = vadd.f32 %v3037_v59, %v8187_v49  ;;  %v3039_v23 = vpop.f32.mrb[59].mxu1  ;;  %v3064_v61 = vmul.f32 %v8334_v30, %v8334_v30 }
 0x493   : > { %5096 = vst [vmem:[%s8212_s23 + $0x60] sm:$0xff] %v3036_v56  ;;  %v3040_v41 = vadd.f32 %v3039_v23, %v8190_v6 }
 0x494   : > { %4825 = vst [vmem:[%s8197_s28 + $0x68] sm:$0xff] %v8342_v54  ;;  %5081 = vst [vmem:[%s8202_s17 + $0x68] sm:$0xff] %v8342_v54  ;;  %3092 = vadd.xlane.f32.xlu0 %v3064_v61  ;;  %v3065_v0 = vmul.f32 %v8342_v54, %v8342_v54 }
 0x495   : > { %5097 = vst [vmem:[%s8212_s23 + $0x68] sm:$0xff] %v3040_v41 }
 0x496   : > { %3094 = vadd.xlane.f32.xlu1 %v3065_v0 }
 0x497   : > { %v3043_v55 = vpop.f32.mrb[60].mxu1 }
 0x498   : > { %v8356_v42 = vadd.f32 %v3043_v55, %v8187_v49  ;;  %v3045_v43 = vpop.f32.mrb[61].mxu1 }
 0x499   : > { %v3046_v25 = vadd.f32 %v3045_v43, %v8190_v6  ;;  %v3047_v62 = vpop.f32.mrb[62].mxu1 }
 0x49a   : > { %4826 = vst [vmem:[%s8197_s28 + $0x70] sm:$0xff] %v8356_v42  ;;  %5082 = vst [vmem:[%s8202_s17 + $0x70] sm:$0xff] %v8356_v42  ;;  %v8364_v28 = vadd.f32 %v3047_v62, %v8187_v49  ;;  %v3049_v26 = vpop.f32.mrb[63].mxu1  ;;  %v3066_v1 = vmul.f32 %v8356_v42, %v8356_v42  ;;  %v6641_v49 = vld [vmem:[#allocation11 + $0x8] sm:$0xff]  }
 0x49b   : > { %5098 = vst [vmem:[%s8212_s23 + $0x70] sm:$0xff] %v3046_v25  ;;  %v3050_v2 = vadd.f32 %v3049_v26, %v8190_v6  ;;  %5980 = vmatprep.subr.bf16.mxu1 %v6641_v49  ;;  %v6644_v6 = vld [vmem:[#allocation11 + $0x20] sm:$0xff]  }
 0x49c   : > { %4827 = vst [vmem:[%s8197_s28 + $0x78] sm:$0xff] %v8364_v28  ;;  %5083 = vst [vmem:[%s8202_s17 + $0x78] sm:$0xff] %v8364_v28  ;;  %3096 = vadd.xlane.f32.xlu0 %v3066_v1  ;;  %v3067_v32 = vmul.f32 %v8364_v28, %v8364_v28  ;;  %5981 = vmatpush3.bf16.msra.mxu1 %v6641_v49 }
 0x49d   : > { %5099 = vst [vmem:[%s8212_s23 + $0x78] sm:$0xff] %v3050_v2  ;;  %5982 = vmatprep.subr.bf16.mxu1 %v6642_v10 }
 0x49e   : > { %3098 = vadd.xlane.f32.xlu1 %v3067_v32 }
 0x4a0   : > { %5983 = vmatpush3.bf16.msra.mxu1 %v6642_v10 }
 0x4a1   : > { %5984 = vmatprep.subr.bf16.mxu1 %v6643_v11 }
 0x4a4   : > { %5985 = vmatpush3.bf16.msra.mxu1 %v6643_v11 }
 0x4a5   : > { %5986 = vmatprep.subr.bf16.mxu1 %v6644_v6 }
 0x4a8   : > { %5987 = vmatpush3.bf16.msra.mxu1 %v6644_v6 }
 0x4a9   : > { %5988 = vmatprep.subr.bf16.mxu1 %v6645_v12 }
 0x4ac   : > { %5989 = vmatpush3.bf16.msra.mxu1 %v6645_v12 }
 0x4ad   : > { %5990 = vmatprep.subr.bf16.mxu1 %v6646_v14 }
 0x4b0   : > { %5991 = vmatpush3.bf16.msra.mxu1 %v6646_v14 }
 0x4f1   : > { %v3069_v17 = vpop.xlane.xlu0 %3068 }
 0x4f2   : > { %v3100_v46 = vmax.f32 %v3069_v17, 1e-24 }
 0x4f4   : > { %6712 = vrsqrt.f32 %v3100_v46 }
 0x4f5   : > { %v3071_v47 = vpop.xlane.xlu0 %3070 }
 0x4f6   : > { %v3101_v18 = vmax.f32 %v3071_v47, 1e-24 }
 0x4f8   : > { %6714 = vrsqrt.f32 %v3101_v18 }
 0x4f9   : > { %v3073_v4 = vpop.xlane.xlu1 %3072 }
 0x4fa   : > { %v3102_v51 = vmax.f32 %v3073_v4, 1e-24 }
 0x4fc   : > { %6716 = vrsqrt.f32 %v3102_v51 }
 0x4fd   : > { %v3075_v5 = vpop.xlane.xlu1 %3074 }
 0x4fe   : > { %v3103_v33 = vmax.f32 %v3075_v5, 1e-24  ;;  %v6713_v13 = vpop.eup %6712 }
 0x4ff   : > { %v8378_v39 = vmul.f32 %v6713_v13, %v8193_v22 }
 0x500   : > { %6718 = vrsqrt.f32 %v3103_v33 }
 0x501   : > { %v3077_v50 = vpop.xlane.xlu0 %3076 }
 0x502   : > { %v6715_v35 = vpop.eup %6714  ;;  %v3104_v19 = vmax.f32 %v3077_v50, 1e-24 }
 0x503   : > { %v3079_v20 = vpop.xlane.xlu1 %3078  ;;  %v8381_v38 = vmul.f32 %v6715_v35, %v8207_v52 }
 0x504   : > { %6720 = vrsqrt.f32 %v3104_v19  ;;  %v3105_v40 = vmax.f32 %v3079_v20, 1e-24 }
 0x505   : > { %v3148_v7 = vpack.c.bf16 %v8381_v38, %v8378_v39 }
 0x506   : > { %6722 = vrsqrt.f32 %v3105_v40  ;;  %v6717_v37 = vpop.eup %6716 }
 0x507   : > { %5962 = vmatprep.mubr.bf16.mxu0 %v3148_v7  ;;  %v8386_v57 = vmul.f32 %v6717_v37, %v8224_v16  ;;  %v6649_v37 = vld [vmem:[#allocation13 + $0x8] sm:$0xff]  }
 0x509   : > { %v3081_v21 = vpop.xlane.xlu0 %3080 }
 0x50a   : > { %v6719_v24 = vpop.eup %6718  ;;  %v3106_v27 = vmax.f32 %v3081_v21, 1e-24  ;;  %v6650_v21 = vld [vmem:[#allocation13 + $0x10] sm:$0xff]  }
 0x50b   : > { %v8389_v22 = vmul.f32 %v6719_v24, %v8232_v63  ;;  %v3083_v60 = vpop.xlane.xlu1 %3082  ;;  %v6653_v24 = vld [vmem:[#allocation13 + $0x28] sm:$0xff]  }
 0x50c   : > { %6724 = vrsqrt.f32 %v3106_v27  ;;  %v3107_v52 = vmax.f32 %v3083_v60, 1e-24  ;;  %v5724_v27 = vld [vmem:[%s9502_s8] ss:$0 sm:$0xff] }
 0x50d   : > { %v3149_v53 = vpack.c.bf16 %v8389_v22, %v8386_v57 }
 0x50e   : > { %v6721_v56 = vpop.eup %6720  ;;  %6726 = vrsqrt.f32 %v3107_v52 }
 0x50f   : > { %5963 = vmatmul.mubr.bf16.vlgmr.msra.gmra.mrb[64].mxu0 %v3149_v53  ;;  %v8394_v61 = vmul.f32 %v6721_v56, %v8246_v44 }
 0x510   : > { %v6723_v59 = vpop.eup %6722 }
 0x511   : > { %v3085_v23 = vpop.xlane.xlu0 %3084  ;;  %v8397_v16 = vmul.f32 %v6723_v59, %v8254_v29 }
 0x512   : > { %v3108_v41 = vmax.f32 %v3085_v23, 1e-24 }
 0x513   : > { %v3087_v63 = vpop.xlane.xlu1 %3086  ;;  %v3150_v0 = vpack.c.bf16 %v8397_v16, %v8394_v61 }
 0x514   : > { %6728 = vrsqrt.f32 %v3108_v41  ;;  %v3109_v55 = vmax.f32 %v3087_v63, 1e-24 }
 0x515   : > { %5966 = vmatprep.mubr.bf16.mxu0 %v3150_v0 }
 0x516   : > { %v6725_v43 = vpop.eup %6724  ;;  %6730 = vrsqrt.f32 %v3109_v55 }
 0x517   : > { %v8402_v26 = vmul.f32 %v6725_v43, %v8268_v9 }
 0x518   : > { %v6727_v25 = vpop.eup %6726 }
 0x519   : > { %v3089_v62 = vpop.xlane.xlu0 %3088  ;;  %v8405_v44 = vmul.f32 %v6727_v25, %v8276_v15 }
 0x51a   : > { %v3110_v29 = vmax.f32 %v3089_v62, 1e-24 }
 0x51b   : > { %v3091_v1 = vpop.xlane.xlu1 %3090  ;;  %v3151_v2 = vpack.c.bf16 %v8405_v44, %v8402_v26 }
 0x51c   : > { %6732 = vrsqrt.f32 %v3110_v29  ;;  %v3111_v32 = vmax.f32 %v3091_v1, 1e-24 }
 0x51d   : > { %5967 = vmatmul.mubr.bf16.gmra.mrb[68].mxu0 %v3151_v2 }
 0x51e   : > { %v6729_v34 = vpop.eup %6728  ;;  %6734 = vrsqrt.f32 %v3111_v32 }
 0x51f   : > { %v8410_v11 = vmul.f32 %v6729_v34, %v8290_v48 }
 0x520   : > { %v6731_v49 = vpop.eup %6730 }
 0x521   : > { %v3093_v10 = vpop.xlane.xlu0 %3092  ;;  %v8413_v9 = vmul.f32 %v6731_v49, %v8298_v8 }
 0x522   : > { %v3112_v15 = vmax.f32 %v3093_v10, 1e-24 }
 0x523   : > { %v3095_v6 = vpop.xlane.xlu1 %3094  ;;  %v3152_v12 = vpack.c.bf16 %v8413_v9, %v8410_v11 }
 0x524   : > { %6736 = vrsqrt.f32 %v3112_v15  ;;  %v3113_v14 = vmax.f32 %v3095_v6, 1e-24 }
 0x525   : > { %5970 = vmatprep.mubr.bf16.mxu0 %v3152_v12 }
 0x526   : > { %v6733_v17 = vpop.eup %6732  ;;  %6738 = vrsqrt.f32 %v3113_v14 }
 0x527   : > { %v8418_v18 = vmul.f32 %v6733_v17, %v8312_v58 }
 0x528   : > { %v6735_v46 = vpop.eup %6734 }
 0x529   : > { %v3097_v47 = vpop.xlane.xlu0 %3096  ;;  %v8421_v48 = vmul.f32 %v6735_v46, %v8320_v45 }
 0x52a   : > { %v3114_v8 = vmax.f32 %v3097_v47, 1e-24 }
 0x52b   : > { %v3099_v4 = vpop.xlane.xlu1 %3098  ;;  %v3153_v51 = vpack.c.bf16 %v8421_v48, %v8418_v18 }
 0x52c   : > { %6740 = vrsqrt.f32 %v3114_v8  ;;  %v3115_v5 = vmax.f32 %v3099_v4, 1e-24 }
 0x52d   : > { %5971 = vmatmul.mubr.bf16.gmra.mrb[72].mxu0 %v3153_v51 }
 0x52e   : > { %v6737_v33 = vpop.eup %6736  ;;  %6742 = vrsqrt.f32 %v3115_v5 }
 0x52f   : > { %v8426_v50 = vmul.f32 %v6737_v33, %v8334_v30  ;;  %v6647_v30 = vld [vmem:[#allocation11 + $0x38] sm:$0xff]  }
 0x530   : > { %v6739_v13 = vpop.eup %6738  ;;  %5992 = vmatprep.subr.bf16.mxu1 %v6647_v30 }
 0x531   : > { %v8429_v58 = vmul.f32 %v6739_v13, %v8342_v54  ;;  %5993 = vmatpush3.bf16.msra.mxu1 %v6647_v30  ;;  %v6648_v54 = vld [vmem:[#allocation13] sm:$0xff]  }
 0x532   : > { %6010 = vmatprep.subr.bf16.mxu0 %v6648_v54 }
 0x533   : > { %v3154_v45 = vpack.c.bf16 %v8429_v58, %v8426_v50  ;;  %6011 = vmatpush3.bf16.msra.mxu0 %v6648_v54 }
 0x534   : > { %6012 = vmatprep.subr.bf16.mxu0 %v6649_v37 }
 0x535   : > { %5974 = vmatprep.mubr.bf16.mxu0 %v3154_v45 }
 0x536   : > { %v6741_v35 = vpop.eup %6740 }
 0x537   : > { %v8434_v20 = vmul.f32 %v6741_v35, %v8356_v42  ;;  %6013 = vmatpush3.bf16.msra.mxu0 %v6649_v37  ;;  %v6651_v42 = vld [vmem:[#allocation13 + $0x18] sm:$0xff]  }
 0x538   : > { %v6743_v19 = vpop.eup %6742  ;;  %6014 = vmatprep.subr.bf16.mxu0 %v6650_v21 }
 0x539   : > { %v8437_v40 = vmul.f32 %v6743_v19, %v8364_v28  ;;  %v6652_v28 = vld [vmem:[#allocation13 + $0x20] sm:$0xff]  }
 0x53b   : > { %v3155_v7 = vpack.c.bf16 %v8437_v40, %v8434_v20  ;;  %6015 = vmatpush3.bf16.msra.mxu0 %v6650_v21 }
 0x53c   : > { %6016 = vmatprep.subr.bf16.mxu0 %v6651_v42 }
 0x53d   : > { %5975 = vmatmul.mubr.bf16.gmra.mrb[76].mxu0 %v3155_v7 }
 0x53f   : > { %6017 = vmatpush3.bf16.msra.mxu0 %v6651_v42 }
 0x540   : > { %6018 = vmatprep.subr.bf16.mxu0 %v6652_v28 }
 0x543   : > { %6019 = vmatpush3.bf16.msra.mxu0 %v6652_v28 }
 0x544   : > { %6020 = vmatprep.subr.bf16.mxu0 %v6653_v24 }
 0x547   : > { %6021 = vmatpush3.bf16.msra.mxu0 %v6653_v24 }
 0x5e2   : > { %v5964_v60 = vpop.f32.mrb[64].mxu0 }
 0x5e3   : > { %v3270_v52 = vadd.f32 %v5964_v60, %v5724_v27  ;;  %v3261_v53 = vpop.f32.mrb[65].mxu0 }
 0x5e4   : > { %v3262_v56 = vadd.f32 %v5724_v27, %v3261_v53  ;;  %v5965_v59 = vpop.f32.mrb[66].mxu0 }
 0x5e5   : > { %v3273_v23 = vadd.f32 %v5965_v59, %v5724_v27  ;;  %v3264_v41 = vpop.f32.mrb[67].mxu0  ;;  %v3326_v0 = vmax.f32 %v3270_v52, 0.0 }
 0x5e6   : > { %v3265_v63 = vadd.f32 %v5724_v27, %v3264_v41  ;;  %v3324_v43 = vmax.f32 %v3262_v56, 0.0 }
 0x5e7   : > { %v3327_v55 = vmax.f32 %v3273_v23, 0.0 }
 0x5e8   : > { %v3325_v25 = vmax.f32 %v3265_v63, 0.0 }
 0x5e9   : > { %v3341_v62 = vpack.c.bf16 %v3327_v55, %v3326_v0 }
 0x5ea   : > { %v3340_v29 = vpack.c.bf16 %v3325_v25, %v3324_v43 }
 0x5ec   : > { %5994 = vmatprep.mubr.bf16.mxu1 %v3340_v29  ;;  %v6655_v29 = vld [vmem:[#allocation13 + $0x38] sm:$0xff]  }
 0x5ed   : > { %5995 = vmatmul.mubr.bf16.vlgmr.msra.gmra.mrb[64].mxu1 %v3341_v62  ;;  %v6654_v62 = vld [vmem:[#allocation13 + $0x30] sm:$0xff]  }
 0x5ee   : > { %6022 = vmatprep.subr.bf16.mxu0 %v6654_v62 }
 0x5ef   : > { %6023 = vmatpush3.bf16.msra.mxu0 %v6654_v62 }
 0x5f0   : > { %v5968_v1 = vpop.f32.mrb[68].mxu0  ;;  %6024 = vmatprep.subr.bf16.mxu0 %v6655_v29 }
 0x5f1   : > { %v3286_v2 = vadd.f32 %v5968_v1, %v5724_v27  ;;  %v3277_v32 = vpop.f32.mrb[69].mxu0  ;;  %v6656_v1 = vld [vmem:[#allocation14] sm:$0xff]  }
 0x5f2   : > { %v3278_v34 = vadd.f32 %v5724_v27, %v3277_v32  ;;  %v5969_v49 = vpop.f32.mrb[70].mxu0  ;;  %6042 = vmatprep.subr.bf16.mxu1 %v6656_v1  ;;  %v6659_v32 = vld [vmem:[#allocation14 + $0x18] sm:$0xff]  }
 0x5f3   : > { %v3289_v10 = vadd.f32 %v5969_v49, %v5724_v27  ;;  %v3280_v15 = vpop.f32.mrb[71].mxu0  ;;  %v3330_v12 = vmax.f32 %v3286_v2, 0.0  ;;  %6025 = vmatpush3.bf16.msra.mxu0 %v6655_v29  ;;  %v6657_v2 = vld [vmem:[#allocation14 + $0x8] sm:$0xff]   ;;  %6043 = vmatpush3.bf16.msra.mxu1 %v6656_v1 }
 0x5f4   : > { %v3281_v6 = vadd.f32 %v5724_v27, %v3280_v15  ;;  %v3328_v17 = vmax.f32 %v3278_v34, 0.0  ;;  %6044 = vmatprep.subr.bf16.mxu1 %v6657_v2  ;;  %v6660_v34 = vld [vmem:[#allocation14 + $0x20] sm:$0xff]   ;;  %v6661_v49 = vld [vmem:[#allocation14 + $0x28] sm:$0xff]  }
 0x5f5   : > { %v3331_v14 = vmax.f32 %v3289_v10, 0.0  ;;  %v5733_v10 = vld [vmem:[%s9503_s10] ss:$0 sm:$0xff] }
 0x5f6   : > { %v3329_v46 = vmax.f32 %v3281_v6, 0.0 }
 0x5f7   : > { %v3343_v47 = vpack.c.bf16 %v3331_v14, %v3330_v12  ;;  %6045 = vmatpush3.bf16.msra.mxu1 %v6657_v2 }
 0x5f8   : > { %v3342_v8 = vpack.c.bf16 %v3329_v46, %v3328_v17 }
 0x5fa   : > { %5998 = vmatprep.mubr.bf16.mxu1 %v3342_v8 }
 0x5fb   : > { %5999 = vmatmul.mubr.bf16.gmra.mrb[68].mxu1 %v3343_v47 }
 0x600   : > { %v5972_v4 = vpop.f32.mrb[72].mxu0 }
 0x601   : > { %v3302_v51 = vadd.f32 %v5972_v4, %v5724_v27  ;;  %v3293_v5 = vpop.f32.mrb[73].mxu0 }
 0x602   : > { %v3294_v33 = vadd.f32 %v5724_v27, %v3293_v5  ;;  %v5973_v13 = vpop.f32.mrb[74].mxu0 }
 0x603   : > { %v3305_v45 = vadd.f32 %v5973_v13, %v5724_v27  ;;  %v3296_v35 = vpop.f32.mrb[75].mxu0  ;;  %v3334_v7 = vmax.f32 %v3302_v51, 0.0 }
 0x604   : > { %v3297_v19 = vadd.f32 %v5724_v27, %v3296_v35  ;;  %v3332_v54 = vmax.f32 %v3294_v33, 0.0 }
 0x605   : > { %v3335_v30 = vmax.f32 %v3305_v45, 0.0 }
 0x606   : > { %v3333_v37 = vmax.f32 %v3297_v19, 0.0 }
 0x607   : > { %v3345_v21 = vpack.c.bf16 %v3335_v30, %v3334_v7 }
 0x608   : > { %v3344_v42 = vpack.c.bf16 %v3333_v37, %v3332_v54 }
 0x60a   : > { %6002 = vmatprep.mubr.bf16.mxu1 %v3344_v42 }
 0x60b   : > { %6003 = vmatmul.mubr.bf16.gmra.mrb[72].mxu1 %v3345_v21 }
 0x610   : > { %v5976_v28 = vpop.f32.mrb[76].mxu0 }
 0x611   : > { %v3318_v24 = vadd.f32 %v5976_v28, %v5724_v27  ;;  %v3309_v60 = vpop.f32.mrb[77].mxu0 }
 0x612   : > { %v3310_v52 = vadd.f32 %v5724_v27, %v3309_v60  ;;  %v5977_v53 = vpop.f32.mrb[78].mxu0 }
 0x613   : > { %v3321_v56 = vadd.f32 %v5977_v53, %v5724_v27  ;;  %v3312_v59 = vpop.f32.mrb[79].mxu0  ;;  %v3338_v41 = vmax.f32 %v3318_v24, 0.0 }
 0x614   : > { %v3313_v23 = vadd.f32 %v5724_v27, %v3312_v59  ;;  %v3336_v0 = vmax.f32 %v3310_v52, 0.0  ;;  %v6658_v27 = vld [vmem:[#allocation14 + $0x10] sm:$0xff]  }
 0x615   : > { %v3339_v63 = vmax.f32 %v3321_v56, 0.0  ;;  %6046 = vmatprep.subr.bf16.mxu1 %v6658_v27 }
 0x616   : > { %v3337_v55 = vmax.f32 %v3313_v23, 0.0  ;;  %6047 = vmatpush3.bf16.msra.mxu1 %v6658_v27 }
 0x617   : > { %v3347_v43 = vpack.c.bf16 %v3339_v63, %v3338_v41  ;;  %6048 = vmatprep.subr.bf16.mxu1 %v6659_v32 }
 0x618   : > { %v3346_v25 = vpack.c.bf16 %v3337_v55, %v3336_v0 }
 0x61a   : > { %6006 = vmatprep.mubr.bf16.mxu1 %v3346_v25  ;;  %6049 = vmatpush3.bf16.msra.mxu1 %v6659_v32 }
 0x61b   : > { %6007 = vmatmul.mubr.bf16.gmra.mrb[76].mxu1 %v3347_v43  ;;  %6050 = vmatprep.subr.bf16.mxu1 %v6660_v34 }
 0x61e   : > { %6051 = vmatpush3.bf16.msra.mxu1 %v6660_v34 }
 0x61f   : > { %6052 = vmatprep.subr.bf16.mxu1 %v6661_v49 }
 0x622   : > { %6053 = vmatpush3.bf16.msra.mxu1 %v6661_v49 }
 0x6c0   : > { %v5996_v15 = vpop.f32.mrb[64].mxu1 }
 0x6c1   : > { %v3462_v6 = vadd.f32 %v5996_v15, %v5733_v10  ;;  %v3453_v12 = vpop.f32.mrb[65].mxu1 }
 0x6c2   : > { %v3454_v14 = vadd.f32 %v5733_v10, %v3453_v12  ;;  %v5997_v17 = vpop.f32.mrb[66].mxu1 }
 0x6c3   : > { %v3465_v46 = vadd.f32 %v5997_v17, %v5733_v10  ;;  %v3456_v47 = vpop.f32.mrb[67].mxu1  ;;  %v3518_v4 = vmax.f32 %v3462_v6, 0.0 }
 0x6c4   : > { %v3457_v8 = vadd.f32 %v5733_v10, %v3456_v47  ;;  %v3516_v5 = vmax.f32 %v3454_v14, 0.0 }
 0x6c5   : > { %v3519_v51 = vmax.f32 %v3465_v46, 0.0 }
 0x6c6   : > { %v3517_v33 = vmax.f32 %v3457_v8, 0.0 }
 0x6c7   : > { %v3533_v13 = vpack.c.bf16 %v3519_v51, %v3518_v4 }
 0x6c8   : > { %v3532_v45 = vpack.c.bf16 %v3517_v33, %v3516_v5 }
 0x6ca   : > { %6026 = vmatprep.mubr.bf16.mxu0 %v3532_v45  ;;  %v6663_v45 = vld [vmem:[#allocation14 + $0x38] sm:$0xff]  }
 0x6cb   : > { %6027 = vmatmul.mubr.bf16.vlgmr.msra.gmra.mrb[80].mxu0 %v3533_v13  ;;  %v6662_v13 = vld [vmem:[#allocation14 + $0x30] sm:$0xff]  }
 0x6cc   : > { %6054 = vmatprep.subr.bf16.mxu1 %v6662_v13 }
 0x6cd   : > { %6055 = vmatpush3.bf16.msra.mxu1 %v6662_v13 }
 0x6ce   : > { %v6000_v35 = vpop.f32.mrb[68].mxu1  ;;  %6056 = vmatprep.subr.bf16.mxu1 %v6663_v45 }
 0x6cf   : > { %v3478_v19 = vadd.f32 %v6000_v35, %v5733_v10  ;;  %v3469_v7 = vpop.f32.mrb[69].mxu1  ;;  %v6664_v35 = vld [vmem:[#allocation16] ss:$16 sps:$4 sm:$0xff]  }
 0x6d0   : > { %v3470_v30 = vadd.f32 %v5733_v10, %v3469_v7  ;;  %v6001_v54 = vpop.f32.mrb[70].mxu1  ;;  %v6669_v7 = vld [vmem:[#allocation16 + $0xc] ss:$16 sps:$4 sm:$0xff]  }
 0x6d1   : > { %v3481_v37 = vadd.f32 %v6001_v54, %v5733_v10  ;;  %v3472_v21 = vpop.f32.mrb[71].mxu1  ;;  %v3522_v28 = vmax.f32 %v3478_v19, 0.0  ;;  %6057 = vmatpush3.bf16.msra.mxu1 %v6663_v45  ;;  %v6666_v19 = vld [vmem:[#allocation16 + $0x4] ss:$16 sps:$4 sm:$0xff]   ;;  %v6685_v45 = vld [vmem:[#allocation16 + $0x68] ss:$16 sps:$4 sm:$0xff]  }
 0x6d2   : > { %v3473_v42 = vadd.f32 %v5733_v10, %v3472_v21  ;;  %v3520_v60 = vmax.f32 %v3470_v30, 0.0  ;;  %v6672_v30 = vld [vmem:[#allocation16 + $0x24] ss:$16 sps:$4 sm:$0xff]   ;;  %4154 = vmatprep.subr.bf16.mxu0 %v6666_v19  ;;  %4267 = vmatprep.subr.bf16.mxu1 %v6669_v7  ;;  %v6693_v19 = vld [vmem:[#allocation16 + $0x8c] ss:$16 sps:$4 sm:$0xff]  }
 0x6d3   : > { %v3523_v24 = vmax.f32 %v3481_v37, 0.0  ;;  %4155 = vmatpush1.bf16.msra.mxu0 %v6664_v35  ;;  %v6678_v54 = vld [vmem:[#allocation16 + $0x44] ss:$16 sps:$4 sm:$0xff]   ;;  %v6676_v37 = vld [vmem:[#allocation16 + $0x40] ss:$16 sps:$4 sm:$0xff]  }
 0x6d4   : > { %v3521_v52 = vmax.f32 %v3473_v42, 0.0  ;;  %4156 = vmatprep.subr.bf16.mxu0 %v6672_v30  ;;  %v6684_v21 = vld [vmem:[#allocation16 + $0x64] ss:$16 sps:$4 sm:$0xff]   ;;  %v6682_v42 = vld [vmem:[#allocation16 + $0x60] ss:$16 sps:$4 sm:$0xff]  }
 0x6d5   : > { %v3535_v53 = vpack.c.bf16 %v3523_v24, %v3522_v28  ;;  %v6690_v28 = vld [vmem:[#allocation16 + $0x84] ss:$16 sps:$4 sm:$0xff]   ;;  %v6688_v24 = vld [vmem:[#allocation16 + $0x80] ss:$16 sps:$4 sm:$0xff]   ;;  %v6691_v30 = vld [vmem:[#allocation16 + $0x88] ss:$16 sps:$4 sm:$0xff]  }
 0x6d6   : > { %v3534_v56 = vpack.c.bf16 %v3521_v52, %v3520_v60  ;;  %v8450_v60 = vld [vmem:[%s9504_s5] ss:$0 sm:$0xff]  ;;  %s7164_s5 = scalar_lea.vmem %s7163_s6, 4096 }
 0x6d8   : > { %6030 = vmatprep.mubr.bf16.mxu0 %v3534_v56 }
 0x6d9   : > { %6031 = vmatmul.mubr.bf16.gmra.mrb[84].mxu0 %v3535_v53 }
 0x6de   : > { %v6004_v59 = vpop.f32.mrb[72].mxu1 }
 0x6df   : > { %v3494_v23 = vadd.f32 %v6004_v59, %v5733_v10  ;;  %v3485_v41 = vpop.f32.mrb[73].mxu1 }
 0x6e0   : > { %v3486_v63 = vadd.f32 %v5733_v10, %v3485_v41  ;;  %v6005_v0 = vpop.f32.mrb[74].mxu1 }
 0x6e1   : > { %v3497_v55 = vadd.f32 %v6005_v0, %v5733_v10  ;;  %v3488_v43 = vpop.f32.mrb[75].mxu1  ;;  %v3526_v62 = vmax.f32 %v3494_v23, 0.0 }
 0x6e2   : > { %v3489_v25 = vadd.f32 %v5733_v10, %v3488_v43  ;;  %v3524_v1 = vmax.f32 %v3486_v63, 0.0 }
 0x6e3   : > { %v3527_v29 = vmax.f32 %v3497_v55, 0.0 }
 0x6e4   : > { %v3525_v2 = vmax.f32 %v3489_v25, 0.0 }
 0x6e5   : > { %v3537_v27 = vpack.c.bf16 %v3527_v29, %v3526_v62 }
 0x6e6   : > { %v3536_v32 = vpack.c.bf16 %v3525_v2, %v3524_v1  ;;  %v6667_v2 = vld [vmem:[#allocation16 + $0x8] ss:$16 sps:$4 sm:$0xff]  }
 0x6e8   : > { %6034 = vmatprep.mubr.bf16.mxu0 %v3536_v32  ;;  %v6673_v32 = vld [vmem:[#allocation16 + $0x28] ss:$16 sps:$4 sm:$0xff]  }
 0x6e9   : > { %6035 = vmatmul.mubr.bf16.gmra.mrb[88].mxu0 %v3537_v27  ;;  %v6675_v27 = vld [vmem:[#allocation16 + $0x2c] ss:$16 sps:$4 sm:$0xff]  }
 0x6ee   : > { %v6008_v34 = vpop.f32.mrb[76].mxu1 }
 0x6ef   : > { %v3510_v49 = vadd.f32 %v6008_v34, %v5733_v10  ;;  %v3501_v15 = vpop.f32.mrb[77].mxu1  ;;  %v6681_v34 = vld [vmem:[#allocation16 + $0x4c] ss:$16 sps:$4 sm:$0xff]  }
 0x6f0   : > { %v3502_v6 = vadd.f32 %v5733_v10, %v3501_v15  ;;  %v6009_v12 = vpop.f32.mrb[78].mxu1 }
 0x6f1   : > { %v3513_v14 = vadd.f32 %v6009_v12, %v5733_v10  ;;  %v3504_v17 = vpop.f32.mrb[79].mxu1  ;;  %v3530_v47 = vmax.f32 %v3510_v49, 0.0 }
 0x6f2   : > { %v3505_v46 = vadd.f32 %v5733_v10, %v3504_v17  ;;  %v3528_v4 = vmax.f32 %v3502_v6, 0.0  ;;  %v6670_v10 = vld [vmem:[#allocation16 + $0x20] ss:$16 sps:$4 sm:$0xff]   ;;  %v6679_v17 = vld [vmem:[#allocation16 + $0x48] ss:$16 sps:$4 sm:$0xff]  }
 0x6f3   : > { %v3531_v8 = vmax.f32 %v3513_v14, 0.0  ;;  %4157 = vmatpush1.bf16.msra.mxu0 %v6670_v10 }
 0x6f4   : > { %v3529_v51 = vmax.f32 %v3505_v46, 0.0  ;;  %4158 = vmatprep.subr.bf16.mxu0 %v6678_v54 }
 0x6f5   : > { %v3539_v5 = vpack.c.bf16 %v3531_v8, %v3530_v47  ;;  %v6687_v8 = vld [vmem:[#allocation16 + $0x6c] ss:$16 sps:$4 sm:$0xff]  }
 0x6f6   : > { %v3538_v33 = vpack.c.bf16 %v3529_v51, %v3528_v4 }
 0x6f7   : > { %4159 = vmatpush1.bf16.msra.mxu0 %v6676_v37 }
 0x6f8   : > { %6038 = vmatprep.mubr.bf16.mxu0 %v3538_v33  ;;  %4160 = vmatprep.subr.bf16.mxu0 %v6684_v21 }
 0x6f9   : > { %6039 = vmatmul.mubr.bf16.gmra.mrb[92].mxu0 %v3539_v5 }
 0x6fb   : > { %4161 = vmatpush1.bf16.msra.mxu0 %v6682_v42 }
 0x6fc   : > { %4162 = vmatprep.subr.bf16.mxu0 %v6690_v28 }
 0x6ff   : > { %4163 = vmatpush1.bf16.msra.mxu0 %v6688_v24 }
 0x79e   : > { %v6028_v52 = vpop.f32.mrb[80].mxu0 }
 0x79f   : > { %v3654_v53 = vadd.f32 %v6028_v52, %v8450_v60  ;;  %v3645_v56 = vpop.f32.mrb[81].mxu0 }
 0x7a0   : > { %v3646_v59 = vadd.f32 %v8450_v60, %v3645_v56  ;;  %v6029_v23 = vpop.f32.mrb[82].mxu0 }
 0x7a1   : > { %v3657_v41 = vadd.f32 %v6029_v23, %v8450_v60  ;;  %v3648_v63 = vpop.f32.mrb[83].mxu0  ;;  %v3710_v55 = vmax.f32 %v3654_v53, 0.0 }
 0x7a2   : > { %v3649_v0 = vadd.f32 %v8450_v60, %v3648_v63  ;;  %v3708_v25 = vmax.f32 %v3646_v59, 0.0 }
 0x7a3   : > { %v3711_v43 = vmax.f32 %v3657_v41, 0.0 }
 0x7a4   : > { %v3709_v62 = vmax.f32 %v3649_v0, 0.0 }
 0x7a5   : > { %v3725_v29 = vpack.c.bf16 %v3711_v43, %v3710_v55 }
 0x7a6   : > { %v3724_v1 = vpack.c.bf16 %v3709_v62, %v3708_v25 }
 0x7a8   : > { %6058 = vmatprep.mubr.bf16.mxu1 %v3724_v1 }
 0x7a9   : > { %6059 = vmatmul.mubr.bf16.vlgmr.msra.gmra.mrb[80].mxu1 %v3725_v29 }
 0x7aa   : > { %4268 = vmatpush1.bf16.msra.mxu1 %v6667_v2 }
 0x7ab   : > { %4269 = vmatprep.subr.bf16.mxu1 %v6675_v27 }
 0x7ac   : > { %v6032_v49 = vpop.f32.mrb[84].mxu0 }
 0x7ad   : > { %v3670_v15 = vadd.f32 %v6032_v49, %v8450_v60  ;;  %v3661_v6 = vpop.f32.mrb[85].mxu0 }
 0x7ae   : > { %v3662_v12 = vadd.f32 %v8450_v60, %v3661_v6  ;;  %v6033_v14 = vpop.f32.mrb[86].mxu0  ;;  %4270 = vmatpush1.bf16.msra.mxu1 %v6673_v32 }
 0x7af   : > { %v3673_v46 = vadd.f32 %v6033_v14, %v8450_v60  ;;  %v3664_v47 = vpop.f32.mrb[87].mxu0  ;;  %4271 = vmatprep.subr.bf16.mxu1 %v6681_v34  ;;  %v3714_v51 = vmax.f32 %v3670_v15, 0.0  ;;  %v6699_v14 = vld [vmem:[#allocation16 + $0xac] ss:$16 sps:$4 sm:$0xff]  }
 0x7b0   : > { %v3665_v4 = vadd.f32 %v8450_v60, %v3664_v47  ;;  %v3712_v33 = vmax.f32 %v3662_v12, 0.0  ;;  %v6696_v12 = vld [vmem:[#allocation16 + $0xa4] ss:$16 sps:$4 sm:$0xff]  }
 0x7b1   : > { %v3715_v5 = vmax.f32 %v3673_v46, 0.0  ;;  %v6697_v46 = vld [vmem:[#allocation16 + $0xa8] ss:$16 sps:$4 sm:$0xff]   ;;  %4164 = vmatprep.subr.bf16.mxu0 %v6696_v12  ;;  %v6702_v47 = vld [vmem:[#allocation16 + $0xc4] ss:$16 sps:$4 sm:$0xff]  }
 0x7b2   : > { %v3713_v13 = vmax.f32 %v3665_v4, 0.0  ;;  %4272 = vmatpush1.bf16.msra.mxu1 %v6679_v17  ;;  %v6694_v17 = vld [vmem:[#allocation16 + $0xa0] ss:$16 sps:$4 sm:$0xff]  }
 0x7b3   : > { %v3727_v35 = vpack.c.bf16 %v3715_v5, %v3714_v51  ;;  %4273 = vmatprep.subr.bf16.mxu1 %v6687_v8  ;;  %4165 = vmatpush1.bf16.msra.mxu0 %v6694_v17  ;;  %v6705_v8 = vld [vmem:[#allocation16 + $0xcc] ss:$16 sps:$4 sm:$0xff]   ;;  %v6700_v4 = vld [vmem:[#allocation16 + $0xc0] ss:$16 sps:$4 sm:$0xff]   ;;  %v6708_v51 = vld [vmem:[#allocation16 + $0xe4] ss:$16 sps:$4 sm:$0xff]  }
 0x7b4   : > { %v3726_v7 = vpack.c.bf16 %v3713_v13, %v3712_v33  ;;  %4166 = vmatprep.subr.bf16.mxu0 %v6702_v47  ;;  %v6711_v5 = vld [vmem:[#allocation16 + $0xec] ss:$16 sps:$4 sm:$0xff]   ;;  %v6706_v33 = vld [vmem:[#allocation16 + $0xe0] ss:$16 sps:$4 sm:$0xff]   ;;  %v6709_v13 = vld [vmem:[#allocation16 + $0xe8] ss:$16 sps:$4 sm:$0xff]  }
 0x7b6   : > { %6062 = vmatprep.mubr.bf16.mxu1 %v3726_v7  ;;  %4274 = vmatpush1.bf16.msra.mxu1 %v6685_v45  ;;  %v7377_v45 = vmov 0  }
 0x7b7   : > { %6063 = vmatmul.mubr.bf16.gmra.mrb[84].mxu1 %v3727_v35  ;;  %4275 = vmatprep.subr.bf16.mxu1 %v6693_v19  ;;  %v8473_v35 = vld [vmem:[%s9505_s11] ss:$0 sm:$0xff]  ;;  %s9075_s11 = scalar_lea.hbm %s9548_s22, %s9069_s19 }
 0x7b8   : > { %4167 = vmatpush1.bf16.msra.mxu0 %v6700_v4  ;;  %4186 = vmatprep.mubr.bf16.mxu0 %v7377_v45 }
 0x7b9   : > { %4168 = vmatprep.subr.bf16.mxu0 %v6708_v51 }
 0x7ba   : > { %4276 = vmatpush1.bf16.msra.mxu1 %v6691_v30 }
 0x7bb   : > { %4277 = vmatprep.subr.bf16.mxu1 %v6699_v14 }
 0x7bc   : > { %v6036_v10 = vpop.f32.mrb[88].mxu0  ;;  %4169 = vmatpush1.bf16.msra.mxu0 %v6706_v33 }
 0x7bd   : > { %v3686_v54 = vadd.f32 %v6036_v10, %v8450_v60  ;;  %v3677_v37 = vpop.f32.mrb[89].mxu0 }
 0x7be   : > { %v3678_v21 = vadd.f32 %v8450_v60, %v3677_v37  ;;  %v6037_v42 = vpop.f32.mrb[90].mxu0  ;;  %4278 = vmatpush1.bf16.msra.mxu1 %v6697_v46 }
 0x7bf   : > { %v3689_v28 = vadd.f32 %v6037_v42, %v8450_v60  ;;  %v3680_v24 = vpop.f32.mrb[91].mxu0  ;;  %v3718_v53 = vmax.f32 %v3686_v54, 0.0  ;;  %4279 = vmatprep.subr.bf16.mxu1 %v6705_v8 }
 0x7c0   : > { %v3681_v52 = vadd.f32 %v8450_v60, %v3680_v24  ;;  %v3716_v59 = vmax.f32 %v3678_v21, 0.0 }
 0x7c1   : > { %v3719_v56 = vmax.f32 %v3689_v28, 0.0 }
 0x7c2   : > { %v3717_v23 = vmax.f32 %v3681_v52, 0.0 }
 0x7c3   : > { %v3729_v41 = vpack.c.bf16 %v3719_v56, %v3718_v53 }
 0x7c4   : > { %v3728_v63 = vpack.c.bf16 %v3717_v23, %v3716_v59 }
 0x7c6   : > { %6066 = vmatprep.mubr.bf16.mxu1 %v3728_v63 }
 0x7c7   : > { %6067 = vmatmul.mubr.bf16.gmra.mrb[88].mxu1 %v3729_v41 }
 0x7cc   : > { %v6040_v0 = vpop.f32.mrb[92].mxu0 }
 0x7cd   : > { %v3702_v55 = vadd.f32 %v6040_v0, %v8450_v60  ;;  %v3693_v43 = vpop.f32.mrb[93].mxu0 }
 0x7ce   : > { %v3694_v25 = vadd.f32 %v8450_v60, %v3693_v43  ;;  %v6041_v62 = vpop.f32.mrb[94].mxu0 }
 0x7cf   : > { %v3705_v29 = vadd.f32 %v6041_v62, %v8450_v60  ;;  %v3696_v1 = vpop.f32.mrb[95].mxu0  ;;  %v3722_v27 = vmax.f32 %v3702_v55, 0.0 }
 0x7d0   : > { %v3697_v2 = vadd.f32 %v8450_v60, %v3696_v1  ;;  %v3720_v34 = vmax.f32 %v3694_v25, 0.0  ;;  %v6703_v60 = vld [vmem:[#allocation16 + $0xc8] ss:$16 sps:$4 sm:$0xff]  }
 0x7d1   : > { %v3723_v32 = vmax.f32 %v3705_v29, 0.0  ;;  %4280 = vmatpush1.bf16.msra.mxu1 %v6703_v60 }
 0x7d2   : > { %v3721_v49 = vmax.f32 %v3697_v2, 0.0  ;;  %4281 = vmatprep.subr.bf16.mxu1 %v6711_v5 }
 0x7d3   : > { %v3731_v15 = vpack.c.bf16 %v3723_v32, %v3722_v27 }
 0x7d4   : > { %v3730_v6 = vpack.c.bf16 %v3721_v49, %v3720_v34 }
 0x7d5   : > { %4282 = vmatpush1.bf16.msra.mxu1 %v6709_v13 }
 0x7d6   : > { %6070 = vmatprep.mubr.bf16.mxu1 %v3730_v6 }
 0x7d7   : > { %6071 = vmatmul.mubr.bf16.gmra.mrb[92].mxu1 %v3731_v15 }
 0x7d8   : > { %4299 = vmatprep.mubr.bf16.mxu1 %v7377_v45 }
 0x87c   : > { %v6060_v19 = vpop.f32.mrb[80].mxu1 }
 0x87d   : > { %v3846_v7 = vadd.f32 %v6060_v19, %v8473_v35  ;;  %v3837_v30 = vpop.f32.mrb[81].mxu1 }
 0x87e   : > { %v3838_v10 = vadd.f32 %v8473_v35, %v3837_v30  ;;  %v6061_v54 = vpop.f32.mrb[82].mxu1 }
 0x87f   : > { %v3902_v37 = vmax.f32 %v3846_v7, 0.0  ;;  %v3849_v21 = vadd.f32 %v6061_v54, %v8473_v35  ;;  %v3840_v42 = vpop.f32.mrb[83].mxu1 }
 0x880   : > { %v3900_v28 = vmax.f32 %v3838_v10, 0.0  ;;  %v3841_v24 = vadd.f32 %v8473_v35, %v3840_v42 }
 0x881   : > { %v3918_v52 = vadd.f32 %v3902_v37, %v8386_v57  ;;  %v3903_v53 = vmax.f32 %v3849_v21, 0.0 }
 0x882   : > { %v3916_v56 = vadd.f32 %v3900_v28, %v8378_v39  ;;  %v3901_v59 = vmax.f32 %v3841_v24, 0.0 }
 0x883   : > { %4830 = vst [vmem:[%s8482_s7 + $0x10] sm:$0xff] %v3918_v52  ;;  %v3919_v23 = vadd.f32 %v3903_v53, %v8389_v22 }
 0x884   : > { %4828 = vst [vmem:[%s8482_s7] sm:$0xff] %v3916_v56  ;;  %v3917_v41 = vadd.f32 %v3901_v59, %v8381_v38 }
 0x885   : > { %4831 = vst [vmem:[%s8482_s7 + $0x18] sm:$0xff] %v3919_v23  ;;  %v3933_v63 = vpack.c.bf16 %v3919_v23, %v3918_v52 }
 0x886   : > { %v3932_v0 = vpack.c.bf16 %v3917_v41, %v3916_v56  ;;  %4829 = vst [vmem:[%s8482_s7 + $0x8] sm:$0xff] %v3917_v41 }
 0x888   : > { %4187 = vmatmul.mubr.bf16.vlgmr.msra.gmra.mrb[96].mxu0 %v3932_v0  ;;  %4300 = vmatmul.mubr.bf16.vlgmr.msra.gmra.mrb[96].mxu1 %v3932_v0 }
 0x889   : > { %4196 = vmatprep.mubr.bf16.mxu0 %v7377_v45  ;;  %4309 = vmatprep.mubr.bf16.mxu1 %v7377_v45 }
 0x88a   : > { %v6064_v39 = vpop.f32.mrb[84].mxu1 }
 0x88b   : > { %v3862_v57 = vadd.f32 %v6064_v39, %v8473_v35  ;;  %v3853_v55 = vpop.f32.mrb[85].mxu1 }
 0x88c   : > { %v3854_v22 = vadd.f32 %v8473_v35, %v3853_v55  ;;  %v6065_v43 = vpop.f32.mrb[86].mxu1 }
 0x88d   : > { %v3906_v38 = vmax.f32 %v3862_v57, 0.0  ;;  %v3865_v25 = vadd.f32 %v6065_v43, %v8473_v35  ;;  %v3856_v62 = vpop.f32.mrb[87].mxu1 }
 0x88e   : > { %v3904_v29 = vmax.f32 %v3854_v22, 0.0  ;;  %v3857_v1 = vadd.f32 %v8473_v35, %v3856_v62 }
 0x88f   : > { %v3922_v2 = vadd.f32 %v3906_v38, %v8402_v26  ;;  %v3907_v27 = vmax.f32 %v3865_v25, 0.0 }
 0x890   : > { %v3920_v32 = vadd.f32 %v3904_v29, %v8394_v61  ;;  %v3905_v34 = vmax.f32 %v3857_v1, 0.0  ;;  %4197 = vmatmul.mubr.bf16.gmra.mrb[100].mxu0 %v3933_v63  ;;  %4310 = vmatmul.mubr.bf16.gmra.mrb[100].mxu1 %v3933_v63  ;;  %v3988_v63 = vsub.s32 3, %v8003_v31 }
 0x891   : > { %4834 = vst [vmem:[%s8482_s7 + $0x30] sm:$0xff] %v3922_v2  ;;  %v3923_v49 = vadd.f32 %v3907_v27, %v8405_v44  ;;  %4206 = vmatprep.mubr.bf16.mxu0 %v7377_v45  ;;  %4319 = vmatprep.mubr.bf16.mxu1 %v7377_v45 }
 0x892   : > { %4832 = vst [vmem:[%s8482_s7 + $0x20] sm:$0xff] %v3920_v32  ;;  %v3921_v15 = vadd.f32 %v3905_v34, %v8397_v16 }
 0x893   : > { %4835 = vst [vmem:[%s8482_s7 + $0x38] sm:$0xff] %v3923_v49  ;;  %v3935_v6 = vpack.c.bf16 %v3923_v49, %v3922_v2 }
 0x894   : > { %4833 = vst [vmem:[%s8482_s7 + $0x28] sm:$0xff] %v3921_v15  ;;  %v3934_v26 = vpack.c.bf16 %v3921_v15, %v3920_v32 }
 0x898   : > { %4207 = vmatmul.mubr.bf16.gmra.mrb[104].mxu0 %v3934_v26  ;;  %4320 = vmatmul.mubr.bf16.gmra.mrb[104].mxu1 %v3934_v26 }
 0x899   : > { %4216 = vmatprep.mubr.bf16.mxu0 %v7377_v45  ;;  %4329 = vmatprep.mubr.bf16.mxu1 %v7377_v45 }
 0x89a   : > { %v6068_v61 = vpop.f32.mrb[88].mxu1 }
 0x89b   : > { %v3878_v44 = vadd.f32 %v6068_v61, %v8473_v35  ;;  %v3869_v12 = vpop.f32.mrb[89].mxu1 }
 0x89c   : > { %v3870_v14 = vadd.f32 %v8473_v35, %v3869_v12  ;;  %v6069_v17 = vpop.f32.mrb[90].mxu1 }
 0x89d   : > { %v3910_v16 = vmax.f32 %v3878_v44, 0.0  ;;  %v3881_v46 = vadd.f32 %v6069_v17, %v8473_v35  ;;  %v3872_v47 = vpop.f32.mrb[91].mxu1 }
 0x89e   : > { %v3908_v8 = vmax.f32 %v3870_v14, 0.0  ;;  %v3873_v4 = vadd.f32 %v8473_v35, %v3872_v47 }
 0x89f   : > { %v3926_v60 = vadd.f32 %v3910_v16, %v8418_v18  ;;  %v3911_v51 = vmax.f32 %v3881_v46, 0.0 }
 0x8a0   : > { %v3924_v5 = vadd.f32 %v3908_v8, %v8410_v11  ;;  %v3909_v33 = vmax.f32 %v3873_v4, 0.0  ;;  %4217 = vmatmul.mubr.bf16.gmra.mrb[108].mxu0 %v3935_v6  ;;  %4330 = vmatmul.mubr.bf16.gmra.mrb[108].mxu1 %v3935_v6 }
 0x8a1   : > { %4838 = vst [vmem:[%s8482_s7 + $0x50] sm:$0xff] %v3926_v60  ;;  %v3927_v13 = vadd.f32 %v3911_v51, %v8421_v48  ;;  %4226 = vmatprep.mubr.bf16.mxu0 %v7377_v45  ;;  %4339 = vmatprep.mubr.bf16.mxu1 %v7377_v45 }
 0x8a2   : > { %4836 = vst [vmem:[%s8482_s7 + $0x40] sm:$0xff] %v3924_v5  ;;  %v3925_v19 = vadd.f32 %v3909_v33, %v8413_v9 }
 0x8a3   : > { %4839 = vst [vmem:[%s8482_s7 + $0x58] sm:$0xff] %v3927_v13  ;;  %v3937_v7 = vpack.c.bf16 %v3927_v13, %v3926_v60 }
 0x8a4   : > { %4837 = vst [vmem:[%s8482_s7 + $0x48] sm:$0xff] %v3925_v19  ;;  %v3936_v18 = vpack.c.bf16 %v3925_v19, %v3924_v5 }
 0x8a8   : > { %4227 = vmatmul.mubr.bf16.gmra.mrb[112].mxu0 %v3936_v18  ;;  %4340 = vmatmul.mubr.bf16.gmra.mrb[112].mxu1 %v3936_v18 }
 0x8a9   : > { %4236 = vmatprep.mubr.bf16.mxu0 %v7377_v45  ;;  %4349 = vmatprep.mubr.bf16.mxu1 %v7377_v45 }
 0x8aa   : > { %v6072_v11 = vpop.f32.mrb[92].mxu1 }
 0x8ab   : > { %v3894_v48 = vadd.f32 %v6072_v11, %v8473_v35  ;;  %v3885_v30 = vpop.f32.mrb[93].mxu1 }
 0x8ac   : > { %v3886_v10 = vadd.f32 %v8473_v35, %v3885_v30  ;;  %v6073_v54 = vpop.f32.mrb[94].mxu1 }
 0x8ad   : > { %v3914_v9 = vmax.f32 %v3894_v48, 0.0  ;;  %v3897_v37 = vadd.f32 %v6073_v54, %v8473_v35  ;;  %v3888_v21 = vpop.f32.mrb[95].mxu1 }
 0x8ae   : > { %v3912_v42 = vmax.f32 %v3886_v10, 0.0  ;;  %v3889_v28 = vadd.f32 %v8473_v35, %v3888_v21 }
 0x8af   : > { %v3930_v24 = vadd.f32 %v3914_v9, %v8434_v20  ;;  %v3915_v52 = vmax.f32 %v3897_v37, 0.0 }
 0x8b0   : > { %v3928_v53 = vadd.f32 %v3912_v42, %v8426_v50  ;;  %v3913_v56 = vmax.f32 %v3889_v28, 0.0  ;;  %4237 = vmatmul.mubr.bf16.gmra.mrb[116].mxu0 %v3937_v7  ;;  %4350 = vmatmul.mubr.bf16.gmra.mrb[116].mxu1 %v3937_v7  ;;  %v3972_v50 = vld [vmem:[%s9506_s0] sm:$0xf]  ;;  %s7158_s0 = scalar_lea.vmem %s9078_s21, 2048 }
 0x8b1   : > { %4842 = vst [vmem:[%s8482_s7 + $0x70] sm:$0xff] %v3930_v24  ;;  %v3931_v59 = vadd.f32 %v3915_v52, %v8437_v40  ;;  %4246 = vmatprep.mubr.bf16.mxu0 %v7377_v45  ;;  %4359 = vmatprep.mubr.bf16.mxu1 %v7377_v45  ;;  %v3984_v40 = vsub.s32 2, %v8003_v31  ;;  %v8548_v41 = vrot.slane %v3972_v50, %v8012_v3  ;;  %p7159_p10 = scmp.ne.s32.totalorder %s9078_s21, %s7158_s0  ;;  %p7166_p8 = scmp.lt.s32.totalorder %s7164_s5, %s7158_s0 }
 0x8b2   : > { %4840 = vst [vmem:[%s8482_s7 + $0x60] sm:$0xff] %v3928_v53  ;;  %v3929_v23 = vadd.f32 %v3913_v56, %v8429_v58  ;;  %v8545_v58 = vrot.slane %v3972_v50, %v8006_v36  ;;  %v8559_v38 = vrot.slane %v3972_v50, %v3988_v63 }
 0x8b3   : > { %4843 = vst [vmem:[%s8482_s7 + $0x78] sm:$0xff] %v3931_v59  ;;  %v3939_v35 = vpack.c.bf16 %v3931_v59, %v3930_v24  ;;  %v8551_v39 = vrot.slane %v3972_v50, %v3984_v40  ;;  %p7160_p11 = pnand %p7159_p10, %p9549_p1  ;;  %p7167_p7 = por %p7166_p8, %p7165_p13 }
 0x8b4   : > { %4841 = vst [vmem:[%s8482_s7 + $0x68] sm:$0xff] %v3929_v23  ;;  %v3938_v20 = vpack.c.bf16 %v3929_v23, %v3928_v53 }
 0x8b5   : > { %p7161_p12 = pneg %p7160_p11 }
 0x8b7   : > { %p7168_p9 = pnand %p7167_p7, %p7161_p12 }
 0x8b8   : > { %4247 = vmatmul.mubr.bf16.gmra.mrb[120].mxu0 %v3938_v20  ;;  %4360 = vmatmul.mubr.bf16.gmra.mrb[120].mxu1 %v3938_v20 }
 0x8b9   : > { %4256 = vmatprep.mubr.bf16.mxu0 %v7377_v45  ;;  %4369 = vmatprep.mubr.bf16.mxu1 %v7377_v45 }
 0x8c0   : > { %4257 = vmatmul.mubr.bf16.gmra.mrb[124].mxu0 %v3939_v35  ;;  %4370 = vmatmul.mubr.bf16.gmra.mrb[124].mxu1 %v3939_v35 }
 0x95b   : > { %v4188_v0 = vpop.f32.mrb[96].mxu0  ;;  %v4301_v45 = vpop.f32.mrb[96].mxu1 }
 0x95c   : > { %v8554_v57 = vadd.f32 %v4188_v0, %v8545_v58  ;;  %v4190_v55 = vpop.f32.mrb[97].mxu0  ;;  %v4303_v22 = vpop.f32.mrb[97].mxu1  ;;  %v8565_v29 = vadd.f32 %v4301_v45, %v8551_v39 }
 0x95d   : > { %v8557_v43 = vadd.f32 %v4190_v55, %v8548_v41  ;;  %v4192_v36 = vpop.f32.mrb[98].mxu0  ;;  %v4305_v25 = vpop.f32.mrb[98].mxu1  ;;  %v8573_v27 = vadd.f32 %v4303_v22, %v8559_v38 }
 0x95e   : > { %v8562_v3 = vadd.f32 %v4192_v36, %v8545_v58  ;;  %v4194_v31 = vpop.f32.mrb[99].mxu0  ;;  %v4307_v62 = vpop.f32.mrb[99].mxu1  ;;  %v8576_v32 = vadd.f32 %v4305_v25, %v8551_v39 }
 0x95f   : > { %v4380_v1 = vmax.f32 %v8554_v57, %v8557_v43  ;;  %v8570_v2 = vadd.f32 %v4194_v31, %v8548_v41  ;;  %v8582_v15 = vadd.f32 %v4307_v62, %v8559_v38 }
 0x961   : > { %v4385_v34 = vmax.f32 %v8562_v3, %v8570_v2  ;;  %v4381_v49 = vmax.f32 %v4380_v1, %v8565_v29 }
 0x963   : > { %v4198_v6 = vpop.f32.mrb[100].mxu0  ;;  %v4311_v26 = vpop.f32.mrb[100].mxu1  ;;  %v4382_v61 = vmax.f32 %v4381_v49, %v8573_v27  ;;  %v4386_v44 = vmax.f32 %v4385_v34, %v8576_v32 }
 0x964   : > { %v8587_v12 = vadd.f32 %v4198_v6, %v8545_v58  ;;  %v4200_v14 = vpop.f32.mrb[101].mxu0  ;;  %v4313_v17 = vpop.f32.mrb[101].mxu1  ;;  %v8597_v5 = vadd.f32 %v4311_v26, %v8551_v39 }
 0x965   : > { %v8590_v16 = vadd.f32 %v4200_v14, %v8548_v41  ;;  %v4202_v46 = vpop.f32.mrb[102].mxu0  ;;  %v4315_v47 = vpop.f32.mrb[102].mxu1  ;;  %4383 = vmax.xlane.f32.xlu0 %v4382_v61  ;;  %v4387_v8 = vmax.f32 %v4386_v44, %v8582_v15  ;;  %v8605_v19 = vadd.f32 %v4313_v17, %v8559_v38 }
 0x966   : > { %v8594_v4 = vadd.f32 %v4202_v46, %v8545_v58  ;;  %v4204_v60 = vpop.f32.mrb[103].mxu0  ;;  %v4317_v51 = vpop.f32.mrb[103].mxu1  ;;  %v8608_v7 = vadd.f32 %v4315_v47, %v8551_v39 }
 0x967   : > { %v4390_v33 = vmax.f32 %v8587_v12, %v8590_v16  ;;  %v8602_v13 = vadd.f32 %v4204_v60, %v8548_v41  ;;  %4388 = vmax.xlane.f32.xlu1 %v4387_v8  ;;  %v8614_v48 = vadd.f32 %v4317_v51, %v8559_v38 }
 0x969   : > { %v4395_v18 = vmax.f32 %v8594_v4, %v8602_v13  ;;  %v4391_v11 = vmax.f32 %v4390_v33, %v8597_v5 }
 0x96b   : > { %v4208_v30 = vpop.f32.mrb[104].mxu0  ;;  %v4321_v10 = vpop.f32.mrb[104].mxu1  ;;  %v4392_v54 = vmax.f32 %v4391_v11, %v8605_v19  ;;  %v4396_v9 = vmax.f32 %v4395_v18, %v8608_v7 }
 0x96c   : > { %v8619_v37 = vadd.f32 %v4208_v30, %v8545_v58  ;;  %v4210_v21 = vpop.f32.mrb[105].mxu0  ;;  %v4323_v42 = vpop.f32.mrb[105].mxu1  ;;  %v8629_v35 = vadd.f32 %v4321_v10, %v8551_v39 }
 0x96d   : > { %v8622_v28 = vadd.f32 %v4210_v21, %v8548_v41  ;;  %v4212_v24 = vpop.f32.mrb[106].mxu0  ;;  %v4325_v52 = vpop.f32.mrb[106].mxu1  ;;  %4393 = vmax.xlane.f32.xlu0 %v4392_v54  ;;  %v4397_v53 = vmax.f32 %v4396_v9, %v8614_v48  ;;  %v8637_v40 = vadd.f32 %v4323_v42, %v8559_v38 }
 0x96e   : > { %v8626_v56 = vadd.f32 %v4212_v24, %v8545_v58  ;;  %v4214_v59 = vpop.f32.mrb[107].mxu0  ;;  %v4327_v23 = vpop.f32.mrb[107].mxu1  ;;  %v8640_v63 = vadd.f32 %v4325_v52, %v8551_v39 }
 0x96f   : > { %v4400_v20 = vmax.f32 %v8619_v37, %v8622_v28  ;;  %v8634_v50 = vadd.f32 %v4214_v59, %v8548_v41  ;;  %4398 = vmax.xlane.f32.xlu1 %v4397_v53  ;;  %v8646_v55 = vadd.f32 %v4327_v23, %v8559_v38 }
 0x971   : > { %v4405_v0 = vmax.f32 %v8626_v56, %v8634_v50  ;;  %v4401_v45 = vmax.f32 %v4400_v20, %v8629_v35 }
 0x973   : > { %v4218_v22 = vpop.f32.mrb[108].mxu0  ;;  %v4331_v36 = vpop.f32.mrb[108].mxu1  ;;  %v4402_v25 = vmax.f32 %v4401_v45, %v8637_v40  ;;  %v4406_v31 = vmax.f32 %v4405_v0, %v8640_v63 }
 0x974   : > { %v8651_v62 = vadd.f32 %v4218_v22, %v8545_v58  ;;  %v4220_v1 = vpop.f32.mrb[109].mxu0  ;;  %v4333_v34 = vpop.f32.mrb[109].mxu1  ;;  %v8661_v46 = vadd.f32 %v4331_v36, %v8551_v39 }
 0x975   : > { %v8654_v49 = vadd.f32 %v4220_v1, %v8548_v41  ;;  %v4222_v6 = vpop.f32.mrb[110].mxu0  ;;  %v4335_v26 = vpop.f32.mrb[110].mxu1  ;;  %4403 = vmax.xlane.f32.xlu0 %v4402_v25  ;;  %v4407_v61 = vmax.f32 %v4406_v31, %v8646_v55  ;;  %v8669_v60 = vadd.f32 %v4333_v34, %v8559_v38 }
 0x976   : > { %v8658_v44 = vadd.f32 %v4222_v6, %v8545_v58  ;;  %v4224_v14 = vpop.f32.mrb[111].mxu0  ;;  %v4337_v17 = vpop.f32.mrb[111].mxu1  ;;  %v8672_v51 = vadd.f32 %v4335_v26, %v8551_v39 }
 0x977   : > { %v4410_v47 = vmax.f32 %v8651_v62, %v8654_v49  ;;  %v8666_v8 = vadd.f32 %v4224_v14, %v8548_v41  ;;  %4408 = vmax.xlane.f32.xlu1 %v4407_v61  ;;  %v8678_v11 = vadd.f32 %v4337_v17, %v8559_v38 }
 0x979   : > { %v4415_v33 = vmax.f32 %v8658_v44, %v8666_v8  ;;  %v4411_v18 = vmax.f32 %v4410_v47, %v8661_v46 }
 0x97b   : > { %v4228_v30 = vpop.f32.mrb[112].mxu0  ;;  %v4341_v10 = vpop.f32.mrb[112].mxu1  ;;  %v4412_v54 = vmax.f32 %v4411_v18, %v8669_v60  ;;  %v4416_v9 = vmax.f32 %v4415_v33, %v8672_v51 }
 0x97c   : > { %v8683_v21 = vadd.f32 %v4228_v30, %v8545_v58  ;;  %v4230_v42 = vpop.f32.mrb[113].mxu0  ;;  %v4343_v24 = vpop.f32.mrb[113].mxu1  ;;  %v8693_v22 = vadd.f32 %v4341_v10, %v8551_v39 }
 0x97d   : > { %v8686_v52 = vadd.f32 %v4230_v42, %v8548_v41  ;;  %v4232_v53 = vpop.f32.mrb[114].mxu0  ;;  %v4345_v59 = vpop.f32.mrb[114].mxu1  ;;  %4413 = vmax.xlane.f32.xlu0 %v4412_v54  ;;  %v4417_v23 = vmax.f32 %v4416_v9, %v8678_v11  ;;  %v8701_v31 = vadd.f32 %v4343_v24, %v8559_v38 }
 0x97e   : > { %v8690_v20 = vadd.f32 %v4232_v53, %v8545_v58  ;;  %v4234_v0 = vpop.f32.mrb[115].mxu0  ;;  %v4347_v45 = vpop.f32.mrb[115].mxu1  ;;  %v8704_v1 = vadd.f32 %v4345_v59, %v8551_v39 }
 0x97f   : > { %v4420_v36 = vmax.f32 %v8683_v21, %v8686_v52  ;;  %v8698_v25 = vadd.f32 %v4234_v0, %v8548_v41  ;;  %4418 = vmax.xlane.f32.xlu1 %v4417_v23  ;;  %v8710_v26 = vadd.f32 %v4347_v45, %v8559_v38 }
 0x981   : > { %v4425_v34 = vmax.f32 %v8690_v20, %v8698_v25  ;;  %v4421_v6 = vmax.f32 %v4420_v36, %v8693_v22 }
 0x983   : > { %v4238_v61 = vpop.f32.mrb[116].mxu0  ;;  %v4351_v14 = vpop.f32.mrb[116].mxu1  ;;  %v4422_v17 = vmax.f32 %v4421_v6, %v8701_v31  ;;  %v4426_v47 = vmax.f32 %v4425_v34, %v8704_v1 }
 0x984   : > { %v8715_v33 = vadd.f32 %v4238_v61, %v8545_v58  ;;  %v4240_v18 = vpop.f32.mrb[117].mxu0  ;;  %v4353_v30 = vpop.f32.mrb[117].mxu1  ;;  %v8725_v23 = vadd.f32 %v4351_v14, %v8551_v39 }
 0x985   : > { %v8718_v10 = vadd.f32 %v4240_v18, %v8548_v41  ;;  %v4242_v54 = vpop.f32.mrb[118].mxu0  ;;  %v4355_v9 = vpop.f32.mrb[118].mxu1  ;;  %4423 = vmax.xlane.f32.xlu0 %v4422_v17  ;;  %v4427_v42 = vmax.f32 %v4426_v47, %v8710_v26  ;;  %v8733_v36 = vadd.f32 %v4353_v30, %v8559_v38 }
 0x986   : > { %v8722_v24 = vadd.f32 %v4242_v54, %v8545_v58  ;;  %v4244_v53 = vpop.f32.mrb[119].mxu0  ;;  %v4357_v59 = vpop.f32.mrb[119].mxu1  ;;  %9508 = vst [vmem:[#allocation33_spill] sm:$0xff] %v8725_v23  ;;  %v8736_v34 = vadd.f32 %v4355_v9, %v8551_v39 }
 0x987   : > { %v4430_v0 = vmax.f32 %v8715_v33, %v8718_v10  ;;  %v8730_v45 = vadd.f32 %v4244_v53, %v8548_v41  ;;  %4428 = vmax.xlane.f32.xlu1 %v4427_v42  ;;  %9510 = vst [vmem:[#allocation35_spill] sm:$0xff] %v8733_v36  ;;  %v8742_v14 = vadd.f32 %v4357_v59, %v8559_v38 }
 0x988   : > { %9507 = vst [vmem:[#allocation32_spill] sm:$0xff] %v8722_v24  ;;  %9511 = vst [vmem:[#allocation36_spill] sm:$0xff] %v8736_v34 }
 0x989   : > { %9509 = vst [vmem:[#allocation34_spill] sm:$0xff] %v8730_v45  ;;  %v4435_v6 = vmax.f32 %v8722_v24, %v8730_v45  ;;  %v4431_v61 = vmax.f32 %v4430_v0, %v8725_v23  ;;  %9512 = vst [vmem:[#allocation37_spill] sm:$0xff] %v8742_v14 }
 0x98b   : > { %v4248_v17 = vpop.f32.mrb[120].mxu0  ;;  %v4361_v47 = vpop.f32.mrb[120].mxu1  ;;  %v4432_v18 = vmax.f32 %v4431_v61, %v8733_v36  ;;  %v4436_v54 = vmax.f32 %v4435_v6, %v8736_v34 }
 0x98c   : > { %v8747_v30 = vadd.f32 %v4248_v17, %v8545_v58  ;;  %v4250_v42 = vpop.f32.mrb[121].mxu0  ;;  %v4363_v9 = vpop.f32.mrb[121].mxu1  ;;  %v8757_v6 = vadd.f32 %v4361_v47, %v8551_v39 }
 0x98d   : > { %v8750_v53 = vadd.f32 %v4250_v42, %v8548_v41  ;;  %4433 = vmax.xlane.f32.xlu0 %v4432_v18  ;;  %v4252_v45 = vpop.f32.mrb[122].mxu0  ;;  %v4365_v0 = vpop.f32.mrb[122].mxu1  ;;  %v4437_v59 = vmax.f32 %v4436_v54, %v8742_v14  ;;  %v8765_v18 = vadd.f32 %v4363_v9, %v8559_v38 }
 0x98e   : > { %9513 = vst [vmem:[#allocation38_spill] sm:$0xff] %v8747_v30  ;;  %v8754_v24 = vadd.f32 %v4252_v45, %v8545_v58  ;;  %v4254_v23 = vpop.f32.mrb[123].mxu0  ;;  %v4367_v61 = vpop.f32.mrb[123].mxu1  ;;  %9516 = vst [vmem:[#allocation41_spill] sm:$0xff] %v8757_v6  ;;  %v8768_v54 = vadd.f32 %v4365_v0, %v8551_v39 }
 0x98f   : > { %9514 = vst [vmem:[#allocation39_spill] sm:$0xff] %v8750_v53  ;;  %v4440_v17 = vmax.f32 %v8747_v30, %v8750_v53  ;;  %v8762_v34 = vadd.f32 %v4254_v23, %v8548_v41  ;;  %4438 = vmax.xlane.f32.xlu1 %v4437_v59  ;;  %v8774_v47 = vadd.f32 %v4367_v61, %v8559_v38 }
 0x990   : > { %9515 = vst [vmem:[#allocation40_spill] sm:$0xff] %v8754_v24  ;;  %9518 = vst [vmem:[#allocation43_spill] sm:$0xff] %v8768_v54 }
 0x991   : > { %9517 = vst [vmem:[#allocation42_spill] sm:$0xff] %v8762_v34  ;;  %v4445_v45 = vmax.f32 %v8754_v24, %v8762_v34  ;;  %v4441_v42 = vmax.f32 %v4440_v17, %v8757_v6 }
 0x993   : > { %v4258_v14 = vpop.f32.mrb[124].mxu0  ;;  %v4371_v53 = vpop.f32.mrb[124].mxu1  ;;  %v4442_v23 = vmax.f32 %v4441_v42, %v8765_v18  ;;  %v4446_v59 = vmax.f32 %v4445_v45, %v8768_v54 }
 0x994   : > { %v8779_v9 = vadd.f32 %v4258_v14, %v8545_v58  ;;  %v4260_v30 = vpop.f32.mrb[125].mxu0  ;;  %v4373_v0 = vpop.f32.mrb[125].mxu1  ;;  %v8789_v45 = vadd.f32 %v4371_v53, %v8551_v39 }
 0x995   : > { %v8782_v36 = vadd.f32 %v4260_v30, %v8548_v41  ;;  %v4262_v34 = vpop.f32.mrb[126].mxu0  ;;  %v4375_v24 = vpop.f32.mrb[126].mxu1  ;;  %4443 = vmax.xlane.f32.xlu0 %v4442_v23  ;;  %v4447_v61 = vmax.f32 %v4446_v59, %v8774_v47  ;;  %v8797_v30 = vadd.f32 %v4373_v0, %v8559_v38 }
 0x996   : > { %v8786_v17 = vadd.f32 %v4262_v34, %v8545_v58  ;;  %v4264_v6 = vpop.f32.mrb[127].mxu0  ;;  %v4377_v42 = vpop.f32.mrb[127].mxu1  ;;  %v8800_v23 = vadd.f32 %v4375_v24, %v8551_v39 }
 0x997   : > { %v4450_v14 = vmax.f32 %v8779_v9, %v8782_v36  ;;  %v8794_v54 = vadd.f32 %v4264_v6, %v8548_v41  ;;  %4448 = vmax.xlane.f32.xlu1 %v4447_v61  ;;  %v8806_v53 = vadd.f32 %v4377_v42, %v8559_v38 }
 0x998   : > { %9519 = vst [vmem:[#allocation44_spill] sm:$0xff] %v8786_v17 }
 0x999   : > { %9520 = vst [vmem:[#allocation45_spill] sm:$0xff] %v8794_v54  ;;  %v4455_v58 = vmax.f32 %v8786_v17, %v8794_v54  ;;  %v4451_v34 = vmax.f32 %v4450_v14, %v8789_v45 }
 0x99b   : > { %v4452_v59 = vmax.f32 %v4451_v34, %v8797_v30  ;;  %v4456_v41 = vmax.f32 %v4455_v58, %v8800_v23 }
 0x99d   : > { %4453 = vmax.xlane.f32.xlu0 %v4452_v59  ;;  %v4457_v6 = vmax.f32 %v4456_v41, %v8806_v53 }
 0x99f   : > { %4458 = vmax.xlane.f32.xlu1 %v4457_v6 }
 0x9f2   : > { %v4384_v0 = vpop.xlane.xlu0 %4383 }
 0x9f3   : > { %v4460_v39 = vsub.f32 %v8554_v57, %v4384_v0  ;;  %v4461_v24 = vsub.f32 %v8557_v43, %v4384_v0  ;;  %v4462_v61 = vsub.f32 %v8565_v29, %v4384_v0  ;;  %v4463_v14 = vsub.f32 %v8573_v27, %v4384_v0 }
 0x9f4   : > { %v4389_v54 = vpop.xlane.xlu1 %4388 }
 0x9f5   : > { %v4524_v38 = vmul.f32 1.442695, %v4460_v39  ;;  %v4526_v42 = vmul.f32 1.442695, %v4461_v24  ;;  %v4528_v17 = vmul.f32 1.442695, %v4462_v61  ;;  %v4464_v34 = vsub.f32 %v8562_v3, %v4389_v54 }
 0x9f6   : > { %v4530_v58 = vmul.f32 1.442695, %v4463_v14  ;;  %v4465_v59 = vsub.f32 %v8570_v2, %v4389_v54  ;;  %v4466_v41 = vsub.f32 %v8576_v32, %v4389_v54  ;;  %v4467_v6 = vsub.f32 %v8582_v15, %v4389_v54 }
 0x9f7   : > { %6744 = vpow2.f32 %v4524_v38  ;;  %v4532_v57 = vmul.f32 1.442695, %v4464_v34 }
 0x9f8   : > { %6746 = vpow2.f32 %v4526_v42  ;;  %v4534_v43 = vmul.f32 1.442695, %v4465_v59  ;;  %v4536_v29 = vmul.f32 1.442695, %v4466_v41  ;;  %v4538_v27 = vmul.f32 1.442695, %v4467_v6 }
 0x9f9   : > { %6748 = vpow2.f32 %v4528_v17 }
 0x9fa   : > { %6750 = vpow2.f32 %v4530_v58  ;;  %v4394_v0 = vpop.xlane.xlu0 %4393 }
 0x9fb   : > { %6752 = vpow2.f32 %v4532_v57  ;;  %v4468_v39 = vsub.f32 %v8587_v12, %v4394_v0  ;;  %v4469_v3 = vsub.f32 %v8590_v16, %v4394_v0  ;;  %v4470_v2 = vsub.f32 %v8597_v5, %v4394_v0 }
 0x9fc   : > { %6754 = vpow2.f32 %v4534_v43  ;;  %v4471_v32 = vsub.f32 %v8605_v19, %v4394_v0  ;;  %v4399_v15 = vpop.xlane.xlu1 %4398 }
 0x9fd   : > { %6756 = vpow2.f32 %v4536_v29  ;;  %v4540_v54 = vmul.f32 1.442695, %v4468_v39  ;;  %v4542_v24 = vmul.f32 1.442695, %v4469_v3  ;;  %v4544_v61 = vmul.f32 1.442695, %v4470_v2 }
 0x9fe   : > { %6758 = vpow2.f32 %v4538_v27  ;;  %v4546_v17 = vmul.f32 1.442695, %v4471_v32  ;;  %v4472_v14 = vsub.f32 %v8594_v4, %v4399_v15  ;;  %v4473_v38 = vsub.f32 %v8602_v13, %v4399_v15 }
 0x9ff   : > { %6760 = vpow2.f32 %v4540_v54  ;;  %v4474_v12 = vsub.f32 %v8608_v7, %v4399_v15  ;;  %v4475_v16 = vsub.f32 %v8614_v48, %v4399_v15 }
 0xa00   : > { %6762 = vpow2.f32 %v4542_v24  ;;  %v4548_v5 = vmul.f32 1.442695, %v4472_v14  ;;  %v4550_v42 = vmul.f32 1.442695, %v4473_v38 }
 0xa01   : > { %v8827_v19 = vpop.eup %6744  ;;  %6764 = vpow2.f32 %v4544_v61  ;;  %v4552_v34 = vmul.f32 1.442695, %v4474_v12  ;;  %v4554_v59 = vmul.f32 1.442695, %v4475_v16 }
 0xa02   : > { %v8829_v58 = vpop.eup %6746  ;;  %6766 = vpow2.f32 %v4546_v17  ;;  %v4404_v41 = vpop.xlane.xlu0 %4403 }
 0xa03   : > { %v8831_v4 = vpop.eup %6748  ;;  %6768 = vpow2.f32 %v4548_v5  ;;  %v4476_v13 = vsub.f32 %v8619_v37, %v4404_v41  ;;  %v4477_v7 = vsub.f32 %v8622_v28, %v4404_v41  ;;  %v4478_v48 = vsub.f32 %v8629_v35, %v4404_v41 }
 0xa04   : > { %v8836_v6 = vpop.eup %6750  ;;  %6770 = vpow2.f32 %v4550_v42  ;;  %v4479_v57 = vsub.f32 %v8637_v40, %v4404_v41  ;;  %v4409_v43 = vpop.xlane.xlu1 %4408  ;;  %v4652_v29 = vadd.f32 %v8829_v58, %v8827_v19 }
 0xa05   : > { %v8841_v27 = vpop.eup %6752  ;;  %6772 = vpow2.f32 %v4552_v34  ;;  %v4556_v0 = vmul.f32 1.442695, %v4476_v13  ;;  %v4558_v39 = vmul.f32 1.442695, %v4477_v7  ;;  %v4560_v3 = vmul.f32 1.442695, %v4478_v48 }
 0xa06   : > { %v8843_v37 = vpop.eup %6754  ;;  %6774 = vpow2.f32 %v4554_v59  ;;  %v4562_v28 = vmul.f32 1.442695, %v4479_v57  ;;  %v4480_v35 = vsub.f32 %v8626_v56, %v4409_v43  ;;  %v4481_v2 = vsub.f32 %v8634_v50, %v4409_v43 }
 0xa07   : > { %v8847_v32 = vpop.eup %6756  ;;  %6776 = vpow2.f32 %v4556_v0  ;;  %v4482_v40 = vsub.f32 %v8640_v63, %v4409_v43  ;;  %v4483_v15 = vsub.f32 %v8646_v55, %v4409_v43  ;;  %v4653_v54 = vadd.f32 %v8831_v4, %v4652_v29 }
 0xa08   : > { %v8852_v24 = vpop.eup %6758  ;;  %6778 = vpow2.f32 %v4558_v39  ;;  %v4564_v61 = vmul.f32 1.442695, %v4480_v35  ;;  %v4566_v17 = vmul.f32 1.442695, %v4481_v2  ;;  %v4657_v14 = vadd.f32 %v8843_v37, %v8841_v27 }
 0xa09   : > { %v8856_v56 = vpop.eup %6760  ;;  %6780 = vpow2.f32 %v4560_v3  ;;  %v4568_v50 = vmul.f32 1.442695, %v4482_v40  ;;  %v4654_v38 = vadd.f32 %v8836_v6, %v4653_v54  ;;  %v4570_v63 = vmul.f32 1.442695, %v4483_v15 }
 0xa0a   : > { %v8859_v12 = vpop.eup %6762  ;;  %6782 = vpow2.f32 %v4562_v28  ;;  %v4414_v55 = vpop.xlane.xlu0 %4413  ;;  %v4658_v16 = vadd.f32 %v8847_v32, %v4657_v14 }
 0xa0b   : > { %v8862_v5 = vpop.eup %6764  ;;  %6784 = vpow2.f32 %v4564_v61  ;;  %4655 = vadd.xlane.f32.xlu0 %v4654_v38  ;;  %v4484_v42 = vsub.f32 %v8651_v62, %v4414_v55  ;;  %v4485_v34 = vsub.f32 %v8654_v49, %v4414_v55  ;;  %v4486_v59 = vsub.f32 %v8661_v46, %v4414_v55 }
 0xa0c   : > { %v8867_v41 = vpop.eup %6766  ;;  %6786 = vpow2.f32 %v4566_v17  ;;  %v4487_v13 = vsub.f32 %v8669_v60, %v4414_v55  ;;  %v4659_v7 = vadd.f32 %v8852_v24, %v4658_v16  ;;  %v4419_v48 = vpop.xlane.xlu1 %4418  ;;  %v4662_v57 = vadd.f32 %v8859_v12, %v8856_v56 }
 0xa0d   : > { %v8873_v43 = vpop.eup %6768  ;;  %6788 = vpow2.f32 %v4568_v50  ;;  %v4572_v29 = vmul.f32 1.442695, %v4484_v42  ;;  %v4574_v62 = vmul.f32 1.442695, %v4485_v34  ;;  %v4576_v0 = vmul.f32 1.442695, %v4486_v59 }
 0xa0e   : > { %v8875_v49 = vpop.eup %6770  ;;  %6790 = vpow2.f32 %v4570_v63  ;;  %v4578_v46 = vmul.f32 1.442695, %v4487_v13  ;;  %4660 = vadd.xlane.f32.xlu1 %v4659_v7  ;;  %v4488_v39 = vsub.f32 %v8658_v44, %v4419_v48  ;;  %v4489_v60 = vsub.f32 %v8666_v8, %v4419_v48 }
 0xa0f   : > { %v8879_v3 = vpop.eup %6772  ;;  %6792 = vpow2.f32 %v4572_v29  ;;  %v4490_v28 = vsub.f32 %v8672_v51, %v4419_v48  ;;  %v4491_v35 = vsub.f32 %v8678_v11, %v4419_v48  ;;  %v4663_v2 = vadd.f32 %v8862_v5, %v4662_v57 }
 0xa10   : > { %v8884_v40 = vpop.eup %6774  ;;  %6794 = vpow2.f32 %v4574_v62  ;;  %v4580_v15 = vmul.f32 1.442695, %v4488_v39  ;;  %v4582_v54 = vmul.f32 1.442695, %v4489_v60  ;;  %v4667_v61 = vadd.f32 %v8875_v49, %v8873_v43 }
 0xa11   : > { %v8888_v44 = vpop.eup %6776  ;;  %6796 = vpow2.f32 %v4576_v0  ;;  %v4584_v8 = vmul.f32 1.442695, %v4490_v28  ;;  %v4664_v17 = vadd.f32 %v8867_v41, %v4663_v2  ;;  %v4586_v51 = vmul.f32 1.442695, %v4491_v35 }
 0xa12   : > { %v8891_v14 = vpop.eup %6778  ;;  %6798 = vpow2.f32 %v4578_v46  ;;  %v4424_v11 = vpop.xlane.xlu0 %4423  ;;  %v4668_v50 = vadd.f32 %v8879_v3, %v4667_v61 }
 0xa13   : > { %v8894_v38 = vpop.eup %6780  ;;  %6800 = vpow2.f32 %v4580_v15  ;;  %4665 = vadd.xlane.f32.xlu0 %v4664_v17  ;;  %v4492_v63 = vsub.f32 %v8683_v21, %v4424_v11  ;;  %v4493_v55 = vsub.f32 %v8686_v52, %v4424_v11  ;;  %v4494_v16 = vsub.f32 %v8693_v22, %v4424_v11 }
 0xa14   : > { %v8899_v42 = vpop.eup %6782  ;;  %6802 = vpow2.f32 %v4582_v54  ;;  %v4495_v34 = vsub.f32 %v8701_v31, %v4424_v11  ;;  %v4669_v59 = vadd.f32 %v8884_v40, %v4668_v50  ;;  %v4429_v13 = vpop.xlane.xlu1 %4428  ;;  %v4672_v7 = vadd.f32 %v8891_v14, %v8888_v44  ;;  %v9521_v50 = vld [vmem:[#allocation33_spill] sm:$0xff] }
 0xa15   : > { %v8905_v48 = vpop.eup %6784  ;;  %6804 = vpow2.f32 %v4584_v8  ;;  %v4588_v57 = vmul.f32 1.442695, %v4492_v63  ;;  %v4590_v21 = vmul.f32 1.442695, %v4493_v55  ;;  %v4592_v29 = vmul.f32 1.442695, %v4494_v16 }
 0xa16   : > { %v8907_v52 = vpop.eup %6786  ;;  %6806 = vpow2.f32 %v4586_v51  ;;  %v4594_v22 = vmul.f32 1.442695, %v4495_v34  ;;  %4670 = vadd.xlane.f32.xlu1 %v4669_v59  ;;  %v4496_v62 = vsub.f32 %v8690_v20, %v4429_v13  ;;  %v4497_v31 = vsub.f32 %v8698_v25, %v4429_v13  ;;  %v9522_v16 = vld [vmem:[#allocation35_spill] sm:$0xff] }
 0xa17   : > { %v8911_v0 = vpop.eup %6788  ;;  %6808 = vpow2.f32 %v4588_v57  ;;  %v4498_v46 = vsub.f32 %v8704_v1, %v4429_v13  ;;  %v4499_v39 = vsub.f32 %v8710_v26, %v4429_v13  ;;  %v4673_v60 = vadd.f32 %v8894_v38, %v4672_v7 }
 0xa18   : > { %v8916_v28 = vpop.eup %6790  ;;  %6810 = vpow2.f32 %v4590_v21  ;;  %v4596_v35 = vmul.f32 1.442695, %v4496_v62  ;;  %v4598_v2 = vmul.f32 1.442695, %v4497_v31  ;;  %v4677_v15 = vadd.f32 %v8907_v52, %v8905_v48  ;;  %v9523_v62 = vld [vmem:[#allocation32_spill] sm:$0xff] }
 0xa19   : > { %v8920_v20 = vpop.eup %6792  ;;  %6812 = vpow2.f32 %v4592_v29  ;;  %v4600_v25 = vmul.f32 1.442695, %v4498_v46  ;;  %v4674_v54 = vadd.f32 %v8899_v42, %v4673_v60  ;;  %v4602_v1 = vmul.f32 1.442695, %v4499_v39  ;;  %v9524_v46 = vld [vmem:[#allocation34_spill] sm:$0xff] }
 0xa1a   : > { %v8923_v61 = vpop.eup %6794  ;;  %6814 = vpow2.f32 %v4594_v22  ;;  %v4434_v26 = vpop.xlane.xlu0 %4433  ;;  %v4678_v8 = vadd.f32 %v8911_v0, %v4677_v15  ;;  %v9526_v15 = vld [vmem:[#allocation37_spill] sm:$0xff] }
 0xa1b   : > { %v8926_v17 = vpop.eup %6796  ;;  %6816 = vpow2.f32 %v4596_v35  ;;  %4675 = vadd.xlane.f32.xlu0 %v4674_v54  ;;  %v4500_v51 = vsub.f32 %v8715_v33, %v4434_v26  ;;  %v4501_v11 = vsub.f32 %v8718_v10, %v4434_v26  ;;  %v4502_v63 = vsub.f32 %v9521_v50, %v4434_v26  ;;  %v9525_v35 = vld [vmem:[#allocation36_spill] sm:$0xff] }
 0xa1c   : > { %v8931_v55 = vpop.eup %6798  ;;  %6818 = vpow2.f32 %v4598_v2  ;;  %v4503_v34 = vsub.f32 %v9522_v16, %v4434_v26  ;;  %v4679_v59 = vadd.f32 %v8916_v28, %v4678_v8  ;;  %v4439_v13 = vpop.xlane.xlu1 %4438  ;;  %v4682_v7 = vadd.f32 %v8923_v61, %v8920_v20 }
 0xa1d   : > { %v8937_v57 = vpop.eup %6800  ;;  %6820 = vpow2.f32 %v4600_v25  ;;  %v4604_v21 = vmul.f32 1.442695, %v4500_v51  ;;  %v4606_v33 = vmul.f32 1.442695, %v4501_v11  ;;  %v4608_v29 = vmul.f32 1.442695, %v4502_v63 }
 0xa1e   : > { %v8939_v10 = vpop.eup %6802  ;;  %6822 = vpow2.f32 %v4602_v1  ;;  %v4610_v22 = vmul.f32 1.442695, %v4503_v34  ;;  %4680 = vadd.xlane.f32.xlu1 %v4679_v59  ;;  %v4504_v31 = vsub.f32 %v9523_v62, %v4439_v13  ;;  %v4505_v39 = vsub.f32 %v9524_v46, %v4439_v13  ;;  %v9530_v62 = vld [vmem:[#allocation39_spill] sm:$0xff]  ;;  %v9531_v46 = vld [vmem:[#allocation41_spill] sm:$0xff] }
 0xa1f   : > { %v8943_v60 = vpop.eup %6804  ;;  %6824 = vpow2.f32 %v4604_v21  ;;  %v4506_v2 = vsub.f32 %v9525_v35, %v4439_v13  ;;  %v4507_v54 = vsub.f32 %v9526_v15, %v4439_v13  ;;  %v4683_v25 = vadd.f32 %v8926_v17, %v4682_v7  ;;  %v9529_v21 = vld [vmem:[#allocation38_spill] sm:$0xff] }
 0xa20   : > { %v8948_v26 = vpop.eup %6806  ;;  %6826 = vpow2.f32 %v4606_v33  ;;  %v4612_v8 = vmul.f32 1.442695, %v4504_v31  ;;  %v4614_v1 = vmul.f32 1.442695, %v4505_v39  ;;  %v4687_v51 = vadd.f32 %v8939_v10, %v8937_v57 }
 0xa21   : > { %v8952_v11 = vpop.eup %6808  ;;  %6828 = vpow2.f32 %v4608_v29  ;;  %v4616_v50 = vmul.f32 1.442695, %v4506_v2  ;;  %v4684_v63 = vadd.f32 %v8931_v55, %v4683_v25  ;;  %v4618_v34 = vmul.f32 1.442695, %v4507_v54 }
 0xa22   : > { %9527 = vst [vmem:[#allocation33_spill] sm:$0xff] %v8952_v11  ;;  %v8955_v16 = vpop.eup %6810  ;;  %6830 = vpow2.f32 %v4610_v22  ;;  %v4688_v59 = vadd.f32 %v8943_v60, %v4687_v51  ;;  %v4444_v13 = vpop.xlane.xlu0 %4443 }
 0xa23   : > { %9528 = vst [vmem:[#allocation35_spill] sm:$0xff] %v8955_v16  ;;  %v8958_v7 = vpop.eup %6812  ;;  %6832 = vpow2.f32 %v4612_v8  ;;  %4685 = vadd.xlane.f32.xlu0 %v4684_v63  ;;  %v4508_v33 = vsub.f32 %v9529_v21, %v4444_v13  ;;  %v4509_v31 = vsub.f32 %v9530_v62, %v4444_v13  ;;  %v4510_v29 = vsub.f32 %v9531_v46, %v4444_v13 }
 0xa24   : > { %v8963_v39 = vpop.eup %6814  ;;  %6834 = vpow2.f32 %v4614_v1  ;;  %v4689_v35 = vadd.f32 %v8948_v26, %v4688_v59  ;;  %v4511_v22 = vsub.f32 %v8765_v18, %v4444_v13  ;;  %v4449_v2 = vpop.xlane.xlu1 %4448  ;;  %v4692_v15 = vadd.f32 %v8955_v16, %v8952_v11  ;;  %v9532_v1 = vld [vmem:[#allocation40_spill] sm:$0xff]  ;;  %v9533_v59 = vld [vmem:[#allocation42_spill] sm:$0xff]  ;;  %v9534_v13 = vld [vmem:[#allocation43_spill] sm:$0xff] }
 0xa25   : > { %v8969_v54 = vpop.eup %6816  ;;  %6836 = vpow2.f32 %v4616_v50  ;;  %v4620_v25 = vmul.f32 1.442695, %v4508_v33  ;;  %v4622_v8 = vmul.f32 1.442695, %v4509_v31  ;;  %v4624_v51 = vmul.f32 1.442695, %v4510_v29 }
 0xa26   : > { %v8971_v63 = vpop.eup %6818  ;;  %6838 = vpow2.f32 %v4618_v34  ;;  %4690 = vadd.xlane.f32.xlu1 %v4689_v35  ;;  %v4626_v21 = vmul.f32 1.442695, %v4511_v22  ;;  %v4512_v62 = vsub.f32 %v9532_v1, %v4449_v2  ;;  %v4513_v46 = vsub.f32 %v9533_v59, %v4449_v2 }
 0xa27   : > { %v8975_v18 = vpop.eup %6820  ;;  %6840 = vpow2.f32 %v4620_v25  ;;  %v4514_v16 = vsub.f32 %v9534_v13, %v4449_v2  ;;  %v4515_v11 = vsub.f32 %v8774_v47, %v4449_v2  ;;  %v4693_v50 = vadd.f32 %v8958_v7, %v4692_v15 }
 0xa28   : > { %v8980_v33 = vpop.eup %6822  ;;  %6842 = vpow2.f32 %v4622_v8  ;;  %v4628_v31 = vmul.f32 1.442695, %v4512_v62  ;;  %v4630_v34 = vmul.f32 1.442695, %v4513_v46  ;;  %v4697_v29 = vadd.f32 %v8971_v63, %v8969_v54 }
 0xa29   : > { %9535 = vst [vmem:[#allocation32_spill] sm:$0xff] %v8980_v33  ;;  %v8984_v35 = vpop.eup %6824  ;;  %6844 = vpow2.f32 %v4624_v51  ;;  %v4632_v22 = vmul.f32 1.442695, %v4514_v16  ;;  %v4694_v25 = vadd.f32 %v8963_v39, %v4693_v50  ;;  %v4634_v47 = vmul.f32 1.442695, %v4515_v11 }
 0xa2a   : > { %v8987_v1 = vpop.eup %6826  ;;  %6846 = vpow2.f32 %v4626_v21  ;;  %v4698_v2 = vadd.f32 %v8975_v18, %v4697_v29  ;;  %v4454_v15 = vpop.xlane.xlu0 %4453 }
 0xa2b   : > { %9536 = vst [vmem:[#allocation34_spill] sm:$0xff] %v8987_v1  ;;  %v8990_v59 = vpop.eup %6828  ;;  %6848 = vpow2.f32 %v4628_v31  ;;  %4695 = vadd.xlane.f32.xlu0 %v4694_v25  ;;  %v4516_v8 = vsub.f32 %v8779_v9, %v4454_v15  ;;  %v4517_v62 = vsub.f32 %v8782_v36, %v4454_v15  ;;  %v4518_v51 = vsub.f32 %v8789_v45, %v4454_v15 }
 0xa2c   : > { %v8995_v16 = vpop.eup %6830  ;;  %6850 = vpow2.f32 %v4630_v34  ;;  %v4699_v46 = vadd.f32 %v8980_v33, %v4698_v2  ;;  %v4519_v11 = vsub.f32 %v8797_v30, %v4454_v15  ;;  %v4459_v21 = vpop.xlane.xlu1 %4458  ;;  %v4702_v13 = vadd.f32 %v8987_v1, %v8984_v35  ;;  %v9537_v34 = vld [vmem:[#allocation44_spill] sm:$0xff]  ;;  %v9538_v2 = vld [vmem:[#allocation45_spill] sm:$0xff] }
 0xa2d   : > { %v9001_v50 = vpop.eup %6832  ;;  %6852 = vpow2.f32 %v4632_v22  ;;  %v4636_v31 = vmul.f32 1.442695, %v4516_v8  ;;  %v4638_v9 = vmul.f32 1.442695, %v4517_v62  ;;  %v4640_v29 = vmul.f32 1.442695, %v4518_v51 }
 0xa2e   : > { %v9003_v36 = vpop.eup %6834  ;;  %6854 = vpow2.f32 %v4634_v47  ;;  %4700 = vadd.xlane.f32.xlu1 %v4699_v46  ;;  %v4642_v45 = vmul.f32 1.442695, %v4519_v11  ;;  %v4520_v25 = vsub.f32 %v9537_v34, %v4459_v21  ;;  %v4521_v33 = vsub.f32 %v9538_v2, %v4459_v21 }
 0xa2f   : > { %v9007_v30 = vpop.eup %6836  ;;  %6856 = vpow2.f32 %v4636_v31  ;;  %v4522_v15 = vsub.f32 %v8800_v23, %v4459_v21  ;;  %v4523_v1 = vsub.f32 %v8806_v53, %v4459_v21  ;;  %v4703_v22 = vadd.f32 %v8990_v59, %v4702_v13 }
 0xa30   : > { %v9012_v8 = vpop.eup %6838  ;;  %6858 = vpow2.f32 %v4638_v9  ;;  %v4644_v62 = vmul.f32 1.442695, %v4520_v25  ;;  %v4646_v47 = vmul.f32 1.442695, %v4521_v33  ;;  %v4707_v51 = vadd.f32 %v9003_v36, %v9001_v50 }
 0xa31   : > { %v9016_v46 = vpop.eup %6840  ;;  %6860 = vpow2.f32 %v4640_v29  ;;  %v4704_v11 = vadd.f32 %v8995_v16, %v4703_v22  ;;  %v4648_v23 = vmul.f32 1.442695, %v4522_v15  ;;  %v4650_v9 = vmul.f32 1.442695, %v4523_v1 }
 0xa32   : > { %v9019_v31 = vpop.eup %6842  ;;  %6862 = vpow2.f32 %v4642_v45  ;;  %v4708_v53 = vadd.f32 %v9007_v30, %v4707_v51 }
 0xa33   : > { %v9022_v21 = vpop.eup %6844  ;;  %6864 = vpow2.f32 %v4644_v62  ;;  %4705 = vadd.xlane.f32.xlu0 %v4704_v11  ;;  %v4712_v33 = vadd.f32 %v9019_v31, %v9016_v46 }
 0xa34   : > { %v9026_v13 = vpop.eup %6846  ;;  %6866 = vpow2.f32 %v4646_v47  ;;  %v4709_v29 = vadd.f32 %v9012_v8, %v4708_v53 }
 0xa35   : > { %v9029_v34 = vpop.eup %6848  ;;  %v4713_v45 = vadd.f32 %v9022_v21, %v4712_v33  ;;  %6868 = vpow2.f32 %v4648_v23 }
 0xa36   : > { %v9032_v25 = vpop.eup %6850  ;;  %4710 = vadd.xlane.f32.xlu1 %v4709_v29  ;;  %6870 = vpow2.f32 %v4650_v9 }
 0xa37   : > { %v9034_v2 = vpop.eup %6852  ;;  %v4714_v15 = vadd.f32 %v9026_v13, %v4713_v45  ;;  %v4717_v22 = vadd.f32 %v9032_v25, %v9029_v34 }
 0xa38   : > { %v9039_v62 = vpop.eup %6854 }
 0xa39   : > { %9539 = vst [vmem:[#allocation36_spill] sm:$0xff] %v9039_v62  ;;  %v9041_v1 = vpop.eup %6856  ;;  %4715 = vadd.xlane.f32.xlu0 %v4714_v15  ;;  %v4718_v47 = vadd.f32 %v9034_v2, %v4717_v22 }
 0xa3a   : > { %9540 = vst [vmem:[#allocation37_spill] sm:$0xff] %v9041_v1  ;;  %v9044_v51 = vpop.eup %6858 }
 0xa3b   : > { %9541 = vst [vmem:[#allocation38_spill] sm:$0xff] %v9044_v51  ;;  %v9046_v11 = vpop.eup %6860  ;;  %v4719_v23 = vadd.f32 %v9039_v62, %v4718_v47  ;;  %v4722_v53 = vadd.f32 %v9044_v51, %v9041_v1 }
 0xa3c   : > { %9542 = vst [vmem:[#allocation39_spill] sm:$0xff] %v9046_v11  ;;  %v9051_v33 = vpop.eup %6862 }
 0xa3d   : > { %9543 = vst [vmem:[#allocation41_spill] sm:$0xff] %v9051_v33  ;;  %v9053_v9 = vpop.eup %6864  ;;  %4720 = vadd.xlane.f32.xlu1 %v4719_v23  ;;  %v4723_v29 = vadd.f32 %v9046_v11, %v4722_v53 }
 0xa3e   : > { %9544 = vst [vmem:[#allocation40_spill] sm:$0xff] %v9053_v9  ;;  %v9056_v45 = vpop.eup %6866 }
 0xa3f   : > { %9545 = vst [vmem:[#allocation42_spill] sm:$0xff] %v9056_v45  ;;  %v4724_v15 = vadd.f32 %v9051_v33, %v4723_v29  ;;  %v4727_v22 = vadd.f32 %v9056_v45, %v9053_v9  ;;  %v9061_v47 = vpop.eup %6868 }
 0xa40   : > { %9546 = vst [vmem:[#allocation43_spill] sm:$0xff] %v9061_v47  ;;  %v9064_v1 = vpop.eup %6870 }
 0xa41   : > { %4725 = vadd.xlane.f32.xlu0 %v4724_v15  ;;  %v4728_v51 = vadd.f32 %v9061_v47, %v4727_v22  ;;  %9547 = vst [vmem:[#allocation44_spill] sm:$0xff] %v9064_v1 }
 0xa43   : > { %v4729_v23 = vadd.f32 %v9064_v1, %v4728_v51 }
 0xa45   : > { %4730 = vadd.xlane.f32.xlu1 %v4729_v23 }
 0xa46   : > { %7171 = shalt.err (!%p7168_p9)
}
 0xa47   : > { %s7172_s7 = scalar_lea.hbm %s9075_s11, 2048  ;;  %s7176_s30 = scalar_lea.hbm %s9548_s22, 4096 }
 0xa48   : > { %p7173_p4 = scmp.ne.s32.totalorder %s9075_s11, %s7172_s7  ;;  %p7177_p2 = scmp.lt.u32.totalorder %s9075_s11, %s9548_s22 }
 0xa49   : > { %p7178_p6 = scmp.lt.u32.totalorder %s7176_s30, %s7172_s7  ;;  %p7180_p10 = scmp.lt.u32.totalorder %s7172_s7, %s9075_s11 }
 0xa4a   : > { %p7174_p3 = pnand %p7173_p4, %p9549_p1 }
 0xa4b   : > { %p7179_p5 = por %p7178_p6, %p7177_p2 }
 0xa4c   : > { %p7175_p0 = pneg %p7174_p3 }
 0xa4d   : > { %p7181_p11 = por %p7180_p10, %p7179_p5 }
 0xa4f   : > { %p7182_p12 = pnand %p7181_p11, %p7175_p0 }
 0xa51   : > { %7185 = shalt.err (!%p7182_p12)
}
 0xa52   : > { %s9435_s0 = smov 128   ;;  %s7380_s1 = smov 8  }
 0xa53   : > { %6173 = dma.vmem_to_hbm [thread:$0]  (%p9549_p1), %s9078_s21, 2048, %s9075_s11, %s9082_s13, %s9435_s0, %s9435_s0, %s7380_s1  }
 0xa54   : > { %s9550_s7 = sld [smem:[#allocation66_spill]]  ;;  %s5183_s30 = sshll.u32 %s8202_s17, 4  ;;  %s9116_s30 = int_to_ptr.vmem [resolvable:$true] %s5183_s30 }
 0xa55   : > { %s9551_s6 = sand.u32 1, %s7518_s29   ;;  %s7186_s14 = scalar_lea.vmem %s9116_s30, 2048 }
 0xa56   : > { %s9120_s10 = scalar_lea.sflag [#allocation22], %s9551_s6  ;;  %p7187_p13 = scmp.ne.s32.totalorder %s9116_s30, %s7186_s14 }
 0xa57   : > { %s7381_s11 = smov [#allocation21]  }
 0xa58   : > { %p7188_p8 = pnand %p7187_p13, %p9549_p1  ;;  %s7190_s21 = sshll.u32 %s7381_s11, 4  ;;  %s7191_s21 = int_to_ptr.vmem [resolvable:$false] %s7190_s21 }
 0xa59   : > { %s7192_s8 = scalar_lea.vmem %s7191_s21, 4096  ;;  %p7193_p9 = scmp.lt.s32.totalorder %s9116_s30, %s7191_s21 }
 0xa5a   : > { %s9113_s24 = scalar_lea.hbm %s9550_s7, %s9069_s19  ;;  %p7189_p7 = pneg %p7188_p8 }
 0xa5b   : > { %p7194_p4 = scmp.lt.s32.totalorder %s7192_s8, %s7186_s14 }
 0xa5d   : > { %p7195_p3 = por %p7194_p4, %p7193_p9 }
 0xa5f   : > { %p7196_p0 = pnand %p7195_p3, %p7189_p7 }
 0xa61   : > { %7199 = shalt.err (!%p7196_p0)
}
 0xa62   : > { %s7200_s17 = scalar_lea.hbm %s9113_s24, 2048  ;;  %s7204_s11 = scalar_lea.hbm %s9550_s7, 4096 }
 0xa63   : > { %p7201_p2 = scmp.ne.s32.totalorder %s9113_s24, %s7200_s17  ;;  %p7205_p10 = scmp.lt.u32.totalorder %s9113_s24, %s9550_s7 }
 0xa64   : > { %p7206_p11 = scmp.lt.u32.totalorder %s7204_s11, %s7200_s17  ;;  %p7208_p13 = scmp.lt.u32.totalorder %s7200_s17, %s9113_s24 }
 0xa65   : > { %p7202_p6 = pnand %p7201_p2, %p9549_p1 }
 0xa66   : > { %p7207_p12 = por %p7206_p11, %p7205_p10 }
 0xa67   : > { %p7203_p5 = pneg %p7202_p6 }
 0xa68   : > { %p7209_p8 = por %p7208_p13, %p7207_p12 }
 0xa6a   : > { %p7210_p7 = pnand %p7209_p8, %p7203_p5 }
 0xa6c   : > { %7213 = shalt.err (!%p7210_p7)
}
 0xa6d   : > { %s9552_s14 = smov 128   ;;  %s9553_s5 = sld [smem:[#allocation63_spill]] }
 0xa6e   : > { %6175 = dma.vmem_to_hbm [thread:$0]  (%p9549_p1), %s9116_s30, 2048, %s9113_s24, %s9120_s10, %s9552_s14, %s9552_s14, %s7380_s1  }
 0xa6f   : > { %s5134_s6 = sshll.u32 %s8197_s28, 4  ;;  %s5101_s11 = scalar_lea.sflag [#allocation4], %s7831_s12  ;;  %s9154_s6 = int_to_ptr.vmem [resolvable:$true] %s5134_s6 }
 0xa70   : > { %s7214_s21 = scalar_lea.vmem %s9154_s6, 2048  ;;  %s7382_s7 = smov [#allocation17]  }
 0xa71   : > { %p7215_p9 = scmp.ne.s32.totalorder %s9154_s6, %s7214_s21  ;;  %s7218_s15 = sshll.u32 %s7382_s7, 4  ;;  %s7219_s15 = int_to_ptr.vmem [resolvable:$false] %s7218_s15 }
 0xa72   : > { %s7220_s24 = scalar_lea.vmem %s7219_s15, 4096  ;;  %p7221_p0 = scmp.lt.s32.totalorder %s9154_s6, %s7219_s15 }
 0xa73   : > { %s9151_s17 = scalar_lea.hbm %s9553_s5, %s9069_s19  ;;  %p7216_p4 = pnand %p7215_p9, %p9549_p1 }
 0xa74   : > { %p7222_p2 = scmp.lt.s32.totalorder %s7220_s24, %s7214_s21 }
 0xa75   : > { %p7217_p3 = pneg %p7216_p4 }
 0xa76   : > { %p7223_p6 = por %p7222_p2, %p7221_p0 }
 0xa78   : > { %p7224_p5 = pnand %p7223_p6, %p7217_p3 }
 0xa7a   : > { %7227 = shalt.err (!%p7224_p5)
}
 0xa7b   : > { %s7228_s28 = scalar_lea.hbm %s9151_s17, 2048  ;;  %s7232_s7 = scalar_lea.hbm %s9553_s5, 4096 }
 0xa7c   : > { %p7229_p10 = scmp.ne.s32.totalorder %s9151_s17, %s7228_s28  ;;  %p7233_p13 = scmp.lt.u32.totalorder %s9151_s17, %s9553_s5 }
 0xa7d   : > { %p7234_p8 = scmp.lt.u32.totalorder %s7232_s7, %s7228_s28  ;;  %p7236_p9 = scmp.lt.u32.totalorder %s7228_s28, %s9151_s17 }
 0xa7e   : > { %p7230_p11 = pnand %p7229_p10, %p9549_p1 }
 0xa7f   : > { %p7235_p7 = por %p7234_p8, %p7233_p13 }
 0xa80   : > { %p7231_p12 = pneg %p7230_p11 }
 0xa81   : > { %p7237_p4 = por %p7236_p9, %p7235_p7 }
 0xa83   : > { %p7238_p3 = pnand %p7237_p4, %p7231_p12 }
 0xa85   : > { %7241 = shalt.err (!%p7238_p3)
}
 0xa86   : > { %6172 = dma.vmem_to_hbm [thread:$0]  (%p9549_p1), %s9154_s6, 2048, %s9151_s17, %s5101_s11, %s9552_s14, %s9552_s14, %s7380_s1  }
 0xa87   : > { %s9554_s30 = sld [smem:[#allocation67_spill]]  ;;  %s5199_s0 = sshll.u32 %s8212_s23, 4  ;;  %s9190_s0 = int_to_ptr.vmem [resolvable:$true] %s5199_s0 }
 0xa88   : > { %s7242_s7 = scalar_lea.vmem %s9190_s0, 2048  ;;  %s7383_s8 = smov [#allocation23]  }
 0xa89   : > { %p7243_p0 = scmp.ne.s32.totalorder %s9190_s0, %s7242_s7  ;;  %s7246_s15 = sshll.u32 %s7383_s8, 4  ;;  %s7247_s15 = int_to_ptr.vmem [resolvable:$false] %s7246_s15 }
 0xa8a   : > { %s7248_s17 = scalar_lea.vmem %s7247_s15, 4096  ;;  %p7249_p5 = scmp.lt.s32.totalorder %s9190_s0, %s7247_s15 }
 0xa8b   : > { %p7244_p2 = pnand %p7243_p0, %p9549_p1  ;;  %p7250_p10 = scmp.lt.s32.totalorder %s7248_s17, %s7242_s7 }
 0xa8d   : > { %s9187_s28 = scalar_lea.hbm %s9554_s30, %s9069_s19  ;;  %p7245_p6 = pneg %p7244_p2 }
 0xa8e   : > { %p7251_p11 = por %p7250_p10, %p7249_p5 }
 0xa90   : > { %p7252_p12 = pnand %p7251_p11, %p7245_p6 }
 0xa92   : > { %7255 = shalt.err (!%p7252_p12)
}
 0xa93   : > { %s7256_s23 = scalar_lea.hbm %s9187_s28, 2048  ;;  %s7260_s11 = scalar_lea.hbm %s9554_s30, 4096 }
 0xa94   : > { %p7257_p13 = scmp.ne.s32.totalorder %s9187_s28, %s7256_s23  ;;  %p7261_p9 = scmp.lt.u32.totalorder %s9187_s28, %s9554_s30 }
 0xa95   : > { %p7262_p4 = scmp.lt.u32.totalorder %s7260_s11, %s7256_s23  ;;  %p7264_p0 = scmp.lt.u32.totalorder %s7256_s23, %s9187_s28 }
 0xa96   : > { %p7258_p8 = pnand %p7257_p13, %p9549_p1 }
 0xa97   : > { %p7263_p3 = por %p7262_p4, %p7261_p9 }
 0xa98   : > { %p7259_p7 = pneg %p7258_p8 }
 0xa99   : > { %p7265_p2 = por %p7264_p0, %p7263_p3 }
 0xa9b   : > { %p7266_p6 = pnand %p7265_p2, %p7259_p7 }
 0xa9d   : > { %7269 = shalt.err (!%p7266_p6)
}
 0xa9e   : > { %6176 = dma.vmem_to_hbm [thread:$0]  (%p9549_p1), %s9190_s0, 2048, %s9187_s28, %s9120_s10, %s9552_s14, %s9552_s14, %s7380_s1   ;;  %v4656_v51 = vpop.xlane.xlu0 %4655  ;;  %v4661_v53 = vpop.xlane.xlu1 %4660 }
 0xa9f   : > { %6872 = vrcp.f32 %v4656_v51  ;;  %s9555_s10 = sshll.u32 %s7831_s12, 8  ;;  %s5879_s12 = sshll.u32 %s7518_s29, 12 }
 0xaa0   : > { %6874 = vrcp.f32 %v4661_v53  ;;  %s9227_s1 = scalar_lea.vmem [#allocation20], %s9555_s10  ;;  %s9569_s7 = sld [smem:[#allocation65_spill]] }
 0xaa1   : > { %s5167_s14 = sshll.u32 %s9227_s1, 4  ;;  %s7384_s15 = smov [#allocation20]   ;;  %s9322_s14 = int_to_ptr.vmem [resolvable:$true] %s5167_s14 }
 0xaa2   : > { %v4666_v29 = vpop.xlane.xlu0 %4665  ;;  %s7270_s29 = scalar_lea.vmem %s9322_s14, 4096  ;;  %s7274_s17 = sshll.u32 %s7384_s15, 4  ;;  %s7275_s17 = int_to_ptr.vmem [resolvable:$false] %s7274_s17 }
 0xaa3   : > { %6876 = vrcp.f32 %v4666_v29  ;;  %v4671_v22 = vpop.xlane.xlu1 %4670  ;;  %p7271_p5 = scmp.ne.s32.totalorder %s9322_s14, %s7270_s29  ;;  %s7276_s23 = scalar_lea.vmem %s7275_s17, 8192 }
 0xaa4   : > { %6878 = vrcp.f32 %v4671_v22  ;;  %p7277_p12 = scmp.lt.s32.totalorder %s9322_s14, %s7275_s17  ;;  %p7278_p13 = scmp.lt.s32.totalorder %s7276_s23, %s7270_s29 }
 0xaa5   : > { %p7272_p10 = pnand %p7271_p5, %p9549_p1 }
 0xaa6   : > { %s9320_s8 = scalar_lea.hbm %s9569_s7, %s5879_s12  ;;  %p7279_p8 = por %p7278_p13, %p7277_p12 }
 0xaa7   : > { %p7273_p11 = pneg %p7272_p10 }
 0xaa9   : > { %v6873_v15 = vpop.eup %6872  ;;  %p7280_p7 = pnand %p7279_p8, %p7273_p11 }
 0xaaa   : > { %v4748_v23 = vmul.f32 %v6873_v15, %v8827_v19  ;;  %v4749_v1 = vmul.f32 %v6873_v15, %v8829_v58  ;;  %v4750_v47 = vmul.f32 %v6873_v15, %v8831_v4  ;;  %v4751_v45 = vmul.f32 %v6873_v15, %v8836_v6  ;;  %v6875_v9 = vpop.eup %6874  ;;  %v4676_v19 = vpop.xlane.xlu0 %4675 }
 0xaab   : > { %v4752_v51 = vmul.f32 %v6875_v9, %v8841_v27  ;;  %v4753_v53 = vmul.f32 %v6875_v9, %v8843_v37  ;;  %v4754_v29 = vmul.f32 %v6875_v9, %v8847_v32  ;;  %v4755_v62 = vmul.f32 %v6875_v9, %v8852_v24  ;;  %v4681_v27 = vpop.xlane.xlu1 %4680 }
 0xaac   : > { %v5844_v33 = vpack.c.bf16 %v4749_v1, %v4748_v23  ;;  %v5845_v11 = vpack.c.bf16 %v4751_v45, %v4750_v47  ;;  %6880 = vrcp.f32 %v4676_v19 }
 0xaad   : > { %v5846_v58 = vpack.c.bf16 %v4753_v53, %v4752_v51  ;;  %v5847_v4 = vpack.c.bf16 %v4755_v62, %v4754_v29  ;;  %v6877_v6 = vpop.eup %6876  ;;  %6882 = vrcp.f32 %v4681_v27 }
 0xaae   : > { %5036 = vst [vmem:[%s9227_s1] sm:$0xff] %v5844_v33  ;;  %5037 = vst [vmem:[%s9227_s1 + $0x8] sm:$0xff] %v5845_v11  ;;  %v4756_v37 = vmul.f32 %v6877_v6, %v8856_v56  ;;  %v4757_v32 = vmul.f32 %v6877_v6, %v8859_v12  ;;  %v4758_v24 = vmul.f32 %v6877_v6, %v8862_v5  ;;  %v6879_v9 = vpop.eup %6878 }
 0xaaf   : > { %5038 = vst [vmem:[%s9227_s1 + $0x10] sm:$0xff] %v5846_v58  ;;  %5039 = vst [vmem:[%s9227_s1 + $0x18] sm:$0xff] %v5847_v4  ;;  %v4759_v1 = vmul.f32 %v6877_v6, %v8867_v41  ;;  %v4760_v62 = vmul.f32 %v6879_v9, %v8873_v43  ;;  %v4761_v45 = vmul.f32 %v6879_v9, %v8875_v49 }
 0xab0   : > { %v5848_v11 = vpack.c.bf16 %v4757_v32, %v4756_v37  ;;  %v4762_v56 = vmul.f32 %v6879_v9, %v8879_v3  ;;  %v4763_v12 = vmul.f32 %v6879_v9, %v8884_v40  ;;  %v4686_v47 = vpop.xlane.xlu0 %4685 }
 0xab1   : > { %v5849_v33 = vpack.c.bf16 %v4759_v1, %v4758_v24  ;;  %6884 = vrcp.f32 %v4686_v47  ;;  %v5850_v5 = vpack.c.bf16 %v4761_v45, %v4760_v62  ;;  %v9556_v62 = vld [vmem:[#allocation33_spill] sm:$0xff] }
 0xab2   : > { %5040 = vst [vmem:[%s9227_s1 + $0x20] sm:$0xff] %v5848_v11  ;;  %v5851_v41 = vpack.c.bf16 %v4763_v12, %v4762_v56  ;;  %v9557_v56 = vld [vmem:[#allocation35_spill] sm:$0xff] }
 0xab3   : > { %5041 = vst [vmem:[%s9227_s1 + $0x28] sm:$0xff] %v5849_v33  ;;  %v4691_v22 = vpop.xlane.xlu1 %4690  ;;  %5042 = vst [vmem:[%s9227_s1 + $0x30] sm:$0xff] %v5850_v5 }
 0xab4   : > { %5043 = vst [vmem:[%s9227_s1 + $0x38] sm:$0xff] %v5851_v41  ;;  %6886 = vrcp.f32 %v4691_v22 }
 0xab6   : > { %v6881_v15 = vpop.eup %6880 }
 0xab7   : > { %v4764_v23 = vmul.f32 %v6881_v15, %v8888_v44  ;;  %v4765_v43 = vmul.f32 %v6881_v15, %v8891_v14  ;;  %v4766_v49 = vmul.f32 %v6881_v15, %v8894_v38  ;;  %v4767_v3 = vmul.f32 %v6881_v15, %v8899_v42  ;;  %v6883_v53 = vpop.eup %6882 }
 0xab8   : > { %v4768_v29 = vmul.f32 %v6883_v53, %v8905_v48  ;;  %v4769_v19 = vmul.f32 %v6883_v53, %v8907_v52  ;;  %v4770_v44 = vmul.f32 %v6883_v53, %v8911_v0  ;;  %v4771_v14 = vmul.f32 %v6883_v53, %v8916_v28  ;;  %v4696_v58 = vpop.xlane.xlu0 %4695 }
 0xab9   : > { %v5852_v40 = vpack.c.bf16 %v4765_v43, %v4764_v23  ;;  %v5853_v51 = vpack.c.bf16 %v4767_v3, %v4766_v49  ;;  %6888 = vrcp.f32 %v4696_v58  ;;  %v9558_v23 = vld [vmem:[#allocation32_spill] sm:$0xff] }
 0xaba   : > { %v5854_v38 = vpack.c.bf16 %v4769_v19, %v4768_v29  ;;  %v5855_v42 = vpack.c.bf16 %v4771_v14, %v4770_v44 }
 0xabb   : > { %5044 = vst [vmem:[%s9227_s1 + $0x40] sm:$0xff] %v5852_v40  ;;  %5045 = vst [vmem:[%s9227_s1 + $0x48] sm:$0xff] %v5853_v51  ;;  %v6885_v4 = vpop.eup %6884  ;;  %v4701_v6 = vpop.xlane.xlu1 %4700  ;;  %v9559_v51 = vld [vmem:[#allocation34_spill] sm:$0xff] }
 0xabc   : > { %5046 = vst [vmem:[%s9227_s1 + $0x50] sm:$0xff] %v5854_v38  ;;  %5047 = vst [vmem:[%s9227_s1 + $0x58] sm:$0xff] %v5855_v42  ;;  %v4772_v27 = vmul.f32 %v6885_v4, %v8920_v20  ;;  %v4773_v48 = vmul.f32 %v6885_v4, %v8923_v61  ;;  %v4774_v52 = vmul.f32 %v6885_v4, %v8926_v17  ;;  %6890 = vrcp.f32 %v4701_v6 }
 0xabd   : > { %v4775_v0 = vmul.f32 %v6885_v4, %v8931_v55 }
 0xabe   : > { %v5856_v28 = vpack.c.bf16 %v4773_v48, %v4772_v27  ;;  %v6887_v32 = vpop.eup %6886 }
 0xabf   : > { %v5857_v37 = vpack.c.bf16 %v4775_v0, %v4774_v52  ;;  %v4776_v24 = vmul.f32 %v6887_v32, %v8937_v57  ;;  %v4777_v1 = vmul.f32 %v6887_v32, %v8939_v10  ;;  %v4778_v20 = vmul.f32 %v6887_v32, %v8943_v60 }
 0xac0   : > { %5048 = vst [vmem:[%s9227_s1 + $0x60] sm:$0xff] %v5856_v28  ;;  %v4779_v61 = vmul.f32 %v6887_v32, %v8948_v26  ;;  %v4706_v11 = vpop.xlane.xlu0 %4705  ;;  %v9561_v32 = vld [vmem:[#allocation37_spill] sm:$0xff] }
 0xac1   : > { %5049 = vst [vmem:[%s9227_s1 + $0x68] sm:$0xff] %v5857_v37  ;;  %6892 = vrcp.f32 %v4706_v11  ;;  %v5858_v17 = vpack.c.bf16 %v4777_v1, %v4776_v24  ;;  %v9562_v1 = vld [vmem:[#allocation38_spill] sm:$0xff] }
 0xac2   : > { %v5859_v55 = vpack.c.bf16 %v4779_v61, %v4778_v20  ;;  %v9563_v20 = vld [vmem:[#allocation39_spill] sm:$0xff] }
 0xac3   : > { %v6889_v33 = vpop.eup %6888  ;;  %v4711_v9 = vpop.xlane.xlu1 %4710  ;;  %5050 = vst [vmem:[%s9227_s1 + $0x70] sm:$0xff] %v5858_v17 }
 0xac4   : > { %5051 = vst [vmem:[%s9227_s1 + $0x78] sm:$0xff] %v5859_v55  ;;  %v4780_v45 = vmul.f32 %v6889_v33, %v9556_v62  ;;  %v4781_v57 = vmul.f32 %v6889_v33, %v9557_v56  ;;  %v4782_v10 = vmul.f32 %v6889_v33, %v8958_v7  ;;  %v4783_v60 = vmul.f32 %v6889_v33, %v8963_v39  ;;  %v9565_v33 = vld [vmem:[#allocation40_spill] sm:$0xff]  ;;  %v9566_v62 = vld [vmem:[#allocation42_spill] sm:$0xff]  ;;  %v9567_v56 = vld [vmem:[#allocation43_spill] sm:$0xff] }
 0xac5   : > { %6894 = vrcp.f32 %v4711_v9 }
 0xac6   : > { %v5860_v26 = vpack.c.bf16 %v4781_v57, %v4780_v45  ;;  %v5861_v12 = vpack.c.bf16 %v4783_v60, %v4782_v10  ;;  %v4716_v47 = vpop.xlane.xlu0 %4715  ;;  %v6891_v5 = vpop.eup %6890  ;;  %v9568_v10 = vld [vmem:[#allocation44_spill] sm:$0xff] }
 0xac7   : > { %6896 = vrcp.f32 %v4716_v47  ;;  %v4784_v41 = vmul.f32 %v6891_v5, %v8969_v54  ;;  %v4785_v15 = vmul.f32 %v6891_v5, %v8971_v63  ;;  %v4786_v22 = vmul.f32 %v6891_v5, %v8975_v18 }
 0xac8   : > { %5052 = vst [vmem:[%s9227_s1 + $0x80] sm:$0xff] %v5860_v26  ;;  %5053 = vst [vmem:[%s9227_s1 + $0x88] sm:$0xff] %v5861_v12  ;;  %v4787_v7 = vmul.f32 %v6891_v5, %v9558_v23 }
 0xac9   : > { %v5862_v43 = vpack.c.bf16 %v4785_v15, %v4784_v41 }
 0xaca   : > { %v5863_v39 = vpack.c.bf16 %v4787_v7, %v4786_v22  ;;  %v4721_v49 = vpop.xlane.xlu1 %4720 }
 0xacb   : > { %v6893_v3 = vpop.eup %6892  ;;  %6898 = vrcp.f32 %v4721_v49  ;;  %5054 = vst [vmem:[%s9227_s1 + $0x90] sm:$0xff] %v5862_v43 }
 0xacc   : > { %5055 = vst [vmem:[%s9227_s1 + $0x98] sm:$0xff] %v5863_v39  ;;  %v4788_v40 = vmul.f32 %v6893_v3, %v8984_v35  ;;  %v4789_v53 = vmul.f32 %v6893_v3, %v9559_v51  ;;  %v4790_v54 = vmul.f32 %v6893_v3, %v8990_v59  ;;  %v4791_v63 = vmul.f32 %v6893_v3, %v8995_v16 }
 0xace   : > { %v5864_v18 = vpack.c.bf16 %v4789_v53, %v4788_v40  ;;  %v5865_v29 = vpack.c.bf16 %v4791_v63, %v4790_v54  ;;  %v4726_v19 = vpop.xlane.xlu0 %4725 }
 0xacf   : > { %v6895_v44 = vpop.eup %6894  ;;  %6900 = vrcp.f32 %v4726_v19 }
 0xad0   : > { %5056 = vst [vmem:[%s9227_s1 + $0xa0] sm:$0xff] %v5864_v18  ;;  %5057 = vst [vmem:[%s9227_s1 + $0xa8] sm:$0xff] %v5865_v29  ;;  %v4792_v14 = vmul.f32 %v6895_v44, %v9001_v50  ;;  %v4793_v58 = vmul.f32 %v6895_v44, %v9003_v36  ;;  %v4794_v35 = vmul.f32 %v6895_v44, %v9007_v30 }
 0xad1   : > { %v4795_v59 = vmul.f32 %v6895_v44, %v9012_v8  ;;  %v6897_v38 = vpop.eup %6896 }
 0xad2   : > { %v5866_v16 = vpack.c.bf16 %v4793_v58, %v4792_v14  ;;  %v4796_v4 = vmul.f32 %v6897_v38, %v9016_v46  ;;  %v4797_v6 = vmul.f32 %v6897_v38, %v9019_v31  ;;  %v4731_v27 = vpop.xlane.xlu1 %4730  ;;  %v4798_v48 = vmul.f32 %v6897_v38, %v9022_v21  ;;  %v9560_v21 = vld [vmem:[#allocation36_spill] sm:$0xff] }
 0xad3   : > { %v5867_v42 = vpack.c.bf16 %v4795_v59, %v4794_v35  ;;  %v4799_v50 = vmul.f32 %v6897_v38, %v9026_v13  ;;  %6902 = vrcp.f32 %v4731_v27 }
 0xad4   : > { %5058 = vst [vmem:[%s9227_s1 + $0xb0] sm:$0xff] %v5866_v16  ;;  %v5868_v36 = vpack.c.bf16 %v4797_v6, %v4796_v4 }
 0xad5   : > { %5059 = vst [vmem:[%s9227_s1 + $0xb8] sm:$0xff] %v5867_v42  ;;  %v6899_v30 = vpop.eup %6898  ;;  %v5869_v8 = vpack.c.bf16 %v4799_v50, %v4798_v48 }
 0xad6   : > { %5060 = vst [vmem:[%s9227_s1 + $0xc0] sm:$0xff] %v5868_v36  ;;  %v4800_v52 = vmul.f32 %v6899_v30, %v9029_v34  ;;  %v4801_v46 = vmul.f32 %v6899_v30, %v9032_v25  ;;  %v4802_v31 = vmul.f32 %v6899_v30, %v9034_v2  ;;  %v4803_v0 = vmul.f32 %v6899_v30, %v9560_v21  ;;  %v9564_v25 = vld [vmem:[#allocation41_spill] sm:$0xff] }
 0xad7   : > { %5061 = vst [vmem:[%s9227_s1 + $0xc8] sm:$0xff] %v5869_v8 }
 0xad8   : > { %v5870_v13 = vpack.c.bf16 %v4801_v46, %v4800_v52  ;;  %v5871_v28 = vpack.c.bf16 %v4803_v0, %v4802_v31 }
 0xad9   : > { %v6901_v37 = vpop.eup %6900 }
 0xada   : > { %5062 = vst [vmem:[%s9227_s1 + $0xd0] sm:$0xff] %v5870_v13  ;;  %5063 = vst [vmem:[%s9227_s1 + $0xd8] sm:$0xff] %v5871_v28  ;;  %v4804_v24 = vmul.f32 %v6901_v37, %v9561_v32  ;;  %v4805_v34 = vmul.f32 %v6901_v37, %v9562_v1  ;;  %v4806_v61 = vmul.f32 %v6901_v37, %v9563_v20 }
 0xadb   : > { %v4807_v11 = vmul.f32 %v6901_v37, %v9564_v25 }
 0xadc   : > { %v5872_v2 = vpack.c.bf16 %v4805_v34, %v4804_v24 }
 0xadd   : > { %v5873_v17 = vpack.c.bf16 %v4807_v11, %v4806_v61  ;;  %v6903_v55 = vpop.eup %6902 }
 0xade   : > { %5064 = vst [vmem:[%s9227_s1 + $0xe0] sm:$0xff] %v5872_v2  ;;  %v4808_v9 = vmul.f32 %v6903_v55, %v9565_v33  ;;  %v4809_v45 = vmul.f32 %v6903_v55, %v9566_v62  ;;  %v4810_v57 = vmul.f32 %v6903_v55, %v9567_v56  ;;  %v4811_v60 = vmul.f32 %v6903_v55, %v9568_v10 }
 0xadf   : > { %5065 = vst [vmem:[%s9227_s1 + $0xe8] sm:$0xff] %v5873_v17 }
 0xae0   : > { %v5874_v26 = vpack.c.bf16 %v4809_v45, %v4808_v9  ;;  %v5875_v12 = vpack.c.bf16 %v4811_v60, %v4810_v57 }
 0xae2   : > { %5066 = vst [vmem:[%s9227_s1 + $0xf0] sm:$0xff] %v5874_v26  ;;  %5067 = vst [vmem:[%s9227_s1 + $0xf8] sm:$0xff] %v5875_v12 }
 0xae3   : > { %7283 = shalt.err (!%p7280_p7)
}
 0xae4   : > { %s7284_s19 = scalar_lea.hbm %s9320_s8, 4096  ;;  %s7288_s21 = scalar_lea.hbm %s9569_s7, 8192 }
 0xae5   : > { %p7285_p9 = scmp.ne.s32.totalorder %s9320_s8, %s7284_s19  ;;  %p7289_p0 = scmp.lt.u32.totalorder %s9320_s8, %s9569_s7 }
 0xae6   : > { %p7290_p2 = scmp.lt.u32.totalorder %s7288_s21, %s7284_s19  ;;  %p7292_p5 = scmp.lt.u32.totalorder %s7284_s19, %s9320_s8 }
 0xae7   : > { %p7286_p4 = pnand %p7285_p9, %p9549_p1 }
 0xae8   : > { %p7291_p6 = por %p7290_p2, %p7289_p0 }
 0xae9   : > { %p7287_p3 = pneg %p7286_p4 }
 0xaea   : > { %p7293_p10 = por %p7292_p5, %p7291_p6 }
 0xaec   : > { %p7294_p11 = pnand %p7293_p10, %p7287_p3 }
 0xaee   : > { %7297 = shalt.err (!%p7294_p11)
}
 0xaef   : > { %s7385_s1 = smov 256   ;;  %s7386_s12 = smov 16  }
 0xaf0   : > { %6174 = dma.vmem_to_hbm [thread:$0]  (%p9549_p1), %s9322_s14, 4096, %s9320_s8, %s9082_s13, %s7385_s1, %s7385_s1, %s7386_s12  }
 0xaf1 PF: > { %s5214_s28 = sand.u32 1, %s7348_s2   ;;  %p9570_p12 = scmp.ne.s32.totalorder %s9487_s9, 0 }
 0xaf2   : > { %p9571_p13 = scmp.ge.s32.totalorder %s7360_s27, 2  ;;  %s5215_s0 = scalar_lea.sflag [#allocation4], %s5214_s28 }
 0xaf4   : > { %p6212_p8 = pnand %p9571_p13, %p9570_p12 }
 0xaf6   : > { %7335 = dma.done.wait (!%p6212_p8), %s5215_s0, 2048  }
 0xaf7   : > { %7337 = vsyncadd (!%p6212_p8), %s5215_s0, 4294965248  ;;  %s9572_s29 = sadd.s32 4294967294, %s7360_s27  }
 0xaf8   : > { %s5223_s15 = sand.u32 1, %s9572_s29  }
 0xaf9   : > { %s5224_s17 = scalar_lea.sflag [#allocation19], %s5223_s15 }
 0xafa   : > { %7339 = dma.done.wait (!%p6212_p8), %s5224_s17, 6144  }
 0xafb   : > { %7341 = vsyncadd (!%p6212_p8), %s5224_s17, 4294961152  ;;  %s5242_s23 = scalar_lea.sflag [#allocation22], %s5223_s15 }
 0xafc   : > { %7343 = dma.done.wait (!%p6212_p8), %s5242_s23, 4096  }
 0xafd   : > { %7345 = vsyncadd (!%p6212_p8), %s5242_s23, 4294963200  ;;  %p45_p1 = scmp.ge.s32.totalorder %s7747_s4, 4   ;;  %s9573_s2 = smov %s7352_s25 }
 0xafe   : > { %s9574_s25 = smov %s7356_s26  ;;  %s9575_s26 = smov %s7758_s16 }
 0xaff   : > { %s9576_s27 = smov %s7747_s4  ;;  %47 = sbr.rel (!%p45_p1) target bundleno = 36 (0x24), region = 229 }
 0xb06   :  { %5256 = vsyncpa [#allocation3], 1 }
 0xb07   :  { %5258 = vsyncpa [#allocation3 + $0x1], 1 }
 0xb08   :  { %5259 = vsyncpa [#allocation6], 1 }
 0xb09   :  { %5260 = vsyncpa [#allocation9], 1 }
 0xb0a   :  { %5261 = vsyncpa [#allocation12], 1 }
 0xb0b   :  { %5262 = vsyncpa [#allocation15], 1 }
 0xb0c   :  { %5263 = vsyncpa [#allocation4], 1 }
 0xb0d   :  { %5265 = vsyncpa [#allocation4 + $0x1], 1 }
 0xb0e   :  { %5266 = vsyncpa [#allocation19], 1 }
 0xb0f   :  { %5268 = vsyncpa [#allocation19 + $0x1], 1 }
 0xb10   :  { %5269 = vsyncpa [#allocation22], 1 }
 0xb11   :  { %5271 = vsyncpa [#allocation22 + $0x1], 1 }

</bundles_post_ra>
